<compile_context>
chip_gen: v5e
topology: v5e:2x2
jax: 0.10.0
libtpu: 0.0.40
codegen_flags: <defaults>
</compile_context>

<pallas_src>
import functools

import jax
import jax.numpy as jnp
from jax import lax
from jax.experimental import pallas as pl
from jax.experimental.pallas import tpu as pltpu


def lstm_kernel(xproj_ref, whh1_ref, w2_ref, b2_ref, h2_ref, *, unroll_time):
    """Per-batch-block 2-layer LSTM recurrence; emits last-step h2 (lane-dense).

    xproj_ref: (T, Bblk, 4H)  precomputed  x_t @ W_ih1 + b1  (time-major, matmul dtype)
    whh1_ref : (H, 4H)        layer-1 recurrent weights (matmul dtype)
    w2_ref   : (2H, 4H)       concat([W_ih2, W_hh2], axis=0) (matmul dtype)
    b2_ref   : (1, 4H)        bias_ih2 + bias_hh2 (f32)
    h2_ref   : (Bblk, H)      output: h2 at the last timestep (f32, lane-dense)
    """
    T = xproj_ref.shape[0]
    Bblk = xproj_ref.shape[1]
    G4 = xproj_ref.shape[2]
    H = G4 // 4
    mm_dtype = whh1_ref.dtype

    # Hoist weight loads / bias broadcast out of the time loop.
    whh1 = whh1_ref[...]
    w2 = w2_ref[...]
    b2 = jnp.broadcast_to(b2_ref[...], (Bblk, G4)).astype(jnp.float32)

    def fast_sigmoid(x):
        # One EUP push (tanh) instead of exp + reciprocal.
        return 0.5 * jnp.tanh(0.5 * x) + 0.5

    def gates_to_hc(gates, c_prev):
        # H == 128 -> each slice is a whole 128-lane block (no masked-lane ops).
        i = fast_sigmoid(gates[:, 0 * H:1 * H])
        f = fast_sigmoid(gates[:, 1 * H:2 * H])
        g = jnp.tanh(gates[:, 2 * H:3 * H])
        o = fast_sigmoid(gates[:, 3 * H:4 * H])
        c_new = f * c_prev + i * g            # cell update kept in f32
        h_new = o * jnp.tanh(c_new)
        return h_new, c_new

    def step(t, state):
        h1, c1, h2, c2 = state
        # Layer 1: recurrent matmul only (input projection precomputed), f32 accumulate.
        g1 = xproj_ref[t].astype(jnp.float32) + jnp.dot(
            h1.astype(mm_dtype), whh1, preferred_element_type=jnp.float32)
        h1, c1 = gates_to_hc(g1, c1)
        # Layer 2: fused [h1 | h2] @ [W_ih2; W_hh2] (one K=2H MXU pass on v6e/v7x).
        xh = jnp.concatenate([h1, h2], axis=-1).astype(mm_dtype)
        g2 = jnp.dot(xh, w2, preferred_element_type=jnp.float32) + b2
        h2, c2 = gates_to_hc(g2, c2)
        return h1, c1, h2, c2

    # State lives in loop carries; zero init (PyTorch default h0 = c0 = 0).
    zeros = jnp.zeros((Bblk, H), jnp.float32)
    state = (zeros, zeros, zeros, zeros)

    if unroll_time:
        # Small batch block: fully unrolled so the LLO scheduler interleaves MXU/EUP/VPU
        # work across adjacent timesteps.
        for t in range(T):
            state = step(t, state)
    else:
        # Large batch block: bound live ranges (4 states + live gates would otherwise
        # exhaust the 64-vreg file and spill).
        state = lax.fori_loop(0, T, step, state, unroll=2)

    h2_ref[...] = state[2]


def _pick_batch_block(B, max_blk=64):
    """Pad B to a sublane-group multiple; pick the largest batch block <= max_blk that
    still leaves >= 2 grid blocks once the padded batch exceeds 8 (v7x megacore)."""
    Bpad = -(-B // 8) * 8
    Bblk = 8
    for cand in (64, 32, 16, 8):
        if cand <= max_blk and Bpad % cand == 0 and (Bpad // cand >= 2 or Bpad <= 8):
            Bblk = cand
            break
    return Bblk, Bpad // Bblk, Bpad


def init_params(key, vocab_size, embedding_dim, unit_num):
    E, H = embedding_dim, unit_num
    ks = jax.random.split(key, 12)
    s = 1.0 / jnp.sqrt(jnp.float32(H))

    def u(k, shape):
        return jax.random.uniform(k, shape, jnp.float32, -s, s)

    return {
        "embedding": jax.random.normal(ks[0], (vocab_size, E), jnp.float32),
        # layer 1: input E -> hidden H          (weights pre-transposed to (in, 4H))
        "wih1": u(ks[1], (E, 4 * H)),
        "whh1": u(ks[2], (H, 4 * H)),
        "b1":   u(ks[3], (1, 4 * H)) + u(ks[4], (1, 4 * H)),    # bias_ih + bias_hh
        # layer 2: input H -> hidden H
        "wih2": u(ks[5], (H, 4 * H)),
        "whh2": u(ks[6], (H, 4 * H)),
        "b2":   u(ks[7], (1, 4 * H)) + u(ks[8], (1, 4 * H)),
        # final linear H -> 1 (applied lane-dense in the wrapper)
        "wlin": u(ks[9], (1, H)),
        "blin": u(ks[10], (1, 1)),
    }


@functools.partial(jax.jit, static_argnames=("matmul_dtype",))
def lstm_forward(x_ids, params, matmul_dtype=jnp.bfloat16):
    # Embedding gather (data-dependent row gather) stays in plain JAX glue.
    emb = jnp.take(params["embedding"], x_ids, axis=0).astype(jnp.float32)   # (B, T, E)
    B, T, _ = emb.shape
    H = params["whh1"].shape[0]

    # One big input-projection matmul with the bias folded in, time-major output.
    x_proj = jnp.einsum("bte,eg->tbg", emb, params["wih1"]) + params["b1"]   # (T, B, 4H)

    # Batch padding + block selection (sublane alignment / megacore sharding).
    Bblk, grid_b, Bpad = _pick_batch_block(B)
    if Bpad != B:
        x_proj = jnp.pad(x_proj, ((0, 0), (0, Bpad - B), (0, 0)))

    # Fused layer-2 weights -> one matmul per step; MXU operands in matmul_dtype
    # (bf16 fast path on v6e/v7x), accumulation stays f32 inside the kernel.
    w2 = jnp.concatenate([params["wih2"], params["whh2"]], axis=0)           # (2H, 4H)
    x_proj = x_proj.astype(matmul_dtype)
    whh1 = params["whh1"].astype(matmul_dtype)
    w2 = w2.astype(matmul_dtype)

    kernel = functools.partial(lstm_kernel, unroll_time=(Bblk <= 16))

    h2_last = pl.pallas_call(
        kernel,
        out_shape=jax.ShapeDtypeStruct((Bpad, H), jnp.float32),
        grid_spec=pltpu.PrefetchScalarGridSpec(
            num_scalar_prefetch=0,
            grid=(grid_b,),
            in_specs=[
                pl.BlockSpec((T, Bblk, 4 * H), lambda i: (0, i, 0)),   # x_proj (batch-blocked)
                pl.BlockSpec((H, 4 * H), lambda i: (0, 0)),            # whh1
                pl.BlockSpec((2 * H, 4 * H), lambda i: (0, 0)),        # w2 = [wih2; whh2]
                pl.BlockSpec((1, 4 * H), lambda i: (0, 0)),            # b2
            ],
            out_specs=pl.BlockSpec((Bblk, H), lambda i: (i, 0)),       # lane-dense output
        ),
        compiler_params=pltpu.CompilerParams(dimension_semantics=("parallel",)),
    )(x_proj, whh1, w2, params["b2"])

    h2_last = h2_last[:B]
    # Final H -> 1 linear + sigmoid moved to the wrapper (keeps the kernel output
    # lane-dense; this is a trivial XLA op).
    return jax.nn.sigmoid(h2_last @ params["wlin"].T + params["blin"])


def ref_forward(x_ids, params):
    """Pure-JAX reference (mirrors PyTorch nn.LSTM semantics, all f32)."""
    emb = jnp.take(params["embedding"], x_ids, axis=0)          # (B, T, E)
    B = emb.shape[0]
    H = params["whh1"].shape[0]

    def run_layer(inp, wih, whh, b):
        def step(carry, x_t):
            h, c = carry
            gates = x_t @ wih + h @ whh + b
            i = jax.nn.sigmoid(gates[:, :H])
            f = jax.nn.sigmoid(gates[:, H:2 * H])
            g = jnp.tanh(gates[:, 2 * H:3 * H])
            o = jax.nn.sigmoid(gates[:, 3 * H:])
            c = f * c + i * g
            h = o * jnp.tanh(c)
            return (h, c), h
        init = (jnp.zeros((B, H), jnp.float32), jnp.zeros((B, H), jnp.float32))
        _, hs = lax.scan(step, init, jnp.transpose(inp, (1, 0, 2)))
        return jnp.transpose(hs, (1, 0, 2))                     # (B, T, H)

    h1 = run_layer(emb, params["wih1"], params["whh1"], params["b1"])
    h2 = run_layer(h1, params["wih2"], params["whh2"], params["b2"])
    last = h2[:, -1, :]
    return jax.nn.sigmoid(last @ params["wlin"].T + params["blin"])


if __name__ == "__main__":
    # Small shapes consistent with the module (unit_num kept at 128 for lane alignment).
    VOCAB, E, T, H, B = 100, 64, 8, 128, 16

    key = jax.random.PRNGKey(0)
    k_param, k_ids = jax.random.split(key)
    params = init_params(k_param, VOCAB, E, H)
    x_ids = jax.random.randint(k_ids, (B, T), 0, VOCAB, dtype=jnp.int32)

    ref = ref_forward(x_ids, params)

    # f32 MXU operands: tight numerical check against the pure-JAX reference.
    out_f32 = jax.block_until_ready(lstm_forward(x_ids, params, matmul_dtype=jnp.float32))
    assert out_f32.shape == (B, 1)
    assert jnp.allclose(out_f32, ref, atol=1e-4, rtol=1e-4), (out_f32, ref)

    # bf16 MXU operands / f32 accumulate (v6e/v7x fast path): deliberately looser tolerance.
    out_bf16 = jax.block_until_ready(lstm_forward(x_ids, params, matmul_dtype=jnp.bfloat16))
    assert out_bf16.shape == (B, 1)
    assert jnp.allclose(out_bf16, ref, atol=3e-2, rtol=3e-2), (out_bf16, ref)

    print("KERNEL_OK")
</pallas_src>

<mosaic_0001>
module attributes {stable_mosaic.version = 11 : i64} {
  func.func @lstm_kernel(%arg0: i32, %arg1: memref<8x8x512xf32, #tpu.memory_space<vmem>>, %arg2: memref<128x512xf32, #tpu.memory_space<vmem>>, %arg3: memref<256x512xf32, #tpu.memory_space<vmem>>, %arg4: memref<1x512xf32, #tpu.memory_space<vmem>>, %arg5: memref<8x128xf32, #tpu.memory_space<vmem>>) attributes {dimension_semantics = [#tpu.dimension_semantics<parallel>], iteration_bounds = array<i64: 2>, scalar_prefetch = 0 : i64, scratch_operands = 0 : i64, tpu.core_type = #tpu.core_type<tc>, window_params = [{transform_indices = @transform_0, window_bounds = array<i64: 8, 8, 512>}, {pipeline_mode = #tpu.pipeline_mode<synchronous>, transform_indices = @transform_1, window_bounds = array<i64: 128, 512>}, {pipeline_mode = #tpu.pipeline_mode<synchronous>, transform_indices = @transform_2, window_bounds = array<i64: 256, 512>}, {pipeline_mode = #tpu.pipeline_mode<synchronous>, transform_indices = @transform_3, window_bounds = array<i64: 1, 512>}, {transform_indices = @transform_4, window_bounds = array<i64: 8, 128>}]} {
    %c0 = arith.constant 0 : index
    %c0_0 = arith.constant 0 : index
    %0 = vector.load %arg2[%c0, %c0_0] : memref<128x512xf32, #tpu.memory_space<vmem>>, vector<128x512xf32>
    %c0_1 = arith.constant 0 : index
    %c0_2 = arith.constant 0 : index
    %1 = vector.load %arg3[%c0_1, %c0_2] : memref<256x512xf32, #tpu.memory_space<vmem>>, vector<256x512xf32>
    %c0_3 = arith.constant 0 : index
    %c0_4 = arith.constant 0 : index
    %2 = vector.load %arg4[%c0_3, %c0_4] : memref<1x512xf32, #tpu.memory_space<vmem>>, vector<1x512xf32>
    %3 = vector.shape_cast %2 : vector<1x512xf32> to vector<1x512xf32>
    %4 = vector.broadcast %3 : vector<1x512xf32> to vector<8x512xf32>
    %cst = arith.constant 0.000000e+00 : f32
    %5 = vector.broadcast %cst : f32 to vector<8x128xf32>
    %c0_5 = arith.constant 0 : index
    %c0_6 = arith.constant 0 : index
    %c0_7 = arith.constant 0 : index
    %6 = vector.load %arg1[%c0_5, %c0_6, %c0_7] : memref<8x8x512xf32, #tpu.memory_space<vmem>>, vector<1x8x512xf32>
    %7 = vector.shape_cast %6 : vector<1x8x512xf32> to vector<8x512xf32>
    %cst_8 = arith.constant dense<0.000000e+00> : vector<8x512xf32>
    %8 = tpu.matmul %5, %0, %cst_8 {dimension_numbers = #tpu.dot_dimension_numbers<[1], [0], [0], [1], [0, 0, 1, 1], [], []>} : vector<8x128xf32>, vector<128x512xf32>, vector<8x512xf32> -> vector<8x512xf32>
    %9 = arith.addf %7, %8 : vector<8x512xf32>
    %10 = vector.extract_strided_slice %9 {offsets = [0, 0], sizes = [8, 128], strides = [1, 1]} : vector<8x512xf32> to vector<8x128xf32>
    %cst_9 = arith.constant 5.000000e-01 : f32
    %11 = vector.broadcast %cst_9 : f32 to vector<8x128xf32>
    %12 = arith.mulf %11, %10 : vector<8x128xf32>
    %13 = math.tanh %12 : vector<8x128xf32>
    %cst_10 = arith.constant 5.000000e-01 : f32
    %14 = vector.broadcast %cst_10 : f32 to vector<8x128xf32>
    %15 = arith.mulf %14, %13 : vector<8x128xf32>
    %cst_11 = arith.constant 5.000000e-01 : f32
    %16 = vector.broadcast %cst_11 : f32 to vector<8x128xf32>
    %17 = arith.addf %15, %16 : vector<8x128xf32>
    %18 = vector.extract_strided_slice %9 {offsets = [0, 128], sizes = [8, 128], strides = [1, 1]} : vector<8x512xf32> to vector<8x128xf32>
    %cst_12 = arith.constant 5.000000e-01 : f32
    %19 = vector.broadcast %cst_12 : f32 to vector<8x128xf32>
    %20 = arith.mulf %19, %18 : vector<8x128xf32>
    %21 = math.tanh %20 : vector<8x128xf32>
    %cst_13 = arith.constant 5.000000e-01 : f32
    %22 = vector.broadcast %cst_13 : f32 to vector<8x128xf32>
    %23 = arith.mulf %22, %21 : vector<8x128xf32>
    %cst_14 = arith.constant 5.000000e-01 : f32
    %24 = vector.broadcast %cst_14 : f32 to vector<8x128xf32>
    %25 = arith.addf %23, %24 : vector<8x128xf32>
    %26 = vector.extract_strided_slice %9 {offsets = [0, 256], sizes = [8, 128], strides = [1, 1]} : vector<8x512xf32> to vector<8x128xf32>
    %27 = math.tanh %26 : vector<8x128xf32>
    %28 = vector.extract_strided_slice %9 {offsets = [0, 384], sizes = [8, 128], strides = [1, 1]} : vector<8x512xf32> to vector<8x128xf32>
    %cst_15 = arith.constant 5.000000e-01 : f32
    %29 = vector.broadcast %cst_15 : f32 to vector<8x128xf32>
    %30 = arith.mulf %29, %28 : vector<8x128xf32>
    %31 = math.tanh %30 : vector<8x128xf32>
    %cst_16 = arith.constant 5.000000e-01 : f32
    %32 = vector.broadcast %cst_16 : f32 to vector<8x128xf32>
    %33 = arith.mulf %32, %31 : vector<8x128xf32>
    %cst_17 = arith.constant 5.000000e-01 : f32
    %34 = vector.broadcast %cst_17 : f32 to vector<8x128xf32>
    %35 = arith.addf %33, %34 : vector<8x128xf32>
    %36 = arith.mulf %25, %5 : vector<8x128xf32>
    %37 = arith.mulf %17, %27 : vector<8x128xf32>
    %38 = arith.addf %36, %37 : vector<8x128xf32>
    %39 = math.tanh %38 : vector<8x128xf32>
    %40 = arith.mulf %35, %39 : vector<8x128xf32>
    %41 = tpu.concatenate %40, %5 in 1 : vector<8x128xf32>, vector<8x128xf32> -> vector<8x256xf32>
    %cst_18 = arith.constant dense<0.000000e+00> : vector<8x512xf32>
    %42 = tpu.matmul %41, %1, %cst_18 {dimension_numbers = #tpu.dot_dimension_numbers<[1], [0], [0], [1], [0, 0, 1, 1], [], []>} : vector<8x256xf32>, vector<256x512xf32>, vector<8x512xf32> -> vector<8x512xf32>
    %43 = arith.addf %42, %4 : vector<8x512xf32>
    %44 = vector.extract_strided_slice %43 {offsets = [0, 0], sizes = [8, 128], strides = [1, 1]} : vector<8x512xf32> to vector<8x128xf32>
    %cst_19 = arith.constant 5.000000e-01 : f32
    %45 = vector.broadcast %cst_19 : f32 to vector<8x128xf32>
    %46 = arith.mulf %45, %44 : vector<8x128xf32>
    %47 = math.tanh %46 : vector<8x128xf32>
    %cst_20 = arith.constant 5.000000e-01 : f32
    %48 = vector.broadcast %cst_20 : f32 to vector<8x128xf32>
    %49 = arith.mulf %48, %47 : vector<8x128xf32>
    %cst_21 = arith.constant 5.000000e-01 : f32
    %50 = vector.broadcast %cst_21 : f32 to vector<8x128xf32>
    %51 = arith.addf %49, %50 : vector<8x128xf32>
    %52 = vector.extract_strided_slice %43 {offsets = [0, 128], sizes = [8, 128], strides = [1, 1]} : vector<8x512xf32> to vector<8x128xf32>
    %cst_22 = arith.constant 5.000000e-01 : f32
    %53 = vector.broadcast %cst_22 : f32 to vector<8x128xf32>
    %54 = arith.mulf %53, %52 : vector<8x128xf32>
    %55 = math.tanh %54 : vector<8x128xf32>
    %cst_23 = arith.constant 5.000000e-01 : f32
    %56 = vector.broadcast %cst_23 : f32 to vector<8x128xf32>
    %57 = arith.mulf %56, %55 : vector<8x128xf32>
    %cst_24 = arith.constant 5.000000e-01 : f32
    %58 = vector.broadcast %cst_24 : f32 to vector<8x128xf32>
    %59 = arith.addf %57, %58 : vector<8x128xf32>
    %60 = vector.extract_strided_slice %43 {offsets = [0, 256], sizes = [8, 128], strides = [1, 1]} : vector<8x512xf32> to vector<8x128xf32>
    %61 = math.tanh %60 : vector<8x128xf32>
    %62 = vector.extract_strided_slice %43 {offsets = [0, 384], sizes = [8, 128], strides = [1, 1]} : vector<8x512xf32> to vector<8x128xf32>
    %cst_25 = arith.constant 5.000000e-01 : f32
    %63 = vector.broadcast %cst_25 : f32 to vector<8x128xf32>
    %64 = arith.mulf %63, %62 : vector<8x128xf32>
    %65 = math.tanh %64 : vector<8x128xf32>
    %cst_26 = arith.constant 5.000000e-01 : f32
    %66 = vector.broadcast %cst_26 : f32 to vector<8x128xf32>
    %67 = arith.mulf %66, %65 : vector<8x128xf32>
    %cst_27 = arith.constant 5.000000e-01 : f32
    %68 = vector.broadcast %cst_27 : f32 to vector<8x128xf32>
    %69 = arith.addf %67, %68 : vector<8x128xf32>
    %70 = arith.mulf %59, %5 : vector<8x128xf32>
    %71 = arith.mulf %51, %61 : vector<8x128xf32>
    %72 = arith.addf %70, %71 : vector<8x128xf32>
    %73 = math.tanh %72 : vector<8x128xf32>
    %74 = arith.mulf %69, %73 : vector<8x128xf32>
    %c1 = arith.constant 1 : index
    %c0_28 = arith.constant 0 : index
    %c0_29 = arith.constant 0 : index
    %75 = vector.load %arg1[%c1, %c0_28, %c0_29] : memref<8x8x512xf32, #tpu.memory_space<vmem>>, vector<1x8x512xf32>
    %76 = vector.shape_cast %75 : vector<1x8x512xf32> to vector<8x512xf32>
    %cst_30 = arith.constant dense<0.000000e+00> : vector<8x512xf32>
    %77 = tpu.matmul %40, %0, %cst_30 {dimension_numbers = #tpu.dot_dimension_numbers<[1], [0], [0], [1], [0, 0, 1, 1], [], []>} : vector<8x128xf32>, vector<128x512xf32>, vector<8x512xf32> -> vector<8x512xf32>
    %78 = arith.addf %76, %77 : vector<8x512xf32>
    %79 = vector.extract_strided_slice %78 {offsets = [0, 0], sizes = [8, 128], strides = [1, 1]} : vector<8x512xf32> to vector<8x128xf32>
    %cst_31 = arith.constant 5.000000e-01 : f32
    %80 = vector.broadcast %cst_31 : f32 to vector<8x128xf32>
    %81 = arith.mulf %80, %79 : vector<8x128xf32>
    %82 = math.tanh %81 : vector<8x128xf32>
    %cst_32 = arith.constant 5.000000e-01 : f32
    %83 = vector.broadcast %cst_32 : f32 to vector<8x128xf32>
    %84 = arith.mulf %83, %82 : vector<8x128xf32>
    %cst_33 = arith.constant 5.000000e-01 : f32
    %85 = vector.broadcast %cst_33 : f32 to vector<8x128xf32>
    %86 = arith.addf %84, %85 : vector<8x128xf32>
    %87 = vector.extract_strided_slice %78 {offsets = [0, 128], sizes = [8, 128], strides = [1, 1]} : vector<8x512xf32> to vector<8x128xf32>
    %cst_34 = arith.constant 5.000000e-01 : f32
    %88 = vector.broadcast %cst_34 : f32 to vector<8x128xf32>
    %89 = arith.mulf %88, %87 : vector<8x128xf32>
    %90 = math.tanh %89 : vector<8x128xf32>
    %cst_35 = arith.constant 5.000000e-01 : f32
    %91 = vector.broadcast %cst_35 : f32 to vector<8x128xf32>
    %92 = arith.mulf %91, %90 : vector<8x128xf32>
    %cst_36 = arith.constant 5.000000e-01 : f32
    %93 = vector.broadcast %cst_36 : f32 to vector<8x128xf32>
    %94 = arith.addf %92, %93 : vector<8x128xf32>
    %95 = vector.extract_strided_slice %78 {offsets = [0, 256], sizes = [8, 128], strides = [1, 1]} : vector<8x512xf32> to vector<8x128xf32>
    %96 = math.tanh %95 : vector<8x128xf32>
    %97 = vector.extract_strided_slice %78 {offsets = [0, 384], sizes = [8, 128], strides = [1, 1]} : vector<8x512xf32> to vector<8x128xf32>
    %cst_37 = arith.constant 5.000000e-01 : f32
    %98 = vector.broadcast %cst_37 : f32 to vector<8x128xf32>
    %99 = arith.mulf %98, %97 : vector<8x128xf32>
    %100 = math.tanh %99 : vector<8x128xf32>
    %cst_38 = arith.constant 5.000000e-01 : f32
    %101 = vector.broadcast %cst_38 : f32 to vector<8x128xf32>
    %102 = arith.mulf %101, %100 : vector<8x128xf32>
    %cst_39 = arith.constant 5.000000e-01 : f32
    %103 = vector.broadcast %cst_39 : f32 to vector<8x128xf32>
    %104 = arith.addf %102, %103 : vector<8x128xf32>
    %105 = arith.mulf %94, %38 : vector<8x128xf32>
    %106 = arith.mulf %86, %96 : vector<8x128xf32>
    %107 = arith.addf %105, %106 : vector<8x128xf32>
    %108 = math.tanh %107 : vector<8x128xf32>
    %109 = arith.mulf %104, %108 : vector<8x128xf32>
    %110 = tpu.concatenate %109, %74 in 1 : vector<8x128xf32>, vector<8x128xf32> -> vector<8x256xf32>
    %cst_40 = arith.constant dense<0.000000e+00> : vector<8x512xf32>
    %111 = tpu.matmul %110, %1, %cst_40 {dimension_numbers = #tpu.dot_dimension_numbers<[1], [0], [0], [1], [0, 0, 1, 1], [], []>} : vector<8x256xf32>, vector<256x512xf32>, vector<8x512xf32> -> vector<8x512xf32>
    %112 = arith.addf %111, %4 : vector<8x512xf32>
    %113 = vector.extract_strided_slice %112 {offsets = [0, 0], sizes = [8, 128], strides = [1, 1]} : vector<8x512xf32> to vector<8x128xf32>
    %cst_41 = arith.constant 5.000000e-01 : f32
    %114 = vector.broadcast %cst_41 : f32 to vector<8x128xf32>
    %115 = arith.mulf %114, %113 : vector<8x128xf32>
    %116 = math.tanh %115 : vector<8x128xf32>
    %cst_42 = arith.constant 5.000000e-01 : f32
    %117 = vector.broadcast %cst_42 : f32 to vector<8x128xf32>
    %118 = arith.mulf %117, %116 : vector<8x128xf32>
    %cst_43 = arith.constant 5.000000e-01 : f32
    %119 = vector.broadcast %cst_43 : f32 to vector<8x128xf32>
    %120 = arith.addf %118, %119 : vector<8x128xf32>
    %121 = vector.extract_strided_slice %112 {offsets = [0, 128], sizes = [8, 128], strides = [1, 1]} : vector<8x512xf32> to vector<8x128xf32>
    %cst_44 = arith.constant 5.000000e-01 : f32
    %122 = vector.broadcast %cst_44 : f32 to vector<8x128xf32>
    %123 = arith.mulf %122, %121 : vector<8x128xf32>
    %124 = math.tanh %123 : vector<8x128xf32>
    %cst_45 = arith.constant 5.000000e-01 : f32
    %125 = vector.broadcast %cst_45 : f32 to vector<8x128xf32>
    %126 = arith.mulf %125, %124 : vector<8x128xf32>
    %cst_46 = arith.constant 5.000000e-01 : f32
    %127 = vector.broadcast %cst_46 : f32 to vector<8x128xf32>
    %128 = arith.addf %126, %127 : vector<8x128xf32>
    %129 = vector.extract_strided_slice %112 {offsets = [0, 256], sizes = [8, 128], strides = [1, 1]} : vector<8x512xf32> to vector<8x128xf32>
    %130 = math.tanh %129 : vector<8x128xf32>
    %131 = vector.extract_strided_slice %112 {offsets = [0, 384], sizes = [8, 128], strides = [1, 1]} : vector<8x512xf32> to vector<8x128xf32>
    %cst_47 = arith.constant 5.000000e-01 : f32
    %132 = vector.broadcast %cst_47 : f32 to vector<8x128xf32>
    %133 = arith.mulf %132, %131 : vector<8x128xf32>
    %134 = math.tanh %133 : vector<8x128xf32>
    %cst_48 = arith.constant 5.000000e-01 : f32
    %135 = vector.broadcast %cst_48 : f32 to vector<8x128xf32>
    %136 = arith.mulf %135, %134 : vector<8x128xf32>
    %cst_49 = arith.constant 5.000000e-01 : f32
    %137 = vector.broadcast %cst_49 : f32 to vector<8x128xf32>
    %138 = arith.addf %136, %137 : vector<8x128xf32>
    %139 = arith.mulf %128, %72 : vector<8x128xf32>
    %140 = arith.mulf %120, %130 : vector<8x128xf32>
    %141 = arith.addf %139, %140 : vector<8x128xf32>
    %142 = math.tanh %141 : vector<8x128xf32>
    %143 = arith.mulf %138, %142 : vector<8x128xf32>
    %c2 = arith.constant 2 : index
    %c0_50 = arith.constant 0 : index
    %c0_51 = arith.constant 0 : index
    %144 = vector.load %arg1[%c2, %c0_50, %c0_51] : memref<8x8x512xf32, #tpu.memory_space<vmem>>, vector<1x8x512xf32>
    %145 = vector.shape_cast %144 : vector<1x8x512xf32> to vector<8x512xf32>
    %cst_52 = arith.constant dense<0.000000e+00> : vector<8x512xf32>
    %146 = tpu.matmul %109, %0, %cst_52 {dimension_numbers = #tpu.dot_dimension_numbers<[1], [0], [0], [1], [0, 0, 1, 1], [], []>} : vector<8x128xf32>, vector<128x512xf32>, vector<8x512xf32> -> vector<8x512xf32>
    %147 = arith.addf %145, %146 : vector<8x512xf32>
    %148 = vector.extract_strided_slice %147 {offsets = [0, 0], sizes = [8, 128], strides = [1, 1]} : vector<8x512xf32> to vector<8x128xf32>
    %cst_53 = arith.constant 5.000000e-01 : f32
    %149 = vector.broadcast %cst_53 : f32 to vector<8x128xf32>
    %150 = arith.mulf %149, %148 : vector<8x128xf32>
    %151 = math.tanh %150 : vector<8x128xf32>
    %cst_54 = arith.constant 5.000000e-01 : f32
    %152 = vector.broadcast %cst_54 : f32 to vector<8x128xf32>
    %153 = arith.mulf %152, %151 : vector<8x128xf32>
    %cst_55 = arith.constant 5.000000e-01 : f32
    %154 = vector.broadcast %cst_55 : f32 to vector<8x128xf32>
    %155 = arith.addf %153, %154 : vector<8x128xf32>
    %156 = vector.extract_strided_slice %147 {offsets = [0, 128], sizes = [8, 128], strides = [1, 1]} : vector<8x512xf32> to vector<8x128xf32>
    %cst_56 = arith.constant 5.000000e-01 : f32
    %157 = vector.broadcast %cst_56 : f32 to vector<8x128xf32>
    %158 = arith.mulf %157, %156 : vector<8x128xf32>
    %159 = math.tanh %158 : vector<8x128xf32>
    %cst_57 = arith.constant 5.000000e-01 : f32
    %160 = vector.broadcast %cst_57 : f32 to vector<8x128xf32>
    %161 = arith.mulf %160, %159 : vector<8x128xf32>
    %cst_58 = arith.constant 5.000000e-01 : f32
    %162 = vector.broadcast %cst_58 : f32 to vector<8x128xf32>
    %163 = arith.addf %161, %162 : vector<8x128xf32>
    %164 = vector.extract_strided_slice %147 {offsets = [0, 256], sizes = [8, 128], strides = [1, 1]} : vector<8x512xf32> to vector<8x128xf32>
    %165 = math.tanh %164 : vector<8x128xf32>
    %166 = vector.extract_strided_slice %147 {offsets = [0, 384], sizes = [8, 128], strides = [1, 1]} : vector<8x512xf32> to vector<8x128xf32>
    %cst_59 = arith.constant 5.000000e-01 : f32
    %167 = vector.broadcast %cst_59 : f32 to vector<8x128xf32>
    %168 = arith.mulf %167, %166 : vector<8x128xf32>
    %169 = math.tanh %168 : vector<8x128xf32>
    %cst_60 = arith.constant 5.000000e-01 : f32
    %170 = vector.broadcast %cst_60 : f32 to vector<8x128xf32>
    %171 = arith.mulf %170, %169 : vector<8x128xf32>
    %cst_61 = arith.constant 5.000000e-01 : f32
    %172 = vector.broadcast %cst_61 : f32 to vector<8x128xf32>
    %173 = arith.addf %171, %172 : vector<8x128xf32>
    %174 = arith.mulf %163, %107 : vector<8x128xf32>
    %175 = arith.mulf %155, %165 : vector<8x128xf32>
    %176 = arith.addf %174, %175 : vector<8x128xf32>
    %177 = math.tanh %176 : vector<8x128xf32>
    %178 = arith.mulf %173, %177 : vector<8x128xf32>
    %179 = tpu.concatenate %178, %143 in 1 : vector<8x128xf32>, vector<8x128xf32> -> vector<8x256xf32>
    %cst_62 = arith.constant dense<0.000000e+00> : vector<8x512xf32>
    %180 = tpu.matmul %179, %1, %cst_62 {dimension_numbers = #tpu.dot_dimension_numbers<[1], [0], [0], [1], [0, 0, 1, 1], [], []>} : vector<8x256xf32>, vector<256x512xf32>, vector<8x512xf32> -> vector<8x512xf32>
    %181 = arith.addf %180, %4 : vector<8x512xf32>
    %182 = vector.extract_strided_slice %181 {offsets = [0, 0], sizes = [8, 128], strides = [1, 1]} : vector<8x512xf32> to vector<8x128xf32>
    %cst_63 = arith.constant 5.000000e-01 : f32
    %183 = vector.broadcast %cst_63 : f32 to vector<8x128xf32>
    %184 = arith.mulf %183, %182 : vector<8x128xf32>
    %185 = math.tanh %184 : vector<8x128xf32>
    %cst_64 = arith.constant 5.000000e-01 : f32
    %186 = vector.broadcast %cst_64 : f32 to vector<8x128xf32>
    %187 = arith.mulf %186, %185 : vector<8x128xf32>
    %cst_65 = arith.constant 5.000000e-01 : f32
    %188 = vector.broadcast %cst_65 : f32 to vector<8x128xf32>
    %189 = arith.addf %187, %188 : vector<8x128xf32>
    %190 = vector.extract_strided_slice %181 {offsets = [0, 128], sizes = [8, 128], strides = [1, 1]} : vector<8x512xf32> to vector<8x128xf32>
    %cst_66 = arith.constant 5.000000e-01 : f32
    %191 = vector.broadcast %cst_66 : f32 to vector<8x128xf32>
    %192 = arith.mulf %191, %190 : vector<8x128xf32>
    %193 = math.tanh %192 : vector<8x128xf32>
    %cst_67 = arith.constant 5.000000e-01 : f32
    %194 = vector.broadcast %cst_67 : f32 to vector<8x128xf32>
    %195 = arith.mulf %194, %193 : vector<8x128xf32>
    %cst_68 = arith.constant 5.000000e-01 : f32
    %196 = vector.broadcast %cst_68 : f32 to vector<8x128xf32>
    %197 = arith.addf %195, %196 : vector<8x128xf32>
    %198 = vector.extract_strided_slice %181 {offsets = [0, 256], sizes = [8, 128], strides = [1, 1]} : vector<8x512xf32> to vector<8x128xf32>
    %199 = math.tanh %198 : vector<8x128xf32>
    %200 = vector.extract_strided_slice %181 {offsets = [0, 384], sizes = [8, 128], strides = [1, 1]} : vector<8x512xf32> to vector<8x128xf32>
    %cst_69 = arith.constant 5.000000e-01 : f32
    %201 = vector.broadcast %cst_69 : f32 to vector<8x128xf32>
    %202 = arith.mulf %201, %200 : vector<8x128xf32>
    %203 = math.tanh %202 : vector<8x128xf32>
    %cst_70 = arith.constant 5.000000e-01 : f32
    %204 = vector.broadcast %cst_70 : f32 to vector<8x128xf32>
    %205 = arith.mulf %204, %203 : vector<8x128xf32>
    %cst_71 = arith.constant 5.000000e-01 : f32
    %206 = vector.broadcast %cst_71 : f32 to vector<8x128xf32>
    %207 = arith.addf %205, %206 : vector<8x128xf32>
    %208 = arith.mulf %197, %141 : vector<8x128xf32>
    %209 = arith.mulf %189, %199 : vector<8x128xf32>
    %210 = arith.addf %208, %209 : vector<8x128xf32>
    %211 = math.tanh %210 : vector<8x128xf32>
    %212 = arith.mulf %207, %211 : vector<8x128xf32>
    %c3 = arith.constant 3 : index
    %c0_72 = arith.constant 0 : index
    %c0_73 = arith.constant 0 : index
    %213 = vector.load %arg1[%c3, %c0_72, %c0_73] : memref<8x8x512xf32, #tpu.memory_space<vmem>>, vector<1x8x512xf32>
    %214 = vector.shape_cast %213 : vector<1x8x512xf32> to vector<8x512xf32>
    %cst_74 = arith.constant dense<0.000000e+00> : vector<8x512xf32>
    %215 = tpu.matmul %178, %0, %cst_74 {dimension_numbers = #tpu.dot_dimension_numbers<[1], [0], [0], [1], [0, 0, 1, 1], [], []>} : vector<8x128xf32>, vector<128x512xf32>, vector<8x512xf32> -> vector<8x512xf32>
    %216 = arith.addf %214, %215 : vector<8x512xf32>
    %217 = vector.extract_strided_slice %216 {offsets = [0, 0], sizes = [8, 128], strides = [1, 1]} : vector<8x512xf32> to vector<8x128xf32>
    %cst_75 = arith.constant 5.000000e-01 : f32
    %218 = vector.broadcast %cst_75 : f32 to vector<8x128xf32>
    %219 = arith.mulf %218, %217 : vector<8x128xf32>
    %220 = math.tanh %219 : vector<8x128xf32>
    %cst_76 = arith.constant 5.000000e-01 : f32
    %221 = vector.broadcast %cst_76 : f32 to vector<8x128xf32>
    %222 = arith.mulf %221, %220 : vector<8x128xf32>
    %cst_77 = arith.constant 5.000000e-01 : f32
    %223 = vector.broadcast %cst_77 : f32 to vector<8x128xf32>
    %224 = arith.addf %222, %223 : vector<8x128xf32>
    %225 = vector.extract_strided_slice %216 {offsets = [0, 128], sizes = [8, 128], strides = [1, 1]} : vector<8x512xf32> to vector<8x128xf32>
    %cst_78 = arith.constant 5.000000e-01 : f32
    %226 = vector.broadcast %cst_78 : f32 to vector<8x128xf32>
    %227 = arith.mulf %226, %225 : vector<8x128xf32>
    %228 = math.tanh %227 : vector<8x128xf32>
    %cst_79 = arith.constant 5.000000e-01 : f32
    %229 = vector.broadcast %cst_79 : f32 to vector<8x128xf32>
    %230 = arith.mulf %229, %228 : vector<8x128xf32>
    %cst_80 = arith.constant 5.000000e-01 : f32
    %231 = vector.broadcast %cst_80 : f32 to vector<8x128xf32>
    %232 = arith.addf %230, %231 : vector<8x128xf32>
    %233 = vector.extract_strided_slice %216 {offsets = [0, 256], sizes = [8, 128], strides = [1, 1]} : vector<8x512xf32> to vector<8x128xf32>
    %234 = math.tanh %233 : vector<8x128xf32>
    %235 = vector.extract_strided_slice %216 {offsets = [0, 384], sizes = [8, 128], strides = [1, 1]} : vector<8x512xf32> to vector<8x128xf32>
    %cst_81 = arith.constant 5.000000e-01 : f32
    %236 = vector.broadcast %cst_81 : f32 to vector<8x128xf32>
    %237 = arith.mulf %236, %235 : vector<8x128xf32>
    %238 = math.tanh %237 : vector<8x128xf32>
    %cst_82 = arith.constant 5.000000e-01 : f32
    %239 = vector.broadcast %cst_82 : f32 to vector<8x128xf32>
    %240 = arith.mulf %239, %238 : vector<8x128xf32>
    %cst_83 = arith.constant 5.000000e-01 : f32
    %241 = vector.broadcast %cst_83 : f32 to vector<8x128xf32>
    %242 = arith.addf %240, %241 : vector<8x128xf32>
    %243 = arith.mulf %232, %176 : vector<8x128xf32>
    %244 = arith.mulf %224, %234 : vector<8x128xf32>
    %245 = arith.addf %243, %244 : vector<8x128xf32>
    %246 = math.tanh %245 : vector<8x128xf32>
    %247 = arith.mulf %242, %246 : vector<8x128xf32>
    %248 = tpu.concatenate %247, %212 in 1 : vector<8x128xf32>, vector<8x128xf32> -> vector<8x256xf32>
    %cst_84 = arith.constant dense<0.000000e+00> : vector<8x512xf32>
    %249 = tpu.matmul %248, %1, %cst_84 {dimension_numbers = #tpu.dot_dimension_numbers<[1], [0], [0], [1], [0, 0, 1, 1], [], []>} : vector<8x256xf32>, vector<256x512xf32>, vector<8x512xf32> -> vector<8x512xf32>
    %250 = arith.addf %249, %4 : vector<8x512xf32>
    %251 = vector.extract_strided_slice %250 {offsets = [0, 0], sizes = [8, 128], strides = [1, 1]} : vector<8x512xf32> to vector<8x128xf32>
    %cst_85 = arith.constant 5.000000e-01 : f32
    %252 = vector.broadcast %cst_85 : f32 to vector<8x128xf32>
    %253 = arith.mulf %252, %251 : vector<8x128xf32>
    %254 = math.tanh %253 : vector<8x128xf32>
    %cst_86 = arith.constant 5.000000e-01 : f32
    %255 = vector.broadcast %cst_86 : f32 to vector<8x128xf32>
    %256 = arith.mulf %255, %254 : vector<8x128xf32>
    %cst_87 = arith.constant 5.000000e-01 : f32
    %257 = vector.broadcast %cst_87 : f32 to vector<8x128xf32>
    %258 = arith.addf %256, %257 : vector<8x128xf32>
    %259 = vector.extract_strided_slice %250 {offsets = [0, 128], sizes = [8, 128], strides = [1, 1]} : vector<8x512xf32> to vector<8x128xf32>
    %cst_88 = arith.constant 5.000000e-01 : f32
    %260 = vector.broadcast %cst_88 : f32 to vector<8x128xf32>
    %261 = arith.mulf %260, %259 : vector<8x128xf32>
    %262 = math.tanh %261 : vector<8x128xf32>
    %cst_89 = arith.constant 5.000000e-01 : f32
    %263 = vector.broadcast %cst_89 : f32 to vector<8x128xf32>
    %264 = arith.mulf %263, %262 : vector<8x128xf32>
    %cst_90 = arith.constant 5.000000e-01 : f32
    %265 = vector.broadcast %cst_90 : f32 to vector<8x128xf32>
    %266 = arith.addf %264, %265 : vector<8x128xf32>
    %267 = vector.extract_strided_slice %250 {offsets = [0, 256], sizes = [8, 128], strides = [1, 1]} : vector<8x512xf32> to vector<8x128xf32>
    %268 = math.tanh %267 : vector<8x128xf32>
    %269 = vector.extract_strided_slice %250 {offsets = [0, 384], sizes = [8, 128], strides = [1, 1]} : vector<8x512xf32> to vector<8x128xf32>
    %cst_91 = arith.constant 5.000000e-01 : f32
    %270 = vector.broadcast %cst_91 : f32 to vector<8x128xf32>
    %271 = arith.mulf %270, %269 : vector<8x128xf32>
    %272 = math.tanh %271 : vector<8x128xf32>
    %cst_92 = arith.constant 5.000000e-01 : f32
    %273 = vector.broadcast %cst_92 : f32 to vector<8x128xf32>
    %274 = arith.mulf %273, %272 : vector<8x128xf32>
    %cst_93 = arith.constant 5.000000e-01 : f32
    %275 = vector.broadcast %cst_93 : f32 to vector<8x128xf32>
    %276 = arith.addf %274, %275 : vector<8x128xf32>
    %277 = arith.mulf %266, %210 : vector<8x128xf32>
    %278 = arith.mulf %258, %268 : vector<8x128xf32>
    %279 = arith.addf %277, %278 : vector<8x128xf32>
    %280 = math.tanh %279 : vector<8x128xf32>
    %281 = arith.mulf %276, %280 : vector<8x128xf32>
    %c4 = arith.constant 4 : index
    %c0_94 = arith.constant 0 : index
    %c0_95 = arith.constant 0 : index
    %282 = vector.load %arg1[%c4, %c0_94, %c0_95] : memref<8x8x512xf32, #tpu.memory_space<vmem>>, vector<1x8x512xf32>
    %283 = vector.shape_cast %282 : vector<1x8x512xf32> to vector<8x512xf32>
    %cst_96 = arith.constant dense<0.000000e+00> : vector<8x512xf32>
    %284 = tpu.matmul %247, %0, %cst_96 {dimension_numbers = #tpu.dot_dimension_numbers<[1], [0], [0], [1], [0, 0, 1, 1], [], []>} : vector<8x128xf32>, vector<128x512xf32>, vector<8x512xf32> -> vector<8x512xf32>
    %285 = arith.addf %283, %284 : vector<8x512xf32>
    %286 = vector.extract_strided_slice %285 {offsets = [0, 0], sizes = [8, 128], strides = [1, 1]} : vector<8x512xf32> to vector<8x128xf32>
    %cst_97 = arith.constant 5.000000e-01 : f32
    %287 = vector.broadcast %cst_97 : f32 to vector<8x128xf32>
    %288 = arith.mulf %287, %286 : vector<8x128xf32>
    %289 = math.tanh %288 : vector<8x128xf32>
    %cst_98 = arith.constant 5.000000e-01 : f32
    %290 = vector.broadcast %cst_98 : f32 to vector<8x128xf32>
    %291 = arith.mulf %290, %289 : vector<8x128xf32>
    %cst_99 = arith.constant 5.000000e-01 : f32
    %292 = vector.broadcast %cst_99 : f32 to vector<8x128xf32>
    %293 = arith.addf %291, %292 : vector<8x128xf32>
    %294 = vector.extract_strided_slice %285 {offsets = [0, 128], sizes = [8, 128], strides = [1, 1]} : vector<8x512xf32> to vector<8x128xf32>
    %cst_100 = arith.constant 5.000000e-01 : f32
    %295 = vector.broadcast %cst_100 : f32 to vector<8x128xf32>
    %296 = arith.mulf %295, %294 : vector<8x128xf32>
    %297 = math.tanh %296 : vector<8x128xf32>
    %cst_101 = arith.constant 5.000000e-01 : f32
    %298 = vector.broadcast %cst_101 : f32 to vector<8x128xf32>
    %299 = arith.mulf %298, %297 : vector<8x128xf32>
    %cst_102 = arith.constant 5.000000e-01 : f32
    %300 = vector.broadcast %cst_102 : f32 to vector<8x128xf32>
    %301 = arith.addf %299, %300 : vector<8x128xf32>
    %302 = vector.extract_strided_slice %285 {offsets = [0, 256], sizes = [8, 128], strides = [1, 1]} : vector<8x512xf32> to vector<8x128xf32>
    %303 = math.tanh %302 : vector<8x128xf32>
    %304 = vector.extract_strided_slice %285 {offsets = [0, 384], sizes = [8, 128], strides = [1, 1]} : vector<8x512xf32> to vector<8x128xf32>
    %cst_103 = arith.constant 5.000000e-01 : f32
    %305 = vector.broadcast %cst_103 : f32 to vector<8x128xf32>
    %306 = arith.mulf %305, %304 : vector<8x128xf32>
    %307 = math.tanh %306 : vector<8x128xf32>
    %cst_104 = arith.constant 5.000000e-01 : f32
    %308 = vector.broadcast %cst_104 : f32 to vector<8x128xf32>
    %309 = arith.mulf %308, %307 : vector<8x128xf32>
    %cst_105 = arith.constant 5.000000e-01 : f32
    %310 = vector.broadcast %cst_105 : f32 to vector<8x128xf32>
    %311 = arith.addf %309, %310 : vector<8x128xf32>
    %312 = arith.mulf %301, %245 : vector<8x128xf32>
    %313 = arith.mulf %293, %303 : vector<8x128xf32>
    %314 = arith.addf %312, %313 : vector<8x128xf32>
    %315 = math.tanh %314 : vector<8x128xf32>
    %316 = arith.mulf %311, %315 : vector<8x128xf32>
    %317 = tpu.concatenate %316, %281 in 1 : vector<8x128xf32>, vector<8x128xf32> -> vector<8x256xf32>
    %cst_106 = arith.constant dense<0.000000e+00> : vector<8x512xf32>
    %318 = tpu.matmul %317, %1, %cst_106 {dimension_numbers = #tpu.dot_dimension_numbers<[1], [0], [0], [1], [0, 0, 1, 1], [], []>} : vector<8x256xf32>, vector<256x512xf32>, vector<8x512xf32> -> vector<8x512xf32>
    %319 = arith.addf %318, %4 : vector<8x512xf32>
    %320 = vector.extract_strided_slice %319 {offsets = [0, 0], sizes = [8, 128], strides = [1, 1]} : vector<8x512xf32> to vector<8x128xf32>
    %cst_107 = arith.constant 5.000000e-01 : f32
    %321 = vector.broadcast %cst_107 : f32 to vector<8x128xf32>
    %322 = arith.mulf %321, %320 : vector<8x128xf32>
    %323 = math.tanh %322 : vector<8x128xf32>
    %cst_108 = arith.constant 5.000000e-01 : f32
    %324 = vector.broadcast %cst_108 : f32 to vector<8x128xf32>
    %325 = arith.mulf %324, %323 : vector<8x128xf32>
    %cst_109 = arith.constant 5.000000e-01 : f32
    %326 = vector.broadcast %cst_109 : f32 to vector<8x128xf32>
    %327 = arith.addf %325, %326 : vector<8x128xf32>
    %328 = vector.extract_strided_slice %319 {offsets = [0, 128], sizes = [8, 128], strides = [1, 1]} : vector<8x512xf32> to vector<8x128xf32>
    %cst_110 = arith.constant 5.000000e-01 : f32
    %329 = vector.broadcast %cst_110 : f32 to vector<8x128xf32>
    %330 = arith.mulf %329, %328 : vector<8x128xf32>
    %331 = math.tanh %330 : vector<8x128xf32>
    %cst_111 = arith.constant 5.000000e-01 : f32
    %332 = vector.broadcast %cst_111 : f32 to vector<8x128xf32>
    %333 = arith.mulf %332, %331 : vector<8x128xf32>
    %cst_112 = arith.constant 5.000000e-01 : f32
    %334 = vector.broadcast %cst_112 : f32 to vector<8x128xf32>
    %335 = arith.addf %333, %334 : vector<8x128xf32>
    %336 = vector.extract_strided_slice %319 {offsets = [0, 256], sizes = [8, 128], strides = [1, 1]} : vector<8x512xf32> to vector<8x128xf32>
    %337 = math.tanh %336 : vector<8x128xf32>
    %338 = vector.extract_strided_slice %319 {offsets = [0, 384], sizes = [8, 128], strides = [1, 1]} : vector<8x512xf32> to vector<8x128xf32>
    %cst_113 = arith.constant 5.000000e-01 : f32
    %339 = vector.broadcast %cst_113 : f32 to vector<8x128xf32>
    %340 = arith.mulf %339, %338 : vector<8x128xf32>
    %341 = math.tanh %340 : vector<8x128xf32>
    %cst_114 = arith.constant 5.000000e-01 : f32
    %342 = vector.broadcast %cst_114 : f32 to vector<8x128xf32>
    %343 = arith.mulf %342, %341 : vector<8x128xf32>
    %cst_115 = arith.constant 5.000000e-01 : f32
    %344 = vector.broadcast %cst_115 : f32 to vector<8x128xf32>
    %345 = arith.addf %343, %344 : vector<8x128xf32>
    %346 = arith.mulf %335, %279 : vector<8x128xf32>
    %347 = arith.mulf %327, %337 : vector<8x128xf32>
    %348 = arith.addf %346, %347 : vector<8x128xf32>
    %349 = math.tanh %348 : vector<8x128xf32>
    %350 = arith.mulf %345, %349 : vector<8x128xf32>
    %c5 = arith.constant 5 : index
    %c0_116 = arith.constant 0 : index
    %c0_117 = arith.constant 0 : index
    %351 = vector.load %arg1[%c5, %c0_116, %c0_117] : memref<8x8x512xf32, #tpu.memory_space<vmem>>, vector<1x8x512xf32>
    %352 = vector.shape_cast %351 : vector<1x8x512xf32> to vector<8x512xf32>
    %cst_118 = arith.constant dense<0.000000e+00> : vector<8x512xf32>
    %353 = tpu.matmul %316, %0, %cst_118 {dimension_numbers = #tpu.dot_dimension_numbers<[1], [0], [0], [1], [0, 0, 1, 1], [], []>} : vector<8x128xf32>, vector<128x512xf32>, vector<8x512xf32> -> vector<8x512xf32>
    %354 = arith.addf %352, %353 : vector<8x512xf32>
    %355 = vector.extract_strided_slice %354 {offsets = [0, 0], sizes = [8, 128], strides = [1, 1]} : vector<8x512xf32> to vector<8x128xf32>
    %cst_119 = arith.constant 5.000000e-01 : f32
    %356 = vector.broadcast %cst_119 : f32 to vector<8x128xf32>
    %357 = arith.mulf %356, %355 : vector<8x128xf32>
    %358 = math.tanh %357 : vector<8x128xf32>
    %cst_120 = arith.constant 5.000000e-01 : f32
    %359 = vector.broadcast %cst_120 : f32 to vector<8x128xf32>
    %360 = arith.mulf %359, %358 : vector<8x128xf32>
    %cst_121 = arith.constant 5.000000e-01 : f32
    %361 = vector.broadcast %cst_121 : f32 to vector<8x128xf32>
    %362 = arith.addf %360, %361 : vector<8x128xf32>
    %363 = vector.extract_strided_slice %354 {offsets = [0, 128], sizes = [8, 128], strides = [1, 1]} : vector<8x512xf32> to vector<8x128xf32>
    %cst_122 = arith.constant 5.000000e-01 : f32
    %364 = vector.broadcast %cst_122 : f32 to vector<8x128xf32>
    %365 = arith.mulf %364, %363 : vector<8x128xf32>
    %366 = math.tanh %365 : vector<8x128xf32>
    %cst_123 = arith.constant 5.000000e-01 : f32
    %367 = vector.broadcast %cst_123 : f32 to vector<8x128xf32>
    %368 = arith.mulf %367, %366 : vector<8x128xf32>
    %cst_124 = arith.constant 5.000000e-01 : f32
    %369 = vector.broadcast %cst_124 : f32 to vector<8x128xf32>
    %370 = arith.addf %368, %369 : vector<8x128xf32>
    %371 = vector.extract_strided_slice %354 {offsets = [0, 256], sizes = [8, 128], strides = [1, 1]} : vector<8x512xf32> to vector<8x128xf32>
    %372 = math.tanh %371 : vector<8x128xf32>
    %373 = vector.extract_strided_slice %354 {offsets = [0, 384], sizes = [8, 128], strides = [1, 1]} : vector<8x512xf32> to vector<8x128xf32>
    %cst_125 = arith.constant 5.000000e-01 : f32
    %374 = vector.broadcast %cst_125 : f32 to vector<8x128xf32>
    %375 = arith.mulf %374, %373 : vector<8x128xf32>
    %376 = math.tanh %375 : vector<8x128xf32>
    %cst_126 = arith.constant 5.000000e-01 : f32
    %377 = vector.broadcast %cst_126 : f32 to vector<8x128xf32>
    %378 = arith.mulf %377, %376 : vector<8x128xf32>
    %cst_127 = arith.constant 5.000000e-01 : f32
    %379 = vector.broadcast %cst_127 : f32 to vector<8x128xf32>
    %380 = arith.addf %378, %379 : vector<8x128xf32>
    %381 = arith.mulf %370, %314 : vector<8x128xf32>
    %382 = arith.mulf %362, %372 : vector<8x128xf32>
    %383 = arith.addf %381, %382 : vector<8x128xf32>
    %384 = math.tanh %383 : vector<8x128xf32>
    %385 = arith.mulf %380, %384 : vector<8x128xf32>
    %386 = tpu.concatenate %385, %350 in 1 : vector<8x128xf32>, vector<8x128xf32> -> vector<8x256xf32>
    %cst_128 = arith.constant dense<0.000000e+00> : vector<8x512xf32>
    %387 = tpu.matmul %386, %1, %cst_128 {dimension_numbers = #tpu.dot_dimension_numbers<[1], [0], [0], [1], [0, 0, 1, 1], [], []>} : vector<8x256xf32>, vector<256x512xf32>, vector<8x512xf32> -> vector<8x512xf32>
    %388 = arith.addf %387, %4 : vector<8x512xf32>
    %389 = vector.extract_strided_slice %388 {offsets = [0, 0], sizes = [8, 128], strides = [1, 1]} : vector<8x512xf32> to vector<8x128xf32>
    %cst_129 = arith.constant 5.000000e-01 : f32
    %390 = vector.broadcast %cst_129 : f32 to vector<8x128xf32>
    %391 = arith.mulf %390, %389 : vector<8x128xf32>
    %392 = math.tanh %391 : vector<8x128xf32>
    %cst_130 = arith.constant 5.000000e-01 : f32
    %393 = vector.broadcast %cst_130 : f32 to vector<8x128xf32>
    %394 = arith.mulf %393, %392 : vector<8x128xf32>
    %cst_131 = arith.constant 5.000000e-01 : f32
    %395 = vector.broadcast %cst_131 : f32 to vector<8x128xf32>
    %396 = arith.addf %394, %395 : vector<8x128xf32>
    %397 = vector.extract_strided_slice %388 {offsets = [0, 128], sizes = [8, 128], strides = [1, 1]} : vector<8x512xf32> to vector<8x128xf32>
    %cst_132 = arith.constant 5.000000e-01 : f32
    %398 = vector.broadcast %cst_132 : f32 to vector<8x128xf32>
    %399 = arith.mulf %398, %397 : vector<8x128xf32>
    %400 = math.tanh %399 : vector<8x128xf32>
    %cst_133 = arith.constant 5.000000e-01 : f32
    %401 = vector.broadcast %cst_133 : f32 to vector<8x128xf32>
    %402 = arith.mulf %401, %400 : vector<8x128xf32>
    %cst_134 = arith.constant 5.000000e-01 : f32
    %403 = vector.broadcast %cst_134 : f32 to vector<8x128xf32>
    %404 = arith.addf %402, %403 : vector<8x128xf32>
    %405 = vector.extract_strided_slice %388 {offsets = [0, 256], sizes = [8, 128], strides = [1, 1]} : vector<8x512xf32> to vector<8x128xf32>
    %406 = math.tanh %405 : vector<8x128xf32>
    %407 = vector.extract_strided_slice %388 {offsets = [0, 384], sizes = [8, 128], strides = [1, 1]} : vector<8x512xf32> to vector<8x128xf32>
    %cst_135 = arith.constant 5.000000e-01 : f32
    %408 = vector.broadcast %cst_135 : f32 to vector<8x128xf32>
    %409 = arith.mulf %408, %407 : vector<8x128xf32>
    %410 = math.tanh %409 : vector<8x128xf32>
    %cst_136 = arith.constant 5.000000e-01 : f32
    %411 = vector.broadcast %cst_136 : f32 to vector<8x128xf32>
    %412 = arith.mulf %411, %410 : vector<8x128xf32>
    %cst_137 = arith.constant 5.000000e-01 : f32
    %413 = vector.broadcast %cst_137 : f32 to vector<8x128xf32>
    %414 = arith.addf %412, %413 : vector<8x128xf32>
    %415 = arith.mulf %404, %348 : vector<8x128xf32>
    %416 = arith.mulf %396, %406 : vector<8x128xf32>
    %417 = arith.addf %415, %416 : vector<8x128xf32>
    %418 = math.tanh %417 : vector<8x128xf32>
    %419 = arith.mulf %414, %418 : vector<8x128xf32>
    %c6 = arith.constant 6 : index
    %c0_138 = arith.constant 0 : index
    %c0_139 = arith.constant 0 : index
    %420 = vector.load %arg1[%c6, %c0_138, %c0_139] : memref<8x8x512xf32, #tpu.memory_space<vmem>>, vector<1x8x512xf32>
    %421 = vector.shape_cast %420 : vector<1x8x512xf32> to vector<8x512xf32>
    %cst_140 = arith.constant dense<0.000000e+00> : vector<8x512xf32>
    %422 = tpu.matmul %385, %0, %cst_140 {dimension_numbers = #tpu.dot_dimension_numbers<[1], [0], [0], [1], [0, 0, 1, 1], [], []>} : vector<8x128xf32>, vector<128x512xf32>, vector<8x512xf32> -> vector<8x512xf32>
    %423 = arith.addf %421, %422 : vector<8x512xf32>
    %424 = vector.extract_strided_slice %423 {offsets = [0, 0], sizes = [8, 128], strides = [1, 1]} : vector<8x512xf32> to vector<8x128xf32>
    %cst_141 = arith.constant 5.000000e-01 : f32
    %425 = vector.broadcast %cst_141 : f32 to vector<8x128xf32>
    %426 = arith.mulf %425, %424 : vector<8x128xf32>
    %427 = math.tanh %426 : vector<8x128xf32>
    %cst_142 = arith.constant 5.000000e-01 : f32
    %428 = vector.broadcast %cst_142 : f32 to vector<8x128xf32>
    %429 = arith.mulf %428, %427 : vector<8x128xf32>
    %cst_143 = arith.constant 5.000000e-01 : f32
    %430 = vector.broadcast %cst_143 : f32 to vector<8x128xf32>
    %431 = arith.addf %429, %430 : vector<8x128xf32>
    %432 = vector.extract_strided_slice %423 {offsets = [0, 128], sizes = [8, 128], strides = [1, 1]} : vector<8x512xf32> to vector<8x128xf32>
    %cst_144 = arith.constant 5.000000e-01 : f32
    %433 = vector.broadcast %cst_144 : f32 to vector<8x128xf32>
    %434 = arith.mulf %433, %432 : vector<8x128xf32>
    %435 = math.tanh %434 : vector<8x128xf32>
    %cst_145 = arith.constant 5.000000e-01 : f32
    %436 = vector.broadcast %cst_145 : f32 to vector<8x128xf32>
    %437 = arith.mulf %436, %435 : vector<8x128xf32>
    %cst_146 = arith.constant 5.000000e-01 : f32
    %438 = vector.broadcast %cst_146 : f32 to vector<8x128xf32>
    %439 = arith.addf %437, %438 : vector<8x128xf32>
    %440 = vector.extract_strided_slice %423 {offsets = [0, 256], sizes = [8, 128], strides = [1, 1]} : vector<8x512xf32> to vector<8x128xf32>
    %441 = math.tanh %440 : vector<8x128xf32>
    %442 = vector.extract_strided_slice %423 {offsets = [0, 384], sizes = [8, 128], strides = [1, 1]} : vector<8x512xf32> to vector<8x128xf32>
    %cst_147 = arith.constant 5.000000e-01 : f32
    %443 = vector.broadcast %cst_147 : f32 to vector<8x128xf32>
    %444 = arith.mulf %443, %442 : vector<8x128xf32>
    %445 = math.tanh %444 : vector<8x128xf32>
    %cst_148 = arith.constant 5.000000e-01 : f32
    %446 = vector.broadcast %cst_148 : f32 to vector<8x128xf32>
    %447 = arith.mulf %446, %445 : vector<8x128xf32>
    %cst_149 = arith.constant 5.000000e-01 : f32
    %448 = vector.broadcast %cst_149 : f32 to vector<8x128xf32>
    %449 = arith.addf %447, %448 : vector<8x128xf32>
    %450 = arith.mulf %439, %383 : vector<8x128xf32>
    %451 = arith.mulf %431, %441 : vector<8x128xf32>
    %452 = arith.addf %450, %451 : vector<8x128xf32>
    %453 = math.tanh %452 : vector<8x128xf32>
    %454 = arith.mulf %449, %453 : vector<8x128xf32>
    %455 = tpu.concatenate %454, %419 in 1 : vector<8x128xf32>, vector<8x128xf32> -> vector<8x256xf32>
    %cst_150 = arith.constant dense<0.000000e+00> : vector<8x512xf32>
    %456 = tpu.matmul %455, %1, %cst_150 {dimension_numbers = #tpu.dot_dimension_numbers<[1], [0], [0], [1], [0, 0, 1, 1], [], []>} : vector<8x256xf32>, vector<256x512xf32>, vector<8x512xf32> -> vector<8x512xf32>
    %457 = arith.addf %456, %4 : vector<8x512xf32>
    %458 = vector.extract_strided_slice %457 {offsets = [0, 0], sizes = [8, 128], strides = [1, 1]} : vector<8x512xf32> to vector<8x128xf32>
    %cst_151 = arith.constant 5.000000e-01 : f32
    %459 = vector.broadcast %cst_151 : f32 to vector<8x128xf32>
    %460 = arith.mulf %459, %458 : vector<8x128xf32>
    %461 = math.tanh %460 : vector<8x128xf32>
    %cst_152 = arith.constant 5.000000e-01 : f32
    %462 = vector.broadcast %cst_152 : f32 to vector<8x128xf32>
    %463 = arith.mulf %462, %461 : vector<8x128xf32>
    %cst_153 = arith.constant 5.000000e-01 : f32
    %464 = vector.broadcast %cst_153 : f32 to vector<8x128xf32>
    %465 = arith.addf %463, %464 : vector<8x128xf32>
    %466 = vector.extract_strided_slice %457 {offsets = [0, 128], sizes = [8, 128], strides = [1, 1]} : vector<8x512xf32> to vector<8x128xf32>
    %cst_154 = arith.constant 5.000000e-01 : f32
    %467 = vector.broadcast %cst_154 : f32 to vector<8x128xf32>
    %468 = arith.mulf %467, %466 : vector<8x128xf32>
    %469 = math.tanh %468 : vector<8x128xf32>
    %cst_155 = arith.constant 5.000000e-01 : f32
    %470 = vector.broadcast %cst_155 : f32 to vector<8x128xf32>
    %471 = arith.mulf %470, %469 : vector<8x128xf32>
    %cst_156 = arith.constant 5.000000e-01 : f32
    %472 = vector.broadcast %cst_156 : f32 to vector<8x128xf32>
    %473 = arith.addf %471, %472 : vector<8x128xf32>
    %474 = vector.extract_strided_slice %457 {offsets = [0, 256], sizes = [8, 128], strides = [1, 1]} : vector<8x512xf32> to vector<8x128xf32>
    %475 = math.tanh %474 : vector<8x128xf32>
    %476 = vector.extract_strided_slice %457 {offsets = [0, 384], sizes = [8, 128], strides = [1, 1]} : vector<8x512xf32> to vector<8x128xf32>
    %cst_157 = arith.constant 5.000000e-01 : f32
    %477 = vector.broadcast %cst_157 : f32 to vector<8x128xf32>
    %478 = arith.mulf %477, %476 : vector<8x128xf32>
    %479 = math.tanh %478 : vector<8x128xf32>
    %cst_158 = arith.constant 5.000000e-01 : f32
    %480 = vector.broadcast %cst_158 : f32 to vector<8x128xf32>
    %481 = arith.mulf %480, %479 : vector<8x128xf32>
    %cst_159 = arith.constant 5.000000e-01 : f32
    %482 = vector.broadcast %cst_159 : f32 to vector<8x128xf32>
    %483 = arith.addf %481, %482 : vector<8x128xf32>
    %484 = arith.mulf %473, %417 : vector<8x128xf32>
    %485 = arith.mulf %465, %475 : vector<8x128xf32>
    %486 = arith.addf %484, %485 : vector<8x128xf32>
    %487 = math.tanh %486 : vector<8x128xf32>
    %488 = arith.mulf %483, %487 : vector<8x128xf32>
    %c7 = arith.constant 7 : index
    %c0_160 = arith.constant 0 : index
    %c0_161 = arith.constant 0 : index
    %489 = vector.load %arg1[%c7, %c0_160, %c0_161] : memref<8x8x512xf32, #tpu.memory_space<vmem>>, vector<1x8x512xf32>
    %490 = vector.shape_cast %489 : vector<1x8x512xf32> to vector<8x512xf32>
    %cst_162 = arith.constant dense<0.000000e+00> : vector<8x512xf32>
    %491 = tpu.matmul %454, %0, %cst_162 {dimension_numbers = #tpu.dot_dimension_numbers<[1], [0], [0], [1], [0, 0, 1, 1], [], []>} : vector<8x128xf32>, vector<128x512xf32>, vector<8x512xf32> -> vector<8x512xf32>
    %492 = arith.addf %490, %491 : vector<8x512xf32>
    %493 = vector.extract_strided_slice %492 {offsets = [0, 0], sizes = [8, 128], strides = [1, 1]} : vector<8x512xf32> to vector<8x128xf32>
    %cst_163 = arith.constant 5.000000e-01 : f32
    %494 = vector.broadcast %cst_163 : f32 to vector<8x128xf32>
    %495 = arith.mulf %494, %493 : vector<8x128xf32>
    %496 = math.tanh %495 : vector<8x128xf32>
    %cst_164 = arith.constant 5.000000e-01 : f32
    %497 = vector.broadcast %cst_164 : f32 to vector<8x128xf32>
    %498 = arith.mulf %497, %496 : vector<8x128xf32>
    %cst_165 = arith.constant 5.000000e-01 : f32
    %499 = vector.broadcast %cst_165 : f32 to vector<8x128xf32>
    %500 = arith.addf %498, %499 : vector<8x128xf32>
    %501 = vector.extract_strided_slice %492 {offsets = [0, 128], sizes = [8, 128], strides = [1, 1]} : vector<8x512xf32> to vector<8x128xf32>
    %cst_166 = arith.constant 5.000000e-01 : f32
    %502 = vector.broadcast %cst_166 : f32 to vector<8x128xf32>
    %503 = arith.mulf %502, %501 : vector<8x128xf32>
    %504 = math.tanh %503 : vector<8x128xf32>
    %cst_167 = arith.constant 5.000000e-01 : f32
    %505 = vector.broadcast %cst_167 : f32 to vector<8x128xf32>
    %506 = arith.mulf %505, %504 : vector<8x128xf32>
    %cst_168 = arith.constant 5.000000e-01 : f32
    %507 = vector.broadcast %cst_168 : f32 to vector<8x128xf32>
    %508 = arith.addf %506, %507 : vector<8x128xf32>
    %509 = vector.extract_strided_slice %492 {offsets = [0, 256], sizes = [8, 128], strides = [1, 1]} : vector<8x512xf32> to vector<8x128xf32>
    %510 = math.tanh %509 : vector<8x128xf32>
    %511 = vector.extract_strided_slice %492 {offsets = [0, 384], sizes = [8, 128], strides = [1, 1]} : vector<8x512xf32> to vector<8x128xf32>
    %cst_169 = arith.constant 5.000000e-01 : f32
    %512 = vector.broadcast %cst_169 : f32 to vector<8x128xf32>
    %513 = arith.mulf %512, %511 : vector<8x128xf32>
    %514 = math.tanh %513 : vector<8x128xf32>
    %cst_170 = arith.constant 5.000000e-01 : f32
    %515 = vector.broadcast %cst_170 : f32 to vector<8x128xf32>
    %516 = arith.mulf %515, %514 : vector<8x128xf32>
    %cst_171 = arith.constant 5.000000e-01 : f32
    %517 = vector.broadcast %cst_171 : f32 to vector<8x128xf32>
    %518 = arith.addf %516, %517 : vector<8x128xf32>
    %519 = arith.mulf %508, %452 : vector<8x128xf32>
    %520 = arith.mulf %500, %510 : vector<8x128xf32>
    %521 = arith.addf %519, %520 : vector<8x128xf32>
    %522 = math.tanh %521 : vector<8x128xf32>
    %523 = arith.mulf %518, %522 : vector<8x128xf32>
    %524 = tpu.concatenate %523, %488 in 1 : vector<8x128xf32>, vector<8x128xf32> -> vector<8x256xf32>
    %cst_172 = arith.constant dense<0.000000e+00> : vector<8x512xf32>
    %525 = tpu.matmul %524, %1, %cst_172 {dimension_numbers = #tpu.dot_dimension_numbers<[1], [0], [0], [1], [0, 0, 1, 1], [], []>} : vector<8x256xf32>, vector<256x512xf32>, vector<8x512xf32> -> vector<8x512xf32>
    %526 = arith.addf %525, %4 : vector<8x512xf32>
    %527 = vector.extract_strided_slice %526 {offsets = [0, 0], sizes = [8, 128], strides = [1, 1]} : vector<8x512xf32> to vector<8x128xf32>
    %cst_173 = arith.constant 5.000000e-01 : f32
    %528 = vector.broadcast %cst_173 : f32 to vector<8x128xf32>
    %529 = arith.mulf %528, %527 : vector<8x128xf32>
    %530 = math.tanh %529 : vector<8x128xf32>
    %cst_174 = arith.constant 5.000000e-01 : f32
    %531 = vector.broadcast %cst_174 : f32 to vector<8x128xf32>
    %532 = arith.mulf %531, %530 : vector<8x128xf32>
    %cst_175 = arith.constant 5.000000e-01 : f32
    %533 = vector.broadcast %cst_175 : f32 to vector<8x128xf32>
    %534 = arith.addf %532, %533 : vector<8x128xf32>
    %535 = vector.extract_strided_slice %526 {offsets = [0, 128], sizes = [8, 128], strides = [1, 1]} : vector<8x512xf32> to vector<8x128xf32>
    %cst_176 = arith.constant 5.000000e-01 : f32
    %536 = vector.broadcast %cst_176 : f32 to vector<8x128xf32>
    %537 = arith.mulf %536, %535 : vector<8x128xf32>
    %538 = math.tanh %537 : vector<8x128xf32>
    %cst_177 = arith.constant 5.000000e-01 : f32
    %539 = vector.broadcast %cst_177 : f32 to vector<8x128xf32>
    %540 = arith.mulf %539, %538 : vector<8x128xf32>
    %cst_178 = arith.constant 5.000000e-01 : f32
    %541 = vector.broadcast %cst_178 : f32 to vector<8x128xf32>
    %542 = arith.addf %540, %541 : vector<8x128xf32>
    %543 = vector.extract_strided_slice %526 {offsets = [0, 256], sizes = [8, 128], strides = [1, 1]} : vector<8x512xf32> to vector<8x128xf32>
    %544 = math.tanh %543 : vector<8x128xf32>
    %545 = vector.extract_strided_slice %526 {offsets = [0, 384], sizes = [8, 128], strides = [1, 1]} : vector<8x512xf32> to vector<8x128xf32>
    %cst_179 = arith.constant 5.000000e-01 : f32
    %546 = vector.broadcast %cst_179 : f32 to vector<8x128xf32>
    %547 = arith.mulf %546, %545 : vector<8x128xf32>
    %548 = math.tanh %547 : vector<8x128xf32>
    %cst_180 = arith.constant 5.000000e-01 : f32
    %549 = vector.broadcast %cst_180 : f32 to vector<8x128xf32>
    %550 = arith.mulf %549, %548 : vector<8x128xf32>
    %cst_181 = arith.constant 5.000000e-01 : f32
    %551 = vector.broadcast %cst_181 : f32 to vector<8x128xf32>
    %552 = arith.addf %550, %551 : vector<8x128xf32>
    %553 = arith.mulf %542, %486 : vector<8x128xf32>
    %554 = arith.mulf %534, %544 : vector<8x128xf32>
    %555 = arith.addf %553, %554 : vector<8x128xf32>
    %556 = math.tanh %555 : vector<8x128xf32>
    %557 = arith.mulf %552, %556 : vector<8x128xf32>
    %c0_182 = arith.constant 0 : index
    %c0_183 = arith.constant 0 : index
    %558 = vector.load %arg5[%c0_182, %c0_183] : memref<8x128xf32, #tpu.memory_space<vmem>>, vector<8x128xf32>
    tpu.vector_store %arg5[%c0_182, %c0_183], %557 {strides = array<i32>} : memref<8x128xf32, #tpu.memory_space<vmem>>, vector<8x128xf32>,
    return
  }
  func.func @transform_0(%arg0: i32) -> (i32, i32, i32) {
    %c0_i32 = arith.constant 0 : i32
    %c0_i32_0 = arith.constant 0 : i32
    %c0_i32_1 = arith.constant 0 : i32
    return %c0_i32, %arg0, %c0_i32_0 : i32, i32, i32
  }
  func.func @transform_1(%arg0: i32) -> (i32, i32) {
    %c0_i32 = arith.constant 0 : i32
    %c0_i32_0 = arith.constant 0 : i32
    %c0_i32_1 = arith.constant 0 : i32
    return %c0_i32, %c0_i32_0 : i32, i32
  }
  func.func @transform_2(%arg0: i32) -> (i32, i32) {
    %c0_i32 = arith.constant 0 : i32
    %c0_i32_0 = arith.constant 0 : i32
    %c0_i32_1 = arith.constant 0 : i32
    return %c0_i32, %c0_i32_0 : i32, i32
  }
  func.func @transform_3(%arg0: i32) -> (i32, i32) {
    %c0_i32 = arith.constant 0 : i32
    %c0_i32_0 = arith.constant 0 : i32
    %c0_i32_1 = arith.constant 0 : i32
    return %c0_i32, %c0_i32_0 : i32, i32
  }
  func.func @transform_4(%arg0: i32) -> (i32, i32) {
    %c0_i32 = arith.constant 0 : i32
    %c0_i32_0 = arith.constant 0 : i32
    return %arg0, %c0_i32 : i32, i32
  }
}

</mosaic_0001>

<bundles_post_ra>
// kernel: lstm_forward.1
= control target key start
LH: loop header
LB: loop body
LE: loop exit
PB: predicated region body
PF: predicated region fallthrough
CT: control target
= control target key end

     0   :  { %s3671_s15 = smov 0   ;;  %s3673_s16 = smov 0   ;;  %s9314_s0 = inlined_call_operand.vmem [shape: f32[8,16,512], index: 0, kind: input, shape index: {}]   ;;  %s9315_s1 = inlined_call_operand.vmem [shape: f32[128,512], index: 1, kind: input, shape index: {}]   ;;  %s9316_s2 = inlined_call_operand.vmem [shape: f32[256,512], index: 2, kind: input, shape index: {}]   ;;  %s9317_s3 = inlined_call_operand.vmem [shape: f32[1,512], index: 3, kind: input, shape index: {}]   ;;  %s9318_s4 = inlined_call_operand.vmem [shape: f32[16,128], index: 4, kind: output, shape index: {}]  }
   0x1   :  { %s3675_s17 = smov 0  }
   0x2 LB: > { %s2819_s18 = sadd.s32 4294967295, %s3643_s17   ;;  %s3688_s19 = sadd.s32 1, %s3643_s17   ;;  %s3643_s17 = sphi %s3675_s17, %s10827_s17   ;;  %s3639_s16 = sphi %s3673_s16, %s10826_s16   ;;  %s3635_s15 = sphi %s3671_s15, %s10825_s15  }
   0x3   : > { %s18_s20 = ssub.s32 %s3643_s17, %s3688_s19  ;;  %s21_s21 = sadd.s32 1, %s3639_s16 }
   0x4   : > { %p19_p0 = scmp.eq.s32.totalorder %s18_s20, 0  ;;  %p28_p1 = scmp.ne.s32.totalorder %s3639_s16, %s3635_s15 }
   0x5   : > { %p29_p2 = scmp.eq.s32.totalorder %s3643_s17, 0  ;;  %p2822_p4 = scmp.ge.s32.totalorder %s3643_s17, 2 }
   0x6   : > { %s3697_s22 = scalar_select %p19_p0, %s3639_s16, %s21_s21  }
   0x7   : > { %p30_p3 = por %p29_p2, %p28_p1  ;;  %152 = sbr.rel (%p2822_p4) target bundleno = 48 (0x30), region = 28 }
   0xc   : > { %155 = sbr.rel (!%p30_p3) target bundleno = 48 (0x30), region = 32  ;;  %s157_s23 = sand.u32 (%p30_p3), 1, %s3639_s16  }
   0xd   : > { %s2859_s24 = sshll.u32 (%p30_p3), %s3643_s17, 5  ;;  %s2823_s25 = sshll.u32 (%p30_p3), %s157_s23, 8 }
   0xe   : > { %s3705_s28 = scalar_lea.vmem (%p30_p3), %s9314_s0, %s2859_s24  ;;  %s3710_s29 = scalar_lea.vmem (%p30_p3), [#allocation2], %s2823_s25 }
   0xf   : > { %v175_v0 = vld [vmem:[%s3705_s28] sm:$0xff] (%p30_p3)  ;;  %v177_v1 = vld [vmem:[%s3705_s28 + $0x8] sm:$0xff] (%p30_p3)  ;;  %v179_v2 = vld [vmem:[%s3705_s28 + $0x10] sm:$0xff] (%p30_p3) }
  0x10   : > { %176 = vst [vmem:[%s3710_s29] sm:$0xff] (%p30_p3), %v175_v0  ;;  %v181_v3 = vld [vmem:[%s3705_s28 + $0x18] sm:$0xff] (%p30_p3)  ;;  %v183_v4 = vld [vmem:[%s3705_s28 + $0x40] sm:$0xff] (%p30_p3)  ;;  %v185_v5 = vld [vmem:[%s3705_s28 + $0x48] sm:$0xff] (%p30_p3) }
  0x11   : > { %178 = vst [vmem:[%s3710_s29 + $0x8] sm:$0xff] %v177_v1  ;;  %v187_v6 = vld [vmem:[%s3705_s28 + $0x50] sm:$0xff]  ;;  %v189_v7 = vld [vmem:[%s3705_s28 + $0x58] sm:$0xff]  ;;  %v191_v8 = vld [vmem:[%s3705_s28 + $0x80] sm:$0xff] }
  0x12   : > { %180 = vst [vmem:[%s3710_s29 + $0x10] sm:$0xff] %v179_v2  ;;  %v193_v9 = vld [vmem:[%s3705_s28 + $0x88] sm:$0xff]  ;;  %v195_v10 = vld [vmem:[%s3705_s28 + $0x90] sm:$0xff]  ;;  %v197_v11 = vld [vmem:[%s3705_s28 + $0x98] sm:$0xff] }
  0x13   : > { %182 = vst [vmem:[%s3710_s29 + $0x18] sm:$0xff] %v181_v3  ;;  %v199_v12 = vld [vmem:[%s3705_s28 + $0xc0] sm:$0xff]  ;;  %v201_v13 = vld [vmem:[%s3705_s28 + $0xc8] sm:$0xff]  ;;  %v203_v14 = vld [vmem:[%s3705_s28 + $0xd0] sm:$0xff] }
  0x14   : > { %184 = vst [vmem:[%s3710_s29 + $0x20] sm:$0xff] %v183_v4  ;;  %v205_v15 = vld [vmem:[%s3705_s28 + $0xd8] sm:$0xff]  ;;  %v207_v16 = vld [vmem:[%s3705_s28 + $0x100] sm:$0xff]  ;;  %v209_v17 = vld [vmem:[%s3705_s28 + $0x108] sm:$0xff] }
  0x15   : > { %186 = vst [vmem:[%s3710_s29 + $0x28] sm:$0xff] %v185_v5  ;;  %v211_v18 = vld [vmem:[%s3705_s28 + $0x110] sm:$0xff]  ;;  %v213_v19 = vld [vmem:[%s3705_s28 + $0x118] sm:$0xff]  ;;  %v215_v20 = vld [vmem:[%s3705_s28 + $0x140] sm:$0xff] }
  0x16   : > { %188 = vst [vmem:[%s3710_s29 + $0x30] sm:$0xff] %v187_v6  ;;  %v217_v21 = vld [vmem:[%s3705_s28 + $0x148] sm:$0xff]  ;;  %v219_v22 = vld [vmem:[%s3705_s28 + $0x150] sm:$0xff]  ;;  %v221_v23 = vld [vmem:[%s3705_s28 + $0x158] sm:$0xff] }
  0x17   : > { %190 = vst [vmem:[%s3710_s29 + $0x38] sm:$0xff] %v189_v7  ;;  %v223_v24 = vld [vmem:[%s3705_s28 + $0x180] sm:$0xff]  ;;  %v225_v25 = vld [vmem:[%s3705_s28 + $0x188] sm:$0xff]  ;;  %v227_v26 = vld [vmem:[%s3705_s28 + $0x190] sm:$0xff] }
  0x18   : > { %192 = vst [vmem:[%s3710_s29 + $0x40] sm:$0xff] %v191_v8  ;;  %v229_v27 = vld [vmem:[%s3705_s28 + $0x198] sm:$0xff]  ;;  %v231_v28 = vld [vmem:[%s3705_s28 + $0x1c0] sm:$0xff]  ;;  %v233_v29 = vld [vmem:[%s3705_s28 + $0x1c8] sm:$0xff] }
  0x19   : > { %194 = vst [vmem:[%s3710_s29 + $0x48] sm:$0xff] %v193_v9  ;;  %v235_v30 = vld [vmem:[%s3705_s28 + $0x1d0] sm:$0xff]  ;;  %v237_v31 = vld [vmem:[%s3705_s28 + $0x1d8] sm:$0xff] }
  0x1a   : > { %196 = vst [vmem:[%s3710_s29 + $0x50] sm:$0xff] %v195_v10 }
  0x1b   : > { %198 = vst [vmem:[%s3710_s29 + $0x58] sm:$0xff] %v197_v11 }
  0x1c   : > { %200 = vst [vmem:[%s3710_s29 + $0x60] sm:$0xff] %v199_v12 }
  0x1d   : > { %202 = vst [vmem:[%s3710_s29 + $0x68] sm:$0xff] %v201_v13 }
  0x1e   : > { %204 = vst [vmem:[%s3710_s29 + $0x70] sm:$0xff] %v203_v14 }
  0x1f   : > { %206 = vst [vmem:[%s3710_s29 + $0x78] sm:$0xff] %v205_v15 }
  0x20   : > { %208 = vst [vmem:[%s3710_s29 + $0x80] sm:$0xff] %v207_v16 }
  0x21   : > { %210 = vst [vmem:[%s3710_s29 + $0x88] sm:$0xff] %v209_v17 }
  0x22   : > { %212 = vst [vmem:[%s3710_s29 + $0x90] sm:$0xff] %v211_v18 }
  0x23   : > { %214 = vst [vmem:[%s3710_s29 + $0x98] sm:$0xff] %v213_v19 }
  0x24   : > { %216 = vst [vmem:[%s3710_s29 + $0xa0] sm:$0xff] %v215_v20 }
  0x25   : > { %218 = vst [vmem:[%s3710_s29 + $0xa8] sm:$0xff] %v217_v21 }
  0x26   : > { %220 = vst [vmem:[%s3710_s29 + $0xb0] sm:$0xff] %v219_v22 }
  0x27   : > { %222 = vst [vmem:[%s3710_s29 + $0xb8] sm:$0xff] %v221_v23 }
  0x28   : > { %224 = vst [vmem:[%s3710_s29 + $0xc0] sm:$0xff] %v223_v24 }
  0x29   : > { %226 = vst [vmem:[%s3710_s29 + $0xc8] sm:$0xff] %v225_v25 }
  0x2a   : > { %228 = vst [vmem:[%s3710_s29 + $0xd0] sm:$0xff] %v227_v26 }
  0x2b   : > { %230 = vst [vmem:[%s3710_s29 + $0xd8] sm:$0xff] %v229_v27 }
  0x2c   : > { %232 = vst [vmem:[%s3710_s29 + $0xe0] sm:$0xff] %v231_v28 }
  0x2d   : > { %234 = vst [vmem:[%s3710_s29 + $0xe8] sm:$0xff] %v233_v29 }
  0x2e   : > { %236 = vst [vmem:[%s3710_s29 + $0xf0] sm:$0xff] %v235_v30 }
  0x2f   : > { %238 = vst [vmem:[%s3710_s29 + $0xf8] sm:$0xff] %v237_v31 }
  0x30 PF: > { %p2826_p5 = scmp.ge.s32.totalorder %s3643_s17, 1  ;;  %p243_p6 = scmp.lt.s32.totalorder %s3643_s17, 3 }
  0x32   : > { %p244_p7 = pnand %p2826_p5, %p243_p6 }
  0x34   : > { %247 = sbr.rel (%p244_p7) target bundleno = 1770 (0x6ea), region = 55 }
  0x39   : > { %v3778_v32 = vld [vmem:[%s9315_s1 + $0x1e0] sm:$0xff]  ;;  %v3783_v33 = vld [vmem:[%s9315_s1 + $0x1e8] sm:$0xff]  ;;  %v3788_v34 = vld [vmem:[%s9315_s1 + $0x1f0] sm:$0xff]  ;;  %s250_s12 = sand.u32 1, %s3635_s15   ;;  %p274_p8 = scmp.lt.s32.totalorder %s2819_s18, 1 }
  0x3a   : > { %9822 = vst [vmem:[#allocation3_spill] sm:$0xff] %v3778_v32  ;;  %484 = vmatpush.msra.mxu0 %v3778_v32  ;;  %504 = vmatpush.msra.mxu1 %v3783_v33  ;;  %v3795_v35 = vld [vmem:[%s9315_s1 + $0x1c0] sm:$0xff]  ;;  %v3800_v36 = vld [vmem:[%s9315_s1 + $0x1c8] sm:$0xff]  ;;  %v3805_v37 = vld [vmem:[%s9315_s1 + $0x1d0] sm:$0xff]  ;;  %s2827_s15 = sshll.u32 %s250_s12, 8 }
  0x3b   : > { %9823 = vst [vmem:[#allocation4_spill] sm:$0xff] %v3788_v34  ;;  %524 = vmatpush.msra.mxu2 %v3788_v34  ;;  %v3811_v38 = vld [vmem:[%s9315_s1 + $0x1a0] sm:$0xff]  ;;  %v3816_v39 = vld [vmem:[%s9315_s1 + $0x1a8] sm:$0xff]  ;;  %v3823_v40 = vld [vmem:[%s9315_s1 + $0x1b0] sm:$0xff]  ;;  %s4992_s9 = scalar_lea.vmem [#allocation2], %s2827_s15  ;;  %s10829_s18 = smov (!%p274_p8, %s2819_s18), 1 }
  0x3c   : > { %9824 = vst [vmem:[#allocation5_spill] sm:$0xff] %v3795_v35  ;;  %485 = vmatpush.msra.mxu0 %v3795_v35  ;;  %505 = vmatpush.msra.mxu1 %v3800_v36  ;;  %v3828_v41 = vld [vmem:[%s9315_s1 + $0x1f8] sm:$0xff]  ;;  %v3835_v42 = vld [vmem:[%s9315_s1 + $0x180] sm:$0xff]  ;;  %v3840_v43 = vld [vmem:[%s9315_s1 + $0x188] sm:$0xff] }
  0x3d   : > { %9825 = vst [vmem:[#allocation6_spill] sm:$0xff] %v3805_v37  ;;  %525 = vmatpush.msra.mxu2 %v3805_v37  ;;  %544 = vmatpush.msra.mxu3 %v3828_v41  ;;  %v3845_v44 = vld [vmem:[%s9315_s1 + $0x1d8] sm:$0xff]  ;;  %v3852_v45 = vld [vmem:[%s9315_s1 + $0x190] sm:$0xff]  ;;  %v3864_v47 = vld [vmem:[%s9315_s1 + $0x160] sm:$0xff] }
  0x3e   : > { %9826 = vst [vmem:[#allocation7_spill] sm:$0xff] %v3811_v38  ;;  %486 = vmatpush.msra.mxu0 %v3811_v38  ;;  %506 = vmatpush.msra.mxu1 %v3816_v39  ;;  %v3857_v46 = vld [vmem:[%s9315_s1 + $0x1b8] sm:$0xff]  ;;  %v3869_v48 = vld [vmem:[%s9315_s1 + $0x168] sm:$0xff]  ;;  %v3876_v49 = vld [vmem:[%s9315_s1 + $0x170] sm:$0xff] }
  0x3f   : > { %9827 = vst [vmem:[#allocation8_spill] sm:$0xff] %v3823_v40  ;;  %526 = vmatpush.msra.mxu2 %v3823_v40  ;;  %545 = vmatpush.msra.mxu3 %v3845_v44  ;;  %v3881_v50 = vld [vmem:[%s9315_s1 + $0x198] sm:$0xff]  ;;  %v3888_v51 = vld [vmem:[%s9315_s1 + $0x140] sm:$0xff]  ;;  %v3893_v52 = vld [vmem:[%s9315_s1 + $0x148] sm:$0xff] }
  0x40   : > { %9828 = vst [vmem:[#allocation9_spill] sm:$0xff] %v3835_v42  ;;  %487 = vmatpush.msra.mxu0 %v3835_v42  ;;  %507 = vmatpush.msra.mxu1 %v3840_v43  ;;  %v3900_v53 = vld [vmem:[%s9315_s1 + $0x150] sm:$0xff]  ;;  %v3905_v54 = vld [vmem:[%s9315_s1 + $0x178] sm:$0xff]  ;;  %v3912_v55 = vld [vmem:[%s9315_s1 + $0x120] sm:$0xff] }
  0x41   : > { %9829 = vst [vmem:[#allocation10_spill] sm:$0xff] %v3852_v45  ;;  %527 = vmatpush.msra.mxu2 %v3852_v45  ;;  %546 = vmatpush.msra.mxu3 %v3857_v46  ;;  %v3917_v56 = vld [vmem:[%s9315_s1 + $0x128] sm:$0xff]  ;;  %v3924_v57 = vld [vmem:[%s9315_s1 + $0x130] sm:$0xff]  ;;  %v3929_v58 = vld [vmem:[%s9315_s1 + $0x158] sm:$0xff] }
  0x42   : > { %9830 = vst [vmem:[#allocation11_spill] sm:$0xff] %v3864_v47  ;;  %488 = vmatpush.msra.mxu0 %v3864_v47  ;;  %508 = vmatpush.msra.mxu1 %v3869_v48  ;;  %v3936_v59 = vld [vmem:[%s9315_s1 + $0x100] sm:$0xff]  ;;  %v3941_v60 = vld [vmem:[%s9315_s1 + $0x108] sm:$0xff]  ;;  %v3948_v61 = vld [vmem:[%s9315_s1 + $0x110] sm:$0xff] }
  0x43   : > { %9831 = vst [vmem:[#allocation12_spill] sm:$0xff] %v3876_v49  ;;  %528 = vmatpush.msra.mxu2 %v3876_v49  ;;  %547 = vmatpush.msra.mxu3 %v3881_v50  ;;  %v3953_v62 = vld [vmem:[%s9315_s1 + $0x138] sm:$0xff]  ;;  %v3960_v63 = vld [vmem:[%s9315_s1 + $0xe0] sm:$0xff]  ;;  %v3965_v0 = vld [vmem:[%s9315_s1 + $0xe8] sm:$0xff] }
  0x44   : > { %9832 = vst [vmem:[#allocation13_spill] sm:$0xff] %v3888_v51  ;;  %489 = vmatpush.msra.mxu0 %v3888_v51  ;;  %509 = vmatpush.msra.mxu1 %v3893_v52  ;;  %v3972_v1 = vld [vmem:[%s9315_s1 + $0xf0] sm:$0xff]  ;;  %v3977_v2 = vld [vmem:[%s9315_s1 + $0x118] sm:$0xff]  ;;  %v3984_v3 = vld [vmem:[%s9315_s1 + $0xc0] sm:$0xff] }
  0x45   : > { %9833 = vst [vmem:[#allocation14_spill] sm:$0xff] %v3900_v53  ;;  %529 = vmatpush.msra.mxu2 %v3900_v53  ;;  %548 = vmatpush.msra.mxu3 %v3905_v54  ;;  %v3989_v4 = vld [vmem:[%s9315_s1 + $0xc8] sm:$0xff]  ;;  %v3996_v5 = vld [vmem:[%s9315_s1 + $0xd0] sm:$0xff]  ;;  %v4001_v6 = vld [vmem:[%s9315_s1 + $0xf8] sm:$0xff] }
  0x46   : > { %9834 = vst [vmem:[#allocation15_spill] sm:$0xff] %v3912_v55  ;;  %490 = vmatpush.msra.mxu0 %v3912_v55  ;;  %510 = vmatpush.msra.mxu1 %v3917_v56  ;;  %v4008_v7 = vld [vmem:[%s9315_s1 + $0xa0] sm:$0xff]  ;;  %v4013_v8 = vld [vmem:[%s9315_s1 + $0xa8] sm:$0xff]  ;;  %v4020_v9 = vld [vmem:[%s9315_s1 + $0xb0] sm:$0xff] }
  0x47   : > { %9835 = vst [vmem:[#allocation16_spill] sm:$0xff] %v3924_v57  ;;  %530 = vmatpush.msra.mxu2 %v3924_v57  ;;  %549 = vmatpush.msra.mxu3 %v3929_v58  ;;  %v4025_v10 = vld [vmem:[%s9315_s1 + $0xd8] sm:$0xff]  ;;  %v4032_v11 = vld [vmem:[%s9315_s1 + $0x80] sm:$0xff]  ;;  %v4037_v12 = vld [vmem:[%s9315_s1 + $0x88] sm:$0xff] }
  0x48   : > { %9836 = vst [vmem:[#allocation17_spill] sm:$0xff] %v3936_v59  ;;  %491 = vmatpush.msra.mxu0 %v3936_v59  ;;  %511 = vmatpush.msra.mxu1 %v3941_v60  ;;  %v4044_v13 = vld [vmem:[%s9315_s1 + $0x90] sm:$0xff]  ;;  %v4049_v14 = vld [vmem:[%s9315_s1 + $0xb8] sm:$0xff]  ;;  %v4056_v15 = vld [vmem:[%s9315_s1 + $0x60] sm:$0xff] }
  0x49   : > { %9837 = vst [vmem:[#allocation18_spill] sm:$0xff] %v3948_v61  ;;  %531 = vmatpush.msra.mxu2 %v3948_v61  ;;  %550 = vmatpush.msra.mxu3 %v3953_v62  ;;  %v4061_v16 = vld [vmem:[%s9315_s1 + $0x68] sm:$0xff]  ;;  %v4068_v17 = vld [vmem:[%s9315_s1 + $0x70] sm:$0xff]  ;;  %v4073_v18 = vld [vmem:[%s9315_s1 + $0x98] sm:$0xff] }
  0x4a   : > { %9838 = vst [vmem:[#allocation19_spill] sm:$0xff] %v3960_v63  ;;  %492 = vmatpush.msra.mxu0 %v3960_v63  ;;  %512 = vmatpush.msra.mxu1 %v3965_v0  ;;  %v4080_v19 = vld [vmem:[%s9315_s1 + $0x40] sm:$0xff]  ;;  %v4085_v20 = vld [vmem:[%s9315_s1 + $0x48] sm:$0xff]  ;;  %v4092_v21 = vld [vmem:[%s9315_s1 + $0x50] sm:$0xff] }
  0x4b   : > { %9839 = vst [vmem:[#allocation20_spill] sm:$0xff] %v3972_v1  ;;  %532 = vmatpush.msra.mxu2 %v3972_v1  ;;  %551 = vmatpush.msra.mxu3 %v3977_v2  ;;  %v4097_v22 = vld [vmem:[%s9315_s1 + $0x78] sm:$0xff]  ;;  %v4104_v23 = vld [vmem:[%s9315_s1 + $0x20] sm:$0xff]  ;;  %v4109_v24 = vld [vmem:[%s9315_s1 + $0x28] sm:$0xff] }
  0x4c   : > { %9840 = vst [vmem:[#allocation21_spill] sm:$0xff] %v3984_v3  ;;  %493 = vmatpush.msra.mxu0 %v3984_v3  ;;  %513 = vmatpush.msra.mxu1 %v3989_v4  ;;  %v4116_v25 = vld [vmem:[%s9315_s1 + $0x30] sm:$0xff]  ;;  %v4121_v26 = vld [vmem:[%s9315_s1 + $0x58] sm:$0xff]  ;;  %v4128_v27 = vld [vmem:[%s9315_s1] sm:$0xff] }
  0x4d   : > { %9841 = vst [vmem:[#allocation22_spill] sm:$0xff] %v3996_v5  ;;  %533 = vmatpush.msra.mxu2 %v3996_v5  ;;  %552 = vmatpush.msra.mxu3 %v4001_v6  ;;  %v4133_v28 = vld [vmem:[%s9315_s1 + $0x8] sm:$0xff]  ;;  %v4140_v29 = vld [vmem:[%s9315_s1 + $0x10] sm:$0xff]  ;;  %v4149_v30 = vld [vmem:[%s9315_s1 + $0x38] sm:$0xff] }
  0x4e   : > { %9842 = vst [vmem:[#allocation23_spill] sm:$0xff] %v4008_v7  ;;  %494 = vmatpush.msra.mxu0 %v4008_v7  ;;  %514 = vmatpush.msra.mxu1 %v4013_v8  ;;  %v4154_v31 = vld [vmem:[%s9316_s2 + $0x3e0] sm:$0xff]  ;;  %v4221_v7 = vld [vmem:[%s9316_s2 + $0x3a8] sm:$0xff] }
  0x4f   : > { %9843 = vst [vmem:[#allocation24_spill] sm:$0xff] %v4020_v9  ;;  %534 = vmatpush.msra.mxu2 %v4020_v9  ;;  %553 = vmatpush.msra.mxu3 %v4025_v10  ;;  %v4216_v9 = vld [vmem:[%s9316_s2 + $0x1c8] sm:$0xff]  ;;  %v4233_v5 = vld [vmem:[%s9316_s2 + $0x1a0] sm:$0xff] }
  0x50   : > { %9844 = vst [vmem:[#allocation25_spill] sm:$0xff] %v4032_v11  ;;  %495 = vmatpush.msra.mxu0 %v4032_v11  ;;  %515 = vmatpush.msra.mxu1 %v4037_v12  ;;  %v4209_v11 = vld [vmem:[%s9316_s2 + $0x1c0] sm:$0xff]  ;;  %v4240_v3 = vld [vmem:[%s9316_s2 + $0x1a8] sm:$0xff] }
  0x51   : > { %9845 = vst [vmem:[#allocation26_spill] sm:$0xff] %v4044_v13  ;;  %535 = vmatpush.msra.mxu2 %v4044_v13  ;;  %554 = vmatpush.msra.mxu3 %v4049_v14  ;;  %v4203_v13 = vld [vmem:[%s9316_s2 + $0x380] sm:$0xff]  ;;  %v4264_v63 = vld [vmem:[%s9316_s2 + $0x188] sm:$0xff] }
  0x52   : > { %9846 = vst [vmem:[#allocation27_spill] sm:$0xff] %v4056_v15  ;;  %496 = vmatpush.msra.mxu0 %v4056_v15  ;;  %516 = vmatpush.msra.mxu1 %v4061_v16  ;;  %v4198_v15 = vld [vmem:[%s9316_s2 + $0x3c8] sm:$0xff]  ;;  %v4257_v1 = vld [vmem:[%s9316_s2 + $0x180] sm:$0xff] }
  0x53   : > { %9847 = vst [vmem:[#allocation28_spill] sm:$0xff] %v4068_v17  ;;  %536 = vmatpush.msra.mxu2 %v4068_v17  ;;  %555 = vmatpush.msra.mxu3 %v4073_v18  ;;  %v9856_v17 = vmov 0.0   ;;  %v4281_v61 = vld [vmem:[%s9316_s2 + $0x160] sm:$0xff]  ;;  %v4288_v59 = vld [vmem:[%s9316_s2 + $0x168] sm:$0xff] }
  0x54   : > { %9848 = vst [vmem:[#allocation29_spill] sm:$0xff] %v4080_v19  ;;  %497 = vmatpush.msra.mxu0 %v4080_v19  ;;  %517 = vmatpush.msra.mxu1 %v4085_v20  ;;  %v4192_v19 = vld [vmem:[%s9316_s2 + $0x1e8] sm:$0xff]  ;;  %v4305_v57 = vld [vmem:[%s9316_s2 + $0x140] sm:$0xff] }
  0x55   : > { %9849 = vst [vmem:[#allocation30_spill] sm:$0xff] %v4092_v21  ;;  %537 = vmatpush.msra.mxu2 %v4092_v21  ;;  %556 = vmatpush.msra.mxu3 %v4097_v22  ;;  %v4187_v21 = vld [vmem:[%s9316_s2 + $0x1e0] sm:$0xff]  ;;  %v4312_v55 = vld [vmem:[%s9316_s2 + $0x148] sm:$0xff] }
  0x56   : > { %9850 = vst [vmem:[#allocation31_spill] sm:$0xff] %v4104_v23  ;;  %498 = vmatpush.msra.mxu0 %v4104_v23  ;;  %518 = vmatpush.msra.mxu1 %v4109_v24  ;;  %v9323_v23 = vmov 0.0   ;;  %v4329_v53 = vld [vmem:[%s9316_s2 + $0x120] sm:$0xff]  ;;  %v4336_v51 = vld [vmem:[%s9316_s2 + $0x128] sm:$0xff] }
  0x57   : > { %9851 = vst [vmem:[#allocation32_spill] sm:$0xff] %v4116_v25  ;;  %538 = vmatpush.msra.mxu2 %v4116_v25  ;;  %557 = vmatpush.msra.mxu3 %v4121_v26  ;;  %v4168_v25 = vld [vmem:[%s9316_s2 + $0x3c0] sm:$0xff]  ;;  %v4360_v47 = vld [vmem:[%s9316_s2 + $0x108] sm:$0xff] }
  0x58   : > { %9852 = vst [vmem:[#allocation33_spill] sm:$0xff] %v4128_v27  ;;  %499 = vmatpush.msra.mxu0 %v4128_v27  ;;  %519 = vmatpush.msra.mxu1 %v4133_v28  ;;  %v4163_v27 = vld [vmem:[%s9315_s1 + $0x18] sm:$0xff]  ;;  %v4353_v49 = vld [vmem:[%s9316_s2 + $0x100] sm:$0xff]  ;;  %v4384_v42 = vld [vmem:[%s9316_s2 + $0xe8] sm:$0xff] }
  0x59   : > { %9853 = vst [vmem:[#allocation34_spill] sm:$0xff] %v4140_v29  ;;  %539 = vmatpush.msra.mxu2 %v4140_v29  ;;  %500 = vmatmul.f32.vlgmr.msra.gmra.mxu0 %v9323_v23  ;;  %v4175_v29 = vld [vmem:[%s9316_s2 + $0x3e8] sm:$0xff]  ;;  %v4377_v45 = vld [vmem:[%s9316_s2 + $0xe0] sm:$0xff] }
  0x5a   : > { %520 = vmatmul.f32.vlgmr.msra.gmra.mxu1 %v9323_v23  ;;  %540 = vmatmul.f32.vlgmr.msra.gmra.mxu2 %v9323_v23  ;;  %v4180_v23 = vld [vmem:[%s9316_s2 + $0x3a0] sm:$0xff]  ;;  %9854 = vst [vmem:[#allocation35_spill] sm:$0xff] %v4187_v21  ;;  %v4408_v38 = vld [vmem:[%s9316_s2 + $0xc8] sm:$0xff] }
  0x5b   : > { %558 = vmatpush.msra.mxu3 %v4149_v30  ;;  %606 = vmatpush.msrb.mxu1 %v4154_v31  ;;  %9855 = vst [vmem:[#allocation36_spill] sm:$0xff] %v4192_v19  ;;  %v4401_v40 = vld [vmem:[%s9316_s2 + $0xc0] sm:$0xff]  ;;  %v4432_v35 = vld [vmem:[%s9316_s2 + $0xa8] sm:$0xff] }
  0x5c   : > { %586 = vmatpush.msrb.mxu0 %v4187_v21  ;;  %9857 = vst [vmem:[#allocation37_spill] sm:$0xff] %v4209_v11  ;;  %v4226_v21 = vld [vmem:[%s9316_s2 + $0x360] sm:$0xff]  ;;  %626 = vmatpush.msrb.mxu2 %v4192_v19  ;;  %v4245_v19 = vld [vmem:[%s9316_s2 + $0x388] sm:$0xff] }
  0x5d   : > { %559 = vmatpush.msra.mxu3 %v4163_v27  ;;  %607 = vmatpush.msrb.mxu1 %v4168_v25  ;;  %9858 = vst [vmem:[#allocation38_spill] sm:$0xff] %v4216_v9  ;;  %v4425_v37 = vld [vmem:[%s9316_s2 + $0xa0] sm:$0xff]  ;;  %v4456_v32 = vld [vmem:[%s9316_s2 + $0x88] sm:$0xff] }
  0x5e   : > { %560 = vmatmul.f32.vlgmr.msra.gmra.mxu3 %v9856_v17  ;;  %587 = vmatpush.msrb.mxu0 %v4209_v11  ;;  %9859 = vst [vmem:[#allocation39_spill] sm:$0xff] %v4233_v5  ;;  %v4250_v11 = vld [vmem:[%s9316_s2 + $0x340] sm:$0xff] }
  0x5f   : > { %646 = vmatpush.msrb.mxu3 %v4175_v29  ;;  %608 = vmatpush.msrb.mxu1 %v4180_v23  ;;  %9860 = vst [vmem:[#allocation40_spill] sm:$0xff] %v4240_v3  ;;  %v4449_v34 = vld [vmem:[%s9316_s2 + $0x80] sm:$0xff] }
  0x60   : > { %627 = vmatpush.msrb.mxu2 %v4216_v9  ;;  %588 = vmatpush.msrb.mxu0 %v4233_v5  ;;  %9861 = vst [vmem:[#allocation41_spill] sm:$0xff] %v4257_v1  ;;  %v4269_v9 = vld [vmem:[%s9316_s2 + $0x368] sm:$0xff]  ;;  %v4274_v5 = vld [vmem:[%s9316_s2 + $0x320] sm:$0xff] }
  0x61   : > { %647 = vmatpush.msrb.mxu3 %v4198_v15  ;;  %609 = vmatpush.msrb.mxu1 %v4203_v13  ;;  %9862 = vst [vmem:[#allocation42_spill] sm:$0xff] %v4264_v63 }
  0x62   : > { %628 = vmatpush.msrb.mxu2 %v4240_v3  ;;  %589 = vmatpush.msrb.mxu0 %v4257_v1  ;;  %9863 = vst [vmem:[#allocation43_spill] sm:$0xff] %v4281_v61  ;;  %v4293_v3 = vld [vmem:[%s9316_s2 + $0x348] sm:$0xff]  ;;  %v4298_v1 = vld [vmem:[%s9316_s2 + $0x300] sm:$0xff] }
  0x63   : > { %648 = vmatpush.msrb.mxu3 %v4221_v7  ;;  %610 = vmatpush.msrb.mxu1 %v4226_v21  ;;  %9864 = vst [vmem:[#allocation44_spill] sm:$0xff] %v4288_v59 }
  0x64   : > { %629 = vmatpush.msrb.mxu2 %v4264_v63  ;;  %590 = vmatpush.msrb.mxu0 %v4281_v61  ;;  %9865 = vst [vmem:[#allocation45_spill] sm:$0xff] %v4305_v57  ;;  %v4317_v63 = vld [vmem:[%s9316_s2 + $0x328] sm:$0xff]  ;;  %v4322_v61 = vld [vmem:[%s9316_s2 + $0x2e0] sm:$0xff] }
  0x65   : > { %649 = vmatpush.msrb.mxu3 %v4245_v19  ;;  %611 = vmatpush.msrb.mxu1 %v4250_v11  ;;  %9866 = vst [vmem:[#allocation46_spill] sm:$0xff] %v4312_v55 }
  0x66   : > { %630 = vmatpush.msrb.mxu2 %v4288_v59  ;;  %591 = vmatpush.msrb.mxu0 %v4305_v57  ;;  %9867 = vst [vmem:[#allocation47_spill] sm:$0xff] %v4329_v53  ;;  %v4341_v59 = vld [vmem:[%s9316_s2 + $0x308] sm:$0xff]  ;;  %v4346_v57 = vld [vmem:[%s9316_s2 + $0x2c0] sm:$0xff] }
  0x67   : > { %650 = vmatpush.msrb.mxu3 %v4269_v9  ;;  %612 = vmatpush.msrb.mxu1 %v4274_v5  ;;  %9868 = vst [vmem:[#allocation48_spill] sm:$0xff] %v4336_v51 }
  0x68   : > { %631 = vmatpush.msrb.mxu2 %v4312_v55  ;;  %592 = vmatpush.msrb.mxu0 %v4329_v53  ;;  %9869 = vst [vmem:[#allocation49_spill] sm:$0xff] %v4353_v49  ;;  %v4365_v55 = vld [vmem:[%s9316_s2 + $0x2e8] sm:$0xff]  ;;  %v4370_v53 = vld [vmem:[%s9316_s2 + $0x2a0] sm:$0xff] }
  0x69   : > { %651 = vmatpush.msrb.mxu3 %v4293_v3  ;;  %613 = vmatpush.msrb.mxu1 %v4298_v1  ;;  %9870 = vst [vmem:[#allocation50_spill] sm:$0xff] %v4360_v47 }
  0x6a   : > { %632 = vmatpush.msrb.mxu2 %v4336_v51  ;;  %593 = vmatpush.msrb.mxu0 %v4353_v49  ;;  %9871 = vst [vmem:[#allocation51_spill] sm:$0xff] %v4377_v45  ;;  %v4389_v51 = vld [vmem:[%s9316_s2 + $0x2c8] sm:$0xff]  ;;  %v4394_v49 = vld [vmem:[%s9316_s2 + $0x280] sm:$0xff] }
  0x6b   : > { %652 = vmatpush.msrb.mxu3 %v4317_v63  ;;  %614 = vmatpush.msrb.mxu1 %v4322_v61  ;;  %9872 = vst [vmem:[#allocation52_spill] sm:$0xff] %v4384_v42 }
  0x6c   : > { %9873 = vst [vmem:[#allocation53_spill] sm:$0xff] %v4394_v49  ;;  %633 = vmatpush.msrb.mxu2 %v4360_v47  ;;  %594 = vmatpush.msrb.mxu0 %v4377_v45  ;;  %v4413_v47 = vld [vmem:[%s9316_s2 + $0x2a8] sm:$0xff]  ;;  %v4418_v45 = vld [vmem:[%s9316_s2 + $0x260] sm:$0xff] }
  0x6d   : > { %653 = vmatpush.msrb.mxu3 %v4341_v59  ;;  %615 = vmatpush.msrb.mxu1 %v4346_v57  ;;  %9874 = vst [vmem:[#allocation54_spill] sm:$0xff] %v4401_v40 }
  0x6e   : > { %9875 = vst [vmem:[#allocation55_spill] sm:$0xff] %v4408_v38  ;;  %634 = vmatpush.msrb.mxu2 %v4384_v42  ;;  %595 = vmatpush.msrb.mxu0 %v4401_v40  ;;  %v4437_v42 = vld [vmem:[%s9316_s2 + $0x288] sm:$0xff]  ;;  %v4442_v40 = vld [vmem:[%s9316_s2 + $0x240] sm:$0xff] }
  0x6f   : > { %654 = vmatpush.msrb.mxu3 %v4365_v55  ;;  %616 = vmatpush.msrb.mxu1 %v4370_v53  ;;  %9876 = vst [vmem:[#allocation56_spill] sm:$0xff] %v4413_v47 }
  0x70   : > { %9877 = vst [vmem:[#allocation57_spill] sm:$0xff] %v4418_v45  ;;  %635 = vmatpush.msrb.mxu2 %v4408_v38  ;;  %596 = vmatpush.msrb.mxu0 %v4425_v37  ;;  %v4461_v38 = vld [vmem:[%s9316_s2 + $0x268] sm:$0xff] }
  0x71   : > { %9878 = vst [vmem:[#allocation58_spill] sm:$0xff] %v4425_v37  ;;  %655 = vmatpush.msrb.mxu3 %v4389_v51  ;;  %617 = vmatpush.msrb.mxu1 %v4394_v49  ;;  %v4466_v37 = vld [vmem:[%s9316_s2 + $0x220] sm:$0xff]  ;;  %v4556_v49 = vld [vmem:[%s9316_s2 + $0x3b0] sm:$0xff] }
  0x72   : > { %9879 = vst [vmem:[#allocation59_spill] sm:$0xff] %v4432_v35  ;;  %636 = vmatpush.msrb.mxu2 %v4432_v35  ;;  %597 = vmatpush.msrb.mxu0 %v4449_v34  ;;  %v4485_v35 = vld [vmem:[%s9316_s2 + $0x248] sm:$0xff] }
  0x73   : > { %9880 = vst [vmem:[#allocation60_spill] sm:$0xff] %v4437_v42  ;;  %656 = vmatpush.msrb.mxu3 %v4413_v47  ;;  %618 = vmatpush.msrb.mxu1 %v4418_v45  ;;  %v4473_v45 = vld [vmem:[%s9316_s2 + $0x60] sm:$0xff]  ;;  %v4480_v47 = vld [vmem:[%s9316_s2 + $0x68] sm:$0xff] }
  0x74   : > { %9881 = vst [vmem:[#allocation61_spill] sm:$0xff] %v4442_v40  ;;  %637 = vmatpush.msrb.mxu2 %v4456_v32  ;;  %598 = vmatpush.msrb.mxu0 %v4473_v45 }
  0x75   : > { %9882 = vst [vmem:[#allocation62_spill] sm:$0xff] %v4449_v34  ;;  %657 = vmatpush.msrb.mxu3 %v4437_v42  ;;  %619 = vmatpush.msrb.mxu1 %v4442_v40  ;;  %v4490_v34 = vld [vmem:[%s9316_s2 + $0x200] sm:$0xff]  ;;  %v4504_v42 = vld [vmem:[%s9316_s2 + $0x3f0] sm:$0xff] }
  0x76   : > { %9883 = vst [vmem:[#allocation63_spill] sm:$0xff] %v4456_v32  ;;  %v4497_v40 = vld [vmem:[%s9316_s2 + $0x40] sm:$0xff]  ;;  %v4509_v32 = vld [vmem:[%s9316_s2 + $0x48] sm:$0xff]  ;;  %638 = vmatpush.msrb.mxu2 %v4480_v47 }
  0x77   : > { %9884 = vst [vmem:[#allocation64_spill] sm:$0xff] %v4461_v38  ;;  %658 = vmatpush.msrb.mxu3 %v4461_v38  ;;  %620 = vmatpush.msrb.mxu1 %v4466_v37  ;;  %v4528_v38 = vld [vmem:[%s9316_s2 + $0x3d0] sm:$0xff] }
  0x78   : > { %9885 = vst [vmem:[#allocation65_spill] sm:$0xff] %v4466_v37  ;;  %599 = vmatpush.msrb.mxu0 %v4497_v40  ;;  %v4521_v37 = vld [vmem:[%s9316_s2 + $0x20] sm:$0xff]  ;;  %639 = vmatpush.msrb.mxu2 %v4509_v32 }
  0x79   : > { %9886 = vst [vmem:[#allocation66_spill] sm:$0xff] %v4473_v45  ;;  %v4514_v45 = vld [vmem:[%s9316_s2 + $0x228] sm:$0xff]  ;;  %659 = vmatpush.msrb.mxu3 %v4485_v35  ;;  %621 = vmatpush.msrb.mxu1 %v4490_v34 }
  0x7a   : > { %9887 = vst [vmem:[#allocation67_spill] sm:$0xff] %v4480_v47  ;;  %v4533_v47 = vld [vmem:[%s9316_s2 + $0x28] sm:$0xff]  ;;  %600 = vmatpush.msrb.mxu0 %v4521_v37  ;;  %622 = vmatmul.f32.vlgmr.msrb.gmra.mxu1 %v9856_v17 }
  0x7b   : > { %9888 = vst [vmem:[#allocation68_spill] sm:$0xff] %v4485_v35  ;;  %686 = vmatpush.msra.mxu1 %v4504_v42  ;;  %660 = vmatpush.msrb.mxu3 %v4514_v45  ;;  %v4551_v35 = vld [vmem:[%s9316_s2 + $0x3f8] sm:$0xff] }
  0x7c   : > { %9889 = vst [vmem:[#allocation69_spill] sm:$0xff] %v4490_v34  ;;  %v4545_v34 = vld [vmem:[%s9316_s2] sm:$0xff]  ;;  %640 = vmatpush.msrb.mxu2 %v4533_v47 }
  0x7d   : > { %9890 = vst [vmem:[#allocation70_spill] sm:$0xff] %v4497_v40  ;;  %v4538_v40 = vld [vmem:[%s9316_s2 + $0x208] sm:$0xff]  ;;  %687 = vmatpush.msra.mxu1 %v4528_v38  ;;  %601 = vmatpush.msrb.mxu0 %v4545_v34 }
  0x7e   : > { %9891 = vst [vmem:[#allocation71_spill] sm:$0xff] %v4504_v42  ;;  %661 = vmatpush.msrb.mxu3 %v4538_v40  ;;  %v4570_v42 = vld [vmem:[%s9316_s2 + $0x3d8] sm:$0xff] }
  0x7f   : > { %9892 = vst [vmem:[#allocation72_spill] sm:$0xff] %v4509_v32  ;;  %v4564_v32 = vld [vmem:[%s9316_s2 + $0x8] sm:$0xff]  ;;  %688 = vmatpush.msra.mxu1 %v4556_v49  ;;  %662 = vmatmul.f32.vlgmr.msrb.gmra.mxu3 %v9856_v17 }
  0x80   : > { %9893 = vst [vmem:[#allocation73_spill] sm:$0xff] %v4521_v37  ;;  %v4575_v37 = vld [vmem:[%s9316_s2 + $0x390] sm:$0xff]  ;;  %726 = vmatpush.msra.mxu3 %v4551_v35  ;;  %641 = vmatpush.msrb.mxu2 %v4564_v32 }
  0x81   : > { %9894 = vst [vmem:[#allocation74_spill] sm:$0xff] %v4528_v38  ;;  %v4588_v38 = vld [vmem:[%s9316_s2 + $0x3b8] sm:$0xff]  ;;  %689 = vmatpush.msra.mxu1 %v4575_v37 }
  0x82   : > { %9895 = vst [vmem:[#allocation75_spill] sm:$0xff] %v4533_v47  ;;  %v4583_v47 = vld [vmem:[%s9316_s2 + $0x1f0] sm:$0xff]  ;;  %727 = vmatpush.msra.mxu3 %v4570_v42 }
  0x83   : > { %9896 = vst [vmem:[#allocation76_spill] sm:$0xff] %v4538_v40  ;;  %v4593_v40 = vld [vmem:[%s9316_s2 + $0x370] sm:$0xff]  ;;  %666 = vmatpush.msra.mxu0 %v4583_v47 }
  0x84   : > { %9897 = vst [vmem:[#allocation77_spill] sm:$0xff] %v4545_v34  ;;  %v4602_v34 = vld [vmem:[%s9316_s2 + $0x1f8] sm:$0xff]  ;;  %728 = vmatpush.msra.mxu3 %v4588_v38  ;;  %690 = vmatpush.msra.mxu1 %v4593_v40 }
  0x85   : > { %9898 = vst [vmem:[#allocation78_spill] sm:$0xff] %v4556_v49  ;;  %v4607_v49 = vld [vmem:[%s9316_s2 + $0x398] sm:$0xff]  ;;  %706 = vmatpush.msra.mxu2 %v4602_v34 }
  0x86   : > { %9899 = vst [vmem:[#allocation79_spill] sm:$0xff] %v4564_v32  ;;  %v4612_v32 = vld [vmem:[%s9316_s2 + $0x350] sm:$0xff]  ;;  %729 = vmatpush.msra.mxu3 %v4607_v49 }
  0x87   : > { %9900 = vst [vmem:[#allocation80_spill] sm:$0xff] %v4570_v42  ;;  %v4626_v42 = vld [vmem:[%s9316_s2 + $0x330] sm:$0xff]  ;;  %691 = vmatpush.msra.mxu1 %v4612_v32 }
  0x88   : > { %9901 = vst [vmem:[#allocation81_spill] sm:$0xff] %v4575_v37  ;;  %v4621_v37 = vld [vmem:[%s9316_s2 + $0x378] sm:$0xff] }
  0x89   : > { %9902 = vst [vmem:[#allocation82_spill] sm:$0xff] %v4583_v47  ;;  %v4634_v47 = vld [vmem:[%s9316_s2 + $0x358] sm:$0xff]  ;;  %730 = vmatpush.msra.mxu3 %v4621_v37  ;;  %692 = vmatpush.msra.mxu1 %v4626_v42 }
  0x8a   : > { %9903 = vst [vmem:[#allocation83_spill] sm:$0xff] %v4593_v40  ;;  %v4639_v40 = vld [vmem:[%s9316_s2 + $0x310] sm:$0xff] }
  0x8b   : > { %9904 = vst [vmem:[#allocation84_spill] sm:$0xff] %v4602_v34  ;;  %v4646_v34 = vld [vmem:[%s9316_s2 + $0x338] sm:$0xff]  ;;  %731 = vmatpush.msra.mxu3 %v4634_v47  ;;  %693 = vmatpush.msra.mxu1 %v4639_v40 }
  0x8c   : > { %9905 = vst [vmem:[#allocation85_spill] sm:$0xff] %v4612_v32  ;;  %v4651_v32 = vld [vmem:[%s9316_s2 + $0x2f0] sm:$0xff] }
  0x8d   : > { %9906 = vst [vmem:[#allocation86_spill] sm:$0xff] %v4621_v37  ;;  %v4658_v37 = vld [vmem:[%s9316_s2 + $0x318] sm:$0xff]  ;;  %732 = vmatpush.msra.mxu3 %v4646_v34  ;;  %694 = vmatpush.msra.mxu1 %v4651_v32 }
  0x8e   : > { %9907 = vst [vmem:[#allocation87_spill] sm:$0xff] %v4626_v42  ;;  %v4663_v42 = vld [vmem:[%s9316_s2 + $0x2d0] sm:$0xff] }
  0x8f   : > { %9908 = vst [vmem:[#allocation88_spill] sm:$0xff] %v4634_v47  ;;  %v4670_v47 = vld [vmem:[%s9316_s2 + $0x2f8] sm:$0xff]  ;;  %733 = vmatpush.msra.mxu3 %v4658_v37  ;;  %695 = vmatpush.msra.mxu1 %v4663_v42 }
  0x90   : > { %9909 = vst [vmem:[#allocation89_spill] sm:$0xff] %v4639_v40  ;;  %v4675_v40 = vld [vmem:[%s9316_s2 + $0x2b0] sm:$0xff] }
  0x91   : > { %9910 = vst [vmem:[#allocation90_spill] sm:$0xff] %v4646_v34  ;;  %v4682_v34 = vld [vmem:[%s9316_s2 + $0x2d8] sm:$0xff]  ;;  %734 = vmatpush.msra.mxu3 %v4670_v47  ;;  %696 = vmatpush.msra.mxu1 %v4675_v40 }
  0x92   : > { %9911 = vst [vmem:[#allocation91_spill] sm:$0xff] %v4651_v32  ;;  %v4687_v32 = vld [vmem:[%s9316_s2 + $0x290] sm:$0xff] }
  0x93   : > { %9912 = vst [vmem:[#allocation92_spill] sm:$0xff] %v4658_v37  ;;  %v4694_v37 = vld [vmem:[%s9316_s2 + $0x2b8] sm:$0xff]  ;;  %735 = vmatpush.msra.mxu3 %v4682_v34  ;;  %697 = vmatpush.msra.mxu1 %v4687_v32 }
  0x94   : > { %9913 = vst [vmem:[#allocation93_spill] sm:$0xff] %v4663_v42  ;;  %v4699_v42 = vld [vmem:[%s9316_s2 + $0x270] sm:$0xff] }
  0x95   : > { %9914 = vst [vmem:[#allocation94_spill] sm:$0xff] %v4670_v47  ;;  %v4706_v47 = vld [vmem:[%s9316_s2 + $0x298] sm:$0xff]  ;;  %736 = vmatpush.msra.mxu3 %v4694_v37  ;;  %698 = vmatpush.msra.mxu1 %v4699_v42 }
  0x96   : > { %9915 = vst [vmem:[#allocation95_spill] sm:$0xff] %v4675_v40  ;;  %v4711_v40 = vld [vmem:[%s9316_s2 + $0x250] sm:$0xff] }
  0x97   : > { %9916 = vst [vmem:[#allocation96_spill] sm:$0xff] %v4682_v34  ;;  %v4718_v34 = vld [vmem:[%s9316_s2 + $0x278] sm:$0xff]  ;;  %737 = vmatpush.msra.mxu3 %v4706_v47  ;;  %699 = vmatpush.msra.mxu1 %v4711_v40 }
  0x98   : > { %9917 = vst [vmem:[#allocation97_spill] sm:$0xff] %v4687_v32  ;;  %v4723_v32 = vld [vmem:[%s9316_s2 + $0x230] sm:$0xff] }
  0x99   : > { %9918 = vst [vmem:[#allocation98_spill] sm:$0xff] %v4694_v37  ;;  %v4730_v37 = vld [vmem:[%s9316_s2 + $0x258] sm:$0xff]  ;;  %738 = vmatpush.msra.mxu3 %v4718_v34  ;;  %700 = vmatpush.msra.mxu1 %v4723_v32 }
  0x9a   : > { %9919 = vst [vmem:[#allocation99_spill] sm:$0xff] %v4699_v42  ;;  %v4735_v42 = vld [vmem:[%s9316_s2 + $0x210] sm:$0xff] }
  0x9b   : > { %9920 = vst [vmem:[#allocation100_spill] sm:$0xff] %v4706_v47  ;;  %v4742_v47 = vld [vmem:[%s9316_s2 + $0x238] sm:$0xff]  ;;  %739 = vmatpush.msra.mxu3 %v4730_v37  ;;  %701 = vmatpush.msra.mxu1 %v4735_v42 }
  0x9c   : > { %9921 = vst [vmem:[#allocation101_spill] sm:$0xff] %v4711_v40  ;;  %v4749_v40 = vld [vmem:[%s9316_s2 + $0x218] sm:$0xff]  ;;  %702 = vmatmul.f32.vlgmr.msra.gmra.mxu1 %v9856_v17 }
  0x9d   : > { %789 = vmatpush.msrb.mxu1 %v3783_v33  ;;  %740 = vmatpush.msra.mxu3 %v4742_v47  ;;  %v4786_v33 = vld [vmem:[%s9316_s2 + $0x1d0] sm:$0xff] }
  0x9e   : > { %667 = vmatpush.msra.mxu0 %v4786_v33 }
  0x9f   : > { %790 = vmatpush.msrb.mxu1 %v3800_v36  ;;  %741 = vmatpush.msra.mxu3 %v4749_v40  ;;  %v4791_v36 = vld [vmem:[%s9316_s2 + $0x1d8] sm:$0xff] }
  0xa0   : > { %742 = vmatmul.f32.vlgmr.msra.gmra.mxu3 %v9856_v17  ;;  %707 = vmatpush.msra.mxu2 %v4791_v36  ;;  %v9928_v17 = vld [vmem:[#allocation65_spill] sm:$0xff] }
  0xa1   : > { %829 = vmatpush.msrb.mxu3 %v3828_v41  ;;  %791 = vmatpush.msrb.mxu1 %v3816_v39  ;;  %v4798_v39 = vld [vmem:[%s9316_s2 + $0x1b0] sm:$0xff]  ;;  %v4803_v41 = vld [vmem:[%s9316_s2 + $0x1b8] sm:$0xff] }
  0xa2   : > { %668 = vmatpush.msra.mxu0 %v4798_v39  ;;  %708 = vmatpush.msra.mxu2 %v4803_v41 }
  0xa3   : > { %830 = vmatpush.msrb.mxu3 %v3845_v44  ;;  %792 = vmatpush.msrb.mxu1 %v3840_v43  ;;  %v4812_v43 = vld [vmem:[%s9316_s2 + $0x190] sm:$0xff]  ;;  %v4817_v44 = vld [vmem:[%s9316_s2 + $0x198] sm:$0xff] }
  0xa4   : > { %669 = vmatpush.msra.mxu0 %v4812_v43  ;;  %709 = vmatpush.msra.mxu2 %v4817_v44 }
  0xa5   : > { %831 = vmatpush.msrb.mxu3 %v3857_v46  ;;  %793 = vmatpush.msrb.mxu1 %v3869_v48  ;;  %v4826_v46 = vld [vmem:[%s9316_s2 + $0x170] sm:$0xff]  ;;  %v4831_v48 = vld [vmem:[%s9316_s2 + $0x178] sm:$0xff] }
  0xa6   : > { %670 = vmatpush.msra.mxu0 %v4826_v46  ;;  %710 = vmatpush.msra.mxu2 %v4831_v48 }
  0xa7   : > { %832 = vmatpush.msrb.mxu3 %v3881_v50  ;;  %794 = vmatpush.msrb.mxu1 %v3893_v52  ;;  %v4840_v50 = vld [vmem:[%s9316_s2 + $0x150] sm:$0xff]  ;;  %v4845_v52 = vld [vmem:[%s9316_s2 + $0x158] sm:$0xff] }
  0xa8   : > { %671 = vmatpush.msra.mxu0 %v4840_v50  ;;  %711 = vmatpush.msra.mxu2 %v4845_v52 }
  0xa9   : > { %833 = vmatpush.msrb.mxu3 %v3905_v54  ;;  %795 = vmatpush.msrb.mxu1 %v3917_v56  ;;  %v4854_v54 = vld [vmem:[%s9316_s2 + $0x130] sm:$0xff]  ;;  %v4859_v56 = vld [vmem:[%s9316_s2 + $0x138] sm:$0xff] }
  0xaa   : > { %672 = vmatpush.msra.mxu0 %v4854_v54  ;;  %712 = vmatpush.msra.mxu2 %v4859_v56 }
  0xab   : > { %834 = vmatpush.msrb.mxu3 %v3929_v58  ;;  %796 = vmatpush.msrb.mxu1 %v3941_v60  ;;  %v4868_v58 = vld [vmem:[%s9316_s2 + $0x110] sm:$0xff]  ;;  %v4873_v60 = vld [vmem:[%s9316_s2 + $0x118] sm:$0xff] }
  0xac   : > { %673 = vmatpush.msra.mxu0 %v4868_v58  ;;  %713 = vmatpush.msra.mxu2 %v4873_v60 }
  0xad   : > { %835 = vmatpush.msrb.mxu3 %v3953_v62  ;;  %797 = vmatpush.msrb.mxu1 %v3965_v0  ;;  %v4882_v62 = vld [vmem:[%s9316_s2 + $0xf0] sm:$0xff]  ;;  %v4887_v0 = vld [vmem:[%s9316_s2 + $0xf8] sm:$0xff] }
  0xae   : > { %674 = vmatpush.msra.mxu0 %v4882_v62  ;;  %714 = vmatpush.msra.mxu2 %v4887_v0 }
  0xaf   : > { %836 = vmatpush.msrb.mxu3 %v3977_v2  ;;  %798 = vmatpush.msrb.mxu1 %v3989_v4  ;;  %v4896_v2 = vld [vmem:[%s9316_s2 + $0xd0] sm:$0xff]  ;;  %v4901_v4 = vld [vmem:[%s9316_s2 + $0xd8] sm:$0xff] }
  0xb0   : > { %675 = vmatpush.msra.mxu0 %v4896_v2  ;;  %715 = vmatpush.msra.mxu2 %v4901_v4 }
  0xb1   : > { %837 = vmatpush.msrb.mxu3 %v4001_v6  ;;  %799 = vmatpush.msrb.mxu1 %v4013_v8  ;;  %v4910_v6 = vld [vmem:[%s9316_s2 + $0xb0] sm:$0xff]  ;;  %v4929_v8 = vld [vmem:[%s9316_s2 + $0x98] sm:$0xff] }
  0xb2   : > { %676 = vmatpush.msra.mxu0 %v4910_v6 }
  0xb3   : > { %838 = vmatpush.msrb.mxu3 %v4025_v10  ;;  %800 = vmatpush.msrb.mxu1 %v4037_v12  ;;  %v9923_v10 = vld [vmem:[#allocation56_spill] sm:$0xff] }
  0xb4   : > { %v9925_v12 = vld [vmem:[#allocation60_spill] sm:$0xff] }
  0xb5   : > { %839 = vmatpush.msrb.mxu3 %v4049_v14  ;;  %801 = vmatpush.msrb.mxu1 %v4061_v16  ;;  %v481_v14 = vld [vmem:[%s4992_s9 + $0x8] sm:$0xff] }
  0xb6   : > { %v9927_v16 = vld [vmem:[#allocation64_spill] sm:$0xff] }
  0xb7   : > { %840 = vmatpush.msrb.mxu3 %v4073_v18  ;;  %802 = vmatpush.msrb.mxu1 %v4085_v20 }
  0xb9   : > { %841 = vmatpush.msrb.mxu3 %v4097_v22  ;;  %803 = vmatpush.msrb.mxu1 %v4109_v24  ;;  %v9930_v22 = vld [vmem:[#allocation69_spill] sm:$0xff] }
  0xbb   : > { %842 = vmatpush.msrb.mxu3 %v4121_v26  ;;  %804 = vmatpush.msrb.mxu1 %v4133_v28  ;;  %v9931_v26 = vld [vmem:[#allocation76_spill] sm:$0xff] }
  0xbd   : > { %843 = vmatpush.msrb.mxu3 %v4149_v30  ;;  %891 = vmatpush.msra.mxu1 %v4154_v31 }
  0xbf   : > { %844 = vmatpush.msrb.mxu3 %v4163_v27  ;;  %892 = vmatpush.msra.mxu1 %v4168_v25  ;;  %v482_v25 = vld [vmem:[%s4992_s9 + $0x10] sm:$0xff] }
  0xc1   : > { %931 = vmatpush.msra.mxu3 %v4175_v29  ;;  %893 = vmatpush.msra.mxu1 %v4180_v23  ;;  %v483_v29 = vld [vmem:[%s4992_s9 + $0x18] sm:$0xff] }
  0xc3   : > { %932 = vmatpush.msra.mxu3 %v4198_v15  ;;  %894 = vmatpush.msra.mxu1 %v4203_v13  ;;  %v9926_v13 = vld [vmem:[#allocation61_spill] sm:$0xff] }
  0xc5   : > { %933 = vmatpush.msra.mxu3 %v4221_v7  ;;  %895 = vmatpush.msra.mxu1 %v4226_v21  ;;  %v4915_v7 = vld [vmem:[%s9316_s2 + $0xb8] sm:$0xff]  ;;  %v9929_v21 = vld [vmem:[#allocation68_spill] sm:$0xff] }
  0xc6   : > { %716 = vmatpush.msra.mxu2 %v4915_v7 }
  0xc7   : > { %934 = vmatpush.msra.mxu3 %v4245_v19  ;;  %896 = vmatpush.msra.mxu1 %v4250_v11  ;;  %v9924_v11 = vld [vmem:[#allocation57_spill] sm:$0xff] }
  0xc8   : > { %717 = vmatpush.msra.mxu2 %v4929_v8 }
  0xc9   : > { %935 = vmatpush.msra.mxu3 %v4269_v9  ;;  %897 = vmatpush.msra.mxu1 %v4274_v5  ;;  %v4924_v5 = vld [vmem:[%s9316_s2 + $0x90] sm:$0xff] }
  0xca   : > { %677 = vmatpush.msra.mxu0 %v4924_v5  ;;  %v9922_v9 = vld [vmem:[#allocation53_spill] sm:$0xff] }
  0xcb   : > { %936 = vmatpush.msra.mxu3 %v4293_v3  ;;  %898 = vmatpush.msra.mxu1 %v4298_v1  ;;  %v4939_v1 = vld [vmem:[%s9316_s2 + $0x70] sm:$0xff]  ;;  %v4944_v3 = vld [vmem:[%s9316_s2 + $0x78] sm:$0xff] }
  0xcc   : > { %678 = vmatpush.msra.mxu0 %v4939_v1  ;;  %718 = vmatpush.msra.mxu2 %v4944_v3 }
  0xcd   : > { %937 = vmatpush.msra.mxu3 %v4317_v63  ;;  %899 = vmatpush.msra.mxu1 %v4322_v61  ;;  %v4953_v61 = vld [vmem:[%s9316_s2 + $0x50] sm:$0xff]  ;;  %v4958_v63 = vld [vmem:[%s9316_s2 + $0x58] sm:$0xff] }
  0xce   : > { %679 = vmatpush.msra.mxu0 %v4953_v61  ;;  %719 = vmatpush.msra.mxu2 %v4958_v63 }
  0xcf   : > { %938 = vmatpush.msra.mxu3 %v4341_v59  ;;  %900 = vmatpush.msra.mxu1 %v4346_v57  ;;  %v4967_v57 = vld [vmem:[%s9316_s2 + $0x30] sm:$0xff]  ;;  %v4972_v59 = vld [vmem:[%s9316_s2 + $0x38] sm:$0xff] }
  0xd0   : > { %680 = vmatpush.msra.mxu0 %v4967_v57  ;;  %720 = vmatpush.msra.mxu2 %v4972_v59 }
  0xd1   : > { %939 = vmatpush.msra.mxu3 %v4365_v55  ;;  %901 = vmatpush.msra.mxu1 %v4370_v53  ;;  %v4981_v53 = vld [vmem:[%s9316_s2 + $0x10] sm:$0xff]  ;;  %v4986_v55 = vld [vmem:[%s9316_s2 + $0x18] sm:$0xff] }
  0xd2   : > { %681 = vmatpush.msra.mxu0 %v4981_v53  ;;  %721 = vmatpush.msra.mxu2 %v4986_v55 }
  0xd3   : > { %940 = vmatpush.msra.mxu3 %v4389_v51  ;;  %902 = vmatpush.msra.mxu1 %v9922_v9  ;;  %v480_v51 = vld [vmem:[%s4992_s9] sm:$0xff] }
  0xd5   : > { %941 = vmatpush.msra.mxu3 %v9923_v10  ;;  %903 = vmatpush.msra.mxu1 %v9924_v11 }
  0xd6   : > { %v501_v15 = vpop.f32.mrf.mxu0 }
  0xd7   : > { %942 = vmatpush.msra.mxu3 %v9925_v12  ;;  %904 = vmatpush.msra.mxu1 %v9926_v13  ;;  %v564_v18 = vadd.f32 %v501_v15, %v480_v51  ;;  %v521_v19 = vpop.f32.mrf.mxu1 }
  0xd8   : > { %v565_v20 = vadd.f32 %v521_v19, %v481_v14 }
  0xd9   : > { %943 = vmatpush.msra.mxu3 %v9927_v16  ;;  %905 = vmatpush.msra.mxu1 %v9928_v17  ;;  %v568_v23 = vmul.f32 0.5, %v564_v18 }
  0xda   : > { %v572_v24 = vmul.f32 0.5, %v565_v20 }
  0xdb   : > { %944 = vmatpush.msra.mxu3 %v9929_v21  ;;  %906 = vmatpush.msra.mxu1 %v9930_v22  ;;  %2885 = vtanh.f32 %v568_v23  ;;  %v9932_v23 = vld [vmem:[#allocation3_spill] sm:$0xff] }
  0xdc   : > { %2887 = vtanh.f32 %v572_v24  ;;  %v9933_v24 = vld [vmem:[#allocation4_spill] sm:$0xff] }
  0xdd   : > { %945 = vmatpush.msra.mxu3 %v4514_v45  ;;  %v541_v27 = vpop.f32.mrf.mxu2 }
  0xde   : > { %v566_v28 = vadd.f32 %v541_v27, %v482_v25  ;;  %v9934_v25 = vld [vmem:[#allocation5_spill] sm:$0xff]  ;;  %v9936_v27 = vld [vmem:[#allocation6_spill] sm:$0xff] }
  0xdf   : > { %946 = vmatpush.msra.mxu3 %v9931_v26  ;;  %v9935_v26 = vld [vmem:[#allocation71_spill] sm:$0xff] }
  0xe0   : > { %2889 = vtanh.f32 %v566_v28  ;;  %v9937_v28 = vld [vmem:[#allocation7_spill] sm:$0xff] }
  0xe1   : > { %v2886_v30 = vpop.eup %2885  ;;  %v561_v31 = vpop.f32.mrf.mxu3 }
  0xe2   : > { %v2888_v9 = vpop.eup %2887  ;;  %v570_v10 = vmul.f32 0.5, %v2886_v30  ;;  %v567_v11 = vadd.f32 %v561_v31, %v483_v29  ;;  %v9938_v29 = vld [vmem:[#allocation74_spill] sm:$0xff]  ;;  %v9939_v30 = vld [vmem:[#allocation8_spill] sm:$0xff] }
  0xe3   : > { %v574_v51 = vmul.f32 0.5, %v2888_v9  ;;  %v9940_v31 = vld [vmem:[#allocation80_spill] sm:$0xff]  ;;  %v9941_v9 = vld [vmem:[#allocation9_spill] sm:$0xff] }
  0xe4   : > { %v571_v12 = vadd.f32 0.5, %v570_v10  ;;  %v577_v13 = vmul.f32 0.5, %v567_v11  ;;  %v9942_v10 = vld [vmem:[#allocation78_spill] sm:$0xff] }
  0xe5   : > { %v575_v14 = vadd.f32 0.5, %v574_v51  ;;  %v9943_v11 = vld [vmem:[#allocation10_spill] sm:$0xff]  ;;  %v9944_v51 = vld [vmem:[#allocation11_spill] sm:$0xff] }
  0xe6   : > { %v2890_v15 = vpop.eup %2889  ;;  %2891 = vtanh.f32 %v577_v13  ;;  %v9947_v13 = vld [vmem:[#allocation81_spill] sm:$0xff] }
  0xe7   : > { %v581_v45 = vmul.f32 0.0, %v575_v14  ;;  %v582_v16 = vmul.f32 %v2890_v15, %v571_v12  ;;  %v9946_v12 = vld [vmem:[#allocation13_spill] sm:$0xff]  ;;  %v9948_v14 = vld [vmem:[#allocation14_spill] sm:$0xff]  ;;  %v9949_v15 = vld [vmem:[#allocation15_spill] sm:$0xff] }
  0xe9   : > { %v5006_v17 = vadd.f32 %v582_v16, %v581_v45  ;;  %v9950_v45 = vld [vmem:[#allocation83_spill] sm:$0xff]  ;;  %v9951_v16 = vld [vmem:[#allocation16_spill] sm:$0xff] }
  0xeb   : > { %2893 = vtanh.f32 %v5006_v17 }
  0xec   : > { %v2892_v18 = vpop.eup %2891 }
  0xed   : > { %v579_v19 = vmul.f32 0.5, %v2892_v18  ;;  %v9952_v18 = vld [vmem:[#allocation86_spill] sm:$0xff] }
  0xef   : > { %v580_v20 = vadd.f32 0.5, %v579_v19  ;;  %v9953_v19 = vld [vmem:[#allocation17_spill] sm:$0xff] }
  0xf1   : > { %v2894_v21 = vpop.eup %2893 }
  0xf2   : > { %v5009_v22 = vmul.f32 %v2894_v21, %v580_v20  ;;  %v9954_v20 = vld [vmem:[#allocation85_spill] sm:$0xff]  ;;  %v9956_v21 = vld [vmem:[#allocation88_spill] sm:$0xff] }
  0xf4   : > { %602 = vmatmul.f32.vlgmr.msrb.gmra.mxu0 %v5009_v22  ;;  %642 = vmatmul.f32.vlgmr.msrb.gmra.mxu2 %v5009_v22 }
  0xf5   : > { %769 = vmatpush.msrb.mxu0 %v9932_v23  ;;  %805 = vmatmul.f32.vlgmr.msrb.gmra.mxu1 %v5009_v22  ;;  %v9957_v23 = vld [vmem:[#allocation19_spill] sm:$0xff] }
  0xf6   : > { %809 = vmatpush.msrb.mxu2 %v9933_v24  ;;  %845 = vmatmul.f32.vlgmr.msrb.gmra.mxu3 %v5009_v22  ;;  %v9958_v24 = vld [vmem:[#allocation87_spill] sm:$0xff] }
  0xf7   : > { %770 = vmatpush.msrb.mxu0 %v9934_v25  ;;  %971 = vmatpush.msrb.mxu1 %v9935_v26  ;;  %v9960_v25 = vld [vmem:[#allocation90_spill] sm:$0xff]  ;;  %v9961_v26 = vld [vmem:[#allocation21_spill] sm:$0xff] }
  0xf8   : > { %810 = vmatpush.msrb.mxu2 %v9936_v27  ;;  %1011 = vmatpush.msrb.mxu3 %v4551_v35  ;;  %v9945_v35 = vld [vmem:[#allocation12_spill] sm:$0xff]  ;;  %v9962_v27 = vld [vmem:[#allocation89_spill] sm:$0xff] }
  0xf9   : > { %771 = vmatpush.msrb.mxu0 %v9937_v28  ;;  %972 = vmatpush.msrb.mxu1 %v9938_v29  ;;  %v9963_v28 = vld [vmem:[#allocation22_spill] sm:$0xff]  ;;  %v9964_v29 = vld [vmem:[#allocation92_spill] sm:$0xff] }
  0xfa   : > { %811 = vmatpush.msrb.mxu2 %v9939_v30  ;;  %1012 = vmatpush.msrb.mxu3 %v9940_v31  ;;  %v9965_v30 = vld [vmem:[#allocation23_spill] sm:$0xff] }
  0xfb   : > { %772 = vmatpush.msrb.mxu0 %v9941_v9  ;;  %973 = vmatpush.msrb.mxu1 %v9942_v10  ;;  %v9966_v31 = vld [vmem:[#allocation91_spill] sm:$0xff]  ;;  %v9967_v9 = vld [vmem:[#allocation24_spill] sm:$0xff]  ;;  %v9968_v10 = vld [vmem:[#allocation94_spill] sm:$0xff] }
  0xfc   : > { %812 = vmatpush.msrb.mxu2 %v9943_v11  ;;  %682 = vmatmul.f32.vlgmr.msra.gmra.mxu0 %v5009_v22  ;;  %v9969_v11 = vld [vmem:[#allocation25_spill] sm:$0xff] }
  0xfd   : > { %722 = vmatmul.f32.vlgmr.msra.gmra.mxu2 %v5009_v22  ;;  %773 = vmatpush.msrb.mxu0 %v9944_v51  ;;  %v9970_v51 = vld [vmem:[#allocation93_spill] sm:$0xff] }
  0xfe   : > { %813 = vmatpush.msrb.mxu2 %v9945_v35  ;;  %1013 = vmatpush.msrb.mxu3 %v4588_v38  ;;  %v9955_v38 = vld [vmem:[#allocation18_spill] sm:$0xff] }
  0xff   : > { %774 = vmatpush.msrb.mxu0 %v9946_v12  ;;  %974 = vmatpush.msrb.mxu1 %v9947_v13  ;;  %v9971_v35 = vld [vmem:[#allocation26_spill] sm:$0xff]  ;;  %v9972_v12 = vld [vmem:[#allocation96_spill] sm:$0xff]  ;;  %v9973_v13 = vld [vmem:[#allocation27_spill] sm:$0xff] }
 0x100   : > { %814 = vmatpush.msrb.mxu2 %v9948_v14  ;;  %1014 = vmatpush.msrb.mxu3 %v4607_v49  ;;  %v9959_v49 = vld [vmem:[#allocation20_spill] sm:$0xff]  ;;  %v9974_v14 = vld [vmem:[#allocation95_spill] sm:$0xff] }
 0x101   : > { %775 = vmatpush.msrb.mxu0 %v9949_v15  ;;  %975 = vmatpush.msrb.mxu1 %v9950_v45  ;;  %v9975_v15 = vld [vmem:[#allocation28_spill] sm:$0xff]  ;;  %v9976_v45 = vld [vmem:[#allocation98_spill] sm:$0xff] }
 0x102   : > { %815 = vmatpush.msrb.mxu2 %v9951_v16  ;;  %1015 = vmatpush.msrb.mxu3 %v9952_v18  ;;  %v9977_v16 = vld [vmem:[#allocation29_spill] sm:$0xff] }
 0x103   : > { %776 = vmatpush.msrb.mxu0 %v9953_v19  ;;  %976 = vmatpush.msrb.mxu1 %v9954_v20  ;;  %v9978_v18 = vld [vmem:[#allocation97_spill] sm:$0xff]  ;;  %v9979_v19 = vld [vmem:[#allocation30_spill] sm:$0xff]  ;;  %v9980_v20 = vld [vmem:[#allocation100_spill] sm:$0xff] }
 0x104   : > { %816 = vmatpush.msrb.mxu2 %v9955_v38  ;;  %1016 = vmatpush.msrb.mxu3 %v9956_v21  ;;  %v9981_v38 = vld [vmem:[#allocation31_spill] sm:$0xff] }
 0x105   : > { %777 = vmatpush.msrb.mxu0 %v9957_v23  ;;  %977 = vmatpush.msrb.mxu1 %v9958_v24  ;;  %v9982_v21 = vld [vmem:[#allocation99_spill] sm:$0xff]  ;;  %v9983_v23 = vld [vmem:[#allocation32_spill] sm:$0xff]  ;;  %v9984_v24 = vld [vmem:[#allocation33_spill] sm:$0xff] }
 0x106   : > { %817 = vmatpush.msrb.mxu2 %v9959_v49  ;;  %1017 = vmatpush.msrb.mxu3 %v9960_v25  ;;  %v9985_v49 = vld [vmem:[#allocation101_spill] sm:$0xff]  ;;  %v9986_v25 = vld [vmem:[#allocation34_spill] sm:$0xff] }
 0x107   : > { %778 = vmatpush.msrb.mxu0 %v9961_v26  ;;  %978 = vmatpush.msrb.mxu1 %v9962_v27  ;;  %v9987_v26 = vld [vmem:[#allocation35_spill] sm:$0xff]  ;;  %v9988_v27 = vld [vmem:[#allocation36_spill] sm:$0xff] }
 0x108   : > { %818 = vmatpush.msrb.mxu2 %v9963_v28  ;;  %1018 = vmatpush.msrb.mxu3 %v9964_v29  ;;  %v9989_v28 = vld [vmem:[#allocation37_spill] sm:$0xff]  ;;  %v9991_v29 = vld [vmem:[#allocation39_spill] sm:$0xff] }
 0x109   : > { %779 = vmatpush.msrb.mxu0 %v9965_v30  ;;  %979 = vmatpush.msrb.mxu1 %v9966_v31  ;;  %v9992_v30 = vld [vmem:[#allocation40_spill] sm:$0xff]  ;;  %v9994_v31 = vld [vmem:[#allocation42_spill] sm:$0xff] }
 0x10a   : > { %819 = vmatpush.msrb.mxu2 %v9967_v9  ;;  %1019 = vmatpush.msrb.mxu3 %v9968_v10  ;;  %v9996_v9 = vld [vmem:[#allocation44_spill] sm:$0xff]  ;;  %v9998_v10 = vld [vmem:[#allocation46_spill] sm:$0xff] }
 0x10b   : > { %780 = vmatpush.msrb.mxu0 %v9969_v11  ;;  %980 = vmatpush.msrb.mxu1 %v9970_v51  ;;  %v10000_v11 = vld [vmem:[#allocation48_spill] sm:$0xff]  ;;  %v10002_v51 = vld [vmem:[#allocation50_spill] sm:$0xff] }
 0x10c   : > { %820 = vmatpush.msrb.mxu2 %v9971_v35  ;;  %1020 = vmatpush.msrb.mxu3 %v9972_v12  ;;  %v10004_v35 = vld [vmem:[#allocation52_spill] sm:$0xff]  ;;  %v10005_v12 = vld [vmem:[#allocation54_spill] sm:$0xff] }
 0x10d   : > { %781 = vmatpush.msrb.mxu0 %v9973_v13  ;;  %981 = vmatpush.msrb.mxu1 %v9974_v14  ;;  %v10006_v13 = vld [vmem:[#allocation55_spill] sm:$0xff]  ;;  %v10007_v14 = vld [vmem:[#allocation58_spill] sm:$0xff] }
 0x10e   : > { %821 = vmatpush.msrb.mxu2 %v9975_v15  ;;  %1021 = vmatpush.msrb.mxu3 %v9976_v45  ;;  %v10008_v15 = vld [vmem:[#allocation59_spill] sm:$0xff]  ;;  %v10009_v45 = vld [vmem:[#allocation62_spill] sm:$0xff] }
 0x10f   : > { %782 = vmatpush.msrb.mxu0 %v9977_v16  ;;  %982 = vmatpush.msrb.mxu1 %v9978_v18  ;;  %v10010_v16 = vld [vmem:[#allocation63_spill] sm:$0xff]  ;;  %v10011_v18 = vld [vmem:[#allocation66_spill] sm:$0xff] }
 0x110   : > { %822 = vmatpush.msrb.mxu2 %v9979_v19  ;;  %1022 = vmatpush.msrb.mxu3 %v9980_v20  ;;  %v10012_v19 = vld [vmem:[#allocation67_spill] sm:$0xff]  ;;  %v10013_v20 = vld [vmem:[#allocation70_spill] sm:$0xff] }
 0x111   : > { %783 = vmatpush.msrb.mxu0 %v9981_v38  ;;  %983 = vmatpush.msrb.mxu1 %v9982_v21  ;;  %v10014_v38 = vld [vmem:[#allocation72_spill] sm:$0xff]  ;;  %v10015_v21 = vld [vmem:[#allocation73_spill] sm:$0xff] }
 0x112   : > { %823 = vmatpush.msrb.mxu2 %v9983_v23  ;;  %1023 = vmatpush.msrb.mxu3 %v4718_v34  ;;  %v9990_v34 = vld [vmem:[#allocation38_spill] sm:$0xff]  ;;  %v10016_v23 = vld [vmem:[#allocation75_spill] sm:$0xff] }
 0x113   : > { %784 = vmatpush.msrb.mxu0 %v9984_v24  ;;  %984 = vmatpush.msrb.mxu1 %v9985_v49  ;;  %v10017_v24 = vld [vmem:[#allocation77_spill] sm:$0xff]  ;;  %v10018_v49 = vld [vmem:[#allocation79_spill] sm:$0xff] }
 0x114   : > { %824 = vmatpush.msrb.mxu2 %v9986_v25  ;;  %785 = vmatmul.f32.vlgmr.msrb.gmra.mxu0 %v5009_v22  ;;  %v10019_v25 = vld [vmem:[#allocation82_spill] sm:$0xff] }
 0x115   : > { %825 = vmatmul.f32.vlgmr.msrb.gmra.mxu2 %v5009_v22  ;;  %871 = vmatpush.msra.mxu0 %v9987_v26  ;;  %v9993_v22 = vld [vmem:[#allocation41_spill] sm:$0xff]  ;;  %v10020_v26 = vld [vmem:[#allocation84_spill] sm:$0xff] }
 0x116   : > { %911 = vmatpush.msra.mxu2 %v9988_v27  ;;  %1024 = vmatpush.msrb.mxu3 %v4730_v37  ;;  %v9995_v37 = vld [vmem:[#allocation43_spill] sm:$0xff] }
 0x117   : > { %872 = vmatpush.msra.mxu0 %v9989_v28  ;;  %985 = vmatpush.msrb.mxu1 %v4723_v32  ;;  %v9997_v32 = vld [vmem:[#allocation45_spill] sm:$0xff] }
 0x118   : > { %912 = vmatpush.msra.mxu2 %v9990_v34  ;;  %1025 = vmatpush.msrb.mxu3 %v4742_v47  ;;  %v9999_v47 = vld [vmem:[#allocation47_spill] sm:$0xff]  ;;  %v663_v34 = vpop.f32.mrf.mxu3 }
 0x119   : > { %873 = vmatpush.msra.mxu0 %v9991_v29  ;;  %986 = vmatpush.msrb.mxu1 %v4735_v42  ;;  %v10001_v42 = vld [vmem:[#allocation49_spill] sm:$0xff] }
 0x11a   : > { %913 = vmatpush.msra.mxu2 %v9992_v30  ;;  %1026 = vmatpush.msrb.mxu3 %v4749_v40  ;;  %v10003_v40 = vld [vmem:[#allocation51_spill] sm:$0xff] }
 0x11b   : > { %874 = vmatpush.msra.mxu0 %v9993_v22 }
 0x11c   : > { %914 = vmatpush.msra.mxu2 %v9994_v31 }
 0x11d   : > { %875 = vmatpush.msra.mxu0 %v9995_v37 }
 0x11e   : > { %915 = vmatpush.msra.mxu2 %v9996_v9 }
 0x11f   : > { %876 = vmatpush.msra.mxu0 %v9997_v32 }
 0x120   : > { %916 = vmatpush.msra.mxu2 %v9998_v10 }
 0x121   : > { %877 = vmatpush.msra.mxu0 %v9999_v47 }
 0x122   : > { %917 = vmatpush.msra.mxu2 %v10000_v11 }
 0x123   : > { %878 = vmatpush.msra.mxu0 %v10001_v42 }
 0x124   : > { %918 = vmatpush.msra.mxu2 %v10002_v51  ;;  %v743_v51 = vpop.f32.mrf.mxu3 }
 0x125   : > { %879 = vmatpush.msra.mxu0 %v10003_v40 }
 0x126   : > { %919 = vmatpush.msra.mxu2 %v10004_v35 }
 0x127   : > { %880 = vmatpush.msra.mxu0 %v10005_v12 }
 0x128   : > { %920 = vmatpush.msra.mxu2 %v10006_v13 }
 0x129   : > { %881 = vmatpush.msra.mxu0 %v10007_v14 }
 0x12a   : > { %921 = vmatpush.msra.mxu2 %v10008_v15 }
 0x12b   : > { %882 = vmatpush.msra.mxu0 %v10009_v45  ;;  %v2830_v45 = vld [vmem:[%s4992_s9 + $0x28] sm:$0xff] }
 0x12c   : > { %922 = vmatpush.msra.mxu2 %v10010_v16 }
 0x12d   : > { %883 = vmatpush.msra.mxu0 %v10011_v18 }
 0x12e   : > { %923 = vmatpush.msra.mxu2 %v10012_v19 }
 0x12f   : > { %884 = vmatpush.msra.mxu0 %v10013_v20 }
 0x130   : > { %924 = vmatpush.msra.mxu2 %v10014_v38 }
 0x131   : > { %885 = vmatpush.msra.mxu0 %v10015_v21 }
 0x132   : > { %925 = vmatpush.msra.mxu2 %v10016_v23 }
 0x133   : > { %886 = vmatpush.msra.mxu0 %v10017_v24 }
 0x134   : > { %926 = vmatpush.msra.mxu2 %v10018_v49 }
 0x135   : > { %951 = vmatpush.msrb.mxu0 %v10019_v25 }
 0x136   : > { %991 = vmatpush.msrb.mxu2 %v10020_v26  ;;  %v2829_v26 = vld [vmem:[%s4992_s9 + $0x20] sm:$0xff] }
 0x137   : > { %952 = vmatpush.msrb.mxu0 %v4786_v33  ;;  %v470_v33 = vld [vmem:[%s9317_s3] sm:$0xf] }
 0x138   : > { %992 = vmatpush.msrb.mxu2 %v4791_v36  ;;  %v5150_v36 = vperm.slane %v470_v33, 0  ;;  %v5155_v27 = vperm.slane %v470_v33, 2  ;;  %v5159_v10 = vperm.slane %v470_v33, 3 }
 0x139   : > { %953 = vmatpush.msrb.mxu0 %v4798_v39  ;;  %v623_v39 = vpop.f32.mrf.mxu1 }
 0x13a   : > { %993 = vmatpush.msrb.mxu2 %v4803_v41 }
 0x13b   : > { %954 = vmatpush.msrb.mxu0 %v4812_v43 }
 0x13c   : > { %994 = vmatpush.msrb.mxu2 %v4817_v44 }
 0x13d   : > { %955 = vmatpush.msrb.mxu0 %v4826_v46  ;;  %v5153_v46 = vperm.slane %v470_v33, 1 }
 0x13e   : > { %995 = vmatpush.msrb.mxu2 %v4831_v48 }
 0x13f   : > { %956 = vmatpush.msrb.mxu0 %v4840_v50 }
 0x140   : > { %996 = vmatpush.msrb.mxu2 %v4845_v52 }
 0x141   : > { %957 = vmatpush.msrb.mxu0 %v4854_v54  ;;  %v703_v37 = vpop.f32.mrf.mxu1 }
 0x142   : > { %997 = vmatpush.msrb.mxu2 %v4859_v56 }
 0x143   : > { %958 = vmatpush.msrb.mxu0 %v4868_v58 }
 0x144   : > { %998 = vmatpush.msrb.mxu2 %v4873_v60 }
 0x145   : > { %959 = vmatpush.msrb.mxu0 %v4882_v62 }
 0x146   : > { %999 = vmatpush.msrb.mxu2 %v4887_v0 }
 0x147   : > { %960 = vmatpush.msrb.mxu0 %v4896_v2 }
 0x148   : > { %1000 = vmatpush.msrb.mxu2 %v4901_v4 }
 0x149   : > { %961 = vmatpush.msrb.mxu0 %v4910_v6 }
 0x14a   : > { %1001 = vmatpush.msrb.mxu2 %v4915_v7 }
 0x14b   : > { %962 = vmatpush.msrb.mxu0 %v4924_v5 }
 0x14c   : > { %1002 = vmatpush.msrb.mxu2 %v4929_v8 }
 0x14d   : > { %963 = vmatpush.msrb.mxu0 %v4939_v1 }
 0x14e   : > { %1003 = vmatpush.msrb.mxu2 %v4944_v3 }
 0x14f   : > { %964 = vmatpush.msrb.mxu0 %v4953_v61 }
 0x150   : > { %1004 = vmatpush.msrb.mxu2 %v4958_v63 }
 0x151   : > { %965 = vmatpush.msrb.mxu0 %v4967_v57 }
 0x152   : > { %1005 = vmatpush.msrb.mxu2 %v4972_v59 }
 0x153   : > { %966 = vmatpush.msrb.mxu0 %v4981_v53 }
 0x154   : > { %1006 = vmatpush.msrb.mxu2 %v4986_v55 }
 0x171   : > { %v603_v41 = vpop.f32.mrf.mxu0 }
 0x172   : > { %v604_v43 = vadd.f32 %v603_v41, %v5150_v36  ;;  %v806_v16 = vpop.f32.mrf.mxu1 }
 0x173   : > { %v850_v20 = vadd.f32 %v2830_v45, %v806_v16 }
 0x174   : > { %v624_v44 = vadd.f32 %v623_v39, %v604_v43 }
 0x175   : > { %v857_v49 = vmul.f32 0.5, %v850_v20 }
 0x176   : > { %v746_v48 = vmul.f32 0.5, %v624_v44  ;;  %v2832_v44 = vld [vmem:[%s4992_s9 + $0x38] sm:$0xff] }
 0x177   : > { %v643_v28 = vpop.f32.mrf.mxu2 }
 0x178   : > { %v644_v29 = vadd.f32 %v643_v28, %v5153_v46  ;;  %2895 = vtanh.f32 %v746_v48 }
 0x179   : > { %v683_v30 = vpop.f32.mrf.mxu0  ;;  %v846_v48 = vpop.f32.mrf.mxu3 }
 0x17a   : > { %v664_v22 = vadd.f32 %v663_v34, %v644_v29  ;;  %v684_v31 = vadd.f32 %v683_v30, %v5155_v27  ;;  %v852_v29 = vadd.f32 %v2832_v44, %v846_v48  ;;  %v2831_v30 = vld [vmem:[%s4992_s9 + $0x30] sm:$0xff]  ;;  %v5272_v44 = vld [vmem:[%s9315_s1 + $0xe8] sm:$0xff]  ;;  %v5278_v48 = vld [vmem:[%s9315_s1 + $0xf8] sm:$0xff] }
 0x17c   : > { %v750_v9 = vmul.f32 0.5, %v664_v22  ;;  %v704_v32 = vadd.f32 %v703_v37, %v684_v31  ;;  %v5172_v31 = vld [vmem:[%s9315_s1 + $0x1e8] sm:$0xff]  ;;  %v5178_v37 = vld [vmem:[%s9315_s1 + $0x1f8] sm:$0xff] }
 0x17e   : > { %2897 = vtanh.f32 %v750_v9  ;;  %v2896_v47 = vpop.eup %2895 }
 0x17f   : > { %2899 = vtanh.f32 %v704_v32  ;;  %v748_v40 = vmul.f32 0.5, %v2896_v47  ;;  %v5184_v47 = vld [vmem:[%s9315_s1 + $0x1c8] sm:$0xff] }
 0x180   : > { %v723_v11 = vpop.f32.mrf.mxu2 }
 0x181   : > { %v724_v42 = vadd.f32 %v723_v11, %v5159_v10  ;;  %v749_v18 = vadd.f32 0.5, %v748_v40  ;;  %v5190_v11 = vld [vmem:[%s9315_s1 + $0x1d8] sm:$0xff]  ;;  %v5196_v40 = vld [vmem:[%s9315_s1 + $0x1a8] sm:$0xff] }
 0x183   : > { %v744_v35 = vadd.f32 %v743_v51, %v724_v42  ;;  %v862_v51 = vmul.f32 0.5, %v852_v29 }
 0x184   : > { %v2898_v12 = vpop.eup %2897 }
 0x185   : > { %v752_v13 = vmul.f32 0.5, %v2898_v12  ;;  %v755_v14 = vmul.f32 0.5, %v744_v35  ;;  %v2900_v15 = vpop.eup %2899  ;;  %v5202_v35 = vld [vmem:[%s9315_s1 + $0x1b8] sm:$0xff] }
 0x186   : > { %v760_v21 = vmul.f32 %v2900_v15, %v749_v18  ;;  %v5214_v15 = vld [vmem:[%s9315_s1 + $0x198] sm:$0xff]  ;;  %v5220_v18 = vld [vmem:[%s9315_s1 + $0x168] sm:$0xff] }
 0x187   : > { %v753_v19 = vadd.f32 0.5, %v752_v13  ;;  %2901 = vtanh.f32 %v755_v14  ;;  %v5208_v14 = vld [vmem:[%s9315_s1 + $0x188] sm:$0xff] }
 0x189   : > { %v759_v38 = vmul.f32 0.0, %v753_v19  ;;  %v5226_v19 = vld [vmem:[%s9315_s1 + $0x178] sm:$0xff] }
 0x18b   : > { %v5163_v23 = vadd.f32 %v760_v21, %v759_v38  ;;  %v5232_v38 = vld [vmem:[%s9315_s1 + $0x148] sm:$0xff]  ;;  %v5238_v21 = vld [vmem:[%s9315_s1 + $0x158] sm:$0xff] }
 0x18d   : > { %v2902_v24 = vpop.eup %2901  ;;  %2903 = vtanh.f32 %v5163_v23 }
 0x18e   : > { %v757_v25 = vmul.f32 0.5, %v2902_v24  ;;  %2905 = vtanh.f32 %v857_v49 }
 0x190   : > { %v758_v39 = vadd.f32 0.5, %v757_v25  ;;  %v5245_v25 = vld [vmem:[%s9315_s1 + $0x128] sm:$0xff] }
 0x191   : > { %v786_v33 = vpop.f32.mrf.mxu0 }
 0x192   : > { %v849_v41 = vadd.f32 %v2829_v26, %v786_v33  ;;  %v5251_v26 = vld [vmem:[%s9315_s1 + $0x138] sm:$0xff] }
 0x193   : > { %v2904_v43 = vpop.eup %2903 }
 0x194   : > { %v853_v28 = vmul.f32 0.5, %v849_v41  ;;  %v763_v34 = vmul.f32 %v2904_v43, %v758_v39  ;;  %v2906_v22 = vpop.eup %2905  ;;  %v5265_v41 = vld [vmem:[%s9315_s1 + $0x118] sm:$0xff] }
 0x195   : > { %v859_v42 = vmul.f32 0.5, %v2906_v22  ;;  %v5302_v22 = vld [vmem:[%s9315_s1 + $0xb8] sm:$0xff] }
 0x196   : > { %2907 = vtanh.f32 %v853_v28  ;;  %907 = vmatmul.f32.vlgmr.msra.gmra.mxu1 %v763_v34  ;;  %947 = vmatmul.f32.vlgmr.msra.gmra.mxu3 %v763_v34  ;;  %v5284_v28 = vld [vmem:[%s9315_s1 + $0xc8] sm:$0xff] }
 0x197   : > { %1074 = vmatpush.msra.mxu1 %v5172_v31  ;;  %1114 = vmatpush.msra.mxu3 %v5178_v37  ;;  %v860_v45 = vadd.f32 0.5, %v859_v42  ;;  %v5310_v42 = vld [vmem:[%s9315_s1 + $0x88] sm:$0xff] }
 0x198   : > { %v826_v9 = vpop.f32.mrf.mxu2 }
 0x199   : > { %v851_v32 = vadd.f32 %v2831_v30, %v826_v9  ;;  %1075 = vmatpush.msra.mxu1 %v5184_v47  ;;  %1115 = vmatpush.msra.mxu3 %v5190_v11  ;;  %v866_v24 = vmul.f32 %v860_v45, %v5006_v17  ;;  %v5259_v17 = vld [vmem:[%s9315_s1 + $0x108] sm:$0xff] }
 0x19a   : > { %v5296_v30 = vld [vmem:[%s9315_s1 + $0xa8] sm:$0xff] }
 0x19b   : > { %2909 = vtanh.f32 %v851_v32  ;;  %1076 = vmatpush.msra.mxu1 %v5196_v40  ;;  %1116 = vmatpush.msra.mxu3 %v5202_v35  ;;  %v5336_v45 = vld [vmem:[%s9315_s1 + $0x68] sm:$0xff] }
 0x19c   : > { %v2908_v12 = vpop.eup %2907  ;;  %2911 = vtanh.f32 %v862_v51  ;;  %v5316_v51 = vld [vmem:[%s9315_s1 + $0x98] sm:$0xff] }
 0x19d   : > { %v855_v13 = vmul.f32 0.5, %v2908_v12  ;;  %1077 = vmatpush.msra.mxu1 %v5208_v14  ;;  %1117 = vmatpush.msra.mxu3 %v5214_v15  ;;  %v5324_v12 = vld [vmem:[%s9315_s1 + $0x1e0] sm:$0xff] }
 0x19e   : > { %987 = vmatmul.f32.vlgmr.msrb.gmra.mxu1 %v763_v34  ;;  %1027 = vmatmul.f32.vlgmr.msrb.gmra.mxu3 %v763_v34  ;;  %v5290_v34 = vld [vmem:[%s9315_s1 + $0xd8] sm:$0xff] }
 0x19f   : > { %v856_v16 = vadd.f32 0.5, %v855_v13  ;;  %1078 = vmatpush.msra.mxu1 %v5220_v18  ;;  %1118 = vmatpush.msra.mxu3 %v5226_v19  ;;  %v5330_v13 = vld [vmem:[%s9315_s1 + $0x1f0] sm:$0xff] }
 0x1a1   : > { %v2910_v20 = vpop.eup %2909  ;;  %1079 = vmatpush.msra.mxu1 %v5232_v38  ;;  %1119 = vmatpush.msra.mxu3 %v5238_v21 }
 0x1a2   : > { %v867_v49 = vmul.f32 %v2910_v20, %v856_v16  ;;  %v2912_v33 = vpop.eup %2911  ;;  %v5342_v16 = vld [vmem:[%s9315_s1 + $0x78] sm:$0xff]  ;;  %v5348_v20 = vld [vmem:[%s9315_s1 + $0x1c0] sm:$0xff] }
 0x1a3   : > { %1080 = vmatpush.msra.mxu1 %v5245_v25  ;;  %1120 = vmatpush.msra.mxu3 %v5251_v26  ;;  %v864_v43 = vmul.f32 0.5, %v2912_v33  ;;  %v5366_v33 = vld [vmem:[%s9315_s1 + $0x58] sm:$0xff] }
 0x1a4   : > { %v5254_v39 = vadd.f32 %v867_v49, %v866_v24  ;;  %v5354_v24 = vld [vmem:[%s9315_s1 + $0x1d0] sm:$0xff]  ;;  %v5360_v49 = vld [vmem:[%s9315_s1 + $0x48] sm:$0xff] }
 0x1a5   : > { %1081 = vmatpush.msra.mxu1 %v5259_v17  ;;  %1121 = vmatpush.msra.mxu3 %v5265_v41  ;;  %v865_v29 = vadd.f32 0.5, %v864_v43  ;;  %10021 = vst [vmem:[#allocation53_spill] sm:$0xff] %v5354_v24  ;;  %v5372_v43 = vld [vmem:[%s9315_s1 + $0x1a0] sm:$0xff] }
 0x1a6   : > { %2913 = vtanh.f32 %v5254_v39  ;;  %10022 = vst [vmem:[#allocation56_spill] sm:$0xff] %v5372_v43 }
 0x1a7   : > { %1082 = vmatpush.msra.mxu1 %v5272_v44  ;;  %1122 = vmatpush.msra.mxu3 %v5278_v48 }
 0x1a9   : > { %1083 = vmatpush.msra.mxu1 %v5284_v28  ;;  %1123 = vmatpush.msra.mxu3 %v5290_v34 }
 0x1ab   : > { %1084 = vmatpush.msra.mxu1 %v5296_v30  ;;  %1124 = vmatpush.msra.mxu3 %v5302_v22 }
 0x1ac   : > { %v2914_v9 = vpop.eup %2913 }
 0x1ad   : > { %v5305_v32 = vmul.f32 %v2914_v9, %v865_v29  ;;  %1085 = vmatpush.msra.mxu1 %v5310_v42  ;;  %1125 = vmatpush.msra.mxu3 %v5316_v51  ;;  %v5378_v29 = vld [vmem:[%s9315_s1 + $0x1b0] sm:$0xff]  ;;  %v5384_v9 = vld [vmem:[%s9315_s1 + $0x28] sm:$0xff] }
 0x1ae   : > { %10023 = vst [vmem:[#allocation57_spill] sm:$0xff] %v5378_v29 }
 0x1af   : > { %887 = vmatmul.f32.vlgmr.msra.gmra.mxu0 %v5305_v32  ;;  %927 = vmatmul.f32.vlgmr.msra.gmra.mxu2 %v5305_v32  ;;  %10024 = vst [vmem:[#allocation60_spill] sm:$0xff] %v5384_v9 }
 0x1b0   : > { %1054 = vmatpush.msra.mxu0 %v5324_v12  ;;  %1094 = vmatpush.msra.mxu2 %v5330_v13 }
 0x1b1   : > { %1086 = vmatpush.msra.mxu1 %v5336_v45  ;;  %1126 = vmatpush.msra.mxu3 %v5342_v16 }
 0x1b2   : > { %1055 = vmatpush.msra.mxu0 %v5348_v20  ;;  %1095 = vmatpush.msra.mxu2 %v5354_v24  ;;  %v5390_v24 = vld [vmem:[%s9315_s1 + $0x38] sm:$0xff] }
 0x1b3   : > { %1087 = vmatpush.msra.mxu1 %v5360_v49  ;;  %1127 = vmatpush.msra.mxu3 %v5366_v33  ;;  %10025 = vst [vmem:[#allocation61_spill] sm:$0xff] %v5390_v24 }
 0x1b4   : > { %1056 = vmatpush.msra.mxu0 %v5372_v43  ;;  %1096 = vmatpush.msra.mxu2 %v5378_v29  ;;  %v5396_v43 = vld [vmem:[%s9315_s1 + $0x180] sm:$0xff]  ;;  %v5402_v29 = vld [vmem:[%s9315_s1 + $0x190] sm:$0xff] }
 0x1b5   : > { %1088 = vmatpush.msra.mxu1 %v5384_v9  ;;  %1128 = vmatpush.msra.mxu3 %v5390_v24  ;;  %10026 = vst [vmem:[#allocation64_spill] sm:$0xff] %v5396_v43  ;;  %v5408_v9 = vld [vmem:[%s9315_s1 + $0x8] sm:$0xff]  ;;  %v5414_v24 = vld [vmem:[%s9315_s1 + $0x18] sm:$0xff] }
 0x1b6   : > { %1057 = vmatpush.msra.mxu0 %v5396_v43  ;;  %10027 = vst [vmem:[#allocation65_spill] sm:$0xff] %v5402_v29  ;;  %1097 = vmatpush.msra.mxu2 %v5402_v29  ;;  %v5422_v29 = vld [vmem:[%s9315_s1 + $0x160] sm:$0xff]  ;;  %v5429_v43 = vld [vmem:[%s9315_s1 + $0x170] sm:$0xff] }
 0x1b7   : > { %10028 = vst [vmem:[#allocation68_spill] sm:$0xff] %v5408_v9  ;;  %1089 = vmatpush.msra.mxu1 %v5408_v9  ;;  %1129 = vmatpush.msra.mxu3 %v5414_v24  ;;  %v5454_v9 = vld [vmem:[%s9316_s2 + $0x3e8] sm:$0xff] }
 0x1b8   : > { %10029 = vst [vmem:[#allocation69_spill] sm:$0xff] %v5414_v24  ;;  %967 = vmatmul.f32.vlgmr.msrb.gmra.mxu0 %v5305_v32  ;;  %1007 = vmatmul.f32.vlgmr.msrb.gmra.mxu2 %v5305_v32  ;;  %v5436_v24 = vld [vmem:[%s9315_s1 + $0x140] sm:$0xff] }
 0x1b9   : > { %10030 = vst [vmem:[#allocation76_spill] sm:$0xff] %v5422_v29  ;;  %1058 = vmatpush.msra.mxu0 %v5422_v29  ;;  %1090 = vmatmul.f32.vlgmr.msra.gmra.mxu1 %v5305_v32  ;;  %v5442_v29 = vld [vmem:[%s9316_s2 + $0x3e0] sm:$0xff] }
 0x1ba   : > { %10031 = vst [vmem:[#allocation3_spill] sm:$0xff] %v5429_v43  ;;  %1098 = vmatpush.msra.mxu2 %v5429_v43  ;;  %1130 = vmatmul.f32.vlgmr.msra.gmra.mxu3 %v5305_v32  ;;  %v5448_v43 = vld [vmem:[%s9315_s1 + $0x150] sm:$0xff] }
 0x1bb   : > { %10032 = vst [vmem:[#allocation4_spill] sm:$0xff] %v5436_v24  ;;  %1059 = vmatpush.msra.mxu0 %v5436_v24  ;;  %1176 = vmatpush.msrb.mxu1 %v5442_v29  ;;  %v5460_v24 = vld [vmem:[%s9315_s1 + $0x120] sm:$0xff] }
 0x1bc   : > { %10033 = vst [vmem:[#allocation5_spill] sm:$0xff] %v5442_v29  ;;  %1099 = vmatpush.msra.mxu2 %v5448_v43  ;;  %1216 = vmatpush.msrb.mxu3 %v5454_v9  ;;  %v5466_v29 = vld [vmem:[%s9316_s2 + $0x3c0] sm:$0xff] }
 0x1bd   : > { %10034 = vst [vmem:[#allocation71_spill] sm:$0xff] %v5448_v43  ;;  %1060 = vmatpush.msra.mxu0 %v5460_v24  ;;  %1177 = vmatpush.msrb.mxu1 %v5466_v29  ;;  %v5472_v43 = vld [vmem:[%s9315_s1 + $0x130] sm:$0xff] }
 0x1be   : > { %10035 = vst [vmem:[#allocation6_spill] sm:$0xff] %v5454_v9  ;;  %1100 = vmatpush.msra.mxu2 %v5472_v43  ;;  %v5478_v9 = vld [vmem:[%s9316_s2 + $0x3c8] sm:$0xff] }
 0x1bf   : > { %10036 = vst [vmem:[#allocation7_spill] sm:$0xff] %v5460_v24  ;;  %1217 = vmatpush.msrb.mxu3 %v5478_v9  ;;  %v5484_v24 = vld [vmem:[%s9315_s1 + $0x100] sm:$0xff] }
 0x1c0   : > { %10037 = vst [vmem:[#allocation74_spill] sm:$0xff] %v5466_v29  ;;  %1061 = vmatpush.msra.mxu0 %v5484_v24  ;;  %v5490_v29 = vld [vmem:[%s9316_s2 + $0x3a0] sm:$0xff] }
 0x1c1   : > { %10038 = vst [vmem:[#allocation8_spill] sm:$0xff] %v5472_v43  ;;  %1178 = vmatpush.msrb.mxu1 %v5490_v29  ;;  %v5496_v43 = vld [vmem:[%s9315_s1 + $0x110] sm:$0xff] }
 0x1c2   : > { %10039 = vst [vmem:[#allocation80_spill] sm:$0xff] %v5478_v9  ;;  %1101 = vmatpush.msra.mxu2 %v5496_v43  ;;  %v5502_v9 = vld [vmem:[%s9316_s2 + $0x3a8] sm:$0xff] }
 0x1c3   : > { %10040 = vst [vmem:[#allocation9_spill] sm:$0xff] %v5484_v24  ;;  %1218 = vmatpush.msrb.mxu3 %v5502_v9  ;;  %v5508_v24 = vld [vmem:[%s9315_s1 + $0xe0] sm:$0xff] }
 0x1c4   : > { %10041 = vst [vmem:[#allocation78_spill] sm:$0xff] %v5490_v29  ;;  %1062 = vmatpush.msra.mxu0 %v5508_v24  ;;  %v5514_v29 = vld [vmem:[%s9316_s2 + $0x380] sm:$0xff] }
 0x1c5   : > { %10042 = vst [vmem:[#allocation10_spill] sm:$0xff] %v5496_v43  ;;  %1179 = vmatpush.msrb.mxu1 %v5514_v29  ;;  %v5520_v43 = vld [vmem:[%s9315_s1 + $0xf0] sm:$0xff] }
 0x1c6   : > { %10043 = vst [vmem:[#allocation11_spill] sm:$0xff] %v5502_v9  ;;  %1102 = vmatpush.msra.mxu2 %v5520_v43  ;;  %v5526_v9 = vld [vmem:[%s9316_s2 + $0x388] sm:$0xff] }
 0x1c7   : > { %10044 = vst [vmem:[#allocation12_spill] sm:$0xff] %v5508_v24  ;;  %1219 = vmatpush.msrb.mxu3 %v5526_v9  ;;  %v5532_v24 = vld [vmem:[%s9315_s1 + $0xc0] sm:$0xff] }
 0x1c8   : > { %10045 = vst [vmem:[#allocation13_spill] sm:$0xff] %v5514_v29  ;;  %1063 = vmatpush.msra.mxu0 %v5532_v24  ;;  %v5538_v29 = vld [vmem:[%s9316_s2 + $0x360] sm:$0xff] }
 0x1c9   : > { %10046 = vst [vmem:[#allocation81_spill] sm:$0xff] %v5520_v43  ;;  %1180 = vmatpush.msrb.mxu1 %v5538_v29  ;;  %v5544_v43 = vld [vmem:[%s9315_s1 + $0xd0] sm:$0xff] }
 0x1ca   : > { %10047 = vst [vmem:[#allocation14_spill] sm:$0xff] %v5526_v9  ;;  %1103 = vmatpush.msra.mxu2 %v5544_v43  ;;  %v5550_v9 = vld [vmem:[%s9316_s2 + $0x368] sm:$0xff] }
 0x1cb   : > { %10048 = vst [vmem:[#allocation15_spill] sm:$0xff] %v5532_v24  ;;  %1220 = vmatpush.msrb.mxu3 %v5550_v9  ;;  %v5556_v24 = vld [vmem:[%s9315_s1 + $0xa0] sm:$0xff] }
 0x1cc   : > { %10049 = vst [vmem:[#allocation83_spill] sm:$0xff] %v5538_v29  ;;  %1064 = vmatpush.msra.mxu0 %v5556_v24  ;;  %v5562_v29 = vld [vmem:[%s9316_s2 + $0x340] sm:$0xff] }
 0x1cd   : > { %10050 = vst [vmem:[#allocation16_spill] sm:$0xff] %v5544_v43  ;;  %1181 = vmatpush.msrb.mxu1 %v5562_v29  ;;  %v5568_v43 = vld [vmem:[%s9315_s1 + $0xb0] sm:$0xff] }
 0x1ce   : > { %10051 = vst [vmem:[#allocation86_spill] sm:$0xff] %v5550_v9  ;;  %1104 = vmatpush.msra.mxu2 %v5568_v43  ;;  %v5574_v9 = vld [vmem:[%s9316_s2 + $0x348] sm:$0xff] }
 0x1cf   : > { %10052 = vst [vmem:[#allocation17_spill] sm:$0xff] %v5556_v24  ;;  %1221 = vmatpush.msrb.mxu3 %v5574_v9  ;;  %v5580_v24 = vld [vmem:[%s9315_s1 + $0x80] sm:$0xff] }
 0x1d0   : > { %10053 = vst [vmem:[#allocation85_spill] sm:$0xff] %v5562_v29  ;;  %1065 = vmatpush.msra.mxu0 %v5580_v24  ;;  %v5586_v29 = vld [vmem:[%s9316_s2 + $0x320] sm:$0xff] }
 0x1d1   : > { %10054 = vst [vmem:[#allocation18_spill] sm:$0xff] %v5568_v43  ;;  %1182 = vmatpush.msrb.mxu1 %v5586_v29  ;;  %v5592_v43 = vld [vmem:[%s9315_s1 + $0x90] sm:$0xff] }
 0x1d2   : > { %10055 = vst [vmem:[#allocation88_spill] sm:$0xff] %v5574_v9  ;;  %1105 = vmatpush.msra.mxu2 %v5592_v43  ;;  %v5598_v9 = vld [vmem:[%s9316_s2 + $0x328] sm:$0xff] }
 0x1d3   : > { %10056 = vst [vmem:[#allocation19_spill] sm:$0xff] %v5580_v24  ;;  %1222 = vmatpush.msrb.mxu3 %v5598_v9  ;;  %v5604_v24 = vld [vmem:[%s9315_s1 + $0x60] sm:$0xff] }
 0x1d4   : > { %10057 = vst [vmem:[#allocation87_spill] sm:$0xff] %v5586_v29  ;;  %1066 = vmatpush.msra.mxu0 %v5604_v24  ;;  %v5610_v29 = vld [vmem:[%s9316_s2 + $0x300] sm:$0xff] }
 0x1d5   : > { %10058 = vst [vmem:[#allocation20_spill] sm:$0xff] %v5592_v43  ;;  %1183 = vmatpush.msrb.mxu1 %v5610_v29  ;;  %v5616_v43 = vld [vmem:[%s9315_s1 + $0x70] sm:$0xff] }
 0x1d6   : > { %10059 = vst [vmem:[#allocation90_spill] sm:$0xff] %v5598_v9  ;;  %1106 = vmatpush.msra.mxu2 %v5616_v43  ;;  %v5622_v9 = vld [vmem:[%s9316_s2 + $0x308] sm:$0xff] }
 0x1d7   : > { %10060 = vst [vmem:[#allocation21_spill] sm:$0xff] %v5604_v24  ;;  %1223 = vmatpush.msrb.mxu3 %v5622_v9  ;;  %v5628_v24 = vld [vmem:[%s9315_s1 + $0x40] sm:$0xff] }
 0x1d8   : > { %10061 = vst [vmem:[#allocation89_spill] sm:$0xff] %v5610_v29  ;;  %1067 = vmatpush.msra.mxu0 %v5628_v24  ;;  %v5634_v29 = vld [vmem:[%s9316_s2 + $0x2e0] sm:$0xff] }
 0x1d9   : > { %10062 = vst [vmem:[#allocation22_spill] sm:$0xff] %v5616_v43  ;;  %1184 = vmatpush.msrb.mxu1 %v5634_v29  ;;  %v5640_v43 = vld [vmem:[%s9315_s1 + $0x50] sm:$0xff] }
 0x1da   : > { %10063 = vst [vmem:[#allocation92_spill] sm:$0xff] %v5622_v9  ;;  %1107 = vmatpush.msra.mxu2 %v5640_v43  ;;  %v5646_v9 = vld [vmem:[%s9316_s2 + $0x2e8] sm:$0xff] }
 0x1db   : > { %10064 = vst [vmem:[#allocation23_spill] sm:$0xff] %v5628_v24  ;;  %1224 = vmatpush.msrb.mxu3 %v5646_v9  ;;  %v5652_v24 = vld [vmem:[%s9315_s1 + $0x20] sm:$0xff] }
 0x1dc   : > { %10065 = vst [vmem:[#allocation91_spill] sm:$0xff] %v5634_v29  ;;  %1068 = vmatpush.msra.mxu0 %v5652_v24  ;;  %v5658_v29 = vld [vmem:[%s9316_s2 + $0x2c0] sm:$0xff] }
 0x1dd   : > { %10066 = vst [vmem:[#allocation24_spill] sm:$0xff] %v5640_v43  ;;  %1185 = vmatpush.msrb.mxu1 %v5658_v29  ;;  %v5664_v43 = vld [vmem:[%s9315_s1 + $0x30] sm:$0xff] }
 0x1de   : > { %10067 = vst [vmem:[#allocation94_spill] sm:$0xff] %v5646_v9  ;;  %1108 = vmatpush.msra.mxu2 %v5664_v43  ;;  %v5670_v9 = vld [vmem:[%s9316_s2 + $0x2c8] sm:$0xff] }
 0x1df   : > { %10068 = vst [vmem:[#allocation25_spill] sm:$0xff] %v5652_v24  ;;  %1225 = vmatpush.msrb.mxu3 %v5670_v9  ;;  %v5676_v24 = vld [vmem:[%s9315_s1] sm:$0xff] }
 0x1e0   : > { %10069 = vst [vmem:[#allocation93_spill] sm:$0xff] %v5658_v29  ;;  %1069 = vmatpush.msra.mxu0 %v5676_v24  ;;  %v5682_v29 = vld [vmem:[%s9316_s2 + $0x2a0] sm:$0xff] }
 0x1e1   : > { %10070 = vst [vmem:[#allocation26_spill] sm:$0xff] %v5664_v43  ;;  %1186 = vmatpush.msrb.mxu1 %v5682_v29  ;;  %v5688_v43 = vld [vmem:[%s9315_s1 + $0x10] sm:$0xff]  ;;  %1070 = vmatmul.f32.vlgmr.msra.gmra.mxu0 %v5305_v32 }
 0x1e2   : > { %10071 = vst [vmem:[#allocation96_spill] sm:$0xff] %v5676_v24  ;;  %1109 = vmatpush.msra.mxu2 %v5688_v43  ;;  %v5696_v24 = vld [vmem:[%s9316_s2 + $0x2a8] sm:$0xff] }
 0x1e3   : > { %10072 = vst [vmem:[#allocation27_spill] sm:$0xff] %v5682_v29  ;;  %1110 = vmatmul.f32.vlgmr.msra.gmra.mxu2 %v5305_v32  ;;  %1226 = vmatpush.msrb.mxu3 %v5696_v24  ;;  %v5702_v29 = vld [vmem:[%s9316_s2 + $0x280] sm:$0xff]  ;;  %v5714_v32 = vld [vmem:[%s9316_s2 + $0x288] sm:$0xff] }
 0x1e4   : > { %10073 = vst [vmem:[#allocation95_spill] sm:$0xff] %v5688_v43  ;;  %1187 = vmatpush.msrb.mxu1 %v5702_v29  ;;  %v5708_v43 = vld [vmem:[%s9316_s2 + $0x1e0] sm:$0xff] }
 0x1e5   : > { %10074 = vst [vmem:[#allocation28_spill] sm:$0xff] %v5696_v24  ;;  %1156 = vmatpush.msrb.mxu0 %v5708_v43  ;;  %1227 = vmatpush.msrb.mxu3 %v5714_v32  ;;  %v5720_v24 = vld [vmem:[%s9316_s2 + $0x1e8] sm:$0xff] }
 0x1e6   : > { %10075 = vst [vmem:[#allocation98_spill] sm:$0xff] %v5702_v29  ;;  %1196 = vmatpush.msrb.mxu2 %v5720_v24  ;;  %v5726_v29 = vld [vmem:[%s9316_s2 + $0x260] sm:$0xff] }
 0x1e7   : > { %10076 = vst [vmem:[#allocation29_spill] sm:$0xff] %v5708_v43  ;;  %1188 = vmatpush.msrb.mxu1 %v5726_v29  ;;  %v5732_v43 = vld [vmem:[%s9316_s2 + $0x1c0] sm:$0xff] }
 0x1e8   : > { %10077 = vst [vmem:[#allocation97_spill] sm:$0xff] %v5714_v32  ;;  %1157 = vmatpush.msrb.mxu0 %v5732_v43  ;;  %v5738_v32 = vld [vmem:[%s9316_s2 + $0x268] sm:$0xff] }
 0x1e9   : > { %10078 = vst [vmem:[#allocation30_spill] sm:$0xff] %v5720_v24  ;;  %1228 = vmatpush.msrb.mxu3 %v5738_v32  ;;  %v5744_v24 = vld [vmem:[%s9316_s2 + $0x1c8] sm:$0xff] }
 0x1ea   : > { %10079 = vst [vmem:[#allocation100_spill] sm:$0xff] %v5726_v29  ;;  %1197 = vmatpush.msrb.mxu2 %v5744_v24  ;;  %v5750_v29 = vld [vmem:[%s9316_s2 + $0x240] sm:$0xff] }
 0x1eb   : > { %10080 = vst [vmem:[#allocation31_spill] sm:$0xff] %v5732_v43  ;;  %1189 = vmatpush.msrb.mxu1 %v5750_v29  ;;  %v5756_v43 = vld [vmem:[%s9316_s2 + $0x1a0] sm:$0xff] }
 0x1ec   : > { %10081 = vst [vmem:[#allocation99_spill] sm:$0xff] %v5738_v32  ;;  %1158 = vmatpush.msrb.mxu0 %v5756_v43  ;;  %v5762_v32 = vld [vmem:[%s9316_s2 + $0x248] sm:$0xff] }
 0x1ed   : > { %10082 = vst [vmem:[#allocation32_spill] sm:$0xff] %v5744_v24  ;;  %1229 = vmatpush.msrb.mxu3 %v5762_v32  ;;  %v5768_v24 = vld [vmem:[%s9316_s2 + $0x1a8] sm:$0xff] }
 0x1ee   : > { %10083 = vst [vmem:[#allocation33_spill] sm:$0xff] %v5750_v29  ;;  %1198 = vmatpush.msrb.mxu2 %v5768_v24  ;;  %v5774_v29 = vld [vmem:[%s9316_s2 + $0x220] sm:$0xff] }
 0x1ef   : > { %10084 = vst [vmem:[#allocation101_spill] sm:$0xff] %v5756_v43  ;;  %1190 = vmatpush.msrb.mxu1 %v5774_v29  ;;  %v5780_v43 = vld [vmem:[%s9316_s2 + $0x180] sm:$0xff] }
 0x1f0   : > { %10085 = vst [vmem:[#allocation34_spill] sm:$0xff] %v5762_v32  ;;  %1159 = vmatpush.msrb.mxu0 %v5780_v43  ;;  %v5786_v32 = vld [vmem:[%s9316_s2 + $0x228] sm:$0xff] }
 0x1f1   : > { %10086 = vst [vmem:[#allocation35_spill] sm:$0xff] %v5768_v24  ;;  %1230 = vmatpush.msrb.mxu3 %v5786_v32  ;;  %v5792_v24 = vld [vmem:[%s9316_s2 + $0x188] sm:$0xff] }
 0x1f2   : > { %10087 = vst [vmem:[#allocation36_spill] sm:$0xff] %v5774_v29  ;;  %1199 = vmatpush.msrb.mxu2 %v5792_v24  ;;  %v5798_v29 = vld [vmem:[%s9316_s2 + $0x200] sm:$0xff] }
 0x1f3   : > { %10088 = vst [vmem:[#allocation37_spill] sm:$0xff] %v5780_v43  ;;  %1191 = vmatpush.msrb.mxu1 %v5798_v29  ;;  %v5804_v43 = vld [vmem:[%s9316_s2 + $0x160] sm:$0xff] }
 0x1f4   : > { %10089 = vst [vmem:[#allocation38_spill] sm:$0xff] %v5786_v32  ;;  %1160 = vmatpush.msrb.mxu0 %v5804_v43  ;;  %v5810_v32 = vld [vmem:[%s9316_s2 + $0x208] sm:$0xff] }
 0x1f5   : > { %10090 = vst [vmem:[#allocation39_spill] sm:$0xff] %v5792_v24  ;;  %1231 = vmatpush.msrb.mxu3 %v5810_v32  ;;  %v5816_v24 = vld [vmem:[%s9316_s2 + $0x168] sm:$0xff] }
 0x1f6   : > { %10091 = vst [vmem:[#allocation40_spill] sm:$0xff] %v5798_v29  ;;  %1200 = vmatpush.msrb.mxu2 %v5816_v24  ;;  %v5822_v29 = vld [vmem:[%s9316_s2 + $0x3f0] sm:$0xff] }
 0x1f7   : > { %10092 = vst [vmem:[#allocation41_spill] sm:$0xff] %v5804_v43  ;;  %1256 = vmatpush.msra.mxu1 %v5822_v29  ;;  %v5828_v43 = vld [vmem:[%s9316_s2 + $0x3f8] sm:$0xff] }
 0x1f8   : > { %10093 = vst [vmem:[#allocation42_spill] sm:$0xff] %v5810_v32  ;;  %1296 = vmatpush.msra.mxu3 %v5828_v43  ;;  %v5834_v32 = vld [vmem:[%s9316_s2 + $0x140] sm:$0xff] }
 0x1f9   : > { %10094 = vst [vmem:[#allocation43_spill] sm:$0xff] %v5816_v24  ;;  %1161 = vmatpush.msrb.mxu0 %v5834_v32  ;;  %v5840_v24 = vld [vmem:[%s9316_s2 + $0x148] sm:$0xff] }
 0x1fa   : > { %10095 = vst [vmem:[#allocation44_spill] sm:$0xff] %v5822_v29  ;;  %1201 = vmatpush.msrb.mxu2 %v5840_v24  ;;  %v5846_v29 = vld [vmem:[%s9316_s2 + $0x3d0] sm:$0xff] }
 0x1fb   : > { %10096 = vst [vmem:[#allocation45_spill] sm:$0xff] %v5828_v43  ;;  %1257 = vmatpush.msra.mxu1 %v5846_v29  ;;  %v5852_v43 = vld [vmem:[%s9316_s2 + $0x3d8] sm:$0xff] }
 0x1fc   : > { %10097 = vst [vmem:[#allocation46_spill] sm:$0xff] %v5834_v32  ;;  %1297 = vmatpush.msra.mxu3 %v5852_v43  ;;  %v5858_v32 = vld [vmem:[%s9316_s2 + $0x120] sm:$0xff] }
 0x1fd   : > { %10098 = vst [vmem:[#allocation47_spill] sm:$0xff] %v5840_v24  ;;  %1162 = vmatpush.msrb.mxu0 %v5858_v32  ;;  %v5864_v24 = vld [vmem:[%s9316_s2 + $0x128] sm:$0xff] }
 0x1fe   : > { %10099 = vst [vmem:[#allocation48_spill] sm:$0xff] %v5846_v29  ;;  %1202 = vmatpush.msrb.mxu2 %v5864_v24  ;;  %v5870_v29 = vld [vmem:[%s9316_s2 + $0x3b0] sm:$0xff] }
 0x1ff   : > { %10100 = vst [vmem:[#allocation49_spill] sm:$0xff] %v5852_v43  ;;  %1258 = vmatpush.msra.mxu1 %v5870_v29  ;;  %v5876_v43 = vld [vmem:[%s9316_s2 + $0x3b8] sm:$0xff] }
 0x200   : > { %10101 = vst [vmem:[#allocation50_spill] sm:$0xff] %v5858_v32  ;;  %1298 = vmatpush.msra.mxu3 %v5876_v43  ;;  %v5882_v32 = vld [vmem:[%s9316_s2 + $0x100] sm:$0xff] }
 0x201   : > { %10102 = vst [vmem:[#allocation51_spill] sm:$0xff] %v5864_v24  ;;  %1163 = vmatpush.msrb.mxu0 %v5882_v32  ;;  %v5888_v24 = vld [vmem:[%s9316_s2 + $0x108] sm:$0xff] }
 0x202   : > { %10103 = vst [vmem:[#allocation52_spill] sm:$0xff] %v5870_v29  ;;  %1203 = vmatpush.msrb.mxu2 %v5888_v24  ;;  %v5894_v29 = vld [vmem:[%s9316_s2 + $0x390] sm:$0xff] }
 0x203   : > { %10104 = vst [vmem:[#allocation54_spill] sm:$0xff] %v5876_v43  ;;  %1259 = vmatpush.msra.mxu1 %v5894_v29  ;;  %v5900_v43 = vld [vmem:[%s9316_s2 + $0x398] sm:$0xff] }
 0x204   : > { %10105 = vst [vmem:[#allocation55_spill] sm:$0xff] %v5882_v32  ;;  %1299 = vmatpush.msra.mxu3 %v5900_v43  ;;  %v5906_v32 = vld [vmem:[%s9316_s2 + $0xe0] sm:$0xff] }
 0x205   : > { %10106 = vst [vmem:[#allocation58_spill] sm:$0xff] %v5888_v24  ;;  %1164 = vmatpush.msrb.mxu0 %v5906_v32  ;;  %v5912_v24 = vld [vmem:[%s9316_s2 + $0xe8] sm:$0xff] }
 0x206   : > { %10107 = vst [vmem:[#allocation59_spill] sm:$0xff] %v5894_v29  ;;  %1204 = vmatpush.msrb.mxu2 %v5912_v24  ;;  %v5918_v29 = vld [vmem:[%s9316_s2 + $0x370] sm:$0xff] }
 0x207   : > { %10108 = vst [vmem:[#allocation62_spill] sm:$0xff] %v5900_v43  ;;  %1260 = vmatpush.msra.mxu1 %v5918_v29  ;;  %v5924_v43 = vld [vmem:[%s9316_s2 + $0x378] sm:$0xff] }
 0x208   : > { %10109 = vst [vmem:[#allocation63_spill] sm:$0xff] %v5906_v32  ;;  %1300 = vmatpush.msra.mxu3 %v5924_v43  ;;  %v5930_v32 = vld [vmem:[%s9316_s2 + $0xc0] sm:$0xff] }
 0x209   : > { %10110 = vst [vmem:[#allocation66_spill] sm:$0xff] %v5912_v24  ;;  %1165 = vmatpush.msrb.mxu0 %v5930_v32  ;;  %v5936_v24 = vld [vmem:[%s9316_s2 + $0xc8] sm:$0xff] }
 0x20a   : > { %10111 = vst [vmem:[#allocation67_spill] sm:$0xff] %v5918_v29  ;;  %1205 = vmatpush.msrb.mxu2 %v5936_v24  ;;  %v5942_v29 = vld [vmem:[%s9316_s2 + $0x350] sm:$0xff] }
 0x20b   : > { %10112 = vst [vmem:[#allocation70_spill] sm:$0xff] %v5924_v43  ;;  %1261 = vmatpush.msra.mxu1 %v5942_v29  ;;  %v5948_v43 = vld [vmem:[%s9316_s2 + $0x358] sm:$0xff] }
 0x20c   : > { %10113 = vst [vmem:[#allocation72_spill] sm:$0xff] %v5930_v32  ;;  %1301 = vmatpush.msra.mxu3 %v5948_v43  ;;  %v5954_v32 = vld [vmem:[%s9316_s2 + $0xa0] sm:$0xff] }
 0x20d   : > { %10114 = vst [vmem:[#allocation73_spill] sm:$0xff] %v5936_v24  ;;  %1166 = vmatpush.msrb.mxu0 %v5954_v32  ;;  %v5960_v24 = vld [vmem:[%s9316_s2 + $0xa8] sm:$0xff] }
 0x20e   : > { %10115 = vst [vmem:[#allocation75_spill] sm:$0xff] %v5942_v29  ;;  %1206 = vmatpush.msrb.mxu2 %v5960_v24  ;;  %v5966_v29 = vld [vmem:[%s9316_s2 + $0x330] sm:$0xff] }
 0x20f   : > { %10116 = vst [vmem:[#allocation77_spill] sm:$0xff] %v5948_v43  ;;  %1262 = vmatpush.msra.mxu1 %v5966_v29  ;;  %v5972_v43 = vld [vmem:[%s9316_s2 + $0x338] sm:$0xff] }
 0x210   : > { %10117 = vst [vmem:[#allocation79_spill] sm:$0xff] %v5954_v32  ;;  %1302 = vmatpush.msra.mxu3 %v5972_v43  ;;  %v5978_v32 = vld [vmem:[%s9316_s2 + $0x80] sm:$0xff] }
 0x211   : > { %10118 = vst [vmem:[#allocation82_spill] sm:$0xff] %v5960_v24  ;;  %1167 = vmatpush.msrb.mxu0 %v5978_v32  ;;  %v5984_v24 = vld [vmem:[%s9316_s2 + $0x88] sm:$0xff] }
 0x212   : > { %10119 = vst [vmem:[#allocation84_spill] sm:$0xff] %v5966_v29  ;;  %1207 = vmatpush.msrb.mxu2 %v5984_v24  ;;  %v5990_v29 = vld [vmem:[%s9316_s2 + $0x310] sm:$0xff] }
 0x213   : > { %10120 = vst [vmem:[#allocation102_spill] sm:$0xff] %v5972_v43  ;;  %1263 = vmatpush.msra.mxu1 %v5990_v29  ;;  %v5996_v43 = vld [vmem:[%s9316_s2 + $0x318] sm:$0xff] }
 0x214   : > { %10121 = vst [vmem:[#allocation103_spill] sm:$0xff] %v5978_v32  ;;  %1303 = vmatpush.msra.mxu3 %v5996_v43  ;;  %v6002_v32 = vld [vmem:[%s9316_s2 + $0x60] sm:$0xff] }
 0x215   : > { %10122 = vst [vmem:[#allocation104_spill] sm:$0xff] %v5984_v24  ;;  %1168 = vmatpush.msrb.mxu0 %v6002_v32  ;;  %v6008_v24 = vld [vmem:[%s9316_s2 + $0x68] sm:$0xff] }
 0x216   : > { %10123 = vst [vmem:[#allocation105_spill] sm:$0xff] %v5990_v29  ;;  %1208 = vmatpush.msrb.mxu2 %v6008_v24  ;;  %v6014_v29 = vld [vmem:[%s9316_s2 + $0x2f0] sm:$0xff] }
 0x217   : > { %10124 = vst [vmem:[#allocation106_spill] sm:$0xff] %v5996_v43  ;;  %1264 = vmatpush.msra.mxu1 %v6014_v29  ;;  %v6020_v43 = vld [vmem:[%s9316_s2 + $0x2f8] sm:$0xff] }
 0x218   : > { %10125 = vst [vmem:[#allocation107_spill] sm:$0xff] %v6002_v32  ;;  %1304 = vmatpush.msra.mxu3 %v6020_v43  ;;  %v6026_v32 = vld [vmem:[%s9316_s2 + $0x40] sm:$0xff] }
 0x219   : > { %10126 = vst [vmem:[#allocation108_spill] sm:$0xff] %v6008_v24  ;;  %1169 = vmatpush.msrb.mxu0 %v6026_v32  ;;  %v6032_v24 = vld [vmem:[%s9316_s2 + $0x48] sm:$0xff] }
 0x21a   : > { %10127 = vst [vmem:[#allocation109_spill] sm:$0xff] %v6014_v29  ;;  %1209 = vmatpush.msrb.mxu2 %v6032_v24  ;;  %v6038_v29 = vld [vmem:[%s9316_s2 + $0x2d0] sm:$0xff] }
 0x21b   : > { %10128 = vst [vmem:[#allocation110_spill] sm:$0xff] %v6020_v43  ;;  %1265 = vmatpush.msra.mxu1 %v6038_v29  ;;  %v6044_v43 = vld [vmem:[%s9316_s2 + $0x2d8] sm:$0xff] }
 0x21c   : > { %10129 = vst [vmem:[#allocation111_spill] sm:$0xff] %v6026_v32  ;;  %1305 = vmatpush.msra.mxu3 %v6044_v43  ;;  %v6050_v32 = vld [vmem:[%s9316_s2 + $0x20] sm:$0xff] }
 0x21d   : > { %10130 = vst [vmem:[#allocation112_spill] sm:$0xff] %v6032_v24  ;;  %1170 = vmatpush.msrb.mxu0 %v6050_v32  ;;  %v6056_v24 = vld [vmem:[%s9316_s2 + $0x28] sm:$0xff] }
 0x21e   : > { %10131 = vst [vmem:[#allocation113_spill] sm:$0xff] %v6038_v29  ;;  %1210 = vmatpush.msrb.mxu2 %v6056_v24  ;;  %v6062_v29 = vld [vmem:[%s9316_s2 + $0x2b0] sm:$0xff] }
 0x21f   : > { %10132 = vst [vmem:[#allocation114_spill] sm:$0xff] %v6044_v43  ;;  %1266 = vmatpush.msra.mxu1 %v6062_v29  ;;  %v6068_v43 = vld [vmem:[%s9316_s2 + $0x2b8] sm:$0xff] }
 0x220   : > { %10133 = vst [vmem:[#allocation115_spill] sm:$0xff] %v6050_v32  ;;  %1306 = vmatpush.msra.mxu3 %v6068_v43  ;;  %v6074_v32 = vld [vmem:[%s9316_s2] sm:$0xff] }
 0x221   : > { %10134 = vst [vmem:[#allocation116_spill] sm:$0xff] %v6056_v24  ;;  %1171 = vmatpush.msrb.mxu0 %v6074_v32  ;;  %v6080_v24 = vld [vmem:[%s9316_s2 + $0x8] sm:$0xff] }
 0x222   : > { %10135 = vst [vmem:[#allocation117_spill] sm:$0xff] %v6062_v29  ;;  %1211 = vmatpush.msrb.mxu2 %v6080_v24  ;;  %v6086_v29 = vld [vmem:[%s9316_s2 + $0x290] sm:$0xff] }
 0x223   : > { %10136 = vst [vmem:[#allocation118_spill] sm:$0xff] %v6068_v43  ;;  %1267 = vmatpush.msra.mxu1 %v6086_v29  ;;  %v6092_v43 = vld [vmem:[%s9316_s2 + $0x298] sm:$0xff] }
 0x224   : > { %10137 = vst [vmem:[#allocation119_spill] sm:$0xff] %v6074_v32  ;;  %1307 = vmatpush.msra.mxu3 %v6092_v43  ;;  %v6098_v32 = vld [vmem:[%s9316_s2 + $0x1f0] sm:$0xff] }
 0x225   : > { %10138 = vst [vmem:[#allocation120_spill] sm:$0xff] %v6080_v24  ;;  %1236 = vmatpush.msra.mxu0 %v6098_v32  ;;  %v6104_v24 = vld [vmem:[%s9316_s2 + $0x1f8] sm:$0xff] }
 0x226   : > { %10139 = vst [vmem:[#allocation121_spill] sm:$0xff] %v6086_v29  ;;  %1276 = vmatpush.msra.mxu2 %v6104_v24  ;;  %v6110_v29 = vld [vmem:[%s9316_s2 + $0x270] sm:$0xff] }
 0x227   : > { %10140 = vst [vmem:[#allocation122_spill] sm:$0xff] %v6092_v43  ;;  %1268 = vmatpush.msra.mxu1 %v6110_v29  ;;  %v6116_v43 = vld [vmem:[%s9316_s2 + $0x278] sm:$0xff] }
 0x228   : > { %10141 = vst [vmem:[#allocation123_spill] sm:$0xff] %v6098_v32  ;;  %1308 = vmatpush.msra.mxu3 %v6116_v43  ;;  %v6122_v32 = vld [vmem:[%s9316_s2 + $0x1d0] sm:$0xff] }
 0x229   : > { %10142 = vst [vmem:[#allocation124_spill] sm:$0xff] %v6104_v24  ;;  %1237 = vmatpush.msra.mxu0 %v6122_v32  ;;  %v6128_v24 = vld [vmem:[%s9316_s2 + $0x1d8] sm:$0xff] }
 0x22a   : > { %10143 = vst [vmem:[#allocation125_spill] sm:$0xff] %v6110_v29  ;;  %1277 = vmatpush.msra.mxu2 %v6128_v24  ;;  %v6134_v29 = vld [vmem:[%s9316_s2 + $0x250] sm:$0xff] }
 0x22b   : > { %10144 = vst [vmem:[#allocation126_spill] sm:$0xff] %v6116_v43  ;;  %1269 = vmatpush.msra.mxu1 %v6134_v29  ;;  %v6140_v43 = vld [vmem:[%s9316_s2 + $0x258] sm:$0xff] }
 0x22c   : > { %10145 = vst [vmem:[#allocation127_spill] sm:$0xff] %v6122_v32  ;;  %1309 = vmatpush.msra.mxu3 %v6140_v43  ;;  %v6146_v32 = vld [vmem:[%s9316_s2 + $0x1b0] sm:$0xff] }
 0x22d   : > { %10146 = vst [vmem:[#allocation128_spill] sm:$0xff] %v6128_v24  ;;  %1238 = vmatpush.msra.mxu0 %v6146_v32  ;;  %v6152_v24 = vld [vmem:[%s9316_s2 + $0x1b8] sm:$0xff] }
 0x22e   : > { %10147 = vst [vmem:[#allocation129_spill] sm:$0xff] %v6134_v29  ;;  %1278 = vmatpush.msra.mxu2 %v6152_v24  ;;  %v6158_v29 = vld [vmem:[%s9316_s2 + $0x230] sm:$0xff] }
 0x22f   : > { %10148 = vst [vmem:[#allocation130_spill] sm:$0xff] %v6140_v43  ;;  %1270 = vmatpush.msra.mxu1 %v6158_v29  ;;  %v6164_v43 = vld [vmem:[%s9316_s2 + $0x238] sm:$0xff] }
 0x230   : > { %10149 = vst [vmem:[#allocation131_spill] sm:$0xff] %v6146_v32  ;;  %1310 = vmatpush.msra.mxu3 %v6164_v43  ;;  %v6170_v32 = vld [vmem:[%s9316_s2 + $0x190] sm:$0xff] }
 0x231   : > { %10150 = vst [vmem:[#allocation132_spill] sm:$0xff] %v6152_v24  ;;  %1239 = vmatpush.msra.mxu0 %v6170_v32  ;;  %v6176_v24 = vld [vmem:[%s9316_s2 + $0x198] sm:$0xff] }
 0x232   : > { %10151 = vst [vmem:[#allocation133_spill] sm:$0xff] %v6158_v29  ;;  %1279 = vmatpush.msra.mxu2 %v6176_v24  ;;  %v6182_v29 = vld [vmem:[%s9316_s2 + $0x210] sm:$0xff] }
 0x233   : > { %10152 = vst [vmem:[#allocation134_spill] sm:$0xff] %v6164_v43  ;;  %1271 = vmatpush.msra.mxu1 %v6182_v29  ;;  %v6188_v43 = vld [vmem:[%s9316_s2 + $0x218] sm:$0xff] }
 0x234   : > { %10153 = vst [vmem:[#allocation135_spill] sm:$0xff] %v6170_v32  ;;  %1311 = vmatpush.msra.mxu3 %v6188_v43  ;;  %v6194_v32 = vld [vmem:[%s9316_s2 + $0x170] sm:$0xff] }
 0x235   : > { %10154 = vst [vmem:[#allocation136_spill] sm:$0xff] %v6176_v24  ;;  %1240 = vmatpush.msra.mxu0 %v6194_v32  ;;  %v6200_v24 = vld [vmem:[%s9316_s2 + $0x178] sm:$0xff] }
 0x236   : > { %1280 = vmatpush.msra.mxu2 %v6200_v24 }
 0x237   : > { %1241 = vmatpush.msra.mxu0 %v4840_v50  ;;  %v888_v50 = vpop.f32.mrf.mxu0 }
 0x238   : > { %1281 = vmatpush.msra.mxu2 %v4845_v52  ;;  %v908_v52 = vpop.f32.mrf.mxu1 }
 0x239   : > { %1242 = vmatpush.msra.mxu0 %v4854_v54  ;;  %v889_v54 = vadd.f32 %v888_v50, %v5150_v36 }
 0x23a   : > { %1282 = vmatpush.msra.mxu2 %v4859_v56 }
 0x23b   : > { %1243 = vmatpush.msra.mxu0 %v4868_v58  ;;  %v909_v56 = vadd.f32 %v908_v52, %v889_v54 }
 0x23c   : > { %1283 = vmatpush.msra.mxu2 %v4873_v60  ;;  %v928_v60 = vpop.f32.mrf.mxu2 }
 0x23d   : > { %1244 = vmatpush.msra.mxu0 %v4882_v62  ;;  %v1031_v58 = vmul.f32 0.5, %v909_v56  ;;  %v948_v62 = vpop.f32.mrf.mxu3 }
 0x23e   : > { %1284 = vmatpush.msra.mxu2 %v4887_v0  ;;  %v929_v0 = vadd.f32 %v928_v60, %v5153_v46 }
 0x23f   : > { %1245 = vmatpush.msra.mxu0 %v4896_v2  ;;  %2915 = vtanh.f32 %v1031_v58  ;;  %v2834_v58 = vld [vmem:[%s4992_s9 + $0x48] sm:$0xff] }
 0x240   : > { %1285 = vmatpush.msra.mxu2 %v4901_v4  ;;  %v949_v2 = vadd.f32 %v948_v62, %v929_v0  ;;  %v968_v4 = vpop.f32.mrf.mxu0 }
 0x241   : > { %1246 = vmatpush.msra.mxu0 %v4910_v6  ;;  %v969_v6 = vadd.f32 %v968_v4, %v5155_v27 }
 0x242   : > { %1286 = vmatpush.msra.mxu2 %v4915_v7  ;;  %v988_v7 = vpop.f32.mrf.mxu1 }
 0x243   : > { %1247 = vmatpush.msra.mxu0 %v4924_v5  ;;  %v1035_v5 = vmul.f32 0.5, %v949_v2 }
 0x244   : > { %1287 = vmatpush.msra.mxu2 %v4929_v8  ;;  %v989_v8 = vadd.f32 %v988_v7, %v969_v6 }
 0x245   : > { %1248 = vmatpush.msra.mxu0 %v4939_v1  ;;  %2917 = vtanh.f32 %v1035_v5  ;;  %v2916_v1 = vpop.eup %2915 }
 0x246   : > { %1288 = vmatpush.msra.mxu2 %v4944_v3  ;;  %2919 = vtanh.f32 %v989_v8  ;;  %v1008_v3 = vpop.f32.mrf.mxu2  ;;  %v2833_v8 = vld [vmem:[%s4992_s9 + $0x40] sm:$0xff] }
 0x247   : > { %1249 = vmatpush.msra.mxu0 %v4953_v61  ;;  %v1009_v61 = vadd.f32 %v1008_v3, %v5159_v10 }
 0x248   : > { %1289 = vmatpush.msra.mxu2 %v4958_v63  ;;  %v1028_v63 = vpop.f32.mrf.mxu3 }
 0x249   : > { %1250 = vmatpush.msra.mxu0 %v4967_v57  ;;  %v1033_v57 = vmul.f32 0.5, %v2916_v1 }
 0x24a   : > { %1290 = vmatpush.msra.mxu2 %v4972_v59  ;;  %v1029_v59 = vadd.f32 %v1028_v63, %v1009_v61  ;;  %v1091_v60 = vpop.f32.mrf.mxu1 }
 0x24b   : > { %1251 = vmatpush.msra.mxu0 %v4981_v53  ;;  %v2918_v53 = vpop.eup %2917  ;;  %v1034_v54 = vadd.f32 0.5, %v1033_v57  ;;  %v1135_v2 = vadd.f32 %v2834_v58, %v1091_v60  ;;  %v2836_v57 = vld [vmem:[%s4992_s9 + $0x58] sm:$0xff] }
 0x24c   : > { %1291 = vmatpush.msra.mxu2 %v4986_v55  ;;  %v1037_v55 = vmul.f32 0.5, %v2918_v53  ;;  %v1040_v50 = vmul.f32 0.5, %v1029_v59  ;;  %v2920_v52 = vpop.eup %2919 }
 0x24d   : > { %v1045_v0 = vmul.f32 %v2920_v52, %v1034_v54  ;;  %v1142_v7 = vmul.f32 0.5, %v1135_v2  ;;  %v10176_v2 = vld [vmem:[#allocation10_spill] sm:$0xff] }
 0x24e   : > { %v1038_v56 = vadd.f32 0.5, %v1037_v55  ;;  %2921 = vtanh.f32 %v1040_v50  ;;  %v2835_v50 = vld [vmem:[%s4992_s9 + $0x50] sm:$0xff] }
 0x250   : > { %v1044_v62 = vmul.f32 %v1038_v56, %v5163_v23  ;;  %v1131_v59 = vpop.f32.mrf.mxu3 }
 0x251   : > { %v1137_v55 = vadd.f32 %v2836_v57, %v1131_v59  ;;  %v10185_v57 = vld [vmem:[#allocation86_spill] sm:$0xff]  ;;  %v10186_v59 = vld [vmem:[#allocation17_spill] sm:$0xff] }
 0x252   : > { %v6231_v4 = vadd.f32 %v1045_v0, %v1044_v62  ;;  %v10175_v0 = vld [vmem:[#allocation78_spill] sm:$0xff] }
 0x253   : > { %v1147_v60 = vmul.f32 0.5, %v1137_v55  ;;  %v10189_v55 = vld [vmem:[#allocation88_spill] sm:$0xff] }
 0x254   : > { %v2922_v6 = vpop.eup %2921  ;;  %2923 = vtanh.f32 %v6231_v4 }
 0x255   : > { %v1042_v5 = vmul.f32 0.5, %v2922_v6  ;;  %2925 = vtanh.f32 %v1142_v7  ;;  %v10177_v6 = vld [vmem:[#allocation11_spill] sm:$0xff]  ;;  %v10178_v7 = vld [vmem:[#allocation12_spill] sm:$0xff] }
 0x257   : > { %v1043_v1 = vadd.f32 0.5, %v1042_v5  ;;  %v10179_v5 = vld [vmem:[#allocation13_spill] sm:$0xff] }
 0x25a   : > { %v2924_v61 = vpop.eup %2923 }
 0x25b   : > { %v1048_v53 = vmul.f32 %v2924_v61, %v1043_v1  ;;  %v2926_v52 = vpop.eup %2925  ;;  %v10181_v1 = vld [vmem:[#allocation14_spill] sm:$0xff]  ;;  %v10183_v61 = vld [vmem:[#allocation83_spill] sm:$0xff] }
 0x25c   : > { %v1144_v58 = vmul.f32 0.5, %v2926_v52  ;;  %v10191_v52 = vld [vmem:[#allocation87_spill] sm:$0xff] }
 0x25d   : > { %1192 = vmatmul.f32.vlgmr.msrb.gmra.mxu1 %v1048_v53  ;;  %1232 = vmatmul.f32.vlgmr.msrb.gmra.mxu3 %v1048_v53 }
 0x25e   : > { %v1071_v3 = vpop.f32.mrf.mxu0  ;;  %1359 = vmatpush.msrb.mxu1 %v5172_v31  ;;  %1399 = vmatpush.msrb.mxu3 %v5178_v37  ;;  %v1145_v37 = vadd.f32 0.5, %v1144_v58  ;;  %v10194_v58 = vld [vmem:[#allocation21_spill] sm:$0xff] }
 0x25f   : > { %v1134_v63 = vadd.f32 %v2833_v8, %v1071_v3  ;;  %v10180_v8 = vld [vmem:[#allocation81_spill] sm:$0xff]  ;;  %v10182_v3 = vld [vmem:[#allocation15_spill] sm:$0xff] }
 0x260   : > { %1360 = vmatpush.msrb.mxu1 %v5184_v47  ;;  %1400 = vmatpush.msrb.mxu3 %v5190_v11 }
 0x261   : > { %v1138_v23 = vmul.f32 0.5, %v1134_v63  ;;  %v10184_v63 = vld [vmem:[#allocation16_spill] sm:$0xff] }
 0x262   : > { %1361 = vmatpush.msrb.mxu1 %v5196_v40  ;;  %1401 = vmatpush.msrb.mxu3 %v5202_v35  ;;  %v1151_v40 = vmul.f32 %v1145_v37, %v5254_v39  ;;  %v10157_v39 = vld [vmem:[#allocation61_spill] sm:$0xff]  ;;  %v10198_v37 = vld [vmem:[#allocation23_spill] sm:$0xff] }
 0x263   : > { %2927 = vtanh.f32 %v1138_v23  ;;  %v10188_v23 = vld [vmem:[#allocation18_spill] sm:$0xff] }
 0x264   : > { %1362 = vmatpush.msrb.mxu1 %v5208_v14  ;;  %1402 = vmatpush.msrb.mxu3 %v5214_v15 }
 0x265   : > { %1272 = vmatmul.f32.vlgmr.msra.gmra.mxu1 %v1048_v53  ;;  %1312 = vmatmul.f32.vlgmr.msra.gmra.mxu3 %v1048_v53  ;;  %v10187_v53 = vld [vmem:[#allocation85_spill] sm:$0xff] }
 0x266   : > { %v1111_v54 = vpop.f32.mrf.mxu2  ;;  %1363 = vmatpush.msrb.mxu1 %v5220_v18  ;;  %1403 = vmatpush.msrb.mxu3 %v5226_v19 }
 0x267   : > { %v1136_v56 = vadd.f32 %v2835_v50, %v1111_v54  ;;  %v10190_v50 = vld [vmem:[#allocation19_spill] sm:$0xff]  ;;  %v10192_v54 = vld [vmem:[#allocation20_spill] sm:$0xff] }
 0x268   : > { %1364 = vmatpush.msrb.mxu1 %v5232_v38  ;;  %1404 = vmatpush.msrb.mxu3 %v5238_v21 }
 0x269   : > { %2929 = vtanh.f32 %v1136_v56  ;;  %v2928_v62 = vpop.eup %2927  ;;  %v10193_v56 = vld [vmem:[#allocation90_spill] sm:$0xff] }
 0x26a   : > { %v1140_v31 = vmul.f32 0.5, %v2928_v62  ;;  %2931 = vtanh.f32 %v1147_v60  ;;  %1365 = vmatpush.msrb.mxu1 %v5245_v25  ;;  %1405 = vmatpush.msrb.mxu3 %v5251_v26  ;;  %v10155_v25 = vld [vmem:[#allocation53_spill] sm:$0xff]  ;;  %v10156_v26 = vld [vmem:[#allocation60_spill] sm:$0xff]  ;;  %v10196_v62 = vld [vmem:[#allocation22_spill] sm:$0xff] }
 0x26b   : > { %v10195_v60 = vld [vmem:[#allocation89_spill] sm:$0xff] }
 0x26c   : > { %v1141_v47 = vadd.f32 0.5, %v1140_v31  ;;  %1366 = vmatpush.msrb.mxu1 %v5259_v17  ;;  %1406 = vmatpush.msrb.mxu3 %v5265_v41  ;;  %v10158_v17 = vld [vmem:[#allocation56_spill] sm:$0xff]  ;;  %v10159_v41 = vld [vmem:[#allocation57_spill] sm:$0xff] }
 0x26d   : > { %v10197_v31 = vld [vmem:[#allocation92_spill] sm:$0xff] }
 0x26e   : > { %1367 = vmatpush.msrb.mxu1 %v5272_v44  ;;  %1407 = vmatpush.msrb.mxu3 %v5278_v48  ;;  %v10160_v44 = vld [vmem:[#allocation68_spill] sm:$0xff]  ;;  %v10161_v48 = vld [vmem:[#allocation69_spill] sm:$0xff] }
 0x26f   : > { %v2930_v11 = vpop.eup %2929 }
 0x270   : > { %v1152_v35 = vmul.f32 %v2930_v11, %v1141_v47  ;;  %v2932_v14 = vpop.eup %2931  ;;  %1368 = vmatpush.msrb.mxu1 %v5284_v28  ;;  %1408 = vmatpush.msrb.mxu3 %v5290_v34  ;;  %v10162_v28 = vld [vmem:[#allocation64_spill] sm:$0xff]  ;;  %v10163_v34 = vld [vmem:[#allocation65_spill] sm:$0xff]  ;;  %v10199_v47 = vld [vmem:[#allocation91_spill] sm:$0xff] }
 0x271   : > { %v1149_v18 = vmul.f32 0.5, %v2932_v14  ;;  %v10200_v11 = vld [vmem:[#allocation24_spill] sm:$0xff]  ;;  %v10203_v14 = vld [vmem:[#allocation93_spill] sm:$0xff] }
 0x272   : > { %v6252_v15 = vadd.f32 %v1152_v35, %v1151_v40  ;;  %1369 = vmatpush.msrb.mxu1 %v5296_v30  ;;  %1409 = vmatpush.msrb.mxu3 %v5302_v22  ;;  %v10164_v30 = vld [vmem:[#allocation76_spill] sm:$0xff]  ;;  %v10165_v22 = vld [vmem:[#allocation3_spill] sm:$0xff]  ;;  %v10201_v40 = vld [vmem:[#allocation94_spill] sm:$0xff] }
 0x273   : > { %v1150_v19 = vadd.f32 0.5, %v1149_v18  ;;  %v10202_v35 = vld [vmem:[#allocation25_spill] sm:$0xff]  ;;  %v10204_v18 = vld [vmem:[#allocation26_spill] sm:$0xff] }
 0x274   : > { %2933 = vtanh.f32 %v6252_v15  ;;  %1370 = vmatpush.msrb.mxu1 %v5310_v42  ;;  %1410 = vmatpush.msrb.mxu3 %v5316_v51  ;;  %v10166_v42 = vld [vmem:[#allocation4_spill] sm:$0xff]  ;;  %v10167_v51 = vld [vmem:[#allocation5_spill] sm:$0xff] }
 0x276   : > { %1371 = vmatpush.msrb.mxu1 %v5336_v45  ;;  %1411 = vmatpush.msrb.mxu3 %v5342_v16  ;;  %v10170_v45 = vld [vmem:[#allocation7_spill] sm:$0xff]  ;;  %v10171_v16 = vld [vmem:[#allocation74_spill] sm:$0xff] }
 0x278   : > { %1372 = vmatpush.msrb.mxu1 %v5360_v49  ;;  %1412 = vmatpush.msrb.mxu3 %v5366_v33  ;;  %v10173_v49 = vld [vmem:[#allocation80_spill] sm:$0xff]  ;;  %v10174_v33 = vld [vmem:[#allocation9_spill] sm:$0xff] }
 0x27a   : > { %v2934_v38 = vpop.eup %2933  ;;  %1373 = vmatpush.msrb.mxu1 %v10156_v26  ;;  %1413 = vmatpush.msrb.mxu3 %v10157_v39  ;;  %v10208_v26 = vld [vmem:[#allocation28_spill] sm:$0xff]  ;;  %v10209_v39 = vld [vmem:[#allocation98_spill] sm:$0xff] }
 0x27b   : > { %v6265_v21 = vmul.f32 %v2934_v38, %v1150_v19  ;;  %v10205_v19 = vld [vmem:[#allocation96_spill] sm:$0xff]  ;;  %v10206_v38 = vld [vmem:[#allocation27_spill] sm:$0xff] }
 0x27c   : > { %1374 = vmatpush.msrb.mxu1 %v10160_v44  ;;  %1414 = vmatpush.msrb.mxu3 %v10161_v48  ;;  %v10212_v44 = vld [vmem:[#allocation30_spill] sm:$0xff]  ;;  %v10214_v48 = vld [vmem:[#allocation31_spill] sm:$0xff] }
 0x27d   : > { %1172 = vmatmul.f32.vlgmr.msrb.gmra.mxu0 %v6265_v21  ;;  %1212 = vmatmul.f32.vlgmr.msrb.gmra.mxu2 %v6265_v21 }
 0x27e   : > { %1339 = vmatpush.msrb.mxu0 %v5324_v12  ;;  %1379 = vmatpush.msrb.mxu2 %v5330_v13  ;;  %v10168_v12 = vld [vmem:[#allocation71_spill] sm:$0xff]  ;;  %v10169_v13 = vld [vmem:[#allocation6_spill] sm:$0xff] }
 0x27f   : > { %1375 = vmatmul.f32.vlgmr.msrb.gmra.mxu1 %v6265_v21  ;;  %1415 = vmatmul.f32.vlgmr.msrb.gmra.mxu3 %v6265_v21 }
 0x280   : > { %1340 = vmatpush.msrb.mxu0 %v5348_v20  ;;  %1380 = vmatpush.msrb.mxu2 %v10155_v25  ;;  %v10172_v20 = vld [vmem:[#allocation8_spill] sm:$0xff]  ;;  %v10207_v25 = vld [vmem:[#allocation95_spill] sm:$0xff] }
 0x281   : > { %1461 = vmatpush.msra.mxu1 %v10167_v51  ;;  %1501 = vmatpush.msra.mxu3 %v10169_v13  ;;  %v10221_v51 = vld [vmem:[#allocation36_spill] sm:$0xff]  ;;  %v10223_v13 = vld [vmem:[#allocation38_spill] sm:$0xff] }
 0x282   : > { %1341 = vmatpush.msrb.mxu0 %v10158_v17  ;;  %1381 = vmatpush.msrb.mxu2 %v10159_v41  ;;  %v10210_v17 = vld [vmem:[#allocation29_spill] sm:$0xff] }
 0x283   : > { %1462 = vmatpush.msra.mxu1 %v10171_v16  ;;  %1502 = vmatpush.msra.mxu3 %v10173_v49  ;;  %v10211_v41 = vld [vmem:[#allocation97_spill] sm:$0xff]  ;;  %v10225_v16 = vld [vmem:[#allocation40_spill] sm:$0xff]  ;;  %v10227_v49 = vld [vmem:[#allocation42_spill] sm:$0xff] }
 0x284   : > { %1342 = vmatpush.msrb.mxu0 %v10162_v28  ;;  %1382 = vmatpush.msrb.mxu2 %v10163_v34  ;;  %v10215_v28 = vld [vmem:[#allocation99_spill] sm:$0xff]  ;;  %v10216_v34 = vld [vmem:[#allocation32_spill] sm:$0xff] }
 0x285   : > { %1252 = vmatmul.f32.vlgmr.msra.gmra.mxu0 %v6265_v21  ;;  %1292 = vmatmul.f32.vlgmr.msra.gmra.mxu2 %v6265_v21 }
 0x286   : > { %1343 = vmatpush.msrb.mxu0 %v10164_v30  ;;  %1383 = vmatpush.msrb.mxu2 %v10165_v22  ;;  %v10217_v30 = vld [vmem:[#allocation33_spill] sm:$0xff]  ;;  %v10219_v22 = vld [vmem:[#allocation34_spill] sm:$0xff] }
 0x287   : > { %1463 = vmatpush.msra.mxu1 %v10175_v0  ;;  %1503 = vmatpush.msra.mxu3 %v10177_v6  ;;  %v10229_v0 = vld [vmem:[#allocation44_spill] sm:$0xff]  ;;  %v10231_v6 = vld [vmem:[#allocation46_spill] sm:$0xff] }
 0x288   : > { %1344 = vmatpush.msrb.mxu0 %v10166_v42  ;;  %1384 = vmatpush.msrb.mxu2 %v10168_v12  ;;  %v10220_v42 = vld [vmem:[#allocation35_spill] sm:$0xff]  ;;  %v10222_v12 = vld [vmem:[#allocation37_spill] sm:$0xff] }
 0x289   : > { %1464 = vmatpush.msra.mxu1 %v10179_v5  ;;  %1504 = vmatpush.msra.mxu3 %v10181_v1  ;;  %v10233_v5 = vld [vmem:[#allocation48_spill] sm:$0xff]  ;;  %v10235_v1 = vld [vmem:[#allocation50_spill] sm:$0xff] }
 0x28a   : > { %1345 = vmatpush.msrb.mxu0 %v10170_v45  ;;  %1385 = vmatpush.msrb.mxu2 %v10172_v20  ;;  %v10224_v45 = vld [vmem:[#allocation39_spill] sm:$0xff]  ;;  %v10226_v20 = vld [vmem:[#allocation41_spill] sm:$0xff] }
 0x28b   : > { %1465 = vmatpush.msra.mxu1 %v10183_v61  ;;  %1505 = vmatpush.msra.mxu3 %v10185_v57  ;;  %v10237_v61 = vld [vmem:[#allocation52_spill] sm:$0xff]  ;;  %v10239_v57 = vld [vmem:[#allocation55_spill] sm:$0xff] }
 0x28c   : > { %1346 = vmatpush.msrb.mxu0 %v10174_v33  ;;  %1386 = vmatpush.msrb.mxu2 %v10176_v2  ;;  %v10228_v33 = vld [vmem:[#allocation43_spill] sm:$0xff]  ;;  %v10230_v2 = vld [vmem:[#allocation45_spill] sm:$0xff] }
 0x28d   : > { %1466 = vmatpush.msra.mxu1 %v10187_v53  ;;  %1506 = vmatpush.msra.mxu3 %v10189_v55  ;;  %v10241_v53 = vld [vmem:[#allocation59_spill] sm:$0xff] }
 0x28e   : > { %1347 = vmatpush.msrb.mxu0 %v10178_v7  ;;  %1387 = vmatpush.msrb.mxu2 %v10180_v8  ;;  %v10232_v7 = vld [vmem:[#allocation47_spill] sm:$0xff]  ;;  %v10234_v8 = vld [vmem:[#allocation49_spill] sm:$0xff] }
 0x28f   : > { %1467 = vmatpush.msra.mxu1 %v10191_v52  ;;  %1507 = vmatpush.msra.mxu3 %v10193_v56  ;;  %v10243_v55 = vld [vmem:[#allocation63_spill] sm:$0xff]  ;;  %v10247_v56 = vld [vmem:[#allocation72_spill] sm:$0xff] }
 0x290   : > { %1348 = vmatpush.msrb.mxu0 %v10182_v3  ;;  %1388 = vmatpush.msrb.mxu2 %v10184_v63  ;;  %v10236_v3 = vld [vmem:[#allocation51_spill] sm:$0xff]  ;;  %v10238_v63 = vld [vmem:[#allocation54_spill] sm:$0xff] }
 0x291   : > { %1468 = vmatpush.msra.mxu1 %v10195_v60  ;;  %1508 = vmatpush.msra.mxu3 %v10197_v31  ;;  %v10245_v52 = vld [vmem:[#allocation67_spill] sm:$0xff] }
 0x292   : > { %1349 = vmatpush.msrb.mxu0 %v10186_v59  ;;  %1389 = vmatpush.msrb.mxu2 %v10188_v23  ;;  %v10240_v59 = vld [vmem:[#allocation58_spill] sm:$0xff]  ;;  %v10249_v60 = vld [vmem:[#allocation75_spill] sm:$0xff] }
 0x293   : > { %1469 = vmatpush.msra.mxu1 %v10199_v47  ;;  %1509 = vmatpush.msra.mxu3 %v10201_v40  ;;  %v10242_v23 = vld [vmem:[#allocation62_spill] sm:$0xff]  ;;  %v10251_v31 = vld [vmem:[#allocation79_spill] sm:$0xff]  ;;  %v10253_v47 = vld [vmem:[#allocation84_spill] sm:$0xff] }
 0x294   : > { %1350 = vmatpush.msrb.mxu0 %v10190_v50  ;;  %1390 = vmatpush.msrb.mxu2 %v10192_v54  ;;  %v10244_v50 = vld [vmem:[#allocation66_spill] sm:$0xff]  ;;  %v10255_v40 = vld [vmem:[#allocation103_spill] sm:$0xff] }
 0x295   : > { %1470 = vmatpush.msra.mxu1 %v10203_v14  ;;  %1510 = vmatpush.msra.mxu3 %v5670_v9  ;;  %v10213_v9 = vld [vmem:[#allocation100_spill] sm:$0xff]  ;;  %v10246_v54 = vld [vmem:[#allocation70_spill] sm:$0xff]  ;;  %v10257_v14 = vld [vmem:[#allocation105_spill] sm:$0xff] }
 0x296   : > { %1351 = vmatpush.msrb.mxu0 %v10194_v58  ;;  %1391 = vmatpush.msrb.mxu2 %v10196_v62  ;;  %v10248_v58 = vld [vmem:[#allocation73_spill] sm:$0xff] }
 0x297   : > { %1471 = vmatpush.msra.mxu1 %v10206_v38  ;;  %1511 = vmatpush.msra.mxu3 %v10208_v26  ;;  %v10250_v62 = vld [vmem:[#allocation77_spill] sm:$0xff]  ;;  %v10260_v38 = vld [vmem:[#allocation108_spill] sm:$0xff]  ;;  %v10262_v26 = vld [vmem:[#allocation110_spill] sm:$0xff] }
 0x298   : > { %1352 = vmatpush.msrb.mxu0 %v10198_v37  ;;  %1392 = vmatpush.msrb.mxu2 %v10200_v11  ;;  %v10252_v37 = vld [vmem:[#allocation82_spill] sm:$0xff] }
 0x299   : > { %1472 = vmatpush.msra.mxu1 %v10209_v39  ;;  %1512 = vmatpush.msra.mxu3 %v10211_v41  ;;  %v10254_v11 = vld [vmem:[#allocation102_spill] sm:$0xff]  ;;  %v10263_v39 = vld [vmem:[#allocation111_spill] sm:$0xff]  ;;  %v10265_v41 = vld [vmem:[#allocation113_spill] sm:$0xff] }
 0x29a   : > { %1353 = vmatpush.msrb.mxu0 %v10202_v35  ;;  %1393 = vmatpush.msrb.mxu2 %v10204_v18  ;;  %v10256_v35 = vld [vmem:[#allocation104_spill] sm:$0xff]  ;;  %v10258_v18 = vld [vmem:[#allocation106_spill] sm:$0xff] }
 0x29b   : > { %1473 = vmatpush.msra.mxu1 %v10213_v9  ;;  %1513 = vmatpush.msra.mxu3 %v10215_v28  ;;  %v10267_v9 = vld [vmem:[#allocation115_spill] sm:$0xff]  ;;  %v10269_v28 = vld [vmem:[#allocation117_spill] sm:$0xff] }
 0x29c   : > { %1354 = vmatpush.msrb.mxu0 %v10205_v19  ;;  %1394 = vmatpush.msrb.mxu2 %v10207_v25  ;;  %v10259_v19 = vld [vmem:[#allocation107_spill] sm:$0xff]  ;;  %v10261_v25 = vld [vmem:[#allocation109_spill] sm:$0xff] }
 0x29d   : > { %1355 = vmatmul.f32.vlgmr.msrb.gmra.mxu0 %v6265_v21  ;;  %1395 = vmatmul.f32.vlgmr.msrb.gmra.mxu2 %v6265_v21  ;;  %v10218_v21 = vld [vmem:[#allocation101_spill] sm:$0xff] }
 0x29e   : > { %1441 = vmatpush.msra.mxu0 %v10210_v17  ;;  %1481 = vmatpush.msra.mxu2 %v10212_v44  ;;  %v10264_v17 = vld [vmem:[#allocation112_spill] sm:$0xff]  ;;  %v10266_v44 = vld [vmem:[#allocation114_spill] sm:$0xff] }
 0x29f   : > { %1474 = vmatpush.msra.mxu1 %v10217_v30  ;;  %1514 = vmatpush.msra.mxu3 %v10219_v22  ;;  %v10271_v30 = vld [vmem:[#allocation119_spill] sm:$0xff]  ;;  %v10273_v22 = vld [vmem:[#allocation121_spill] sm:$0xff] }
 0x2a0   : > { %1442 = vmatpush.msra.mxu0 %v10214_v48  ;;  %1482 = vmatpush.msra.mxu2 %v10216_v34  ;;  %v10268_v48 = vld [vmem:[#allocation116_spill] sm:$0xff]  ;;  %v10270_v34 = vld [vmem:[#allocation118_spill] sm:$0xff] }
 0x2a1   : > { %1475 = vmatpush.msra.mxu1 %v10221_v51  ;;  %1515 = vmatpush.msra.mxu3 %v10223_v13  ;;  %v10275_v51 = vld [vmem:[#allocation123_spill] sm:$0xff]  ;;  %v10277_v13 = vld [vmem:[#allocation125_spill] sm:$0xff] }
 0x2a2   : > { %1443 = vmatpush.msra.mxu0 %v10218_v21  ;;  %1483 = vmatpush.msra.mxu2 %v10220_v42  ;;  %v10272_v21 = vld [vmem:[#allocation120_spill] sm:$0xff]  ;;  %v10274_v42 = vld [vmem:[#allocation122_spill] sm:$0xff] }
 0x2a3   : > { %1476 = vmatpush.msra.mxu1 %v10225_v16  ;;  %1516 = vmatpush.msra.mxu3 %v10227_v49  ;;  %v10279_v16 = vld [vmem:[#allocation127_spill] sm:$0xff]  ;;  %v10281_v49 = vld [vmem:[#allocation129_spill] sm:$0xff] }
 0x2a4   : > { %1444 = vmatpush.msra.mxu0 %v10222_v12  ;;  %1484 = vmatpush.msra.mxu2 %v10224_v45  ;;  %v10276_v12 = vld [vmem:[#allocation124_spill] sm:$0xff]  ;;  %v10278_v45 = vld [vmem:[#allocation126_spill] sm:$0xff] }
 0x2a5   : > { %1541 = vmatpush.msrb.mxu1 %v10229_v0  ;;  %1581 = vmatpush.msrb.mxu3 %v10230_v2  ;;  %v10283_v0 = vld [vmem:[#allocation131_spill] sm:$0xff]  ;;  %v10284_v2 = vld [vmem:[#allocation132_spill] sm:$0xff] }
 0x2a6   : > { %1445 = vmatpush.msra.mxu0 %v10226_v20  ;;  %1485 = vmatpush.msra.mxu2 %v10228_v33  ;;  %v10280_v20 = vld [vmem:[#allocation128_spill] sm:$0xff]  ;;  %v10282_v33 = vld [vmem:[#allocation130_spill] sm:$0xff] }
 0x2a7   : > { %1542 = vmatpush.msrb.mxu1 %v10233_v5  ;;  %1582 = vmatpush.msrb.mxu3 %v10234_v8  ;;  %v10287_v5 = vld [vmem:[#allocation135_spill] sm:$0xff]  ;;  %v10288_v8 = vld [vmem:[#allocation136_spill] sm:$0xff] }
 0x2a8   : > { %1446 = vmatpush.msra.mxu0 %v10231_v6  ;;  %1486 = vmatpush.msra.mxu2 %v10232_v7  ;;  %v10285_v6 = vld [vmem:[#allocation133_spill] sm:$0xff]  ;;  %v10286_v7 = vld [vmem:[#allocation134_spill] sm:$0xff] }
 0x2a9   : > { %1543 = vmatpush.msrb.mxu1 %v10237_v61  ;;  %1583 = vmatpush.msrb.mxu3 %v10238_v63  ;;  %v6460_v61 = vld [vmem:[%s9316_s2 + $0xf0] sm:$0xff]  ;;  %v6466_v63 = vld [vmem:[%s9316_s2 + $0xf8] sm:$0xff] }
 0x2aa   : > { %1447 = vmatpush.msra.mxu0 %v10235_v1  ;;  %1487 = vmatpush.msra.mxu2 %v10236_v3  ;;  %v6424_v1 = vld [vmem:[%s9316_s2 + $0x150] sm:$0xff]  ;;  %v6430_v3 = vld [vmem:[%s9316_s2 + $0x158] sm:$0xff] }
 0x2ab   : > { %1544 = vmatpush.msrb.mxu1 %v10241_v53  ;;  %1584 = vmatpush.msrb.mxu3 %v10242_v23  ;;  %v6484_v53 = vld [vmem:[%s9316_s2 + $0xb0] sm:$0xff]  ;;  %v6490_v23 = vld [vmem:[%s9316_s2 + $0xb8] sm:$0xff] }
 0x2ac   : > { %1448 = vmatpush.msra.mxu0 %v10239_v57  ;;  %1488 = vmatpush.msra.mxu2 %v10240_v59  ;;  %v6472_v57 = vld [vmem:[%s9316_s2 + $0xd0] sm:$0xff]  ;;  %v6478_v59 = vld [vmem:[%s9316_s2 + $0xd8] sm:$0xff] }
 0x2ad   : > { %1545 = vmatpush.msrb.mxu1 %v10245_v52  ;;  %1585 = vmatpush.msrb.mxu3 %v10246_v54  ;;  %v6508_v52 = vld [vmem:[%s9316_s2 + $0x70] sm:$0xff]  ;;  %v6514_v54 = vld [vmem:[%s9316_s2 + $0x78] sm:$0xff] }
 0x2ae   : > { %1449 = vmatpush.msra.mxu0 %v10243_v55  ;;  %1489 = vmatpush.msra.mxu2 %v10244_v50  ;;  %v6496_v55 = vld [vmem:[%s9316_s2 + $0x90] sm:$0xff]  ;;  %v6502_v50 = vld [vmem:[%s9316_s2 + $0x98] sm:$0xff] }
 0x2af   : > { %1546 = vmatpush.msrb.mxu1 %v10249_v60  ;;  %1586 = vmatpush.msrb.mxu3 %v10250_v62  ;;  %v6532_v60 = vld [vmem:[%s9316_s2 + $0x30] sm:$0xff]  ;;  %v6538_v62 = vld [vmem:[%s9316_s2 + $0x38] sm:$0xff] }
 0x2b0   : > { %1450 = vmatpush.msra.mxu0 %v10247_v56  ;;  %1490 = vmatpush.msra.mxu2 %v10248_v58  ;;  %v6520_v56 = vld [vmem:[%s9316_s2 + $0x50] sm:$0xff]  ;;  %v6526_v58 = vld [vmem:[%s9316_s2 + $0x58] sm:$0xff] }
 0x2b1   : > { %1547 = vmatpush.msrb.mxu1 %v10253_v47  ;;  %1587 = vmatpush.msrb.mxu3 %v10254_v11 }
 0x2b2   : > { %1451 = vmatpush.msra.mxu0 %v10251_v31  ;;  %1491 = vmatpush.msra.mxu2 %v10252_v37  ;;  %v6544_v31 = vld [vmem:[%s9316_s2 + $0x10] sm:$0xff]  ;;  %v6550_v37 = vld [vmem:[%s9316_s2 + $0x18] sm:$0xff] }
 0x2b3   : > { %1548 = vmatpush.msrb.mxu1 %v10257_v14  ;;  %1588 = vmatpush.msrb.mxu3 %v10258_v18 }
 0x2b4   : > { %1452 = vmatpush.msra.mxu0 %v10255_v40  ;;  %1492 = vmatpush.msra.mxu2 %v10256_v35 }
 0x2b5   : > { %1549 = vmatpush.msrb.mxu1 %v10261_v25  ;;  %1589 = vmatpush.msrb.mxu3 %v10262_v26 }
 0x2b6   : > { %1453 = vmatpush.msra.mxu0 %v10259_v19  ;;  %1493 = vmatpush.msra.mxu2 %v10260_v38 }
 0x2b7   : > { %1550 = vmatpush.msrb.mxu1 %v10265_v41  ;;  %1590 = vmatpush.msrb.mxu3 %v10266_v44 }
 0x2b8   : > { %1454 = vmatpush.msra.mxu0 %v10263_v39  ;;  %1494 = vmatpush.msra.mxu2 %v10264_v17 }
 0x2b9   : > { %1551 = vmatpush.msrb.mxu1 %v10269_v28  ;;  %1591 = vmatpush.msrb.mxu3 %v10270_v34 }
 0x2ba   : > { %1455 = vmatpush.msra.mxu0 %v10267_v9  ;;  %1495 = vmatpush.msra.mxu2 %v10268_v48 }
 0x2bb   : > { %1552 = vmatpush.msrb.mxu1 %v10273_v22  ;;  %1592 = vmatpush.msrb.mxu3 %v10274_v42 }
 0x2bc   : > { %1456 = vmatpush.msra.mxu0 %v10271_v30  ;;  %1496 = vmatpush.msra.mxu2 %v10272_v21 }
 0x2bd   : > { %1553 = vmatpush.msrb.mxu1 %v10277_v13  ;;  %1593 = vmatpush.msrb.mxu3 %v10278_v45  ;;  %v2838_v13 = vld [vmem:[%s4992_s9 + $0x68] sm:$0xff] }
 0x2be   : > { %1521 = vmatpush.msrb.mxu0 %v10275_v51  ;;  %1561 = vmatpush.msrb.mxu2 %v10276_v12 }
 0x2bf   : > { %1554 = vmatpush.msrb.mxu1 %v10281_v49  ;;  %1594 = vmatpush.msrb.mxu3 %v10282_v33 }
 0x2c0   : > { %1522 = vmatpush.msrb.mxu0 %v10279_v16  ;;  %1562 = vmatpush.msrb.mxu2 %v10280_v20 }
 0x2c1   : > { %1555 = vmatpush.msrb.mxu1 %v10285_v6  ;;  %1595 = vmatpush.msrb.mxu3 %v10286_v7 }
 0x2c2   : > { %1523 = vmatpush.msrb.mxu0 %v10283_v0  ;;  %1563 = vmatpush.msrb.mxu2 %v10284_v2 }
 0x2c3   : > { %1556 = vmatpush.msrb.mxu1 %v6182_v29  ;;  %1596 = vmatpush.msrb.mxu3 %v6188_v43  ;;  %v6436_v43 = vld [vmem:[%s9316_s2 + $0x130] sm:$0xff] }
 0x2c4   : > { %1524 = vmatpush.msrb.mxu0 %v10287_v5  ;;  %1564 = vmatpush.msrb.mxu2 %v10288_v8  ;;  %v6448_v29 = vld [vmem:[%s9316_s2 + $0x110] sm:$0xff]  ;;  %v2837_v8 = vld [vmem:[%s4992_s9 + $0x60] sm:$0xff] }
 0x2c6   : > { %1525 = vmatpush.msrb.mxu0 %v6194_v32  ;;  %1565 = vmatpush.msrb.mxu2 %v6200_v24  ;;  %v6442_v24 = vld [vmem:[%s9316_s2 + $0x138] sm:$0xff] }
 0x2c7   : > { %v6454_v32 = vld [vmem:[%s9316_s2 + $0x118] sm:$0xff] }
 0x2c8   : > { %1526 = vmatpush.msrb.mxu0 %v6424_v1  ;;  %1566 = vmatpush.msrb.mxu2 %v6430_v3 }
 0x2ca   : > { %1527 = vmatpush.msrb.mxu0 %v6436_v43  ;;  %1567 = vmatpush.msrb.mxu2 %v6442_v24 }
 0x2cc   : > { %1528 = vmatpush.msrb.mxu0 %v6448_v29  ;;  %1568 = vmatpush.msrb.mxu2 %v6454_v32 }
 0x2ce   : > { %1529 = vmatpush.msrb.mxu0 %v6460_v61  ;;  %1569 = vmatpush.msrb.mxu2 %v6466_v63 }
 0x2d0   : > { %1530 = vmatpush.msrb.mxu0 %v6472_v57  ;;  %1570 = vmatpush.msrb.mxu2 %v6478_v59 }
 0x2d2   : > { %1531 = vmatpush.msrb.mxu0 %v6484_v53  ;;  %1571 = vmatpush.msrb.mxu2 %v6490_v23 }
 0x2d4   : > { %1532 = vmatpush.msrb.mxu0 %v6496_v55  ;;  %1572 = vmatpush.msrb.mxu2 %v6502_v50 }
 0x2d6   : > { %1533 = vmatpush.msrb.mxu0 %v6508_v52  ;;  %1573 = vmatpush.msrb.mxu2 %v6514_v54 }
 0x2d8   : > { %1534 = vmatpush.msrb.mxu0 %v6520_v56  ;;  %1574 = vmatpush.msrb.mxu2 %v6526_v58 }
 0x2da   : > { %1535 = vmatpush.msrb.mxu0 %v6532_v60  ;;  %1575 = vmatpush.msrb.mxu2 %v6538_v62  ;;  %v1193_v47 = vpop.f32.mrf.mxu1 }
 0x2dc   : > { %1536 = vmatpush.msrb.mxu0 %v6544_v31  ;;  %1576 = vmatpush.msrb.mxu2 %v6550_v37 }
 0x2e0   : > { %v1233_v18 = vpop.f32.mrf.mxu3 }
 0x2e2   : > { %v1273_v17 = vpop.f32.mrf.mxu1 }
 0x2e8   : > { %v1313_v34 = vpop.f32.mrf.mxu3 }
 0x2fa   : > { %v1173_v11 = vpop.f32.mrf.mxu0 }
 0x2fb   : > { %v1174_v40 = vadd.f32 %v1173_v11, %v5150_v36 }
 0x2fc   : > { %v1376_v45 = vpop.f32.mrf.mxu1 }
 0x2fd   : > { %v1194_v35 = vadd.f32 %v1193_v47, %v1174_v40  ;;  %v1420_v0 = vadd.f32 %v2838_v13, %v1376_v45 }
 0x2ff   : > { %v1316_v14 = vmul.f32 0.5, %v1194_v35  ;;  %v1427_v7 = vmul.f32 0.5, %v1420_v0  ;;  %v6634_v0 = vld [vmem:[%s9315_s1 + $0x158] sm:$0xff] }
 0x300   : > { %v1213_v19 = vpop.f32.mrf.mxu2 }
 0x301   : > { %v1214_v38 = vadd.f32 %v1213_v19, %v5153_v46  ;;  %2935 = vtanh.f32 %v1316_v14  ;;  %v2840_v14 = vld [vmem:[%s4992_s9 + $0x78] sm:$0xff] }
 0x302   : > { %v1253_v25 = vpop.f32.mrf.mxu0 }
 0x303   : > { %v1234_v26 = vadd.f32 %v1233_v18, %v1214_v38  ;;  %v1254_v39 = vadd.f32 %v1253_v25, %v5155_v27  ;;  %v1416_v18 = vpop.f32.mrf.mxu3  ;;  %v2839_v25 = vld [vmem:[%s4992_s9 + $0x70] sm:$0xff] }
 0x304   : > { %v1422_v38 = vadd.f32 %v2840_v14, %v1416_v18  ;;  %v6668_v14 = vld [vmem:[%s9315_s1 + $0xe8] sm:$0xff]  ;;  %v6674_v18 = vld [vmem:[%s9315_s1 + $0xf8] sm:$0xff] }
 0x305   : > { %v1320_v41 = vmul.f32 0.5, %v1234_v26  ;;  %v1274_v44 = vadd.f32 %v1273_v17, %v1254_v39  ;;  %v6568_v39 = vld [vmem:[%s9315_s1 + $0x1e8] sm:$0xff]  ;;  %v6574_v17 = vld [vmem:[%s9315_s1 + $0x1f8] sm:$0xff] }
 0x307   : > { %2937 = vtanh.f32 %v1320_v41  ;;  %v2936_v48 = vpop.eup %2935 }
 0x308   : > { %v1293_v9 = vpop.f32.mrf.mxu2  ;;  %2939 = vtanh.f32 %v1274_v44  ;;  %v1318_v21 = vmul.f32 0.5, %v2936_v48  ;;  %v6586_v48 = vld [vmem:[%s9315_s1 + $0x1d8] sm:$0xff] }
 0x309   : > { %v1294_v28 = vadd.f32 %v1293_v9, %v5159_v10  ;;  %v6580_v9 = vld [vmem:[%s9315_s1 + $0x1c8] sm:$0xff] }
 0x30a   : > { %v1319_v16 = vadd.f32 0.5, %v1318_v21  ;;  %v6598_v21 = vld [vmem:[%s9315_s1 + $0x1b8] sm:$0xff] }
 0x30b   : > { %v1314_v30 = vadd.f32 %v1313_v34, %v1294_v28  ;;  %v1432_v34 = vmul.f32 0.5, %v1422_v38 }
 0x30d   : > { %v2938_v22 = vpop.eup %2937  ;;  %v1325_v42 = vmul.f32 0.5, %v1314_v30  ;;  %v6592_v30 = vld [vmem:[%s9315_s1 + $0x1a8] sm:$0xff] }
 0x30e   : > { %v1322_v51 = vmul.f32 0.5, %v2938_v22  ;;  %v2940_v12 = vpop.eup %2939 }
 0x30f   : > { %2941 = vtanh.f32 %v1325_v42  ;;  %v1330_v33 = vmul.f32 %v2940_v12, %v1319_v16  ;;  %v6610_v12 = vld [vmem:[%s9315_s1 + $0x198] sm:$0xff]  ;;  %v6616_v16 = vld [vmem:[%s9315_s1 + $0x168] sm:$0xff] }
 0x310   : > { %v1323_v20 = vadd.f32 0.5, %v1322_v51  ;;  %v6604_v51 = vld [vmem:[%s9315_s1 + $0x188] sm:$0xff] }
 0x312   : > { %v1329_v49 = vmul.f32 %v1323_v20, %v6231_v4  ;;  %v6622_v20 = vld [vmem:[%s9315_s1 + $0x178] sm:$0xff] }
 0x314   : > { %v6559_v2 = vadd.f32 %v1330_v33, %v1329_v49  ;;  %v6628_v33 = vld [vmem:[%s9315_s1 + $0x148] sm:$0xff] }
 0x315   : > { %v2942_v6 = vpop.eup %2941 }
 0x316   : > { %2943 = vtanh.f32 %v6559_v2  ;;  %v1327_v5 = vmul.f32 0.5, %v2942_v6 }
 0x317   : > { %2945 = vtanh.f32 %v1427_v7 }
 0x318   : > { %v1328_v11 = vadd.f32 0.5, %v1327_v5  ;;  %v6641_v5 = vld [vmem:[%s9315_s1 + $0x128] sm:$0xff] }
 0x31a   : > { %v1356_v47 = vpop.f32.mrf.mxu0 }
 0x31b   : > { %v1419_v40 = vadd.f32 %v2837_v8, %v1356_v47  ;;  %v6647_v8 = vld [vmem:[%s9315_s1 + $0x138] sm:$0xff] }
 0x31c   : > { %v2944_v35 = vpop.eup %2943 }
 0x31d   : > { %v1423_v19 = vmul.f32 0.5, %v1419_v40  ;;  %v1333_v4 = vmul.f32 %v2944_v35, %v1328_v11  ;;  %v2946_v26 = vpop.eup %2945  ;;  %v6661_v40 = vld [vmem:[%s9315_s1 + $0x118] sm:$0xff] }
 0x31e   : > { %v1429_v28 = vmul.f32 0.5, %v2946_v26  ;;  %v6698_v26 = vld [vmem:[%s9315_s1 + $0xb8] sm:$0xff] }
 0x31f   : > { %2947 = vtanh.f32 %v1423_v19  ;;  %1477 = vmatmul.f32.vlgmr.msra.gmra.mxu1 %v1333_v4  ;;  %1517 = vmatmul.f32.vlgmr.msra.gmra.mxu3 %v1333_v4  ;;  %v6680_v19 = vld [vmem:[%s9315_s1 + $0xc8] sm:$0xff] }
 0x320   : > { %1644 = vmatpush.msra.mxu1 %v6568_v39  ;;  %1684 = vmatpush.msra.mxu3 %v6574_v17  ;;  %v1396_v41 = vpop.f32.mrf.mxu2  ;;  %v1430_v13 = vadd.f32 0.5, %v1429_v28  ;;  %v6706_v28 = vld [vmem:[%s9315_s1 + $0x88] sm:$0xff] }
 0x321   : > { %v1421_v44 = vadd.f32 %v2839_v25, %v1396_v41  ;;  %v6692_v25 = vld [vmem:[%s9315_s1 + $0xa8] sm:$0xff] }
 0x322   : > { %1645 = vmatpush.msra.mxu1 %v6580_v9  ;;  %1685 = vmatpush.msra.mxu3 %v6586_v48  ;;  %v1436_v6 = vmul.f32 %v1430_v13, %v6252_v15  ;;  %v6655_v15 = vld [vmem:[%s9315_s1 + $0x108] sm:$0xff] }
 0x323   : > { %2949 = vtanh.f32 %v1421_v44  ;;  %v6732_v13 = vld [vmem:[%s9315_s1 + $0x68] sm:$0xff] }
 0x324   : > { %1646 = vmatpush.msra.mxu1 %v6592_v30  ;;  %1686 = vmatpush.msra.mxu3 %v6598_v21  ;;  %2951 = vtanh.f32 %v1432_v34  ;;  %v6712_v34 = vld [vmem:[%s9315_s1 + $0x98] sm:$0xff] }
 0x325   : > { %v2948_v22 = vpop.eup %2947 }
 0x326   : > { %v1425_v42 = vmul.f32 0.5, %v2948_v22  ;;  %1647 = vmatpush.msra.mxu1 %v6604_v51  ;;  %1687 = vmatpush.msra.mxu3 %v6610_v12  ;;  %v6720_v22 = vld [vmem:[%s9315_s1 + $0x1e0] sm:$0xff] }
 0x327   : > { %1557 = vmatmul.f32.vlgmr.msrb.gmra.mxu1 %v1333_v4  ;;  %1597 = vmatmul.f32.vlgmr.msrb.gmra.mxu3 %v1333_v4  ;;  %v6686_v4 = vld [vmem:[%s9315_s1 + $0xd8] sm:$0xff] }
 0x328   : > { %v1426_v45 = vadd.f32 0.5, %v1425_v42  ;;  %1648 = vmatpush.msra.mxu1 %v6616_v16  ;;  %1688 = vmatpush.msra.mxu3 %v6622_v20  ;;  %v6726_v42 = vld [vmem:[%s9315_s1 + $0x1f0] sm:$0xff] }
 0x329   : > { %v2950_v49 = vpop.eup %2949 }
 0x32a   : > { %1649 = vmatpush.msra.mxu1 %v6628_v33  ;;  %1689 = vmatpush.msra.mxu3 %v6634_v0  ;;  %v1437_v7 = vmul.f32 %v2950_v49, %v1426_v45  ;;  %v2952_v47 = vpop.eup %2951  ;;  %v6738_v45 = vld [vmem:[%s9315_s1 + $0x78] sm:$0xff]  ;;  %v6744_v49 = vld [vmem:[%s9315_s1 + $0x1c0] sm:$0xff] }
 0x32b   : > { %v1434_v35 = vmul.f32 0.5, %v2952_v47  ;;  %v6762_v47 = vld [vmem:[%s9315_s1 + $0x58] sm:$0xff] }
 0x32c   : > { %1650 = vmatpush.msra.mxu1 %v6641_v5  ;;  %1690 = vmatpush.msra.mxu3 %v6647_v8  ;;  %v6650_v11 = vadd.f32 %v1437_v7, %v1436_v6  ;;  %v6750_v6 = vld [vmem:[%s9315_s1 + $0x1d0] sm:$0xff]  ;;  %v6756_v7 = vld [vmem:[%s9315_s1 + $0x48] sm:$0xff] }
 0x32d   : > { %v1435_v38 = vadd.f32 0.5, %v1434_v35  ;;  %10289 = vst [vmem:[#allocation53_spill] sm:$0xff] %v6750_v6  ;;  %v6768_v35 = vld [vmem:[%s9315_s1 + $0x1a0] sm:$0xff] }
 0x32e   : > { %1651 = vmatpush.msra.mxu1 %v6655_v15  ;;  %1691 = vmatpush.msra.mxu3 %v6661_v40  ;;  %2953 = vtanh.f32 %v6650_v11  ;;  %10290 = vst [vmem:[#allocation60_spill] sm:$0xff] %v6768_v35 }
 0x330   : > { %1652 = vmatpush.msra.mxu1 %v6668_v14  ;;  %1692 = vmatpush.msra.mxu3 %v6674_v18 }
 0x332   : > { %1653 = vmatpush.msra.mxu1 %v6680_v19  ;;  %1693 = vmatpush.msra.mxu3 %v6686_v4 }
 0x334   : > { %1654 = vmatpush.msra.mxu1 %v6692_v25  ;;  %1694 = vmatpush.msra.mxu3 %v6698_v26  ;;  %v2954_v41 = vpop.eup %2953 }
 0x335   : > { %v6701_v44 = vmul.f32 %v2954_v41, %v1435_v38  ;;  %v6774_v38 = vld [vmem:[%s9315_s1 + $0x1b0] sm:$0xff]  ;;  %v6780_v41 = vld [vmem:[%s9315_s1 + $0x28] sm:$0xff] }
 0x336   : > { %1655 = vmatpush.msra.mxu1 %v6706_v28  ;;  %1695 = vmatpush.msra.mxu3 %v6712_v34  ;;  %10291 = vst [vmem:[#allocation61_spill] sm:$0xff] %v6774_v38 }
 0x337   : > { %1457 = vmatmul.f32.vlgmr.msra.gmra.mxu0 %v6701_v44  ;;  %1497 = vmatmul.f32.vlgmr.msra.gmra.mxu2 %v6701_v44  ;;  %10292 = vst [vmem:[#allocation56_spill] sm:$0xff] %v6780_v41 }
 0x338   : > { %1624 = vmatpush.msra.mxu0 %v6720_v22  ;;  %1664 = vmatpush.msra.mxu2 %v6726_v42 }
 0x339   : > { %1656 = vmatpush.msra.mxu1 %v6732_v13  ;;  %1696 = vmatpush.msra.mxu3 %v6738_v45 }
 0x33a   : > { %1625 = vmatpush.msra.mxu0 %v6744_v49  ;;  %1665 = vmatpush.msra.mxu2 %v6750_v6  ;;  %v6786_v6 = vld [vmem:[%s9315_s1 + $0x38] sm:$0xff] }
 0x33b   : > { %1657 = vmatpush.msra.mxu1 %v6756_v7  ;;  %1697 = vmatpush.msra.mxu3 %v6762_v47  ;;  %10293 = vst [vmem:[#allocation57_spill] sm:$0xff] %v6786_v6 }
 0x33c   : > { %1626 = vmatpush.msra.mxu0 %v6768_v35  ;;  %1666 = vmatpush.msra.mxu2 %v6774_v38  ;;  %v6792_v35 = vld [vmem:[%s9315_s1 + $0x180] sm:$0xff]  ;;  %v6798_v38 = vld [vmem:[%s9315_s1 + $0x190] sm:$0xff] }
 0x33d   : > { %1658 = vmatpush.msra.mxu1 %v6780_v41  ;;  %1698 = vmatpush.msra.mxu3 %v6786_v6  ;;  %10294 = vst [vmem:[#allocation68_spill] sm:$0xff] %v6792_v35  ;;  %v6804_v41 = vld [vmem:[%s9315_s1 + $0x8] sm:$0xff]  ;;  %v6810_v6 = vld [vmem:[%s9315_s1 + $0x18] sm:$0xff] }
 0x33e   : > { %1627 = vmatpush.msra.mxu0 %v6792_v35  ;;  %10295 = vst [vmem:[#allocation69_spill] sm:$0xff] %v6798_v38  ;;  %1667 = vmatpush.msra.mxu2 %v6798_v38  ;;  %v6818_v38 = vld [vmem:[%s9315_s1 + $0x160] sm:$0xff]  ;;  %v6825_v35 = vld [vmem:[%s9315_s1 + $0x170] sm:$0xff] }
 0x33f   : > { %10296 = vst [vmem:[#allocation64_spill] sm:$0xff] %v6804_v41  ;;  %1659 = vmatpush.msra.mxu1 %v6804_v41  ;;  %1699 = vmatpush.msra.mxu3 %v6810_v6  ;;  %v6850_v41 = vld [vmem:[%s9316_s2 + $0x3e8] sm:$0xff] }
 0x340   : > { %10297 = vst [vmem:[#allocation65_spill] sm:$0xff] %v6810_v6  ;;  %1537 = vmatmul.f32.vlgmr.msrb.gmra.mxu0 %v6701_v44  ;;  %1577 = vmatmul.f32.vlgmr.msrb.gmra.mxu2 %v6701_v44  ;;  %v6832_v6 = vld [vmem:[%s9315_s1 + $0x140] sm:$0xff] }
 0x341   : > { %10298 = vst [vmem:[#allocation76_spill] sm:$0xff] %v6818_v38  ;;  %1628 = vmatpush.msra.mxu0 %v6818_v38  ;;  %1660 = vmatmul.f32.vlgmr.msra.gmra.mxu1 %v6701_v44  ;;  %v6838_v38 = vld [vmem:[%s9316_s2 + $0x3e0] sm:$0xff] }
 0x342   : > { %10299 = vst [vmem:[#allocation3_spill] sm:$0xff] %v6825_v35  ;;  %1668 = vmatpush.msra.mxu2 %v6825_v35  ;;  %1700 = vmatmul.f32.vlgmr.msra.gmra.mxu3 %v6701_v44  ;;  %v6844_v35 = vld [vmem:[%s9315_s1 + $0x150] sm:$0xff] }
 0x343   : > { %10300 = vst [vmem:[#allocation4_spill] sm:$0xff] %v6832_v6  ;;  %1629 = vmatpush.msra.mxu0 %v6832_v6  ;;  %1746 = vmatpush.msrb.mxu1 %v6838_v38  ;;  %v6856_v6 = vld [vmem:[%s9315_s1 + $0x120] sm:$0xff] }
 0x344   : > { %10301 = vst [vmem:[#allocation5_spill] sm:$0xff] %v6838_v38  ;;  %1669 = vmatpush.msra.mxu2 %v6844_v35  ;;  %1786 = vmatpush.msrb.mxu3 %v6850_v41  ;;  %v6862_v38 = vld [vmem:[%s9316_s2 + $0x3c0] sm:$0xff] }
 0x345   : > { %10302 = vst [vmem:[#allocation71_spill] sm:$0xff] %v6844_v35  ;;  %1630 = vmatpush.msra.mxu0 %v6856_v6  ;;  %1747 = vmatpush.msrb.mxu1 %v6862_v38  ;;  %v6868_v35 = vld [vmem:[%s9315_s1 + $0x130] sm:$0xff] }
 0x346   : > { %10303 = vst [vmem:[#allocation6_spill] sm:$0xff] %v6850_v41  ;;  %1670 = vmatpush.msra.mxu2 %v6868_v35  ;;  %v6874_v41 = vld [vmem:[%s9316_s2 + $0x3c8] sm:$0xff] }
 0x347   : > { %10304 = vst [vmem:[#allocation7_spill] sm:$0xff] %v6856_v6  ;;  %1787 = vmatpush.msrb.mxu3 %v6874_v41  ;;  %v6880_v6 = vld [vmem:[%s9315_s1 + $0x100] sm:$0xff] }
 0x348   : > { %10305 = vst [vmem:[#allocation74_spill] sm:$0xff] %v6862_v38  ;;  %1631 = vmatpush.msra.mxu0 %v6880_v6  ;;  %v6886_v38 = vld [vmem:[%s9316_s2 + $0x3a0] sm:$0xff] }
 0x349   : > { %10306 = vst [vmem:[#allocation8_spill] sm:$0xff] %v6868_v35  ;;  %1748 = vmatpush.msrb.mxu1 %v6886_v38  ;;  %v6892_v35 = vld [vmem:[%s9315_s1 + $0x110] sm:$0xff] }
 0x34a   : > { %10307 = vst [vmem:[#allocation80_spill] sm:$0xff] %v6874_v41  ;;  %1671 = vmatpush.msra.mxu2 %v6892_v35  ;;  %v6898_v41 = vld [vmem:[%s9316_s2 + $0x3a8] sm:$0xff] }
 0x34b   : > { %10308 = vst [vmem:[#allocation9_spill] sm:$0xff] %v6880_v6  ;;  %1788 = vmatpush.msrb.mxu3 %v6898_v41  ;;  %v6904_v6 = vld [vmem:[%s9315_s1 + $0xe0] sm:$0xff] }
 0x34c   : > { %10309 = vst [vmem:[#allocation78_spill] sm:$0xff] %v6886_v38  ;;  %1632 = vmatpush.msra.mxu0 %v6904_v6  ;;  %v6910_v38 = vld [vmem:[%s9316_s2 + $0x380] sm:$0xff] }
 0x34d   : > { %10310 = vst [vmem:[#allocation10_spill] sm:$0xff] %v6892_v35  ;;  %1749 = vmatpush.msrb.mxu1 %v6910_v38  ;;  %v6916_v35 = vld [vmem:[%s9315_s1 + $0xf0] sm:$0xff] }
 0x34e   : > { %10311 = vst [vmem:[#allocation11_spill] sm:$0xff] %v6898_v41  ;;  %1672 = vmatpush.msra.mxu2 %v6916_v35  ;;  %v6922_v41 = vld [vmem:[%s9316_s2 + $0x388] sm:$0xff] }
 0x34f   : > { %10312 = vst [vmem:[#allocation12_spill] sm:$0xff] %v6904_v6  ;;  %1789 = vmatpush.msrb.mxu3 %v6922_v41  ;;  %v6928_v6 = vld [vmem:[%s9315_s1 + $0xc0] sm:$0xff] }
 0x350   : > { %10313 = vst [vmem:[#allocation13_spill] sm:$0xff] %v6910_v38  ;;  %1633 = vmatpush.msra.mxu0 %v6928_v6  ;;  %v6934_v38 = vld [vmem:[%s9316_s2 + $0x360] sm:$0xff] }
 0x351   : > { %10314 = vst [vmem:[#allocation81_spill] sm:$0xff] %v6916_v35  ;;  %1750 = vmatpush.msrb.mxu1 %v6934_v38  ;;  %v6940_v35 = vld [vmem:[%s9315_s1 + $0xd0] sm:$0xff] }
 0x352   : > { %10315 = vst [vmem:[#allocation14_spill] sm:$0xff] %v6922_v41  ;;  %1673 = vmatpush.msra.mxu2 %v6940_v35  ;;  %v6946_v41 = vld [vmem:[%s9316_s2 + $0x368] sm:$0xff] }
 0x353   : > { %10316 = vst [vmem:[#allocation15_spill] sm:$0xff] %v6928_v6  ;;  %1790 = vmatpush.msrb.mxu3 %v6946_v41  ;;  %v6952_v6 = vld [vmem:[%s9315_s1 + $0xa0] sm:$0xff] }
 0x354   : > { %10317 = vst [vmem:[#allocation83_spill] sm:$0xff] %v6934_v38  ;;  %1634 = vmatpush.msra.mxu0 %v6952_v6  ;;  %v6958_v38 = vld [vmem:[%s9316_s2 + $0x340] sm:$0xff] }
 0x355   : > { %10318 = vst [vmem:[#allocation16_spill] sm:$0xff] %v6940_v35  ;;  %1751 = vmatpush.msrb.mxu1 %v6958_v38  ;;  %v6964_v35 = vld [vmem:[%s9315_s1 + $0xb0] sm:$0xff] }
 0x356   : > { %10319 = vst [vmem:[#allocation86_spill] sm:$0xff] %v6946_v41  ;;  %1674 = vmatpush.msra.mxu2 %v6964_v35  ;;  %v6970_v41 = vld [vmem:[%s9316_s2 + $0x348] sm:$0xff] }
 0x357   : > { %10320 = vst [vmem:[#allocation17_spill] sm:$0xff] %v6952_v6  ;;  %1791 = vmatpush.msrb.mxu3 %v6970_v41  ;;  %v6976_v6 = vld [vmem:[%s9315_s1 + $0x80] sm:$0xff] }
 0x358   : > { %10321 = vst [vmem:[#allocation85_spill] sm:$0xff] %v6958_v38  ;;  %1635 = vmatpush.msra.mxu0 %v6976_v6  ;;  %v6982_v38 = vld [vmem:[%s9316_s2 + $0x320] sm:$0xff] }
 0x359   : > { %10322 = vst [vmem:[#allocation18_spill] sm:$0xff] %v6964_v35  ;;  %1752 = vmatpush.msrb.mxu1 %v6982_v38  ;;  %v6988_v35 = vld [vmem:[%s9315_s1 + $0x90] sm:$0xff] }
 0x35a   : > { %10323 = vst [vmem:[#allocation88_spill] sm:$0xff] %v6970_v41  ;;  %1675 = vmatpush.msra.mxu2 %v6988_v35  ;;  %v6994_v41 = vld [vmem:[%s9316_s2 + $0x328] sm:$0xff] }
 0x35b   : > { %10324 = vst [vmem:[#allocation19_spill] sm:$0xff] %v6976_v6  ;;  %1792 = vmatpush.msrb.mxu3 %v6994_v41  ;;  %v7000_v6 = vld [vmem:[%s9315_s1 + $0x60] sm:$0xff] }
 0x35c   : > { %10325 = vst [vmem:[#allocation87_spill] sm:$0xff] %v6982_v38  ;;  %1636 = vmatpush.msra.mxu0 %v7000_v6  ;;  %v7006_v38 = vld [vmem:[%s9316_s2 + $0x300] sm:$0xff] }
 0x35d   : > { %10326 = vst [vmem:[#allocation20_spill] sm:$0xff] %v6988_v35  ;;  %1753 = vmatpush.msrb.mxu1 %v7006_v38  ;;  %v7012_v35 = vld [vmem:[%s9315_s1 + $0x70] sm:$0xff] }
 0x35e   : > { %10327 = vst [vmem:[#allocation90_spill] sm:$0xff] %v6994_v41  ;;  %1676 = vmatpush.msra.mxu2 %v7012_v35  ;;  %v7018_v41 = vld [vmem:[%s9316_s2 + $0x308] sm:$0xff] }
 0x35f   : > { %10328 = vst [vmem:[#allocation21_spill] sm:$0xff] %v7000_v6  ;;  %1793 = vmatpush.msrb.mxu3 %v7018_v41  ;;  %v7024_v6 = vld [vmem:[%s9315_s1 + $0x40] sm:$0xff] }
 0x360   : > { %10329 = vst [vmem:[#allocation89_spill] sm:$0xff] %v7006_v38  ;;  %1637 = vmatpush.msra.mxu0 %v7024_v6  ;;  %v7030_v38 = vld [vmem:[%s9316_s2 + $0x2e0] sm:$0xff] }
 0x361   : > { %10330 = vst [vmem:[#allocation22_spill] sm:$0xff] %v7012_v35  ;;  %1754 = vmatpush.msrb.mxu1 %v7030_v38  ;;  %v7036_v35 = vld [vmem:[%s9315_s1 + $0x50] sm:$0xff] }
 0x362   : > { %10331 = vst [vmem:[#allocation92_spill] sm:$0xff] %v7018_v41  ;;  %1677 = vmatpush.msra.mxu2 %v7036_v35  ;;  %v7042_v41 = vld [vmem:[%s9316_s2 + $0x2e8] sm:$0xff] }
 0x363   : > { %10332 = vst [vmem:[#allocation23_spill] sm:$0xff] %v7024_v6  ;;  %1794 = vmatpush.msrb.mxu3 %v7042_v41  ;;  %v7048_v6 = vld [vmem:[%s9315_s1 + $0x20] sm:$0xff] }
 0x364   : > { %10333 = vst [vmem:[#allocation91_spill] sm:$0xff] %v7030_v38  ;;  %1638 = vmatpush.msra.mxu0 %v7048_v6  ;;  %v7054_v38 = vld [vmem:[%s9316_s2 + $0x2c0] sm:$0xff] }
 0x365   : > { %10334 = vst [vmem:[#allocation24_spill] sm:$0xff] %v7036_v35  ;;  %1755 = vmatpush.msrb.mxu1 %v7054_v38  ;;  %v7060_v35 = vld [vmem:[%s9315_s1 + $0x30] sm:$0xff] }
 0x366   : > { %10335 = vst [vmem:[#allocation94_spill] sm:$0xff] %v7042_v41  ;;  %1678 = vmatpush.msra.mxu2 %v7060_v35  ;;  %v7066_v41 = vld [vmem:[%s9316_s2 + $0x2c8] sm:$0xff] }
 0x367   : > { %10336 = vst [vmem:[#allocation25_spill] sm:$0xff] %v7048_v6  ;;  %1795 = vmatpush.msrb.mxu3 %v7066_v41  ;;  %v7072_v6 = vld [vmem:[%s9315_s1] sm:$0xff] }
 0x368   : > { %10337 = vst [vmem:[#allocation93_spill] sm:$0xff] %v7054_v38  ;;  %1639 = vmatpush.msra.mxu0 %v7072_v6  ;;  %v7078_v38 = vld [vmem:[%s9316_s2 + $0x2a0] sm:$0xff] }
 0x369   : > { %10338 = vst [vmem:[#allocation26_spill] sm:$0xff] %v7060_v35  ;;  %1756 = vmatpush.msrb.mxu1 %v7078_v38  ;;  %v7084_v35 = vld [vmem:[%s9315_s1 + $0x10] sm:$0xff]  ;;  %1640 = vmatmul.f32.vlgmr.msra.gmra.mxu0 %v6701_v44 }
 0x36a   : > { %10339 = vst [vmem:[#allocation96_spill] sm:$0xff] %v7072_v6  ;;  %1679 = vmatpush.msra.mxu2 %v7084_v35  ;;  %v7092_v6 = vld [vmem:[%s9316_s2 + $0x2a8] sm:$0xff] }
 0x36b   : > { %10340 = vst [vmem:[#allocation27_spill] sm:$0xff] %v7078_v38  ;;  %1680 = vmatmul.f32.vlgmr.msra.gmra.mxu2 %v6701_v44  ;;  %1796 = vmatpush.msrb.mxu3 %v7092_v6  ;;  %v7098_v38 = vld [vmem:[%s9316_s2 + $0x280] sm:$0xff]  ;;  %v7110_v44 = vld [vmem:[%s9316_s2 + $0x288] sm:$0xff] }
 0x36c   : > { %10341 = vst [vmem:[#allocation95_spill] sm:$0xff] %v7084_v35  ;;  %1757 = vmatpush.msrb.mxu1 %v7098_v38  ;;  %v7104_v35 = vld [vmem:[%s9316_s2 + $0x1e0] sm:$0xff] }
 0x36d   : > { %10342 = vst [vmem:[#allocation28_spill] sm:$0xff] %v7092_v6  ;;  %1726 = vmatpush.msrb.mxu0 %v7104_v35  ;;  %1797 = vmatpush.msrb.mxu3 %v7110_v44  ;;  %v7116_v6 = vld [vmem:[%s9316_s2 + $0x1e8] sm:$0xff] }
 0x36e   : > { %10343 = vst [vmem:[#allocation98_spill] sm:$0xff] %v7098_v38  ;;  %1766 = vmatpush.msrb.mxu2 %v7116_v6  ;;  %v7122_v38 = vld [vmem:[%s9316_s2 + $0x260] sm:$0xff] }
 0x36f   : > { %10344 = vst [vmem:[#allocation29_spill] sm:$0xff] %v7104_v35  ;;  %1758 = vmatpush.msrb.mxu1 %v7122_v38  ;;  %v7128_v35 = vld [vmem:[%s9316_s2 + $0x1c0] sm:$0xff] }
 0x370   : > { %10345 = vst [vmem:[#allocation97_spill] sm:$0xff] %v7110_v44  ;;  %1727 = vmatpush.msrb.mxu0 %v7128_v35  ;;  %v7134_v44 = vld [vmem:[%s9316_s2 + $0x268] sm:$0xff] }
 0x371   : > { %10346 = vst [vmem:[#allocation30_spill] sm:$0xff] %v7116_v6  ;;  %1798 = vmatpush.msrb.mxu3 %v7134_v44  ;;  %v7140_v6 = vld [vmem:[%s9316_s2 + $0x1c8] sm:$0xff] }
 0x372   : > { %10347 = vst [vmem:[#allocation100_spill] sm:$0xff] %v7122_v38  ;;  %1767 = vmatpush.msrb.mxu2 %v7140_v6  ;;  %v7146_v38 = vld [vmem:[%s9316_s2 + $0x240] sm:$0xff] }
 0x373   : > { %10348 = vst [vmem:[#allocation31_spill] sm:$0xff] %v7128_v35  ;;  %1759 = vmatpush.msrb.mxu1 %v7146_v38  ;;  %v7152_v35 = vld [vmem:[%s9316_s2 + $0x1a0] sm:$0xff] }
 0x374   : > { %10349 = vst [vmem:[#allocation99_spill] sm:$0xff] %v7134_v44  ;;  %1728 = vmatpush.msrb.mxu0 %v7152_v35  ;;  %v7158_v44 = vld [vmem:[%s9316_s2 + $0x248] sm:$0xff] }
 0x375   : > { %10350 = vst [vmem:[#allocation32_spill] sm:$0xff] %v7140_v6  ;;  %1799 = vmatpush.msrb.mxu3 %v7158_v44  ;;  %v7164_v6 = vld [vmem:[%s9316_s2 + $0x1a8] sm:$0xff] }
 0x376   : > { %10351 = vst [vmem:[#allocation33_spill] sm:$0xff] %v7146_v38  ;;  %1768 = vmatpush.msrb.mxu2 %v7164_v6  ;;  %v7170_v38 = vld [vmem:[%s9316_s2 + $0x220] sm:$0xff] }
 0x377   : > { %10352 = vst [vmem:[#allocation101_spill] sm:$0xff] %v7152_v35  ;;  %1760 = vmatpush.msrb.mxu1 %v7170_v38  ;;  %v7176_v35 = vld [vmem:[%s9316_s2 + $0x180] sm:$0xff] }
 0x378   : > { %10353 = vst [vmem:[#allocation34_spill] sm:$0xff] %v7158_v44  ;;  %1729 = vmatpush.msrb.mxu0 %v7176_v35  ;;  %v7182_v44 = vld [vmem:[%s9316_s2 + $0x228] sm:$0xff] }
 0x379   : > { %10354 = vst [vmem:[#allocation35_spill] sm:$0xff] %v7164_v6  ;;  %1800 = vmatpush.msrb.mxu3 %v7182_v44  ;;  %v7188_v6 = vld [vmem:[%s9316_s2 + $0x188] sm:$0xff] }
 0x37a   : > { %10355 = vst [vmem:[#allocation36_spill] sm:$0xff] %v7170_v38  ;;  %1769 = vmatpush.msrb.mxu2 %v7188_v6  ;;  %v7194_v38 = vld [vmem:[%s9316_s2 + $0x200] sm:$0xff] }
 0x37b   : > { %10356 = vst [vmem:[#allocation37_spill] sm:$0xff] %v7176_v35  ;;  %1761 = vmatpush.msrb.mxu1 %v7194_v38  ;;  %v7200_v35 = vld [vmem:[%s9316_s2 + $0x160] sm:$0xff] }
 0x37c   : > { %10357 = vst [vmem:[#allocation38_spill] sm:$0xff] %v7182_v44  ;;  %1730 = vmatpush.msrb.mxu0 %v7200_v35  ;;  %v7206_v44 = vld [vmem:[%s9316_s2 + $0x208] sm:$0xff] }
 0x37d   : > { %10358 = vst [vmem:[#allocation39_spill] sm:$0xff] %v7188_v6  ;;  %1801 = vmatpush.msrb.mxu3 %v7206_v44  ;;  %v7212_v6 = vld [vmem:[%s9316_s2 + $0x168] sm:$0xff] }
 0x37e   : > { %10359 = vst [vmem:[#allocation40_spill] sm:$0xff] %v7194_v38  ;;  %1770 = vmatpush.msrb.mxu2 %v7212_v6  ;;  %v7218_v38 = vld [vmem:[%s9316_s2 + $0x3f0] sm:$0xff] }
 0x37f   : > { %10360 = vst [vmem:[#allocation41_spill] sm:$0xff] %v7200_v35  ;;  %1826 = vmatpush.msra.mxu1 %v7218_v38  ;;  %v7224_v35 = vld [vmem:[%s9316_s2 + $0x3f8] sm:$0xff] }
 0x380   : > { %10361 = vst [vmem:[#allocation42_spill] sm:$0xff] %v7206_v44  ;;  %1866 = vmatpush.msra.mxu3 %v7224_v35  ;;  %v7230_v44 = vld [vmem:[%s9316_s2 + $0x140] sm:$0xff] }
 0x381   : > { %10362 = vst [vmem:[#allocation43_spill] sm:$0xff] %v7212_v6  ;;  %1731 = vmatpush.msrb.mxu0 %v7230_v44  ;;  %v7236_v6 = vld [vmem:[%s9316_s2 + $0x148] sm:$0xff] }
 0x382   : > { %10363 = vst [vmem:[#allocation44_spill] sm:$0xff] %v7218_v38  ;;  %1771 = vmatpush.msrb.mxu2 %v7236_v6  ;;  %v7242_v38 = vld [vmem:[%s9316_s2 + $0x3d0] sm:$0xff] }
 0x383   : > { %10364 = vst [vmem:[#allocation45_spill] sm:$0xff] %v7224_v35  ;;  %1827 = vmatpush.msra.mxu1 %v7242_v38  ;;  %v7248_v35 = vld [vmem:[%s9316_s2 + $0x3d8] sm:$0xff] }
 0x384   : > { %10365 = vst [vmem:[#allocation46_spill] sm:$0xff] %v7230_v44  ;;  %1867 = vmatpush.msra.mxu3 %v7248_v35  ;;  %v7254_v44 = vld [vmem:[%s9316_s2 + $0x120] sm:$0xff] }
 0x385   : > { %10366 = vst [vmem:[#allocation47_spill] sm:$0xff] %v7236_v6  ;;  %1732 = vmatpush.msrb.mxu0 %v7254_v44  ;;  %v7260_v6 = vld [vmem:[%s9316_s2 + $0x128] sm:$0xff] }
 0x386   : > { %10367 = vst [vmem:[#allocation48_spill] sm:$0xff] %v7242_v38  ;;  %1772 = vmatpush.msrb.mxu2 %v7260_v6  ;;  %v7266_v38 = vld [vmem:[%s9316_s2 + $0x3b0] sm:$0xff] }
 0x387   : > { %10368 = vst [vmem:[#allocation49_spill] sm:$0xff] %v7248_v35  ;;  %1828 = vmatpush.msra.mxu1 %v7266_v38  ;;  %v7272_v35 = vld [vmem:[%s9316_s2 + $0x3b8] sm:$0xff] }
 0x388   : > { %10369 = vst [vmem:[#allocation50_spill] sm:$0xff] %v7254_v44  ;;  %1868 = vmatpush.msra.mxu3 %v7272_v35  ;;  %v7278_v44 = vld [vmem:[%s9316_s2 + $0x100] sm:$0xff] }
 0x389   : > { %10370 = vst [vmem:[#allocation51_spill] sm:$0xff] %v7260_v6  ;;  %1733 = vmatpush.msrb.mxu0 %v7278_v44  ;;  %v7284_v6 = vld [vmem:[%s9316_s2 + $0x108] sm:$0xff] }
 0x38a   : > { %10371 = vst [vmem:[#allocation52_spill] sm:$0xff] %v7266_v38  ;;  %1773 = vmatpush.msrb.mxu2 %v7284_v6  ;;  %v7290_v38 = vld [vmem:[%s9316_s2 + $0x390] sm:$0xff] }
 0x38b   : > { %10372 = vst [vmem:[#allocation54_spill] sm:$0xff] %v7272_v35  ;;  %1829 = vmatpush.msra.mxu1 %v7290_v38  ;;  %v7296_v35 = vld [vmem:[%s9316_s2 + $0x398] sm:$0xff] }
 0x38c   : > { %10373 = vst [vmem:[#allocation55_spill] sm:$0xff] %v7278_v44  ;;  %1869 = vmatpush.msra.mxu3 %v7296_v35  ;;  %v7302_v44 = vld [vmem:[%s9316_s2 + $0xe0] sm:$0xff] }
 0x38d   : > { %10374 = vst [vmem:[#allocation58_spill] sm:$0xff] %v7284_v6  ;;  %1734 = vmatpush.msrb.mxu0 %v7302_v44  ;;  %v7308_v6 = vld [vmem:[%s9316_s2 + $0xe8] sm:$0xff] }
 0x38e   : > { %10375 = vst [vmem:[#allocation59_spill] sm:$0xff] %v7290_v38  ;;  %1774 = vmatpush.msrb.mxu2 %v7308_v6  ;;  %v7314_v38 = vld [vmem:[%s9316_s2 + $0x370] sm:$0xff] }
 0x38f   : > { %10376 = vst [vmem:[#allocation62_spill] sm:$0xff] %v7296_v35  ;;  %1830 = vmatpush.msra.mxu1 %v7314_v38  ;;  %v7320_v35 = vld [vmem:[%s9316_s2 + $0x378] sm:$0xff] }
 0x390   : > { %10377 = vst [vmem:[#allocation63_spill] sm:$0xff] %v7302_v44  ;;  %1870 = vmatpush.msra.mxu3 %v7320_v35  ;;  %v7326_v44 = vld [vmem:[%s9316_s2 + $0xc0] sm:$0xff] }
 0x391   : > { %10378 = vst [vmem:[#allocation66_spill] sm:$0xff] %v7308_v6  ;;  %1735 = vmatpush.msrb.mxu0 %v7326_v44  ;;  %v7332_v6 = vld [vmem:[%s9316_s2 + $0xc8] sm:$0xff] }
 0x392   : > { %10379 = vst [vmem:[#allocation67_spill] sm:$0xff] %v7314_v38  ;;  %1775 = vmatpush.msrb.mxu2 %v7332_v6  ;;  %v7338_v38 = vld [vmem:[%s9316_s2 + $0x350] sm:$0xff] }
 0x393   : > { %10380 = vst [vmem:[#allocation70_spill] sm:$0xff] %v7320_v35  ;;  %1831 = vmatpush.msra.mxu1 %v7338_v38  ;;  %v7344_v35 = vld [vmem:[%s9316_s2 + $0x358] sm:$0xff] }
 0x394   : > { %10381 = vst [vmem:[#allocation72_spill] sm:$0xff] %v7326_v44  ;;  %1871 = vmatpush.msra.mxu3 %v7344_v35  ;;  %v7350_v44 = vld [vmem:[%s9316_s2 + $0xa0] sm:$0xff] }
 0x395   : > { %10382 = vst [vmem:[#allocation73_spill] sm:$0xff] %v7332_v6  ;;  %1736 = vmatpush.msrb.mxu0 %v7350_v44  ;;  %v7356_v6 = vld [vmem:[%s9316_s2 + $0xa8] sm:$0xff] }
 0x396   : > { %10383 = vst [vmem:[#allocation75_spill] sm:$0xff] %v7338_v38  ;;  %1776 = vmatpush.msrb.mxu2 %v7356_v6  ;;  %v7362_v38 = vld [vmem:[%s9316_s2 + $0x330] sm:$0xff] }
 0x397   : > { %10384 = vst [vmem:[#allocation77_spill] sm:$0xff] %v7344_v35  ;;  %1832 = vmatpush.msra.mxu1 %v7362_v38  ;;  %v7368_v35 = vld [vmem:[%s9316_s2 + $0x338] sm:$0xff] }
 0x398   : > { %10385 = vst [vmem:[#allocation79_spill] sm:$0xff] %v7350_v44  ;;  %1872 = vmatpush.msra.mxu3 %v7368_v35  ;;  %v7374_v44 = vld [vmem:[%s9316_s2 + $0x80] sm:$0xff] }
 0x399   : > { %10386 = vst [vmem:[#allocation82_spill] sm:$0xff] %v7356_v6  ;;  %1737 = vmatpush.msrb.mxu0 %v7374_v44  ;;  %v7380_v6 = vld [vmem:[%s9316_s2 + $0x88] sm:$0xff] }
 0x39a   : > { %10387 = vst [vmem:[#allocation84_spill] sm:$0xff] %v7362_v38  ;;  %1777 = vmatpush.msrb.mxu2 %v7380_v6  ;;  %v7386_v38 = vld [vmem:[%s9316_s2 + $0x310] sm:$0xff] }
 0x39b   : > { %10388 = vst [vmem:[#allocation102_spill] sm:$0xff] %v7368_v35  ;;  %1833 = vmatpush.msra.mxu1 %v7386_v38  ;;  %v7392_v35 = vld [vmem:[%s9316_s2 + $0x318] sm:$0xff] }
 0x39c   : > { %10389 = vst [vmem:[#allocation103_spill] sm:$0xff] %v7374_v44  ;;  %1873 = vmatpush.msra.mxu3 %v7392_v35  ;;  %v7398_v44 = vld [vmem:[%s9316_s2 + $0x60] sm:$0xff] }
 0x39d   : > { %10390 = vst [vmem:[#allocation104_spill] sm:$0xff] %v7380_v6  ;;  %1738 = vmatpush.msrb.mxu0 %v7398_v44  ;;  %v7404_v6 = vld [vmem:[%s9316_s2 + $0x68] sm:$0xff] }
 0x39e   : > { %10391 = vst [vmem:[#allocation105_spill] sm:$0xff] %v7386_v38  ;;  %1778 = vmatpush.msrb.mxu2 %v7404_v6  ;;  %v7410_v38 = vld [vmem:[%s9316_s2 + $0x2f0] sm:$0xff] }
 0x39f   : > { %10392 = vst [vmem:[#allocation106_spill] sm:$0xff] %v7392_v35  ;;  %1834 = vmatpush.msra.mxu1 %v7410_v38  ;;  %v7416_v35 = vld [vmem:[%s9316_s2 + $0x2f8] sm:$0xff] }
 0x3a0   : > { %10393 = vst [vmem:[#allocation107_spill] sm:$0xff] %v7398_v44  ;;  %1874 = vmatpush.msra.mxu3 %v7416_v35  ;;  %v7422_v44 = vld [vmem:[%s9316_s2 + $0x40] sm:$0xff] }
 0x3a1   : > { %10394 = vst [vmem:[#allocation108_spill] sm:$0xff] %v7404_v6  ;;  %1739 = vmatpush.msrb.mxu0 %v7422_v44  ;;  %v7428_v6 = vld [vmem:[%s9316_s2 + $0x48] sm:$0xff] }
 0x3a2   : > { %10395 = vst [vmem:[#allocation109_spill] sm:$0xff] %v7410_v38  ;;  %1779 = vmatpush.msrb.mxu2 %v7428_v6  ;;  %v7434_v38 = vld [vmem:[%s9316_s2 + $0x2d0] sm:$0xff] }
 0x3a3   : > { %10396 = vst [vmem:[#allocation110_spill] sm:$0xff] %v7416_v35  ;;  %1835 = vmatpush.msra.mxu1 %v7434_v38  ;;  %v7440_v35 = vld [vmem:[%s9316_s2 + $0x2d8] sm:$0xff] }
 0x3a4   : > { %10397 = vst [vmem:[#allocation111_spill] sm:$0xff] %v7422_v44  ;;  %1875 = vmatpush.msra.mxu3 %v7440_v35  ;;  %v7446_v44 = vld [vmem:[%s9316_s2 + $0x20] sm:$0xff] }
 0x3a5   : > { %10398 = vst [vmem:[#allocation112_spill] sm:$0xff] %v7428_v6  ;;  %1740 = vmatpush.msrb.mxu0 %v7446_v44  ;;  %v7452_v6 = vld [vmem:[%s9316_s2 + $0x28] sm:$0xff] }
 0x3a6   : > { %10399 = vst [vmem:[#allocation113_spill] sm:$0xff] %v7434_v38  ;;  %1780 = vmatpush.msrb.mxu2 %v7452_v6  ;;  %v7458_v38 = vld [vmem:[%s9316_s2 + $0x2b0] sm:$0xff] }
 0x3a7   : > { %10400 = vst [vmem:[#allocation114_spill] sm:$0xff] %v7440_v35  ;;  %1836 = vmatpush.msra.mxu1 %v7458_v38  ;;  %v7464_v35 = vld [vmem:[%s9316_s2 + $0x2b8] sm:$0xff] }
 0x3a8   : > { %10401 = vst [vmem:[#allocation115_spill] sm:$0xff] %v7446_v44  ;;  %1876 = vmatpush.msra.mxu3 %v7464_v35  ;;  %v7470_v44 = vld [vmem:[%s9316_s2] sm:$0xff] }
 0x3a9   : > { %10402 = vst [vmem:[#allocation116_spill] sm:$0xff] %v7452_v6  ;;  %1741 = vmatpush.msrb.mxu0 %v7470_v44  ;;  %v7476_v6 = vld [vmem:[%s9316_s2 + $0x8] sm:$0xff] }
 0x3aa   : > { %10403 = vst [vmem:[#allocation117_spill] sm:$0xff] %v7458_v38  ;;  %1781 = vmatpush.msrb.mxu2 %v7476_v6  ;;  %v7482_v38 = vld [vmem:[%s9316_s2 + $0x290] sm:$0xff] }
 0x3ab   : > { %10404 = vst [vmem:[#allocation118_spill] sm:$0xff] %v7464_v35  ;;  %1837 = vmatpush.msra.mxu1 %v7482_v38  ;;  %v7488_v35 = vld [vmem:[%s9316_s2 + $0x298] sm:$0xff] }
 0x3ac   : > { %10405 = vst [vmem:[#allocation119_spill] sm:$0xff] %v7470_v44  ;;  %1877 = vmatpush.msra.mxu3 %v7488_v35  ;;  %v7494_v44 = vld [vmem:[%s9316_s2 + $0x1f0] sm:$0xff] }
 0x3ad   : > { %10406 = vst [vmem:[#allocation120_spill] sm:$0xff] %v7476_v6  ;;  %1806 = vmatpush.msra.mxu0 %v7494_v44  ;;  %v7500_v6 = vld [vmem:[%s9316_s2 + $0x1f8] sm:$0xff] }
 0x3ae   : > { %10407 = vst [vmem:[#allocation121_spill] sm:$0xff] %v7482_v38  ;;  %1846 = vmatpush.msra.mxu2 %v7500_v6  ;;  %v7506_v38 = vld [vmem:[%s9316_s2 + $0x270] sm:$0xff] }
 0x3af   : > { %10408 = vst [vmem:[#allocation122_spill] sm:$0xff] %v7488_v35  ;;  %1838 = vmatpush.msra.mxu1 %v7506_v38  ;;  %v7512_v35 = vld [vmem:[%s9316_s2 + $0x278] sm:$0xff] }
 0x3b0   : > { %10409 = vst [vmem:[#allocation123_spill] sm:$0xff] %v7494_v44  ;;  %1878 = vmatpush.msra.mxu3 %v7512_v35  ;;  %v7518_v44 = vld [vmem:[%s9316_s2 + $0x1d0] sm:$0xff] }
 0x3b1   : > { %10410 = vst [vmem:[#allocation124_spill] sm:$0xff] %v7500_v6  ;;  %1807 = vmatpush.msra.mxu0 %v7518_v44  ;;  %v7524_v6 = vld [vmem:[%s9316_s2 + $0x1d8] sm:$0xff] }
 0x3b2   : > { %10411 = vst [vmem:[#allocation125_spill] sm:$0xff] %v7506_v38  ;;  %1847 = vmatpush.msra.mxu2 %v7524_v6  ;;  %v7530_v38 = vld [vmem:[%s9316_s2 + $0x250] sm:$0xff] }
 0x3b3   : > { %10412 = vst [vmem:[#allocation126_spill] sm:$0xff] %v7512_v35  ;;  %1839 = vmatpush.msra.mxu1 %v7530_v38  ;;  %v7536_v35 = vld [vmem:[%s9316_s2 + $0x258] sm:$0xff] }
 0x3b4   : > { %10413 = vst [vmem:[#allocation127_spill] sm:$0xff] %v7518_v44  ;;  %1879 = vmatpush.msra.mxu3 %v7536_v35  ;;  %v7542_v44 = vld [vmem:[%s9316_s2 + $0x1b0] sm:$0xff] }
 0x3b5   : > { %10414 = vst [vmem:[#allocation128_spill] sm:$0xff] %v7524_v6  ;;  %1808 = vmatpush.msra.mxu0 %v7542_v44  ;;  %v7548_v6 = vld [vmem:[%s9316_s2 + $0x1b8] sm:$0xff] }
 0x3b6   : > { %10415 = vst [vmem:[#allocation129_spill] sm:$0xff] %v7530_v38  ;;  %1848 = vmatpush.msra.mxu2 %v7548_v6  ;;  %v7554_v38 = vld [vmem:[%s9316_s2 + $0x230] sm:$0xff] }
 0x3b7   : > { %10416 = vst [vmem:[#allocation130_spill] sm:$0xff] %v7536_v35  ;;  %1840 = vmatpush.msra.mxu1 %v7554_v38  ;;  %v7560_v35 = vld [vmem:[%s9316_s2 + $0x238] sm:$0xff] }
 0x3b8   : > { %10417 = vst [vmem:[#allocation131_spill] sm:$0xff] %v7542_v44  ;;  %1880 = vmatpush.msra.mxu3 %v7560_v35  ;;  %v7566_v44 = vld [vmem:[%s9316_s2 + $0x190] sm:$0xff] }
 0x3b9   : > { %10418 = vst [vmem:[#allocation132_spill] sm:$0xff] %v7548_v6  ;;  %1809 = vmatpush.msra.mxu0 %v7566_v44  ;;  %v7572_v6 = vld [vmem:[%s9316_s2 + $0x198] sm:$0xff] }
 0x3ba   : > { %10419 = vst [vmem:[#allocation133_spill] sm:$0xff] %v7554_v38  ;;  %1849 = vmatpush.msra.mxu2 %v7572_v6  ;;  %v7578_v38 = vld [vmem:[%s9316_s2 + $0x210] sm:$0xff] }
 0x3bb   : > { %10420 = vst [vmem:[#allocation134_spill] sm:$0xff] %v7560_v35  ;;  %1841 = vmatpush.msra.mxu1 %v7578_v38  ;;  %v7584_v35 = vld [vmem:[%s9316_s2 + $0x218] sm:$0xff] }
 0x3bc   : > { %10421 = vst [vmem:[#allocation135_spill] sm:$0xff] %v7566_v44  ;;  %1881 = vmatpush.msra.mxu3 %v7584_v35  ;;  %v7590_v44 = vld [vmem:[%s9316_s2 + $0x170] sm:$0xff] }
 0x3bd   : > { %10422 = vst [vmem:[#allocation136_spill] sm:$0xff] %v7572_v6  ;;  %1810 = vmatpush.msra.mxu0 %v7590_v44  ;;  %v7596_v6 = vld [vmem:[%s9316_s2 + $0x178] sm:$0xff] }
 0x3be   : > { %1850 = vmatpush.msra.mxu2 %v7596_v6 }
 0x3bf   : > { %1811 = vmatpush.msra.mxu0 %v6424_v1  ;;  %v1458_v1 = vpop.f32.mrf.mxu0 }
 0x3c0   : > { %1851 = vmatpush.msra.mxu2 %v6430_v3  ;;  %v1478_v3 = vpop.f32.mrf.mxu1 }
 0x3c1   : > { %1812 = vmatpush.msra.mxu0 %v6436_v43  ;;  %v1459_v43 = vadd.f32 %v1458_v1, %v5150_v36 }
 0x3c2   : > { %1852 = vmatpush.msra.mxu2 %v6442_v24 }
 0x3c3   : > { %1813 = vmatpush.msra.mxu0 %v6448_v29  ;;  %v1479_v24 = vadd.f32 %v1478_v3, %v1459_v43 }
 0x3c4   : > { %1853 = vmatpush.msra.mxu2 %v6454_v32  ;;  %v1498_v32 = vpop.f32.mrf.mxu2 }
 0x3c5   : > { %1814 = vmatpush.msra.mxu0 %v6460_v61  ;;  %v1601_v29 = vmul.f32 0.5, %v1479_v24  ;;  %v1518_v61 = vpop.f32.mrf.mxu3 }
 0x3c6   : > { %1854 = vmatpush.msra.mxu2 %v6466_v63  ;;  %v1499_v63 = vadd.f32 %v1498_v32, %v5153_v46 }
 0x3c7   : > { %1815 = vmatpush.msra.mxu0 %v6472_v57  ;;  %2955 = vtanh.f32 %v1601_v29  ;;  %v2842_v29 = vld [vmem:[%s4992_s9 + $0x88] sm:$0xff] }
 0x3c8   : > { %1855 = vmatpush.msra.mxu2 %v6478_v59  ;;  %v1519_v57 = vadd.f32 %v1518_v61, %v1499_v63  ;;  %v1538_v59 = vpop.f32.mrf.mxu0 }
 0x3c9   : > { %1816 = vmatpush.msra.mxu0 %v6484_v53  ;;  %v1539_v53 = vadd.f32 %v1538_v59, %v5155_v27 }
 0x3ca   : > { %1856 = vmatpush.msra.mxu2 %v6490_v23  ;;  %v1558_v23 = vpop.f32.mrf.mxu1 }
 0x3cb   : > { %1817 = vmatpush.msra.mxu0 %v6496_v55  ;;  %v1605_v55 = vmul.f32 0.5, %v1519_v57 }
 0x3cc   : > { %1857 = vmatpush.msra.mxu2 %v6502_v50  ;;  %v1559_v50 = vadd.f32 %v1558_v23, %v1539_v53 }
 0x3cd   : > { %1818 = vmatpush.msra.mxu0 %v6508_v52  ;;  %2957 = vtanh.f32 %v1605_v55  ;;  %v2956_v52 = vpop.eup %2955 }
 0x3ce   : > { %1858 = vmatpush.msra.mxu2 %v6514_v54  ;;  %2959 = vtanh.f32 %v1559_v50  ;;  %v1578_v54 = vpop.f32.mrf.mxu2  ;;  %v2841_v50 = vld [vmem:[%s4992_s9 + $0x80] sm:$0xff] }
 0x3cf   : > { %1819 = vmatpush.msra.mxu0 %v6520_v56  ;;  %v1579_v56 = vadd.f32 %v1578_v54, %v5159_v10 }
 0x3d0   : > { %1859 = vmatpush.msra.mxu2 %v6526_v58  ;;  %v1598_v58 = vpop.f32.mrf.mxu3 }
 0x3d1   : > { %1820 = vmatpush.msra.mxu0 %v6532_v60  ;;  %v1603_v60 = vmul.f32 0.5, %v2956_v52 }
 0x3d2   : > { %1860 = vmatpush.msra.mxu2 %v6538_v62  ;;  %v1599_v62 = vadd.f32 %v1598_v58, %v1579_v56  ;;  %v1661_v32 = vpop.f32.mrf.mxu1 }
 0x3d3   : > { %1821 = vmatpush.msra.mxu0 %v6544_v31  ;;  %v2958_v31 = vpop.eup %2957  ;;  %v1604_v43 = vadd.f32 0.5, %v1603_v60  ;;  %v1705_v57 = vadd.f32 %v2842_v29, %v1661_v32  ;;  %v2844_v60 = vld [vmem:[%s4992_s9 + $0x98] sm:$0xff] }
 0x3d4   : > { %1861 = vmatpush.msra.mxu2 %v6550_v37  ;;  %v1607_v37 = vmul.f32 0.5, %v2958_v31  ;;  %v1610_v1 = vmul.f32 0.5, %v1599_v62  ;;  %v2960_v3 = vpop.eup %2959 }
 0x3d5   : > { %v1615_v63 = vmul.f32 %v2960_v3, %v1604_v43  ;;  %v1712_v23 = vmul.f32 0.5, %v1705_v57  ;;  %v10444_v57 = vld [vmem:[#allocation10_spill] sm:$0xff] }
 0x3d6   : > { %v1608_v24 = vadd.f32 0.5, %v1607_v37  ;;  %2961 = vtanh.f32 %v1610_v1  ;;  %v2843_v1 = vld [vmem:[%s4992_s9 + $0x90] sm:$0xff] }
 0x3d8   : > { %v1614_v61 = vmul.f32 %v1608_v24, %v6559_v2  ;;  %v1701_v62 = vpop.f32.mrf.mxu3 }
 0x3d9   : > { %v1707_v37 = vadd.f32 %v2844_v60, %v1701_v62  ;;  %v10453_v60 = vld [vmem:[#allocation86_spill] sm:$0xff]  ;;  %v10454_v62 = vld [vmem:[#allocation17_spill] sm:$0xff] }
 0x3da   : > { %v7627_v59 = vadd.f32 %v1615_v63, %v1614_v61  ;;  %v10443_v63 = vld [vmem:[#allocation78_spill] sm:$0xff] }
 0x3db   : > { %v1717_v32 = vmul.f32 0.5, %v1707_v37  ;;  %v10457_v37 = vld [vmem:[#allocation88_spill] sm:$0xff] }
 0x3dc   : > { %v2962_v53 = vpop.eup %2961  ;;  %2963 = vtanh.f32 %v7627_v59 }
 0x3dd   : > { %v1612_v55 = vmul.f32 0.5, %v2962_v53  ;;  %2965 = vtanh.f32 %v1712_v23  ;;  %v10445_v53 = vld [vmem:[#allocation11_spill] sm:$0xff]  ;;  %v10446_v23 = vld [vmem:[#allocation12_spill] sm:$0xff] }
 0x3df   : > { %v1613_v52 = vadd.f32 0.5, %v1612_v55  ;;  %v10447_v55 = vld [vmem:[#allocation13_spill] sm:$0xff] }
 0x3e2   : > { %v2964_v56 = vpop.eup %2963 }
 0x3e3   : > { %v1618_v31 = vmul.f32 %v2964_v56, %v1613_v52  ;;  %v2966_v3 = vpop.eup %2965  ;;  %v10449_v52 = vld [vmem:[#allocation14_spill] sm:$0xff]  ;;  %v10451_v56 = vld [vmem:[#allocation83_spill] sm:$0xff] }
 0x3e4   : > { %v1714_v29 = vmul.f32 0.5, %v2966_v3  ;;  %v10459_v3 = vld [vmem:[#allocation87_spill] sm:$0xff] }
 0x3e5   : > { %1762 = vmatmul.f32.vlgmr.msrb.gmra.mxu1 %v1618_v31  ;;  %1802 = vmatmul.f32.vlgmr.msrb.gmra.mxu3 %v1618_v31 }
 0x3e6   : > { %v1641_v54 = vpop.f32.mrf.mxu0  ;;  %1929 = vmatpush.msrb.mxu1 %v6568_v39  ;;  %1969 = vmatpush.msrb.mxu3 %v6574_v17  ;;  %v1715_v17 = vadd.f32 0.5, %v1714_v29  ;;  %v10462_v29 = vld [vmem:[#allocation21_spill] sm:$0xff] }
 0x3e7   : > { %v1704_v58 = vadd.f32 %v2841_v50, %v1641_v54  ;;  %v10448_v50 = vld [vmem:[#allocation81_spill] sm:$0xff]  ;;  %v10450_v54 = vld [vmem:[#allocation15_spill] sm:$0xff] }
 0x3e8   : > { %1930 = vmatpush.msrb.mxu1 %v6580_v9  ;;  %1970 = vmatpush.msrb.mxu3 %v6586_v48 }
 0x3e9   : > { %v1708_v2 = vmul.f32 0.5, %v1704_v58  ;;  %v10452_v58 = vld [vmem:[#allocation16_spill] sm:$0xff] }
 0x3ea   : > { %1931 = vmatpush.msrb.mxu1 %v6592_v30  ;;  %1971 = vmatpush.msrb.mxu3 %v6598_v21  ;;  %v1721_v30 = vmul.f32 %v1715_v17, %v6650_v11  ;;  %v10425_v11 = vld [vmem:[#allocation57_spill] sm:$0xff]  ;;  %v10466_v17 = vld [vmem:[#allocation23_spill] sm:$0xff] }
 0x3eb   : > { %2967 = vtanh.f32 %v1708_v2  ;;  %v10456_v2 = vld [vmem:[#allocation18_spill] sm:$0xff] }
 0x3ec   : > { %1932 = vmatpush.msrb.mxu1 %v6604_v51  ;;  %1972 = vmatpush.msrb.mxu3 %v6610_v12 }
 0x3ed   : > { %1842 = vmatmul.f32.vlgmr.msra.gmra.mxu1 %v1618_v31  ;;  %1882 = vmatmul.f32.vlgmr.msra.gmra.mxu3 %v1618_v31  ;;  %v10455_v31 = vld [vmem:[#allocation85_spill] sm:$0xff] }
 0x3ee   : > { %v1681_v43 = vpop.f32.mrf.mxu2  ;;  %1933 = vmatpush.msrb.mxu1 %v6616_v16  ;;  %1973 = vmatpush.msrb.mxu3 %v6622_v20 }
 0x3ef   : > { %v1706_v24 = vadd.f32 %v2843_v1, %v1681_v43  ;;  %v10458_v1 = vld [vmem:[#allocation19_spill] sm:$0xff]  ;;  %v10460_v43 = vld [vmem:[#allocation20_spill] sm:$0xff] }
 0x3f0   : > { %1934 = vmatpush.msrb.mxu1 %v6628_v33  ;;  %1974 = vmatpush.msrb.mxu3 %v6634_v0 }
 0x3f1   : > { %2969 = vtanh.f32 %v1706_v24  ;;  %v2968_v61 = vpop.eup %2967  ;;  %v10461_v24 = vld [vmem:[#allocation90_spill] sm:$0xff] }
 0x3f2   : > { %v1710_v39 = vmul.f32 0.5, %v2968_v61  ;;  %2971 = vtanh.f32 %v1717_v32  ;;  %1935 = vmatpush.msrb.mxu1 %v6641_v5  ;;  %1975 = vmatpush.msrb.mxu3 %v6647_v8  ;;  %v10423_v5 = vld [vmem:[#allocation53_spill] sm:$0xff]  ;;  %v10424_v8 = vld [vmem:[#allocation56_spill] sm:$0xff]  ;;  %v10464_v61 = vld [vmem:[#allocation22_spill] sm:$0xff] }
 0x3f3   : > { %v10463_v32 = vld [vmem:[#allocation89_spill] sm:$0xff] }
 0x3f4   : > { %v1711_v9 = vadd.f32 0.5, %v1710_v39  ;;  %1936 = vmatpush.msrb.mxu1 %v6655_v15  ;;  %1976 = vmatpush.msrb.mxu3 %v6661_v40  ;;  %v10426_v15 = vld [vmem:[#allocation60_spill] sm:$0xff]  ;;  %v10427_v40 = vld [vmem:[#allocation61_spill] sm:$0xff] }
 0x3f5   : > { %v10465_v39 = vld [vmem:[#allocation92_spill] sm:$0xff] }
 0x3f6   : > { %1937 = vmatpush.msrb.mxu1 %v6668_v14  ;;  %1977 = vmatpush.msrb.mxu3 %v6674_v18  ;;  %v10428_v14 = vld [vmem:[#allocation64_spill] sm:$0xff]  ;;  %v10429_v18 = vld [vmem:[#allocation65_spill] sm:$0xff] }
 0x3f7   : > { %v2970_v48 = vpop.eup %2969 }
 0x3f8   : > { %v1722_v21 = vmul.f32 %v2970_v48, %v1711_v9  ;;  %v2972_v51 = vpop.eup %2971  ;;  %1938 = vmatpush.msrb.mxu1 %v6680_v19  ;;  %1978 = vmatpush.msrb.mxu3 %v6686_v4  ;;  %v10430_v19 = vld [vmem:[#allocation68_spill] sm:$0xff]  ;;  %v10431_v4 = vld [vmem:[#allocation69_spill] sm:$0xff]  ;;  %v10467_v9 = vld [vmem:[#allocation91_spill] sm:$0xff] }
 0x3f9   : > { %v1719_v16 = vmul.f32 0.5, %v2972_v51  ;;  %v10468_v48 = vld [vmem:[#allocation24_spill] sm:$0xff]  ;;  %v10471_v51 = vld [vmem:[#allocation93_spill] sm:$0xff] }
 0x3fa   : > { %v7648_v12 = vadd.f32 %v1722_v21, %v1721_v30  ;;  %1939 = vmatpush.msrb.mxu1 %v6692_v25  ;;  %1979 = vmatpush.msrb.mxu3 %v6698_v26  ;;  %v10432_v25 = vld [vmem:[#allocation76_spill] sm:$0xff]  ;;  %v10433_v26 = vld [vmem:[#allocation3_spill] sm:$0xff]  ;;  %v10469_v30 = vld [vmem:[#allocation94_spill] sm:$0xff] }
 0x3fb   : > { %v1720_v20 = vadd.f32 0.5, %v1719_v16  ;;  %v10470_v21 = vld [vmem:[#allocation25_spill] sm:$0xff]  ;;  %v10472_v16 = vld [vmem:[#allocation26_spill] sm:$0xff] }
 0x3fc   : > { %2973 = vtanh.f32 %v7648_v12  ;;  %1940 = vmatpush.msrb.mxu1 %v6706_v28  ;;  %1980 = vmatpush.msrb.mxu3 %v6712_v34  ;;  %v10434_v28 = vld [vmem:[#allocation4_spill] sm:$0xff]  ;;  %v10435_v34 = vld [vmem:[#allocation5_spill] sm:$0xff] }
 0x3fe   : > { %1941 = vmatpush.msrb.mxu1 %v6732_v13  ;;  %1981 = vmatpush.msrb.mxu3 %v6738_v45  ;;  %v10438_v13 = vld [vmem:[#allocation7_spill] sm:$0xff]  ;;  %v10439_v45 = vld [vmem:[#allocation74_spill] sm:$0xff] }
 0x400   : > { %1942 = vmatpush.msrb.mxu1 %v6756_v7  ;;  %1982 = vmatpush.msrb.mxu3 %v6762_v47  ;;  %v10441_v7 = vld [vmem:[#allocation80_spill] sm:$0xff]  ;;  %v10442_v47 = vld [vmem:[#allocation9_spill] sm:$0xff] }
 0x402   : > { %v2974_v33 = vpop.eup %2973  ;;  %1943 = vmatpush.msrb.mxu1 %v10424_v8  ;;  %1983 = vmatpush.msrb.mxu3 %v10425_v11  ;;  %v10476_v8 = vld [vmem:[#allocation28_spill] sm:$0xff]  ;;  %v10477_v11 = vld [vmem:[#allocation98_spill] sm:$0xff] }
 0x403   : > { %v7661_v0 = vmul.f32 %v2974_v33, %v1720_v20  ;;  %v10473_v20 = vld [vmem:[#allocation96_spill] sm:$0xff]  ;;  %v10474_v33 = vld [vmem:[#allocation27_spill] sm:$0xff] }
 0x404   : > { %1944 = vmatpush.msrb.mxu1 %v10428_v14  ;;  %1984 = vmatpush.msrb.mxu3 %v10429_v18  ;;  %v10480_v14 = vld [vmem:[#allocation30_spill] sm:$0xff]  ;;  %v10482_v18 = vld [vmem:[#allocation31_spill] sm:$0xff] }
 0x405   : > { %1742 = vmatmul.f32.vlgmr.msrb.gmra.mxu0 %v7661_v0  ;;  %1782 = vmatmul.f32.vlgmr.msrb.gmra.mxu2 %v7661_v0 }
 0x406   : > { %1909 = vmatpush.msrb.mxu0 %v6720_v22  ;;  %1949 = vmatpush.msrb.mxu2 %v6726_v42  ;;  %v10436_v22 = vld [vmem:[#allocation71_spill] sm:$0xff]  ;;  %v10437_v42 = vld [vmem:[#allocation6_spill] sm:$0xff] }
 0x407   : > { %1945 = vmatmul.f32.vlgmr.msrb.gmra.mxu1 %v7661_v0  ;;  %1985 = vmatmul.f32.vlgmr.msrb.gmra.mxu3 %v7661_v0 }
 0x408   : > { %1910 = vmatpush.msrb.mxu0 %v6744_v49  ;;  %1950 = vmatpush.msrb.mxu2 %v10423_v5  ;;  %v10440_v49 = vld [vmem:[#allocation8_spill] sm:$0xff]  ;;  %v10475_v5 = vld [vmem:[#allocation95_spill] sm:$0xff] }
 0x409   : > { %2031 = vmatpush.msra.mxu1 %v10435_v34  ;;  %2071 = vmatpush.msra.mxu3 %v10437_v42  ;;  %v10489_v34 = vld [vmem:[#allocation36_spill] sm:$0xff]  ;;  %v10491_v42 = vld [vmem:[#allocation38_spill] sm:$0xff] }
 0x40a   : > { %1911 = vmatpush.msrb.mxu0 %v10426_v15  ;;  %1951 = vmatpush.msrb.mxu2 %v10427_v40  ;;  %v10478_v15 = vld [vmem:[#allocation29_spill] sm:$0xff] }
 0x40b   : > { %2032 = vmatpush.msra.mxu1 %v10439_v45  ;;  %2072 = vmatpush.msra.mxu3 %v10441_v7  ;;  %v10479_v40 = vld [vmem:[#allocation97_spill] sm:$0xff]  ;;  %v10493_v45 = vld [vmem:[#allocation40_spill] sm:$0xff]  ;;  %v10495_v7 = vld [vmem:[#allocation42_spill] sm:$0xff] }
 0x40c   : > { %1912 = vmatpush.msrb.mxu0 %v10430_v19  ;;  %1952 = vmatpush.msrb.mxu2 %v10431_v4  ;;  %v10483_v19 = vld [vmem:[#allocation99_spill] sm:$0xff]  ;;  %v10484_v4 = vld [vmem:[#allocation32_spill] sm:$0xff] }
 0x40d   : > { %1822 = vmatmul.f32.vlgmr.msra.gmra.mxu0 %v7661_v0  ;;  %1862 = vmatmul.f32.vlgmr.msra.gmra.mxu2 %v7661_v0 }
 0x40e   : > { %1913 = vmatpush.msrb.mxu0 %v10432_v25  ;;  %1953 = vmatpush.msrb.mxu2 %v10433_v26  ;;  %v10485_v25 = vld [vmem:[#allocation33_spill] sm:$0xff]  ;;  %v10487_v26 = vld [vmem:[#allocation34_spill] sm:$0xff] }
 0x40f   : > { %2033 = vmatpush.msra.mxu1 %v10443_v63  ;;  %2073 = vmatpush.msra.mxu3 %v10445_v53  ;;  %v10497_v63 = vld [vmem:[#allocation44_spill] sm:$0xff]  ;;  %v10499_v53 = vld [vmem:[#allocation46_spill] sm:$0xff] }
 0x410   : > { %1914 = vmatpush.msrb.mxu0 %v10434_v28  ;;  %1954 = vmatpush.msrb.mxu2 %v10436_v22  ;;  %v10488_v28 = vld [vmem:[#allocation35_spill] sm:$0xff]  ;;  %v10490_v22 = vld [vmem:[#allocation37_spill] sm:$0xff] }
 0x411   : > { %2034 = vmatpush.msra.mxu1 %v10447_v55  ;;  %2074 = vmatpush.msra.mxu3 %v10449_v52  ;;  %v10501_v55 = vld [vmem:[#allocation48_spill] sm:$0xff]  ;;  %v10503_v52 = vld [vmem:[#allocation50_spill] sm:$0xff] }
 0x412   : > { %1915 = vmatpush.msrb.mxu0 %v10438_v13  ;;  %1955 = vmatpush.msrb.mxu2 %v10440_v49  ;;  %v10492_v13 = vld [vmem:[#allocation39_spill] sm:$0xff]  ;;  %v10494_v49 = vld [vmem:[#allocation41_spill] sm:$0xff] }
 0x413   : > { %2035 = vmatpush.msra.mxu1 %v10451_v56  ;;  %2075 = vmatpush.msra.mxu3 %v10453_v60  ;;  %v10505_v56 = vld [vmem:[#allocation52_spill] sm:$0xff]  ;;  %v10507_v60 = vld [vmem:[#allocation55_spill] sm:$0xff] }
 0x414   : > { %1916 = vmatpush.msrb.mxu0 %v10442_v47  ;;  %1956 = vmatpush.msrb.mxu2 %v10444_v57  ;;  %v10496_v47 = vld [vmem:[#allocation43_spill] sm:$0xff]  ;;  %v10498_v57 = vld [vmem:[#allocation45_spill] sm:$0xff] }
 0x415   : > { %2036 = vmatpush.msra.mxu1 %v10455_v31  ;;  %2076 = vmatpush.msra.mxu3 %v10457_v37  ;;  %v10509_v31 = vld [vmem:[#allocation59_spill] sm:$0xff] }
 0x416   : > { %1917 = vmatpush.msrb.mxu0 %v10446_v23  ;;  %1957 = vmatpush.msrb.mxu2 %v10448_v50  ;;  %v10500_v23 = vld [vmem:[#allocation47_spill] sm:$0xff]  ;;  %v10502_v50 = vld [vmem:[#allocation49_spill] sm:$0xff] }
 0x417   : > { %2037 = vmatpush.msra.mxu1 %v10459_v3  ;;  %2077 = vmatpush.msra.mxu3 %v10461_v24  ;;  %v10511_v37 = vld [vmem:[#allocation63_spill] sm:$0xff]  ;;  %v10515_v24 = vld [vmem:[#allocation72_spill] sm:$0xff] }
 0x418   : > { %1918 = vmatpush.msrb.mxu0 %v10450_v54  ;;  %1958 = vmatpush.msrb.mxu2 %v10452_v58  ;;  %v10504_v54 = vld [vmem:[#allocation51_spill] sm:$0xff]  ;;  %v10506_v58 = vld [vmem:[#allocation54_spill] sm:$0xff] }
 0x419   : > { %2038 = vmatpush.msra.mxu1 %v10463_v32  ;;  %2078 = vmatpush.msra.mxu3 %v10465_v39  ;;  %v10513_v3 = vld [vmem:[#allocation67_spill] sm:$0xff] }
 0x41a   : > { %1919 = vmatpush.msrb.mxu0 %v10454_v62  ;;  %1959 = vmatpush.msrb.mxu2 %v10456_v2  ;;  %v10508_v62 = vld [vmem:[#allocation58_spill] sm:$0xff]  ;;  %v10517_v32 = vld [vmem:[#allocation75_spill] sm:$0xff] }
 0x41b   : > { %2039 = vmatpush.msra.mxu1 %v10467_v9  ;;  %2079 = vmatpush.msra.mxu3 %v10469_v30  ;;  %v10510_v2 = vld [vmem:[#allocation62_spill] sm:$0xff]  ;;  %v10519_v39 = vld [vmem:[#allocation79_spill] sm:$0xff]  ;;  %v10521_v9 = vld [vmem:[#allocation84_spill] sm:$0xff] }
 0x41c   : > { %1920 = vmatpush.msrb.mxu0 %v10458_v1  ;;  %1960 = vmatpush.msrb.mxu2 %v10460_v43  ;;  %v10512_v1 = vld [vmem:[#allocation66_spill] sm:$0xff]  ;;  %v10523_v30 = vld [vmem:[#allocation103_spill] sm:$0xff] }
 0x41d   : > { %2040 = vmatpush.msra.mxu1 %v10471_v51  ;;  %2080 = vmatpush.msra.mxu3 %v7066_v41  ;;  %v10481_v41 = vld [vmem:[#allocation100_spill] sm:$0xff]  ;;  %v10514_v43 = vld [vmem:[#allocation70_spill] sm:$0xff]  ;;  %v10525_v51 = vld [vmem:[#allocation105_spill] sm:$0xff] }
 0x41e   : > { %1921 = vmatpush.msrb.mxu0 %v10462_v29  ;;  %1961 = vmatpush.msrb.mxu2 %v10464_v61  ;;  %v10516_v29 = vld [vmem:[#allocation73_spill] sm:$0xff] }
 0x41f   : > { %2041 = vmatpush.msra.mxu1 %v10474_v33  ;;  %2081 = vmatpush.msra.mxu3 %v10476_v8  ;;  %v10518_v61 = vld [vmem:[#allocation77_spill] sm:$0xff]  ;;  %v10528_v33 = vld [vmem:[#allocation108_spill] sm:$0xff]  ;;  %v10530_v8 = vld [vmem:[#allocation110_spill] sm:$0xff] }
 0x420   : > { %1922 = vmatpush.msrb.mxu0 %v10466_v17  ;;  %1962 = vmatpush.msrb.mxu2 %v10468_v48  ;;  %v10520_v17 = vld [vmem:[#allocation82_spill] sm:$0xff] }
 0x421   : > { %2042 = vmatpush.msra.mxu1 %v10477_v11  ;;  %2082 = vmatpush.msra.mxu3 %v10479_v40  ;;  %v10522_v48 = vld [vmem:[#allocation102_spill] sm:$0xff]  ;;  %v10531_v11 = vld [vmem:[#allocation111_spill] sm:$0xff]  ;;  %v10533_v40 = vld [vmem:[#allocation113_spill] sm:$0xff] }
 0x422   : > { %1923 = vmatpush.msrb.mxu0 %v10470_v21  ;;  %1963 = vmatpush.msrb.mxu2 %v10472_v16  ;;  %v10524_v21 = vld [vmem:[#allocation104_spill] sm:$0xff]  ;;  %v10526_v16 = vld [vmem:[#allocation106_spill] sm:$0xff] }
 0x423   : > { %2043 = vmatpush.msra.mxu1 %v10481_v41  ;;  %2083 = vmatpush.msra.mxu3 %v10483_v19  ;;  %v10535_v41 = vld [vmem:[#allocation115_spill] sm:$0xff]  ;;  %v10537_v19 = vld [vmem:[#allocation117_spill] sm:$0xff] }
 0x424   : > { %1924 = vmatpush.msrb.mxu0 %v10473_v20  ;;  %1964 = vmatpush.msrb.mxu2 %v10475_v5  ;;  %v10527_v20 = vld [vmem:[#allocation107_spill] sm:$0xff]  ;;  %v10529_v5 = vld [vmem:[#allocation109_spill] sm:$0xff] }
 0x425   : > { %1925 = vmatmul.f32.vlgmr.msrb.gmra.mxu0 %v7661_v0  ;;  %1965 = vmatmul.f32.vlgmr.msrb.gmra.mxu2 %v7661_v0  ;;  %v10486_v0 = vld [vmem:[#allocation101_spill] sm:$0xff] }
 0x426   : > { %2011 = vmatpush.msra.mxu0 %v10478_v15  ;;  %2051 = vmatpush.msra.mxu2 %v10480_v14  ;;  %v10532_v15 = vld [vmem:[#allocation112_spill] sm:$0xff]  ;;  %v10534_v14 = vld [vmem:[#allocation114_spill] sm:$0xff] }
 0x427   : > { %2044 = vmatpush.msra.mxu1 %v10485_v25  ;;  %2084 = vmatpush.msra.mxu3 %v10487_v26  ;;  %v10539_v25 = vld [vmem:[#allocation119_spill] sm:$0xff]  ;;  %v10541_v26 = vld [vmem:[#allocation121_spill] sm:$0xff] }
 0x428   : > { %2012 = vmatpush.msra.mxu0 %v10482_v18  ;;  %2052 = vmatpush.msra.mxu2 %v10484_v4  ;;  %v10536_v18 = vld [vmem:[#allocation116_spill] sm:$0xff]  ;;  %v10538_v4 = vld [vmem:[#allocation118_spill] sm:$0xff] }
 0x429   : > { %2045 = vmatpush.msra.mxu1 %v10489_v34  ;;  %2085 = vmatpush.msra.mxu3 %v10491_v42  ;;  %v10543_v34 = vld [vmem:[#allocation123_spill] sm:$0xff]  ;;  %v10545_v42 = vld [vmem:[#allocation125_spill] sm:$0xff] }
 0x42a   : > { %2013 = vmatpush.msra.mxu0 %v10486_v0  ;;  %2053 = vmatpush.msra.mxu2 %v10488_v28  ;;  %v10540_v0 = vld [vmem:[#allocation120_spill] sm:$0xff]  ;;  %v10542_v28 = vld [vmem:[#allocation122_spill] sm:$0xff] }
 0x42b   : > { %2046 = vmatpush.msra.mxu1 %v10493_v45  ;;  %2086 = vmatpush.msra.mxu3 %v10495_v7  ;;  %v10547_v45 = vld [vmem:[#allocation127_spill] sm:$0xff]  ;;  %v10549_v7 = vld [vmem:[#allocation129_spill] sm:$0xff] }
 0x42c   : > { %2014 = vmatpush.msra.mxu0 %v10490_v22  ;;  %2054 = vmatpush.msra.mxu2 %v10492_v13  ;;  %v10544_v22 = vld [vmem:[#allocation124_spill] sm:$0xff]  ;;  %v10546_v13 = vld [vmem:[#allocation126_spill] sm:$0xff] }
 0x42d   : > { %2111 = vmatpush.msrb.mxu1 %v10497_v63  ;;  %2151 = vmatpush.msrb.mxu3 %v10498_v57  ;;  %v10551_v63 = vld [vmem:[#allocation131_spill] sm:$0xff]  ;;  %v10552_v57 = vld [vmem:[#allocation132_spill] sm:$0xff] }
 0x42e   : > { %2015 = vmatpush.msra.mxu0 %v10494_v49  ;;  %2055 = vmatpush.msra.mxu2 %v10496_v47  ;;  %v10548_v49 = vld [vmem:[#allocation128_spill] sm:$0xff]  ;;  %v10550_v47 = vld [vmem:[#allocation130_spill] sm:$0xff] }
 0x42f   : > { %2112 = vmatpush.msrb.mxu1 %v10501_v55  ;;  %2152 = vmatpush.msrb.mxu3 %v10502_v50  ;;  %v10555_v55 = vld [vmem:[#allocation135_spill] sm:$0xff]  ;;  %v10556_v50 = vld [vmem:[#allocation136_spill] sm:$0xff] }
 0x430   : > { %2016 = vmatpush.msra.mxu0 %v10499_v53  ;;  %2056 = vmatpush.msra.mxu2 %v10500_v23  ;;  %v10553_v53 = vld [vmem:[#allocation133_spill] sm:$0xff]  ;;  %v10554_v23 = vld [vmem:[#allocation134_spill] sm:$0xff] }
 0x431   : > { %2113 = vmatpush.msrb.mxu1 %v10505_v56  ;;  %2153 = vmatpush.msrb.mxu3 %v10506_v58  ;;  %v7856_v56 = vld [vmem:[%s9316_s2 + $0xf0] sm:$0xff]  ;;  %v7862_v58 = vld [vmem:[%s9316_s2 + $0xf8] sm:$0xff] }
 0x432   : > { %2017 = vmatpush.msra.mxu0 %v10503_v52  ;;  %2057 = vmatpush.msra.mxu2 %v10504_v54  ;;  %v7820_v52 = vld [vmem:[%s9316_s2 + $0x150] sm:$0xff]  ;;  %v7826_v54 = vld [vmem:[%s9316_s2 + $0x158] sm:$0xff] }
 0x433   : > { %2114 = vmatpush.msrb.mxu1 %v10509_v31  ;;  %2154 = vmatpush.msrb.mxu3 %v10510_v2  ;;  %v7880_v31 = vld [vmem:[%s9316_s2 + $0xb0] sm:$0xff]  ;;  %v7886_v2 = vld [vmem:[%s9316_s2 + $0xb8] sm:$0xff] }
 0x434   : > { %2018 = vmatpush.msra.mxu0 %v10507_v60  ;;  %2058 = vmatpush.msra.mxu2 %v10508_v62  ;;  %v7868_v60 = vld [vmem:[%s9316_s2 + $0xd0] sm:$0xff]  ;;  %v7874_v62 = vld [vmem:[%s9316_s2 + $0xd8] sm:$0xff] }
 0x435   : > { %2115 = vmatpush.msrb.mxu1 %v10513_v3  ;;  %2155 = vmatpush.msrb.mxu3 %v10514_v43  ;;  %v7904_v3 = vld [vmem:[%s9316_s2 + $0x70] sm:$0xff]  ;;  %v7910_v43 = vld [vmem:[%s9316_s2 + $0x78] sm:$0xff] }
 0x436   : > { %2019 = vmatpush.msra.mxu0 %v10511_v37  ;;  %2059 = vmatpush.msra.mxu2 %v10512_v1  ;;  %v7892_v37 = vld [vmem:[%s9316_s2 + $0x90] sm:$0xff]  ;;  %v7898_v1 = vld [vmem:[%s9316_s2 + $0x98] sm:$0xff] }
 0x437   : > { %2116 = vmatpush.msrb.mxu1 %v10517_v32  ;;  %2156 = vmatpush.msrb.mxu3 %v10518_v61  ;;  %v7928_v32 = vld [vmem:[%s9316_s2 + $0x30] sm:$0xff]  ;;  %v7934_v61 = vld [vmem:[%s9316_s2 + $0x38] sm:$0xff] }
 0x438   : > { %2020 = vmatpush.msra.mxu0 %v10515_v24  ;;  %2060 = vmatpush.msra.mxu2 %v10516_v29  ;;  %v7916_v24 = vld [vmem:[%s9316_s2 + $0x50] sm:$0xff]  ;;  %v7922_v29 = vld [vmem:[%s9316_s2 + $0x58] sm:$0xff] }
 0x439   : > { %2117 = vmatpush.msrb.mxu1 %v10521_v9  ;;  %2157 = vmatpush.msrb.mxu3 %v10522_v48 }
 0x43a   : > { %2021 = vmatpush.msra.mxu0 %v10519_v39  ;;  %2061 = vmatpush.msra.mxu2 %v10520_v17  ;;  %v7940_v39 = vld [vmem:[%s9316_s2 + $0x10] sm:$0xff]  ;;  %v7946_v17 = vld [vmem:[%s9316_s2 + $0x18] sm:$0xff] }
 0x43b   : > { %2118 = vmatpush.msrb.mxu1 %v10525_v51  ;;  %2158 = vmatpush.msrb.mxu3 %v10526_v16 }
 0x43c   : > { %2022 = vmatpush.msra.mxu0 %v10523_v30  ;;  %2062 = vmatpush.msra.mxu2 %v10524_v21 }
 0x43d   : > { %2119 = vmatpush.msrb.mxu1 %v10529_v5  ;;  %2159 = vmatpush.msrb.mxu3 %v10530_v8 }
 0x43e   : > { %2023 = vmatpush.msra.mxu0 %v10527_v20  ;;  %2063 = vmatpush.msra.mxu2 %v10528_v33 }
 0x43f   : > { %2120 = vmatpush.msrb.mxu1 %v10533_v40  ;;  %2160 = vmatpush.msrb.mxu3 %v10534_v14 }
 0x440   : > { %2024 = vmatpush.msra.mxu0 %v10531_v11  ;;  %2064 = vmatpush.msra.mxu2 %v10532_v15 }
 0x441   : > { %2121 = vmatpush.msrb.mxu1 %v10537_v19  ;;  %2161 = vmatpush.msrb.mxu3 %v10538_v4 }
 0x442   : > { %2025 = vmatpush.msra.mxu0 %v10535_v41  ;;  %2065 = vmatpush.msra.mxu2 %v10536_v18 }
 0x443   : > { %2122 = vmatpush.msrb.mxu1 %v10541_v26  ;;  %2162 = vmatpush.msrb.mxu3 %v10542_v28 }
 0x444   : > { %2026 = vmatpush.msra.mxu0 %v10539_v25  ;;  %2066 = vmatpush.msra.mxu2 %v10540_v0 }
 0x445   : > { %2123 = vmatpush.msrb.mxu1 %v10545_v42  ;;  %2163 = vmatpush.msrb.mxu3 %v10546_v13  ;;  %v2846_v42 = vld [vmem:[%s4992_s9 + $0xa8] sm:$0xff] }
 0x446   : > { %2091 = vmatpush.msrb.mxu0 %v10543_v34  ;;  %2131 = vmatpush.msrb.mxu2 %v10544_v22 }
 0x447   : > { %2124 = vmatpush.msrb.mxu1 %v10549_v7  ;;  %2164 = vmatpush.msrb.mxu3 %v10550_v47 }
 0x448   : > { %2092 = vmatpush.msrb.mxu0 %v10547_v45  ;;  %2132 = vmatpush.msrb.mxu2 %v10548_v49 }
 0x449   : > { %2125 = vmatpush.msrb.mxu1 %v10553_v53  ;;  %2165 = vmatpush.msrb.mxu3 %v10554_v23 }
 0x44a   : > { %2093 = vmatpush.msrb.mxu0 %v10551_v63  ;;  %2133 = vmatpush.msrb.mxu2 %v10552_v57 }
 0x44b   : > { %2126 = vmatpush.msrb.mxu1 %v7578_v38  ;;  %2166 = vmatpush.msrb.mxu3 %v7584_v35  ;;  %v7832_v35 = vld [vmem:[%s9316_s2 + $0x130] sm:$0xff] }
 0x44c   : > { %2094 = vmatpush.msrb.mxu0 %v10555_v55  ;;  %2134 = vmatpush.msrb.mxu2 %v10556_v50  ;;  %v7844_v38 = vld [vmem:[%s9316_s2 + $0x110] sm:$0xff]  ;;  %v2845_v50 = vld [vmem:[%s4992_s9 + $0xa0] sm:$0xff] }
 0x44e   : > { %2095 = vmatpush.msrb.mxu0 %v7590_v44  ;;  %2135 = vmatpush.msrb.mxu2 %v7596_v6  ;;  %v7838_v6 = vld [vmem:[%s9316_s2 + $0x138] sm:$0xff] }
 0x44f   : > { %v7850_v44 = vld [vmem:[%s9316_s2 + $0x118] sm:$0xff] }
 0x450   : > { %2096 = vmatpush.msrb.mxu0 %v7820_v52  ;;  %2136 = vmatpush.msrb.mxu2 %v7826_v54 }
 0x452   : > { %2097 = vmatpush.msrb.mxu0 %v7832_v35  ;;  %2137 = vmatpush.msrb.mxu2 %v7838_v6 }
 0x454   : > { %2098 = vmatpush.msrb.mxu0 %v7844_v38  ;;  %2138 = vmatpush.msrb.mxu2 %v7850_v44 }
 0x456   : > { %2099 = vmatpush.msrb.mxu0 %v7856_v56  ;;  %2139 = vmatpush.msrb.mxu2 %v7862_v58 }
 0x458   : > { %2100 = vmatpush.msrb.mxu0 %v7868_v60  ;;  %2140 = vmatpush.msrb.mxu2 %v7874_v62 }
 0x45a   : > { %2101 = vmatpush.msrb.mxu0 %v7880_v31  ;;  %2141 = vmatpush.msrb.mxu2 %v7886_v2 }
 0x45c   : > { %2102 = vmatpush.msrb.mxu0 %v7892_v37  ;;  %2142 = vmatpush.msrb.mxu2 %v7898_v1 }
 0x45e   : > { %2103 = vmatpush.msrb.mxu0 %v7904_v3  ;;  %2143 = vmatpush.msrb.mxu2 %v7910_v43 }
 0x460   : > { %2104 = vmatpush.msrb.mxu0 %v7916_v24  ;;  %2144 = vmatpush.msrb.mxu2 %v7922_v29 }
 0x462   : > { %2105 = vmatpush.msrb.mxu0 %v7928_v32  ;;  %2145 = vmatpush.msrb.mxu2 %v7934_v61  ;;  %v1763_v9 = vpop.f32.mrf.mxu1 }
 0x464   : > { %2106 = vmatpush.msrb.mxu0 %v7940_v39  ;;  %2146 = vmatpush.msrb.mxu2 %v7946_v17 }
 0x468   : > { %v1803_v16 = vpop.f32.mrf.mxu3 }
 0x46a   : > { %v1843_v15 = vpop.f32.mrf.mxu1 }
 0x470   : > { %v1883_v4 = vpop.f32.mrf.mxu3 }
 0x482   : > { %v1743_v48 = vpop.f32.mrf.mxu0 }
 0x483   : > { %v1744_v30 = vadd.f32 %v1743_v48, %v5150_v36 }
 0x484   : > { %v1946_v13 = vpop.f32.mrf.mxu1 }
 0x485   : > { %v1764_v21 = vadd.f32 %v1763_v9, %v1744_v30  ;;  %v1990_v63 = vadd.f32 %v2846_v42, %v1946_v13 }
 0x487   : > { %v1886_v51 = vmul.f32 0.5, %v1764_v21  ;;  %v1997_v23 = vmul.f32 0.5, %v1990_v63  ;;  %v8030_v63 = vld [vmem:[%s9315_s1 + $0x158] sm:$0xff] }
 0x488   : > { %v1783_v20 = vpop.f32.mrf.mxu2 }
 0x489   : > { %v1784_v33 = vadd.f32 %v1783_v20, %v5153_v46  ;;  %2975 = vtanh.f32 %v1886_v51  ;;  %v2848_v51 = vld [vmem:[%s4992_s9 + $0xb8] sm:$0xff] }
 0x48a   : > { %v1823_v5 = vpop.f32.mrf.mxu0 }
 0x48b   : > { %v1804_v8 = vadd.f32 %v1803_v16, %v1784_v33  ;;  %v1824_v11 = vadd.f32 %v1823_v5, %v5155_v27  ;;  %v1986_v16 = vpop.f32.mrf.mxu3  ;;  %v2847_v5 = vld [vmem:[%s4992_s9 + $0xb0] sm:$0xff] }
 0x48c   : > { %v1992_v33 = vadd.f32 %v2848_v51, %v1986_v16  ;;  %v8064_v51 = vld [vmem:[%s9315_s1 + $0xe8] sm:$0xff]  ;;  %v8070_v16 = vld [vmem:[%s9315_s1 + $0xf8] sm:$0xff] }
 0x48d   : > { %v1890_v40 = vmul.f32 0.5, %v1804_v8  ;;  %v1844_v14 = vadd.f32 %v1843_v15, %v1824_v11  ;;  %v7964_v11 = vld [vmem:[%s9315_s1 + $0x1e8] sm:$0xff]  ;;  %v7970_v15 = vld [vmem:[%s9315_s1 + $0x1f8] sm:$0xff] }
 0x48f   : > { %2977 = vtanh.f32 %v1890_v40  ;;  %v2976_v18 = vpop.eup %2975 }
 0x490   : > { %v1863_v41 = vpop.f32.mrf.mxu2  ;;  %2979 = vtanh.f32 %v1844_v14  ;;  %v1888_v0 = vmul.f32 0.5, %v2976_v18  ;;  %v7982_v18 = vld [vmem:[%s9315_s1 + $0x1d8] sm:$0xff] }
 0x491   : > { %v1864_v19 = vadd.f32 %v1863_v41, %v5159_v10  ;;  %v7976_v41 = vld [vmem:[%s9315_s1 + $0x1c8] sm:$0xff] }
 0x492   : > { %v1889_v45 = vadd.f32 0.5, %v1888_v0  ;;  %v7994_v0 = vld [vmem:[%s9315_s1 + $0x1b8] sm:$0xff] }
 0x493   : > { %v1884_v25 = vadd.f32 %v1883_v4, %v1864_v19  ;;  %v2002_v4 = vmul.f32 0.5, %v1992_v33 }
 0x495   : > { %v2978_v26 = vpop.eup %2977  ;;  %v1895_v28 = vmul.f32 0.5, %v1884_v25  ;;  %v7988_v25 = vld [vmem:[%s9315_s1 + $0x1a8] sm:$0xff] }
 0x496   : > { %v1892_v34 = vmul.f32 0.5, %v2978_v26  ;;  %v2980_v22 = vpop.eup %2979 }
 0x497   : > { %2981 = vtanh.f32 %v1895_v28  ;;  %v1900_v47 = vmul.f32 %v2980_v22, %v1889_v45  ;;  %v8006_v22 = vld [vmem:[%s9315_s1 + $0x198] sm:$0xff]  ;;  %v8012_v45 = vld [vmem:[%s9315_s1 + $0x168] sm:$0xff] }
 0x498   : > { %v1893_v49 = vadd.f32 0.5, %v1892_v34  ;;  %v8000_v34 = vld [vmem:[%s9315_s1 + $0x188] sm:$0xff] }
 0x49a   : > { %v1899_v7 = vmul.f32 %v1893_v49, %v7627_v59  ;;  %v8018_v49 = vld [vmem:[%s9315_s1 + $0x178] sm:$0xff] }
 0x49c   : > { %v7955_v57 = vadd.f32 %v1900_v47, %v1899_v7  ;;  %v8024_v47 = vld [vmem:[%s9315_s1 + $0x148] sm:$0xff] }
 0x49d   : > { %v2982_v53 = vpop.eup %2981 }
 0x49e   : > { %2983 = vtanh.f32 %v7955_v57  ;;  %v1897_v55 = vmul.f32 0.5, %v2982_v53 }
 0x49f   : > { %2985 = vtanh.f32 %v1997_v23 }
 0x4a0   : > { %v1898_v48 = vadd.f32 0.5, %v1897_v55  ;;  %v8037_v55 = vld [vmem:[%s9315_s1 + $0x128] sm:$0xff] }
 0x4a2   : > { %v1926_v9 = vpop.f32.mrf.mxu0 }
 0x4a3   : > { %v1989_v30 = vadd.f32 %v2845_v50, %v1926_v9  ;;  %v8043_v50 = vld [vmem:[%s9315_s1 + $0x138] sm:$0xff] }
 0x4a4   : > { %v2984_v21 = vpop.eup %2983 }
 0x4a5   : > { %v1993_v20 = vmul.f32 0.5, %v1989_v30  ;;  %v1903_v59 = vmul.f32 %v2984_v21, %v1898_v48  ;;  %v2986_v8 = vpop.eup %2985  ;;  %v8057_v30 = vld [vmem:[%s9315_s1 + $0x118] sm:$0xff] }
 0x4a6   : > { %v1999_v19 = vmul.f32 0.5, %v2986_v8  ;;  %v8094_v8 = vld [vmem:[%s9315_s1 + $0xb8] sm:$0xff] }
 0x4a7   : > { %2987 = vtanh.f32 %v1993_v20  ;;  %2047 = vmatmul.f32.vlgmr.msra.gmra.mxu1 %v1903_v59  ;;  %2087 = vmatmul.f32.vlgmr.msra.gmra.mxu3 %v1903_v59  ;;  %v8076_v20 = vld [vmem:[%s9315_s1 + $0xc8] sm:$0xff] }
 0x4a8   : > { %2214 = vmatpush.msra.mxu1 %v7964_v11  ;;  %2254 = vmatpush.msra.mxu3 %v7970_v15  ;;  %v1966_v40 = vpop.f32.mrf.mxu2  ;;  %v2000_v42 = vadd.f32 0.5, %v1999_v19  ;;  %v8102_v19 = vld [vmem:[%s9315_s1 + $0x88] sm:$0xff] }
 0x4a9   : > { %v1991_v14 = vadd.f32 %v2847_v5, %v1966_v40  ;;  %v8088_v5 = vld [vmem:[%s9315_s1 + $0xa8] sm:$0xff] }
 0x4aa   : > { %2215 = vmatpush.msra.mxu1 %v7976_v41  ;;  %2255 = vmatpush.msra.mxu3 %v7982_v18  ;;  %v2006_v53 = vmul.f32 %v2000_v42, %v7648_v12  ;;  %v8051_v12 = vld [vmem:[%s9315_s1 + $0x108] sm:$0xff] }
 0x4ab   : > { %2989 = vtanh.f32 %v1991_v14  ;;  %v8128_v42 = vld [vmem:[%s9315_s1 + $0x68] sm:$0xff] }
 0x4ac   : > { %2216 = vmatpush.msra.mxu1 %v7988_v25  ;;  %2256 = vmatpush.msra.mxu3 %v7994_v0  ;;  %2991 = vtanh.f32 %v2002_v4  ;;  %v8108_v4 = vld [vmem:[%s9315_s1 + $0x98] sm:$0xff] }
 0x4ad   : > { %v2988_v26 = vpop.eup %2987 }
 0x4ae   : > { %v1995_v28 = vmul.f32 0.5, %v2988_v26  ;;  %2217 = vmatpush.msra.mxu1 %v8000_v34  ;;  %2257 = vmatpush.msra.mxu3 %v8006_v22  ;;  %v8116_v26 = vld [vmem:[%s9315_s1 + $0x1e0] sm:$0xff] }
 0x4af   : > { %2127 = vmatmul.f32.vlgmr.msrb.gmra.mxu1 %v1903_v59  ;;  %2167 = vmatmul.f32.vlgmr.msrb.gmra.mxu3 %v1903_v59  ;;  %v8082_v59 = vld [vmem:[%s9315_s1 + $0xd8] sm:$0xff] }
 0x4b0   : > { %v1996_v13 = vadd.f32 0.5, %v1995_v28  ;;  %2218 = vmatpush.msra.mxu1 %v8012_v45  ;;  %2258 = vmatpush.msra.mxu3 %v8018_v49  ;;  %v8122_v28 = vld [vmem:[%s9315_s1 + $0x1f0] sm:$0xff] }
 0x4b1   : > { %v2990_v7 = vpop.eup %2989 }
 0x4b2   : > { %2219 = vmatpush.msra.mxu1 %v8024_v47  ;;  %2259 = vmatpush.msra.mxu3 %v8030_v63  ;;  %v2007_v23 = vmul.f32 %v2990_v7, %v1996_v13  ;;  %v2992_v9 = vpop.eup %2991  ;;  %v8134_v13 = vld [vmem:[%s9315_s1 + $0x78] sm:$0xff]  ;;  %v8140_v7 = vld [vmem:[%s9315_s1 + $0x1c0] sm:$0xff] }
 0x4b3   : > { %v2004_v21 = vmul.f32 0.5, %v2992_v9  ;;  %v8158_v9 = vld [vmem:[%s9315_s1 + $0x58] sm:$0xff] }
 0x4b4   : > { %2220 = vmatpush.msra.mxu1 %v8037_v55  ;;  %2260 = vmatpush.msra.mxu3 %v8043_v50  ;;  %v8046_v48 = vadd.f32 %v2007_v23, %v2006_v53  ;;  %v8146_v53 = vld [vmem:[%s9315_s1 + $0x1d0] sm:$0xff]  ;;  %v8152_v23 = vld [vmem:[%s9315_s1 + $0x48] sm:$0xff] }
 0x4b5   : > { %v2005_v33 = vadd.f32 0.5, %v2004_v21  ;;  %10557 = vst [vmem:[#allocation53_spill] sm:$0xff] %v8146_v53  ;;  %v8164_v21 = vld [vmem:[%s9315_s1 + $0x1a0] sm:$0xff] }
 0x4b6   : > { %2221 = vmatpush.msra.mxu1 %v8051_v12  ;;  %2261 = vmatpush.msra.mxu3 %v8057_v30  ;;  %2993 = vtanh.f32 %v8046_v48  ;;  %10558 = vst [vmem:[#allocation56_spill] sm:$0xff] %v8164_v21 }
 0x4b8   : > { %2222 = vmatpush.msra.mxu1 %v8064_v51  ;;  %2262 = vmatpush.msra.mxu3 %v8070_v16 }
 0x4ba   : > { %2223 = vmatpush.msra.mxu1 %v8076_v20  ;;  %2263 = vmatpush.msra.mxu3 %v8082_v59 }
 0x4bc   : > { %2224 = vmatpush.msra.mxu1 %v8088_v5  ;;  %2264 = vmatpush.msra.mxu3 %v8094_v8  ;;  %v2994_v40 = vpop.eup %2993 }
 0x4bd   : > { %v8097_v14 = vmul.f32 %v2994_v40, %v2005_v33  ;;  %v8170_v33 = vld [vmem:[%s9315_s1 + $0x1b0] sm:$0xff]  ;;  %v8176_v40 = vld [vmem:[%s9315_s1 + $0x28] sm:$0xff] }
 0x4be   : > { %2225 = vmatpush.msra.mxu1 %v8102_v19  ;;  %2265 = vmatpush.msra.mxu3 %v8108_v4  ;;  %10559 = vst [vmem:[#allocation57_spill] sm:$0xff] %v8170_v33 }
 0x4bf   : > { %2027 = vmatmul.f32.vlgmr.msra.gmra.mxu0 %v8097_v14  ;;  %2067 = vmatmul.f32.vlgmr.msra.gmra.mxu2 %v8097_v14  ;;  %10560 = vst [vmem:[#allocation60_spill] sm:$0xff] %v8176_v40 }
 0x4c0   : > { %2194 = vmatpush.msra.mxu0 %v8116_v26  ;;  %2234 = vmatpush.msra.mxu2 %v8122_v28 }
 0x4c1   : > { %2226 = vmatpush.msra.mxu1 %v8128_v42  ;;  %2266 = vmatpush.msra.mxu3 %v8134_v13 }
 0x4c2   : > { %2195 = vmatpush.msra.mxu0 %v8140_v7  ;;  %2235 = vmatpush.msra.mxu2 %v8146_v53  ;;  %v8182_v53 = vld [vmem:[%s9315_s1 + $0x38] sm:$0xff] }
 0x4c3   : > { %2227 = vmatpush.msra.mxu1 %v8152_v23  ;;  %2267 = vmatpush.msra.mxu3 %v8158_v9  ;;  %10561 = vst [vmem:[#allocation61_spill] sm:$0xff] %v8182_v53 }
 0x4c4   : > { %2196 = vmatpush.msra.mxu0 %v8164_v21  ;;  %2236 = vmatpush.msra.mxu2 %v8170_v33  ;;  %v8188_v21 = vld [vmem:[%s9315_s1 + $0x180] sm:$0xff]  ;;  %v8194_v33 = vld [vmem:[%s9315_s1 + $0x190] sm:$0xff] }
 0x4c5   : > { %2228 = vmatpush.msra.mxu1 %v8176_v40  ;;  %2268 = vmatpush.msra.mxu3 %v8182_v53  ;;  %10562 = vst [vmem:[#allocation64_spill] sm:$0xff] %v8188_v21  ;;  %v8200_v40 = vld [vmem:[%s9315_s1 + $0x8] sm:$0xff]  ;;  %v8206_v53 = vld [vmem:[%s9315_s1 + $0x18] sm:$0xff] }
 0x4c6   : > { %2197 = vmatpush.msra.mxu0 %v8188_v21  ;;  %10563 = vst [vmem:[#allocation65_spill] sm:$0xff] %v8194_v33  ;;  %2237 = vmatpush.msra.mxu2 %v8194_v33  ;;  %v8214_v33 = vld [vmem:[%s9315_s1 + $0x160] sm:$0xff]  ;;  %v8221_v21 = vld [vmem:[%s9315_s1 + $0x170] sm:$0xff] }
 0x4c7   : > { %10564 = vst [vmem:[#allocation68_spill] sm:$0xff] %v8200_v40  ;;  %2229 = vmatpush.msra.mxu1 %v8200_v40  ;;  %2269 = vmatpush.msra.mxu3 %v8206_v53  ;;  %v8246_v40 = vld [vmem:[%s9316_s2 + $0x3e8] sm:$0xff] }
 0x4c8   : > { %10565 = vst [vmem:[#allocation69_spill] sm:$0xff] %v8206_v53  ;;  %2107 = vmatmul.f32.vlgmr.msrb.gmra.mxu0 %v8097_v14  ;;  %2147 = vmatmul.f32.vlgmr.msrb.gmra.mxu2 %v8097_v14  ;;  %v8228_v53 = vld [vmem:[%s9315_s1 + $0x140] sm:$0xff] }
 0x4c9   : > { %10566 = vst [vmem:[#allocation76_spill] sm:$0xff] %v8214_v33  ;;  %2198 = vmatpush.msra.mxu0 %v8214_v33  ;;  %2230 = vmatmul.f32.vlgmr.msra.gmra.mxu1 %v8097_v14  ;;  %v8234_v33 = vld [vmem:[%s9316_s2 + $0x3e0] sm:$0xff] }
 0x4ca   : > { %10567 = vst [vmem:[#allocation3_spill] sm:$0xff] %v8221_v21  ;;  %2238 = vmatpush.msra.mxu2 %v8221_v21  ;;  %2270 = vmatmul.f32.vlgmr.msra.gmra.mxu3 %v8097_v14  ;;  %v8240_v21 = vld [vmem:[%s9315_s1 + $0x150] sm:$0xff] }
 0x4cb   : > { %10568 = vst [vmem:[#allocation4_spill] sm:$0xff] %v8228_v53  ;;  %2199 = vmatpush.msra.mxu0 %v8228_v53  ;;  %2316 = vmatpush.msrb.mxu1 %v8234_v33  ;;  %v8252_v53 = vld [vmem:[%s9315_s1 + $0x120] sm:$0xff] }
 0x4cc   : > { %10569 = vst [vmem:[#allocation5_spill] sm:$0xff] %v8234_v33  ;;  %2239 = vmatpush.msra.mxu2 %v8240_v21  ;;  %2356 = vmatpush.msrb.mxu3 %v8246_v40  ;;  %v8258_v33 = vld [vmem:[%s9316_s2 + $0x3c0] sm:$0xff] }
 0x4cd   : > { %10570 = vst [vmem:[#allocation71_spill] sm:$0xff] %v8240_v21  ;;  %2200 = vmatpush.msra.mxu0 %v8252_v53  ;;  %2317 = vmatpush.msrb.mxu1 %v8258_v33  ;;  %v8264_v21 = vld [vmem:[%s9315_s1 + $0x130] sm:$0xff] }
 0x4ce   : > { %10571 = vst [vmem:[#allocation6_spill] sm:$0xff] %v8246_v40  ;;  %2240 = vmatpush.msra.mxu2 %v8264_v21  ;;  %v8270_v40 = vld [vmem:[%s9316_s2 + $0x3c8] sm:$0xff] }
 0x4cf   : > { %10572 = vst [vmem:[#allocation7_spill] sm:$0xff] %v8252_v53  ;;  %2357 = vmatpush.msrb.mxu3 %v8270_v40  ;;  %v8276_v53 = vld [vmem:[%s9315_s1 + $0x100] sm:$0xff] }
 0x4d0   : > { %10573 = vst [vmem:[#allocation74_spill] sm:$0xff] %v8258_v33  ;;  %2201 = vmatpush.msra.mxu0 %v8276_v53  ;;  %v8282_v33 = vld [vmem:[%s9316_s2 + $0x3a0] sm:$0xff] }
 0x4d1   : > { %10574 = vst [vmem:[#allocation8_spill] sm:$0xff] %v8264_v21  ;;  %2318 = vmatpush.msrb.mxu1 %v8282_v33  ;;  %v8288_v21 = vld [vmem:[%s9315_s1 + $0x110] sm:$0xff] }
 0x4d2   : > { %10575 = vst [vmem:[#allocation80_spill] sm:$0xff] %v8270_v40  ;;  %2241 = vmatpush.msra.mxu2 %v8288_v21  ;;  %v8294_v40 = vld [vmem:[%s9316_s2 + $0x3a8] sm:$0xff] }
 0x4d3   : > { %10576 = vst [vmem:[#allocation9_spill] sm:$0xff] %v8276_v53  ;;  %2358 = vmatpush.msrb.mxu3 %v8294_v40  ;;  %v8300_v53 = vld [vmem:[%s9315_s1 + $0xe0] sm:$0xff] }
 0x4d4   : > { %10577 = vst [vmem:[#allocation78_spill] sm:$0xff] %v8282_v33  ;;  %2202 = vmatpush.msra.mxu0 %v8300_v53  ;;  %v8306_v33 = vld [vmem:[%s9316_s2 + $0x380] sm:$0xff] }
 0x4d5   : > { %10578 = vst [vmem:[#allocation10_spill] sm:$0xff] %v8288_v21  ;;  %2319 = vmatpush.msrb.mxu1 %v8306_v33  ;;  %v8312_v21 = vld [vmem:[%s9315_s1 + $0xf0] sm:$0xff] }
 0x4d6   : > { %10579 = vst [vmem:[#allocation11_spill] sm:$0xff] %v8294_v40  ;;  %2242 = vmatpush.msra.mxu2 %v8312_v21  ;;  %v8318_v40 = vld [vmem:[%s9316_s2 + $0x388] sm:$0xff] }
 0x4d7   : > { %10580 = vst [vmem:[#allocation12_spill] sm:$0xff] %v8300_v53  ;;  %2359 = vmatpush.msrb.mxu3 %v8318_v40  ;;  %v8324_v53 = vld [vmem:[%s9315_s1 + $0xc0] sm:$0xff] }
 0x4d8   : > { %10581 = vst [vmem:[#allocation13_spill] sm:$0xff] %v8306_v33  ;;  %2203 = vmatpush.msra.mxu0 %v8324_v53  ;;  %v8330_v33 = vld [vmem:[%s9316_s2 + $0x360] sm:$0xff] }
 0x4d9   : > { %10582 = vst [vmem:[#allocation81_spill] sm:$0xff] %v8312_v21  ;;  %2320 = vmatpush.msrb.mxu1 %v8330_v33  ;;  %v8336_v21 = vld [vmem:[%s9315_s1 + $0xd0] sm:$0xff] }
 0x4da   : > { %10583 = vst [vmem:[#allocation14_spill] sm:$0xff] %v8318_v40  ;;  %2243 = vmatpush.msra.mxu2 %v8336_v21  ;;  %v8342_v40 = vld [vmem:[%s9316_s2 + $0x368] sm:$0xff] }
 0x4db   : > { %10584 = vst [vmem:[#allocation15_spill] sm:$0xff] %v8324_v53  ;;  %2360 = vmatpush.msrb.mxu3 %v8342_v40  ;;  %v8348_v53 = vld [vmem:[%s9315_s1 + $0xa0] sm:$0xff] }
 0x4dc   : > { %10585 = vst [vmem:[#allocation83_spill] sm:$0xff] %v8330_v33  ;;  %2204 = vmatpush.msra.mxu0 %v8348_v53  ;;  %v8354_v33 = vld [vmem:[%s9316_s2 + $0x340] sm:$0xff] }
 0x4dd   : > { %10586 = vst [vmem:[#allocation16_spill] sm:$0xff] %v8336_v21  ;;  %2321 = vmatpush.msrb.mxu1 %v8354_v33  ;;  %v8360_v21 = vld [vmem:[%s9315_s1 + $0xb0] sm:$0xff] }
 0x4de   : > { %10587 = vst [vmem:[#allocation86_spill] sm:$0xff] %v8342_v40  ;;  %2244 = vmatpush.msra.mxu2 %v8360_v21  ;;  %v8366_v40 = vld [vmem:[%s9316_s2 + $0x348] sm:$0xff] }
 0x4df   : > { %10588 = vst [vmem:[#allocation17_spill] sm:$0xff] %v8348_v53  ;;  %2361 = vmatpush.msrb.mxu3 %v8366_v40  ;;  %v8372_v53 = vld [vmem:[%s9315_s1 + $0x80] sm:$0xff] }
 0x4e0   : > { %10589 = vst [vmem:[#allocation85_spill] sm:$0xff] %v8354_v33  ;;  %2205 = vmatpush.msra.mxu0 %v8372_v53  ;;  %v8378_v33 = vld [vmem:[%s9316_s2 + $0x320] sm:$0xff] }
 0x4e1   : > { %10590 = vst [vmem:[#allocation18_spill] sm:$0xff] %v8360_v21  ;;  %2322 = vmatpush.msrb.mxu1 %v8378_v33  ;;  %v8384_v21 = vld [vmem:[%s9315_s1 + $0x90] sm:$0xff] }
 0x4e2   : > { %10591 = vst [vmem:[#allocation88_spill] sm:$0xff] %v8366_v40  ;;  %2245 = vmatpush.msra.mxu2 %v8384_v21  ;;  %v8390_v40 = vld [vmem:[%s9316_s2 + $0x328] sm:$0xff] }
 0x4e3   : > { %10592 = vst [vmem:[#allocation19_spill] sm:$0xff] %v8372_v53  ;;  %2362 = vmatpush.msrb.mxu3 %v8390_v40  ;;  %v8396_v53 = vld [vmem:[%s9315_s1 + $0x60] sm:$0xff] }
 0x4e4   : > { %10593 = vst [vmem:[#allocation87_spill] sm:$0xff] %v8378_v33  ;;  %2206 = vmatpush.msra.mxu0 %v8396_v53  ;;  %v8402_v33 = vld [vmem:[%s9316_s2 + $0x300] sm:$0xff] }
 0x4e5   : > { %10594 = vst [vmem:[#allocation20_spill] sm:$0xff] %v8384_v21  ;;  %2323 = vmatpush.msrb.mxu1 %v8402_v33  ;;  %v8408_v21 = vld [vmem:[%s9315_s1 + $0x70] sm:$0xff] }
 0x4e6   : > { %10595 = vst [vmem:[#allocation90_spill] sm:$0xff] %v8390_v40  ;;  %2246 = vmatpush.msra.mxu2 %v8408_v21  ;;  %v8414_v40 = vld [vmem:[%s9316_s2 + $0x308] sm:$0xff] }
 0x4e7   : > { %10596 = vst [vmem:[#allocation21_spill] sm:$0xff] %v8396_v53  ;;  %2363 = vmatpush.msrb.mxu3 %v8414_v40  ;;  %v8420_v53 = vld [vmem:[%s9315_s1 + $0x40] sm:$0xff] }
 0x4e8   : > { %10597 = vst [vmem:[#allocation89_spill] sm:$0xff] %v8402_v33  ;;  %2207 = vmatpush.msra.mxu0 %v8420_v53  ;;  %v8426_v33 = vld [vmem:[%s9316_s2 + $0x2e0] sm:$0xff] }
 0x4e9   : > { %10598 = vst [vmem:[#allocation22_spill] sm:$0xff] %v8408_v21  ;;  %2324 = vmatpush.msrb.mxu1 %v8426_v33  ;;  %v8432_v21 = vld [vmem:[%s9315_s1 + $0x50] sm:$0xff] }
 0x4ea   : > { %10599 = vst [vmem:[#allocation92_spill] sm:$0xff] %v8414_v40  ;;  %2247 = vmatpush.msra.mxu2 %v8432_v21  ;;  %v8438_v40 = vld [vmem:[%s9316_s2 + $0x2e8] sm:$0xff] }
 0x4eb   : > { %10600 = vst [vmem:[#allocation23_spill] sm:$0xff] %v8420_v53  ;;  %2364 = vmatpush.msrb.mxu3 %v8438_v40  ;;  %v8444_v53 = vld [vmem:[%s9315_s1 + $0x20] sm:$0xff] }
 0x4ec   : > { %10601 = vst [vmem:[#allocation91_spill] sm:$0xff] %v8426_v33  ;;  %2208 = vmatpush.msra.mxu0 %v8444_v53  ;;  %v8450_v33 = vld [vmem:[%s9316_s2 + $0x2c0] sm:$0xff] }
 0x4ed   : > { %10602 = vst [vmem:[#allocation24_spill] sm:$0xff] %v8432_v21  ;;  %2325 = vmatpush.msrb.mxu1 %v8450_v33  ;;  %v8456_v21 = vld [vmem:[%s9315_s1 + $0x30] sm:$0xff] }
 0x4ee   : > { %10603 = vst [vmem:[#allocation94_spill] sm:$0xff] %v8438_v40  ;;  %2248 = vmatpush.msra.mxu2 %v8456_v21  ;;  %v8462_v40 = vld [vmem:[%s9316_s2 + $0x2c8] sm:$0xff] }
 0x4ef   : > { %10604 = vst [vmem:[#allocation25_spill] sm:$0xff] %v8444_v53  ;;  %2365 = vmatpush.msrb.mxu3 %v8462_v40  ;;  %v8468_v53 = vld [vmem:[%s9315_s1] sm:$0xff] }
 0x4f0   : > { %10605 = vst [vmem:[#allocation93_spill] sm:$0xff] %v8450_v33  ;;  %2209 = vmatpush.msra.mxu0 %v8468_v53  ;;  %v8474_v33 = vld [vmem:[%s9316_s2 + $0x2a0] sm:$0xff] }
 0x4f1   : > { %10606 = vst [vmem:[#allocation26_spill] sm:$0xff] %v8456_v21  ;;  %2326 = vmatpush.msrb.mxu1 %v8474_v33  ;;  %v8480_v21 = vld [vmem:[%s9315_s1 + $0x10] sm:$0xff]  ;;  %2210 = vmatmul.f32.vlgmr.msra.gmra.mxu0 %v8097_v14 }
 0x4f2   : > { %10607 = vst [vmem:[#allocation96_spill] sm:$0xff] %v8468_v53  ;;  %2249 = vmatpush.msra.mxu2 %v8480_v21  ;;  %v8488_v53 = vld [vmem:[%s9316_s2 + $0x2a8] sm:$0xff] }
 0x4f3   : > { %10608 = vst [vmem:[#allocation27_spill] sm:$0xff] %v8474_v33  ;;  %2250 = vmatmul.f32.vlgmr.msra.gmra.mxu2 %v8097_v14  ;;  %2366 = vmatpush.msrb.mxu3 %v8488_v53  ;;  %v8494_v33 = vld [vmem:[%s9316_s2 + $0x280] sm:$0xff]  ;;  %v8506_v14 = vld [vmem:[%s9316_s2 + $0x288] sm:$0xff] }
 0x4f4   : > { %10609 = vst [vmem:[#allocation95_spill] sm:$0xff] %v8480_v21  ;;  %2327 = vmatpush.msrb.mxu1 %v8494_v33  ;;  %v8500_v21 = vld [vmem:[%s9316_s2 + $0x1e0] sm:$0xff] }
 0x4f5   : > { %10610 = vst [vmem:[#allocation28_spill] sm:$0xff] %v8488_v53  ;;  %2296 = vmatpush.msrb.mxu0 %v8500_v21  ;;  %2367 = vmatpush.msrb.mxu3 %v8506_v14  ;;  %v8512_v53 = vld [vmem:[%s9316_s2 + $0x1e8] sm:$0xff] }
 0x4f6   : > { %10611 = vst [vmem:[#allocation98_spill] sm:$0xff] %v8494_v33  ;;  %2336 = vmatpush.msrb.mxu2 %v8512_v53  ;;  %v8518_v33 = vld [vmem:[%s9316_s2 + $0x260] sm:$0xff] }
 0x4f7   : > { %10612 = vst [vmem:[#allocation29_spill] sm:$0xff] %v8500_v21  ;;  %2328 = vmatpush.msrb.mxu1 %v8518_v33  ;;  %v8524_v21 = vld [vmem:[%s9316_s2 + $0x1c0] sm:$0xff] }
 0x4f8   : > { %10613 = vst [vmem:[#allocation97_spill] sm:$0xff] %v8506_v14  ;;  %2297 = vmatpush.msrb.mxu0 %v8524_v21  ;;  %v8530_v14 = vld [vmem:[%s9316_s2 + $0x268] sm:$0xff] }
 0x4f9   : > { %10614 = vst [vmem:[#allocation30_spill] sm:$0xff] %v8512_v53  ;;  %2368 = vmatpush.msrb.mxu3 %v8530_v14  ;;  %v8536_v53 = vld [vmem:[%s9316_s2 + $0x1c8] sm:$0xff] }
 0x4fa   : > { %10615 = vst [vmem:[#allocation100_spill] sm:$0xff] %v8518_v33  ;;  %2337 = vmatpush.msrb.mxu2 %v8536_v53  ;;  %v8542_v33 = vld [vmem:[%s9316_s2 + $0x240] sm:$0xff] }
 0x4fb   : > { %10616 = vst [vmem:[#allocation31_spill] sm:$0xff] %v8524_v21  ;;  %2329 = vmatpush.msrb.mxu1 %v8542_v33  ;;  %v8548_v21 = vld [vmem:[%s9316_s2 + $0x1a0] sm:$0xff] }
 0x4fc   : > { %10617 = vst [vmem:[#allocation99_spill] sm:$0xff] %v8530_v14  ;;  %2298 = vmatpush.msrb.mxu0 %v8548_v21  ;;  %v8554_v14 = vld [vmem:[%s9316_s2 + $0x248] sm:$0xff] }
 0x4fd   : > { %10618 = vst [vmem:[#allocation32_spill] sm:$0xff] %v8536_v53  ;;  %2369 = vmatpush.msrb.mxu3 %v8554_v14  ;;  %v8560_v53 = vld [vmem:[%s9316_s2 + $0x1a8] sm:$0xff] }
 0x4fe   : > { %10619 = vst [vmem:[#allocation33_spill] sm:$0xff] %v8542_v33  ;;  %2338 = vmatpush.msrb.mxu2 %v8560_v53  ;;  %v8566_v33 = vld [vmem:[%s9316_s2 + $0x220] sm:$0xff] }
 0x4ff   : > { %10620 = vst [vmem:[#allocation101_spill] sm:$0xff] %v8548_v21  ;;  %2330 = vmatpush.msrb.mxu1 %v8566_v33  ;;  %v8572_v21 = vld [vmem:[%s9316_s2 + $0x180] sm:$0xff] }
 0x500   : > { %10621 = vst [vmem:[#allocation34_spill] sm:$0xff] %v8554_v14  ;;  %2299 = vmatpush.msrb.mxu0 %v8572_v21  ;;  %v8578_v14 = vld [vmem:[%s9316_s2 + $0x228] sm:$0xff] }
 0x501   : > { %10622 = vst [vmem:[#allocation35_spill] sm:$0xff] %v8560_v53  ;;  %2370 = vmatpush.msrb.mxu3 %v8578_v14  ;;  %v8584_v53 = vld [vmem:[%s9316_s2 + $0x188] sm:$0xff] }
 0x502   : > { %10623 = vst [vmem:[#allocation36_spill] sm:$0xff] %v8566_v33  ;;  %2339 = vmatpush.msrb.mxu2 %v8584_v53  ;;  %v8590_v33 = vld [vmem:[%s9316_s2 + $0x200] sm:$0xff] }
 0x503   : > { %10624 = vst [vmem:[#allocation37_spill] sm:$0xff] %v8572_v21  ;;  %2331 = vmatpush.msrb.mxu1 %v8590_v33  ;;  %v8596_v21 = vld [vmem:[%s9316_s2 + $0x160] sm:$0xff] }
 0x504   : > { %10625 = vst [vmem:[#allocation38_spill] sm:$0xff] %v8578_v14  ;;  %2300 = vmatpush.msrb.mxu0 %v8596_v21  ;;  %v8602_v14 = vld [vmem:[%s9316_s2 + $0x208] sm:$0xff] }
 0x505   : > { %10626 = vst [vmem:[#allocation39_spill] sm:$0xff] %v8584_v53  ;;  %2371 = vmatpush.msrb.mxu3 %v8602_v14  ;;  %v8608_v53 = vld [vmem:[%s9316_s2 + $0x168] sm:$0xff] }
 0x506   : > { %10627 = vst [vmem:[#allocation40_spill] sm:$0xff] %v8590_v33  ;;  %2340 = vmatpush.msrb.mxu2 %v8608_v53  ;;  %v8614_v33 = vld [vmem:[%s9316_s2 + $0x3f0] sm:$0xff] }
 0x507   : > { %10628 = vst [vmem:[#allocation41_spill] sm:$0xff] %v8596_v21  ;;  %2396 = vmatpush.msra.mxu1 %v8614_v33  ;;  %v8620_v21 = vld [vmem:[%s9316_s2 + $0x3f8] sm:$0xff] }
 0x508   : > { %10629 = vst [vmem:[#allocation42_spill] sm:$0xff] %v8602_v14  ;;  %2436 = vmatpush.msra.mxu3 %v8620_v21  ;;  %v8626_v14 = vld [vmem:[%s9316_s2 + $0x140] sm:$0xff] }
 0x509   : > { %10630 = vst [vmem:[#allocation43_spill] sm:$0xff] %v8608_v53  ;;  %2301 = vmatpush.msrb.mxu0 %v8626_v14  ;;  %v8632_v53 = vld [vmem:[%s9316_s2 + $0x148] sm:$0xff] }
 0x50a   : > { %10631 = vst [vmem:[#allocation44_spill] sm:$0xff] %v8614_v33  ;;  %2341 = vmatpush.msrb.mxu2 %v8632_v53  ;;  %v8638_v33 = vld [vmem:[%s9316_s2 + $0x3d0] sm:$0xff] }
 0x50b   : > { %10632 = vst [vmem:[#allocation45_spill] sm:$0xff] %v8620_v21  ;;  %2397 = vmatpush.msra.mxu1 %v8638_v33  ;;  %v8644_v21 = vld [vmem:[%s9316_s2 + $0x3d8] sm:$0xff] }
 0x50c   : > { %10633 = vst [vmem:[#allocation46_spill] sm:$0xff] %v8626_v14  ;;  %2437 = vmatpush.msra.mxu3 %v8644_v21  ;;  %v8650_v14 = vld [vmem:[%s9316_s2 + $0x120] sm:$0xff] }
 0x50d   : > { %10634 = vst [vmem:[#allocation47_spill] sm:$0xff] %v8632_v53  ;;  %2302 = vmatpush.msrb.mxu0 %v8650_v14  ;;  %v8656_v53 = vld [vmem:[%s9316_s2 + $0x128] sm:$0xff] }
 0x50e   : > { %10635 = vst [vmem:[#allocation48_spill] sm:$0xff] %v8638_v33  ;;  %2342 = vmatpush.msrb.mxu2 %v8656_v53  ;;  %v8662_v33 = vld [vmem:[%s9316_s2 + $0x3b0] sm:$0xff] }
 0x50f   : > { %10636 = vst [vmem:[#allocation49_spill] sm:$0xff] %v8644_v21  ;;  %2398 = vmatpush.msra.mxu1 %v8662_v33  ;;  %v8668_v21 = vld [vmem:[%s9316_s2 + $0x3b8] sm:$0xff] }
 0x510   : > { %10637 = vst [vmem:[#allocation50_spill] sm:$0xff] %v8650_v14  ;;  %2438 = vmatpush.msra.mxu3 %v8668_v21  ;;  %v8674_v14 = vld [vmem:[%s9316_s2 + $0x100] sm:$0xff] }
 0x511   : > { %10638 = vst [vmem:[#allocation51_spill] sm:$0xff] %v8656_v53  ;;  %2303 = vmatpush.msrb.mxu0 %v8674_v14  ;;  %v8680_v53 = vld [vmem:[%s9316_s2 + $0x108] sm:$0xff] }
 0x512   : > { %10639 = vst [vmem:[#allocation52_spill] sm:$0xff] %v8662_v33  ;;  %2343 = vmatpush.msrb.mxu2 %v8680_v53  ;;  %v8686_v33 = vld [vmem:[%s9316_s2 + $0x390] sm:$0xff] }
 0x513   : > { %10640 = vst [vmem:[#allocation54_spill] sm:$0xff] %v8668_v21  ;;  %2399 = vmatpush.msra.mxu1 %v8686_v33  ;;  %v8692_v21 = vld [vmem:[%s9316_s2 + $0x398] sm:$0xff] }
 0x514   : > { %10641 = vst [vmem:[#allocation55_spill] sm:$0xff] %v8674_v14  ;;  %2439 = vmatpush.msra.mxu3 %v8692_v21  ;;  %v8698_v14 = vld [vmem:[%s9316_s2 + $0xe0] sm:$0xff] }
 0x515   : > { %10642 = vst [vmem:[#allocation58_spill] sm:$0xff] %v8680_v53  ;;  %2304 = vmatpush.msrb.mxu0 %v8698_v14  ;;  %v8704_v53 = vld [vmem:[%s9316_s2 + $0xe8] sm:$0xff] }
 0x516   : > { %10643 = vst [vmem:[#allocation59_spill] sm:$0xff] %v8686_v33  ;;  %2344 = vmatpush.msrb.mxu2 %v8704_v53  ;;  %v8710_v33 = vld [vmem:[%s9316_s2 + $0x370] sm:$0xff] }
 0x517   : > { %10644 = vst [vmem:[#allocation62_spill] sm:$0xff] %v8692_v21  ;;  %2400 = vmatpush.msra.mxu1 %v8710_v33  ;;  %v8716_v21 = vld [vmem:[%s9316_s2 + $0x378] sm:$0xff] }
 0x518   : > { %10645 = vst [vmem:[#allocation63_spill] sm:$0xff] %v8698_v14  ;;  %2440 = vmatpush.msra.mxu3 %v8716_v21  ;;  %v8722_v14 = vld [vmem:[%s9316_s2 + $0xc0] sm:$0xff] }
 0x519   : > { %10646 = vst [vmem:[#allocation66_spill] sm:$0xff] %v8704_v53  ;;  %2305 = vmatpush.msrb.mxu0 %v8722_v14  ;;  %v8728_v53 = vld [vmem:[%s9316_s2 + $0xc8] sm:$0xff] }
 0x51a   : > { %10647 = vst [vmem:[#allocation67_spill] sm:$0xff] %v8710_v33  ;;  %2345 = vmatpush.msrb.mxu2 %v8728_v53  ;;  %v8734_v33 = vld [vmem:[%s9316_s2 + $0x350] sm:$0xff] }
 0x51b   : > { %10648 = vst [vmem:[#allocation70_spill] sm:$0xff] %v8716_v21  ;;  %2401 = vmatpush.msra.mxu1 %v8734_v33  ;;  %v8740_v21 = vld [vmem:[%s9316_s2 + $0x358] sm:$0xff] }
 0x51c   : > { %10649 = vst [vmem:[#allocation72_spill] sm:$0xff] %v8722_v14  ;;  %2441 = vmatpush.msra.mxu3 %v8740_v21  ;;  %v8746_v14 = vld [vmem:[%s9316_s2 + $0xa0] sm:$0xff] }
 0x51d   : > { %10650 = vst [vmem:[#allocation73_spill] sm:$0xff] %v8728_v53  ;;  %2306 = vmatpush.msrb.mxu0 %v8746_v14  ;;  %v8752_v53 = vld [vmem:[%s9316_s2 + $0xa8] sm:$0xff] }
 0x51e   : > { %10651 = vst [vmem:[#allocation75_spill] sm:$0xff] %v8734_v33  ;;  %2346 = vmatpush.msrb.mxu2 %v8752_v53  ;;  %v8758_v33 = vld [vmem:[%s9316_s2 + $0x330] sm:$0xff] }
 0x51f   : > { %10652 = vst [vmem:[#allocation77_spill] sm:$0xff] %v8740_v21  ;;  %2402 = vmatpush.msra.mxu1 %v8758_v33  ;;  %v8764_v21 = vld [vmem:[%s9316_s2 + $0x338] sm:$0xff] }
 0x520   : > { %10653 = vst [vmem:[#allocation79_spill] sm:$0xff] %v8746_v14  ;;  %2442 = vmatpush.msra.mxu3 %v8764_v21  ;;  %v8770_v14 = vld [vmem:[%s9316_s2 + $0x80] sm:$0xff] }
 0x521   : > { %10654 = vst [vmem:[#allocation82_spill] sm:$0xff] %v8752_v53  ;;  %2307 = vmatpush.msrb.mxu0 %v8770_v14  ;;  %v8776_v53 = vld [vmem:[%s9316_s2 + $0x88] sm:$0xff] }
 0x522   : > { %10655 = vst [vmem:[#allocation84_spill] sm:$0xff] %v8758_v33  ;;  %2347 = vmatpush.msrb.mxu2 %v8776_v53  ;;  %v8782_v33 = vld [vmem:[%s9316_s2 + $0x310] sm:$0xff] }
 0x523   : > { %10656 = vst [vmem:[#allocation102_spill] sm:$0xff] %v8764_v21  ;;  %2403 = vmatpush.msra.mxu1 %v8782_v33  ;;  %v8788_v21 = vld [vmem:[%s9316_s2 + $0x318] sm:$0xff] }
 0x524   : > { %10657 = vst [vmem:[#allocation103_spill] sm:$0xff] %v8770_v14  ;;  %2443 = vmatpush.msra.mxu3 %v8788_v21  ;;  %v8794_v14 = vld [vmem:[%s9316_s2 + $0x60] sm:$0xff] }
 0x525   : > { %10658 = vst [vmem:[#allocation104_spill] sm:$0xff] %v8776_v53  ;;  %2308 = vmatpush.msrb.mxu0 %v8794_v14  ;;  %v8800_v53 = vld [vmem:[%s9316_s2 + $0x68] sm:$0xff] }
 0x526   : > { %10659 = vst [vmem:[#allocation105_spill] sm:$0xff] %v8782_v33  ;;  %2348 = vmatpush.msrb.mxu2 %v8800_v53  ;;  %v8806_v33 = vld [vmem:[%s9316_s2 + $0x2f0] sm:$0xff] }
 0x527   : > { %10660 = vst [vmem:[#allocation106_spill] sm:$0xff] %v8788_v21  ;;  %2404 = vmatpush.msra.mxu1 %v8806_v33  ;;  %v8812_v21 = vld [vmem:[%s9316_s2 + $0x2f8] sm:$0xff] }
 0x528   : > { %10661 = vst [vmem:[#allocation107_spill] sm:$0xff] %v8794_v14  ;;  %2444 = vmatpush.msra.mxu3 %v8812_v21  ;;  %v8818_v14 = vld [vmem:[%s9316_s2 + $0x40] sm:$0xff] }
 0x529   : > { %10662 = vst [vmem:[#allocation108_spill] sm:$0xff] %v8800_v53  ;;  %2309 = vmatpush.msrb.mxu0 %v8818_v14  ;;  %v8824_v53 = vld [vmem:[%s9316_s2 + $0x48] sm:$0xff] }
 0x52a   : > { %10663 = vst [vmem:[#allocation109_spill] sm:$0xff] %v8806_v33  ;;  %2349 = vmatpush.msrb.mxu2 %v8824_v53  ;;  %v8830_v33 = vld [vmem:[%s9316_s2 + $0x2d0] sm:$0xff] }
 0x52b   : > { %10664 = vst [vmem:[#allocation110_spill] sm:$0xff] %v8812_v21  ;;  %2405 = vmatpush.msra.mxu1 %v8830_v33  ;;  %v8836_v21 = vld [vmem:[%s9316_s2 + $0x2d8] sm:$0xff] }
 0x52c   : > { %10665 = vst [vmem:[#allocation111_spill] sm:$0xff] %v8818_v14  ;;  %2445 = vmatpush.msra.mxu3 %v8836_v21  ;;  %v8842_v14 = vld [vmem:[%s9316_s2 + $0x20] sm:$0xff] }
 0x52d   : > { %10666 = vst [vmem:[#allocation112_spill] sm:$0xff] %v8824_v53  ;;  %2310 = vmatpush.msrb.mxu0 %v8842_v14  ;;  %v8848_v53 = vld [vmem:[%s9316_s2 + $0x28] sm:$0xff] }
 0x52e   : > { %10667 = vst [vmem:[#allocation113_spill] sm:$0xff] %v8830_v33  ;;  %2350 = vmatpush.msrb.mxu2 %v8848_v53  ;;  %v8854_v33 = vld [vmem:[%s9316_s2 + $0x2b0] sm:$0xff] }
 0x52f   : > { %10668 = vst [vmem:[#allocation114_spill] sm:$0xff] %v8836_v21  ;;  %2406 = vmatpush.msra.mxu1 %v8854_v33  ;;  %v8860_v21 = vld [vmem:[%s9316_s2 + $0x2b8] sm:$0xff] }
 0x530   : > { %10669 = vst [vmem:[#allocation115_spill] sm:$0xff] %v8842_v14  ;;  %2446 = vmatpush.msra.mxu3 %v8860_v21  ;;  %v8866_v14 = vld [vmem:[%s9316_s2] sm:$0xff] }
 0x531   : > { %10670 = vst [vmem:[#allocation116_spill] sm:$0xff] %v8848_v53  ;;  %2311 = vmatpush.msrb.mxu0 %v8866_v14  ;;  %v8872_v53 = vld [vmem:[%s9316_s2 + $0x8] sm:$0xff] }
 0x532   : > { %10671 = vst [vmem:[#allocation117_spill] sm:$0xff] %v8854_v33  ;;  %2351 = vmatpush.msrb.mxu2 %v8872_v53  ;;  %v8878_v33 = vld [vmem:[%s9316_s2 + $0x290] sm:$0xff] }
 0x533   : > { %10672 = vst [vmem:[#allocation118_spill] sm:$0xff] %v8860_v21  ;;  %2407 = vmatpush.msra.mxu1 %v8878_v33  ;;  %v8884_v21 = vld [vmem:[%s9316_s2 + $0x298] sm:$0xff] }
 0x534   : > { %10673 = vst [vmem:[#allocation119_spill] sm:$0xff] %v8866_v14  ;;  %2447 = vmatpush.msra.mxu3 %v8884_v21  ;;  %v8890_v14 = vld [vmem:[%s9316_s2 + $0x1f0] sm:$0xff] }
 0x535   : > { %10674 = vst [vmem:[#allocation120_spill] sm:$0xff] %v8872_v53  ;;  %2376 = vmatpush.msra.mxu0 %v8890_v14  ;;  %v8896_v53 = vld [vmem:[%s9316_s2 + $0x1f8] sm:$0xff] }
 0x536   : > { %10675 = vst [vmem:[#allocation121_spill] sm:$0xff] %v8878_v33  ;;  %2416 = vmatpush.msra.mxu2 %v8896_v53  ;;  %v8902_v33 = vld [vmem:[%s9316_s2 + $0x270] sm:$0xff] }
 0x537   : > { %10676 = vst [vmem:[#allocation122_spill] sm:$0xff] %v8884_v21  ;;  %2408 = vmatpush.msra.mxu1 %v8902_v33  ;;  %v8908_v21 = vld [vmem:[%s9316_s2 + $0x278] sm:$0xff] }
 0x538   : > { %10677 = vst [vmem:[#allocation123_spill] sm:$0xff] %v8890_v14  ;;  %2448 = vmatpush.msra.mxu3 %v8908_v21  ;;  %v8914_v14 = vld [vmem:[%s9316_s2 + $0x1d0] sm:$0xff] }
 0x539   : > { %10678 = vst [vmem:[#allocation124_spill] sm:$0xff] %v8896_v53  ;;  %2377 = vmatpush.msra.mxu0 %v8914_v14  ;;  %v8920_v53 = vld [vmem:[%s9316_s2 + $0x1d8] sm:$0xff] }
 0x53a   : > { %10679 = vst [vmem:[#allocation125_spill] sm:$0xff] %v8902_v33  ;;  %2417 = vmatpush.msra.mxu2 %v8920_v53  ;;  %v8926_v33 = vld [vmem:[%s9316_s2 + $0x250] sm:$0xff] }
 0x53b   : > { %10680 = vst [vmem:[#allocation126_spill] sm:$0xff] %v8908_v21  ;;  %2409 = vmatpush.msra.mxu1 %v8926_v33  ;;  %v8932_v21 = vld [vmem:[%s9316_s2 + $0x258] sm:$0xff] }
 0x53c   : > { %10681 = vst [vmem:[#allocation127_spill] sm:$0xff] %v8914_v14  ;;  %2449 = vmatpush.msra.mxu3 %v8932_v21  ;;  %v8938_v14 = vld [vmem:[%s9316_s2 + $0x1b0] sm:$0xff] }
 0x53d   : > { %10682 = vst [vmem:[#allocation128_spill] sm:$0xff] %v8920_v53  ;;  %2378 = vmatpush.msra.mxu0 %v8938_v14  ;;  %v8944_v53 = vld [vmem:[%s9316_s2 + $0x1b8] sm:$0xff] }
 0x53e   : > { %10683 = vst [vmem:[#allocation129_spill] sm:$0xff] %v8926_v33  ;;  %2418 = vmatpush.msra.mxu2 %v8944_v53  ;;  %v8950_v33 = vld [vmem:[%s9316_s2 + $0x230] sm:$0xff] }
 0x53f   : > { %10684 = vst [vmem:[#allocation130_spill] sm:$0xff] %v8932_v21  ;;  %2410 = vmatpush.msra.mxu1 %v8950_v33  ;;  %v8956_v21 = vld [vmem:[%s9316_s2 + $0x238] sm:$0xff] }
 0x540   : > { %10685 = vst [vmem:[#allocation131_spill] sm:$0xff] %v8938_v14  ;;  %2450 = vmatpush.msra.mxu3 %v8956_v21  ;;  %v8962_v14 = vld [vmem:[%s9316_s2 + $0x190] sm:$0xff] }
 0x541   : > { %10686 = vst [vmem:[#allocation132_spill] sm:$0xff] %v8944_v53  ;;  %2379 = vmatpush.msra.mxu0 %v8962_v14  ;;  %v8968_v53 = vld [vmem:[%s9316_s2 + $0x198] sm:$0xff] }
 0x542   : > { %10687 = vst [vmem:[#allocation133_spill] sm:$0xff] %v8950_v33  ;;  %2419 = vmatpush.msra.mxu2 %v8968_v53  ;;  %v8974_v33 = vld [vmem:[%s9316_s2 + $0x210] sm:$0xff] }
 0x543   : > { %10688 = vst [vmem:[#allocation134_spill] sm:$0xff] %v8956_v21  ;;  %2411 = vmatpush.msra.mxu1 %v8974_v33  ;;  %v8980_v21 = vld [vmem:[%s9316_s2 + $0x218] sm:$0xff] }
 0x544   : > { %10689 = vst [vmem:[#allocation135_spill] sm:$0xff] %v8962_v14  ;;  %2451 = vmatpush.msra.mxu3 %v8980_v21  ;;  %v8986_v14 = vld [vmem:[%s9316_s2 + $0x170] sm:$0xff] }
 0x545   : > { %10690 = vst [vmem:[#allocation136_spill] sm:$0xff] %v8968_v53  ;;  %2380 = vmatpush.msra.mxu0 %v8986_v14  ;;  %v8992_v53 = vld [vmem:[%s9316_s2 + $0x178] sm:$0xff] }
 0x546   : > { %2420 = vmatpush.msra.mxu2 %v8992_v53 }
 0x547   : > { %2381 = vmatpush.msra.mxu0 %v7820_v52  ;;  %v2028_v52 = vpop.f32.mrf.mxu0 }
 0x548   : > { %2421 = vmatpush.msra.mxu2 %v7826_v54  ;;  %v2048_v54 = vpop.f32.mrf.mxu1 }
 0x549   : > { %2382 = vmatpush.msra.mxu0 %v7832_v35  ;;  %v2029_v35 = vadd.f32 %v2028_v52, %v5150_v36 }
 0x54a   : > { %2422 = vmatpush.msra.mxu2 %v7838_v6 }
 0x54b   : > { %2383 = vmatpush.msra.mxu0 %v7844_v38  ;;  %v2049_v6 = vadd.f32 %v2048_v54, %v2029_v35 }
 0x54c   : > { %2423 = vmatpush.msra.mxu2 %v7850_v44  ;;  %v2068_v44 = vpop.f32.mrf.mxu2 }
 0x54d   : > { %2384 = vmatpush.msra.mxu0 %v7856_v56  ;;  %v2171_v38 = vmul.f32 0.5, %v2049_v6  ;;  %v2088_v56 = vpop.f32.mrf.mxu3 }
 0x54e   : > { %2424 = vmatpush.msra.mxu2 %v7862_v58  ;;  %v2069_v58 = vadd.f32 %v2068_v44, %v5153_v46 }
 0x54f   : > { %2385 = vmatpush.msra.mxu0 %v7868_v60  ;;  %2995 = vtanh.f32 %v2171_v38  ;;  %v2850_v38 = vld [vmem:[%s4992_s9 + $0xc8] sm:$0xff] }
 0x550   : > { %2425 = vmatpush.msra.mxu2 %v7874_v62  ;;  %v2089_v60 = vadd.f32 %v2088_v56, %v2069_v58  ;;  %v2108_v62 = vpop.f32.mrf.mxu0 }
 0x551   : > { %2386 = vmatpush.msra.mxu0 %v7880_v31  ;;  %v2109_v31 = vadd.f32 %v2108_v62, %v5155_v27 }
 0x552   : > { %2426 = vmatpush.msra.mxu2 %v7886_v2  ;;  %v2128_v2 = vpop.f32.mrf.mxu1 }
 0x553   : > { %2387 = vmatpush.msra.mxu0 %v7892_v37  ;;  %v2175_v37 = vmul.f32 0.5, %v2089_v60 }
 0x554   : > { %2427 = vmatpush.msra.mxu2 %v7898_v1  ;;  %v2129_v1 = vadd.f32 %v2128_v2, %v2109_v31 }
 0x555   : > { %2388 = vmatpush.msra.mxu0 %v7904_v3  ;;  %2997 = vtanh.f32 %v2175_v37  ;;  %v2996_v3 = vpop.eup %2995 }
 0x556   : > { %2428 = vmatpush.msra.mxu2 %v7910_v43  ;;  %2999 = vtanh.f32 %v2129_v1  ;;  %v2148_v43 = vpop.f32.mrf.mxu2  ;;  %v2849_v1 = vld [vmem:[%s4992_s9 + $0xc0] sm:$0xff] }
 0x557   : > { %2389 = vmatpush.msra.mxu0 %v7916_v24  ;;  %v2149_v24 = vadd.f32 %v2148_v43, %v5159_v10 }
 0x558   : > { %2429 = vmatpush.msra.mxu2 %v7922_v29  ;;  %v2168_v29 = vpop.f32.mrf.mxu3 }
 0x559   : > { %2390 = vmatpush.msra.mxu0 %v7928_v32  ;;  %v2173_v32 = vmul.f32 0.5, %v2996_v3 }
 0x55a   : > { %2430 = vmatpush.msra.mxu2 %v7934_v61  ;;  %v2169_v61 = vadd.f32 %v2168_v29, %v2149_v24  ;;  %v2231_v44 = vpop.f32.mrf.mxu1 }
 0x55b   : > { %2391 = vmatpush.msra.mxu0 %v7940_v39  ;;  %v2998_v39 = vpop.eup %2997  ;;  %v2174_v35 = vadd.f32 0.5, %v2173_v32  ;;  %v2275_v60 = vadd.f32 %v2850_v38, %v2231_v44  ;;  %v2852_v32 = vld [vmem:[%s4992_s9 + $0xd8] sm:$0xff] }
 0x55c   : > { %2431 = vmatpush.msra.mxu2 %v7946_v17  ;;  %v2177_v17 = vmul.f32 0.5, %v2998_v39  ;;  %v2180_v52 = vmul.f32 0.5, %v2169_v61  ;;  %v3000_v54 = vpop.eup %2999 }
 0x55d   : > { %v2185_v58 = vmul.f32 %v3000_v54, %v2174_v35  ;;  %v2282_v2 = vmul.f32 0.5, %v2275_v60  ;;  %v10712_v60 = vld [vmem:[#allocation10_spill] sm:$0xff] }
 0x55e   : > { %v2178_v6 = vadd.f32 0.5, %v2177_v17  ;;  %3001 = vtanh.f32 %v2180_v52  ;;  %v2851_v52 = vld [vmem:[%s4992_s9 + $0xd0] sm:$0xff] }
 0x560   : > { %v2184_v56 = vmul.f32 %v2178_v6, %v7955_v57  ;;  %v2271_v61 = vpop.f32.mrf.mxu3 }
 0x561   : > { %v2277_v17 = vadd.f32 %v2852_v32, %v2271_v61  ;;  %v10721_v32 = vld [vmem:[#allocation86_spill] sm:$0xff]  ;;  %v10722_v61 = vld [vmem:[#allocation17_spill] sm:$0xff] }
 0x562   : > { %v9023_v62 = vadd.f32 %v2185_v58, %v2184_v56  ;;  %v10711_v58 = vld [vmem:[#allocation78_spill] sm:$0xff] }
 0x563   : > { %v2287_v44 = vmul.f32 0.5, %v2277_v17  ;;  %v10725_v17 = vld [vmem:[#allocation88_spill] sm:$0xff] }
 0x564   : > { %v3002_v31 = vpop.eup %3001  ;;  %3003 = vtanh.f32 %v9023_v62 }
 0x565   : > { %v2182_v37 = vmul.f32 0.5, %v3002_v31  ;;  %3005 = vtanh.f32 %v2282_v2  ;;  %v10713_v31 = vld [vmem:[#allocation11_spill] sm:$0xff]  ;;  %v10714_v2 = vld [vmem:[#allocation12_spill] sm:$0xff] }
 0x567   : > { %v2183_v3 = vadd.f32 0.5, %v2182_v37  ;;  %v10715_v37 = vld [vmem:[#allocation13_spill] sm:$0xff] }
 0x56a   : > { %v3004_v24 = vpop.eup %3003 }
 0x56b   : > { %v2188_v39 = vmul.f32 %v3004_v24, %v2183_v3  ;;  %v3006_v54 = vpop.eup %3005  ;;  %v10717_v3 = vld [vmem:[#allocation14_spill] sm:$0xff]  ;;  %v10719_v24 = vld [vmem:[#allocation83_spill] sm:$0xff] }
 0x56c   : > { %v2284_v38 = vmul.f32 0.5, %v3006_v54  ;;  %v10727_v54 = vld [vmem:[#allocation87_spill] sm:$0xff] }
 0x56d   : > { %2332 = vmatmul.f32.vlgmr.msrb.gmra.mxu1 %v2188_v39  ;;  %2372 = vmatmul.f32.vlgmr.msrb.gmra.mxu3 %v2188_v39 }
 0x56e   : > { %v2211_v43 = vpop.f32.mrf.mxu0  ;;  %2499 = vmatpush.msrb.mxu1 %v7964_v11  ;;  %2539 = vmatpush.msrb.mxu3 %v7970_v15  ;;  %v2285_v15 = vadd.f32 0.5, %v2284_v38  ;;  %v10730_v38 = vld [vmem:[#allocation21_spill] sm:$0xff] }
 0x56f   : > { %v2274_v29 = vadd.f32 %v2849_v1, %v2211_v43  ;;  %v10716_v1 = vld [vmem:[#allocation81_spill] sm:$0xff]  ;;  %v10718_v43 = vld [vmem:[#allocation15_spill] sm:$0xff] }
 0x570   : > { %2500 = vmatpush.msrb.mxu1 %v7976_v41  ;;  %2540 = vmatpush.msrb.mxu3 %v7982_v18 }
 0x571   : > { %v2278_v57 = vmul.f32 0.5, %v2274_v29  ;;  %v10720_v29 = vld [vmem:[#allocation16_spill] sm:$0xff] }
 0x572   : > { %2501 = vmatpush.msrb.mxu1 %v7988_v25  ;;  %2541 = vmatpush.msrb.mxu3 %v7994_v0  ;;  %v2291_v25 = vmul.f32 %v2285_v15, %v8046_v48  ;;  %v10693_v48 = vld [vmem:[#allocation61_spill] sm:$0xff]  ;;  %v10734_v15 = vld [vmem:[#allocation23_spill] sm:$0xff] }
 0x573   : > { %3007 = vtanh.f32 %v2278_v57  ;;  %v10724_v57 = vld [vmem:[#allocation18_spill] sm:$0xff] }
 0x574   : > { %2502 = vmatpush.msrb.mxu1 %v8000_v34  ;;  %2542 = vmatpush.msrb.mxu3 %v8006_v22 }
 0x575   : > { %2412 = vmatmul.f32.vlgmr.msra.gmra.mxu1 %v2188_v39  ;;  %2452 = vmatmul.f32.vlgmr.msra.gmra.mxu3 %v2188_v39  ;;  %v10723_v39 = vld [vmem:[#allocation85_spill] sm:$0xff] }
 0x576   : > { %v2251_v35 = vpop.f32.mrf.mxu2  ;;  %2503 = vmatpush.msrb.mxu1 %v8012_v45  ;;  %2543 = vmatpush.msrb.mxu3 %v8018_v49 }
 0x577   : > { %v2276_v6 = vadd.f32 %v2851_v52, %v2251_v35  ;;  %v10726_v52 = vld [vmem:[#allocation19_spill] sm:$0xff]  ;;  %v10728_v35 = vld [vmem:[#allocation20_spill] sm:$0xff] }
 0x578   : > { %2504 = vmatpush.msrb.mxu1 %v8024_v47  ;;  %2544 = vmatpush.msrb.mxu3 %v8030_v63 }
 0x579   : > { %3009 = vtanh.f32 %v2276_v6  ;;  %v3008_v56 = vpop.eup %3007  ;;  %v10729_v6 = vld [vmem:[#allocation90_spill] sm:$0xff] }
 0x57a   : > { %v2280_v11 = vmul.f32 0.5, %v3008_v56  ;;  %3011 = vtanh.f32 %v2287_v44  ;;  %2505 = vmatpush.msrb.mxu1 %v8037_v55  ;;  %2545 = vmatpush.msrb.mxu3 %v8043_v50  ;;  %v10691_v55 = vld [vmem:[#allocation53_spill] sm:$0xff]  ;;  %v10692_v50 = vld [vmem:[#allocation60_spill] sm:$0xff]  ;;  %v10732_v56 = vld [vmem:[#allocation22_spill] sm:$0xff] }
 0x57b   : > { %v10731_v44 = vld [vmem:[#allocation89_spill] sm:$0xff] }
 0x57c   : > { %v2281_v41 = vadd.f32 0.5, %v2280_v11  ;;  %2506 = vmatpush.msrb.mxu1 %v8051_v12  ;;  %2546 = vmatpush.msrb.mxu3 %v8057_v30  ;;  %v10694_v12 = vld [vmem:[#allocation56_spill] sm:$0xff]  ;;  %v10695_v30 = vld [vmem:[#allocation57_spill] sm:$0xff] }
 0x57d   : > { %v10733_v11 = vld [vmem:[#allocation92_spill] sm:$0xff] }
 0x57e   : > { %2507 = vmatpush.msrb.mxu1 %v8064_v51  ;;  %2547 = vmatpush.msrb.mxu3 %v8070_v16  ;;  %v10696_v51 = vld [vmem:[#allocation68_spill] sm:$0xff]  ;;  %v10697_v16 = vld [vmem:[#allocation69_spill] sm:$0xff] }
 0x57f   : > { %v3010_v18 = vpop.eup %3009 }
 0x580   : > { %v2292_v0 = vmul.f32 %v3010_v18, %v2281_v41  ;;  %v3012_v34 = vpop.eup %3011  ;;  %2508 = vmatpush.msrb.mxu1 %v8076_v20  ;;  %2548 = vmatpush.msrb.mxu3 %v8082_v59  ;;  %v10698_v20 = vld [vmem:[#allocation64_spill] sm:$0xff]  ;;  %v10699_v59 = vld [vmem:[#allocation65_spill] sm:$0xff]  ;;  %v10735_v41 = vld [vmem:[#allocation91_spill] sm:$0xff] }
 0x581   : > { %v2289_v45 = vmul.f32 0.5, %v3012_v34  ;;  %v10736_v18 = vld [vmem:[#allocation24_spill] sm:$0xff]  ;;  %v10739_v34 = vld [vmem:[#allocation93_spill] sm:$0xff] }
 0x582   : > { %v9044_v22 = vadd.f32 %v2292_v0, %v2291_v25  ;;  %2509 = vmatpush.msrb.mxu1 %v8088_v5  ;;  %2549 = vmatpush.msrb.mxu3 %v8094_v8  ;;  %v10700_v5 = vld [vmem:[#allocation76_spill] sm:$0xff]  ;;  %v10701_v8 = vld [vmem:[#allocation3_spill] sm:$0xff]  ;;  %v10737_v25 = vld [vmem:[#allocation94_spill] sm:$0xff] }
 0x583   : > { %v2290_v49 = vadd.f32 0.5, %v2289_v45  ;;  %v10738_v0 = vld [vmem:[#allocation25_spill] sm:$0xff]  ;;  %v10740_v45 = vld [vmem:[#allocation26_spill] sm:$0xff] }
 0x584   : > { %3013 = vtanh.f32 %v9044_v22  ;;  %2510 = vmatpush.msrb.mxu1 %v8102_v19  ;;  %2550 = vmatpush.msrb.mxu3 %v8108_v4  ;;  %v10702_v19 = vld [vmem:[#allocation4_spill] sm:$0xff]  ;;  %v10703_v4 = vld [vmem:[#allocation5_spill] sm:$0xff] }
 0x586   : > { %2511 = vmatpush.msrb.mxu1 %v8128_v42  ;;  %2551 = vmatpush.msrb.mxu3 %v8134_v13  ;;  %v10706_v42 = vld [vmem:[#allocation7_spill] sm:$0xff]  ;;  %v10707_v13 = vld [vmem:[#allocation74_spill] sm:$0xff] }
 0x588   : > { %2512 = vmatpush.msrb.mxu1 %v8152_v23  ;;  %2552 = vmatpush.msrb.mxu3 %v8158_v9  ;;  %v10709_v23 = vld [vmem:[#allocation80_spill] sm:$0xff]  ;;  %v10710_v9 = vld [vmem:[#allocation9_spill] sm:$0xff] }
 0x58a   : > { %v3014_v47 = vpop.eup %3013  ;;  %2513 = vmatpush.msrb.mxu1 %v10692_v50  ;;  %2553 = vmatpush.msrb.mxu3 %v10693_v48  ;;  %v10744_v50 = vld [vmem:[#allocation28_spill] sm:$0xff]  ;;  %v10745_v48 = vld [vmem:[#allocation98_spill] sm:$0xff] }
 0x58b   : > { %v9057_v63 = vmul.f32 %v3014_v47, %v2290_v49  ;;  %v10741_v49 = vld [vmem:[#allocation96_spill] sm:$0xff]  ;;  %v10742_v47 = vld [vmem:[#allocation27_spill] sm:$0xff] }
 0x58c   : > { %2514 = vmatpush.msrb.mxu1 %v10696_v51  ;;  %2554 = vmatpush.msrb.mxu3 %v10697_v16  ;;  %v10748_v51 = vld [vmem:[#allocation30_spill] sm:$0xff]  ;;  %v10750_v16 = vld [vmem:[#allocation31_spill] sm:$0xff] }
 0x58d   : > { %2312 = vmatmul.f32.vlgmr.msrb.gmra.mxu0 %v9057_v63  ;;  %2352 = vmatmul.f32.vlgmr.msrb.gmra.mxu2 %v9057_v63 }
 0x58e   : > { %2479 = vmatpush.msrb.mxu0 %v8116_v26  ;;  %2519 = vmatpush.msrb.mxu2 %v8122_v28  ;;  %v10704_v26 = vld [vmem:[#allocation71_spill] sm:$0xff]  ;;  %v10705_v28 = vld [vmem:[#allocation6_spill] sm:$0xff] }
 0x58f   : > { %2515 = vmatmul.f32.vlgmr.msrb.gmra.mxu1 %v9057_v63  ;;  %2555 = vmatmul.f32.vlgmr.msrb.gmra.mxu3 %v9057_v63 }
 0x590   : > { %2480 = vmatpush.msrb.mxu0 %v8140_v7  ;;  %2520 = vmatpush.msrb.mxu2 %v10691_v55  ;;  %v10708_v7 = vld [vmem:[#allocation8_spill] sm:$0xff]  ;;  %v10743_v55 = vld [vmem:[#allocation95_spill] sm:$0xff] }
 0x591   : > { %2601 = vmatpush.msra.mxu1 %v10703_v4  ;;  %2641 = vmatpush.msra.mxu3 %v10705_v28  ;;  %v10757_v4 = vld [vmem:[#allocation36_spill] sm:$0xff]  ;;  %v10759_v28 = vld [vmem:[#allocation38_spill] sm:$0xff] }
 0x592   : > { %2481 = vmatpush.msrb.mxu0 %v10694_v12  ;;  %2521 = vmatpush.msrb.mxu2 %v10695_v30  ;;  %v10746_v12 = vld [vmem:[#allocation29_spill] sm:$0xff] }
 0x593   : > { %2602 = vmatpush.msra.mxu1 %v10707_v13  ;;  %2642 = vmatpush.msra.mxu3 %v10709_v23  ;;  %v10747_v30 = vld [vmem:[#allocation97_spill] sm:$0xff]  ;;  %v10761_v13 = vld [vmem:[#allocation40_spill] sm:$0xff]  ;;  %v10763_v23 = vld [vmem:[#allocation42_spill] sm:$0xff] }
 0x594   : > { %2482 = vmatpush.msrb.mxu0 %v10698_v20  ;;  %2522 = vmatpush.msrb.mxu2 %v10699_v59  ;;  %v10751_v20 = vld [vmem:[#allocation99_spill] sm:$0xff]  ;;  %v10752_v59 = vld [vmem:[#allocation32_spill] sm:$0xff] }
 0x595   : > { %2392 = vmatmul.f32.vlgmr.msra.gmra.mxu0 %v9057_v63  ;;  %2432 = vmatmul.f32.vlgmr.msra.gmra.mxu2 %v9057_v63 }
 0x596   : > { %2483 = vmatpush.msrb.mxu0 %v10700_v5  ;;  %2523 = vmatpush.msrb.mxu2 %v10701_v8  ;;  %v10753_v5 = vld [vmem:[#allocation33_spill] sm:$0xff]  ;;  %v10755_v8 = vld [vmem:[#allocation34_spill] sm:$0xff] }
 0x597   : > { %2603 = vmatpush.msra.mxu1 %v10711_v58  ;;  %2643 = vmatpush.msra.mxu3 %v10713_v31  ;;  %v10765_v58 = vld [vmem:[#allocation44_spill] sm:$0xff]  ;;  %v10767_v31 = vld [vmem:[#allocation46_spill] sm:$0xff] }
 0x598   : > { %2484 = vmatpush.msrb.mxu0 %v10702_v19  ;;  %2524 = vmatpush.msrb.mxu2 %v10704_v26  ;;  %v10756_v19 = vld [vmem:[#allocation35_spill] sm:$0xff]  ;;  %v10758_v26 = vld [vmem:[#allocation37_spill] sm:$0xff] }
 0x599   : > { %2604 = vmatpush.msra.mxu1 %v10715_v37  ;;  %2644 = vmatpush.msra.mxu3 %v10717_v3  ;;  %v10769_v37 = vld [vmem:[#allocation48_spill] sm:$0xff]  ;;  %v10771_v3 = vld [vmem:[#allocation50_spill] sm:$0xff] }
 0x59a   : > { %2485 = vmatpush.msrb.mxu0 %v10706_v42  ;;  %2525 = vmatpush.msrb.mxu2 %v10708_v7  ;;  %v10760_v42 = vld [vmem:[#allocation39_spill] sm:$0xff]  ;;  %v10762_v7 = vld [vmem:[#allocation41_spill] sm:$0xff] }
 0x59b   : > { %2605 = vmatpush.msra.mxu1 %v10719_v24  ;;  %2645 = vmatpush.msra.mxu3 %v10721_v32  ;;  %v10773_v24 = vld [vmem:[#allocation52_spill] sm:$0xff]  ;;  %v10775_v32 = vld [vmem:[#allocation55_spill] sm:$0xff] }
 0x59c   : > { %2486 = vmatpush.msrb.mxu0 %v10710_v9  ;;  %2526 = vmatpush.msrb.mxu2 %v10712_v60  ;;  %v10764_v9 = vld [vmem:[#allocation43_spill] sm:$0xff]  ;;  %v10766_v60 = vld [vmem:[#allocation45_spill] sm:$0xff] }
 0x59d   : > { %2606 = vmatpush.msra.mxu1 %v10723_v39  ;;  %2646 = vmatpush.msra.mxu3 %v10725_v17  ;;  %v10777_v39 = vld [vmem:[#allocation59_spill] sm:$0xff] }
 0x59e   : > { %2487 = vmatpush.msrb.mxu0 %v10714_v2  ;;  %2527 = vmatpush.msrb.mxu2 %v10716_v1  ;;  %v10768_v2 = vld [vmem:[#allocation47_spill] sm:$0xff]  ;;  %v10770_v1 = vld [vmem:[#allocation49_spill] sm:$0xff] }
 0x59f   : > { %2607 = vmatpush.msra.mxu1 %v10727_v54  ;;  %2647 = vmatpush.msra.mxu3 %v10729_v6  ;;  %v10779_v17 = vld [vmem:[#allocation63_spill] sm:$0xff]  ;;  %v10783_v6 = vld [vmem:[#allocation72_spill] sm:$0xff] }
 0x5a0   : > { %2488 = vmatpush.msrb.mxu0 %v10718_v43  ;;  %2528 = vmatpush.msrb.mxu2 %v10720_v29  ;;  %v10772_v43 = vld [vmem:[#allocation51_spill] sm:$0xff]  ;;  %v10774_v29 = vld [vmem:[#allocation54_spill] sm:$0xff] }
 0x5a1   : > { %2608 = vmatpush.msra.mxu1 %v10731_v44  ;;  %2648 = vmatpush.msra.mxu3 %v10733_v11  ;;  %v10781_v54 = vld [vmem:[#allocation67_spill] sm:$0xff] }
 0x5a2   : > { %2489 = vmatpush.msrb.mxu0 %v10722_v61  ;;  %2529 = vmatpush.msrb.mxu2 %v10724_v57  ;;  %v10776_v61 = vld [vmem:[#allocation58_spill] sm:$0xff]  ;;  %v10785_v44 = vld [vmem:[#allocation75_spill] sm:$0xff] }
 0x5a3   : > { %2609 = vmatpush.msra.mxu1 %v10735_v41  ;;  %2649 = vmatpush.msra.mxu3 %v10737_v25  ;;  %v10778_v57 = vld [vmem:[#allocation62_spill] sm:$0xff]  ;;  %v10787_v11 = vld [vmem:[#allocation79_spill] sm:$0xff]  ;;  %v10789_v41 = vld [vmem:[#allocation84_spill] sm:$0xff] }
 0x5a4   : > { %2490 = vmatpush.msrb.mxu0 %v10726_v52  ;;  %2530 = vmatpush.msrb.mxu2 %v10728_v35  ;;  %v10780_v52 = vld [vmem:[#allocation66_spill] sm:$0xff]  ;;  %v10791_v25 = vld [vmem:[#allocation103_spill] sm:$0xff] }
 0x5a5   : > { %2610 = vmatpush.msra.mxu1 %v10739_v34  ;;  %2650 = vmatpush.msra.mxu3 %v8462_v40  ;;  %v10749_v40 = vld [vmem:[#allocation100_spill] sm:$0xff]  ;;  %v10782_v35 = vld [vmem:[#allocation70_spill] sm:$0xff]  ;;  %v10793_v34 = vld [vmem:[#allocation105_spill] sm:$0xff] }
 0x5a6   : > { %2491 = vmatpush.msrb.mxu0 %v10730_v38  ;;  %2531 = vmatpush.msrb.mxu2 %v10732_v56  ;;  %v10784_v38 = vld [vmem:[#allocation73_spill] sm:$0xff] }
 0x5a7   : > { %2611 = vmatpush.msra.mxu1 %v10742_v47  ;;  %2651 = vmatpush.msra.mxu3 %v10744_v50  ;;  %v10786_v56 = vld [vmem:[#allocation77_spill] sm:$0xff]  ;;  %v10796_v47 = vld [vmem:[#allocation108_spill] sm:$0xff]  ;;  %v10798_v50 = vld [vmem:[#allocation110_spill] sm:$0xff] }
 0x5a8   : > { %2492 = vmatpush.msrb.mxu0 %v10734_v15  ;;  %2532 = vmatpush.msrb.mxu2 %v10736_v18  ;;  %v10788_v15 = vld [vmem:[#allocation82_spill] sm:$0xff] }
 0x5a9   : > { %2612 = vmatpush.msra.mxu1 %v10745_v48  ;;  %2652 = vmatpush.msra.mxu3 %v10747_v30  ;;  %v10790_v18 = vld [vmem:[#allocation102_spill] sm:$0xff]  ;;  %v10799_v48 = vld [vmem:[#allocation111_spill] sm:$0xff]  ;;  %v10801_v30 = vld [vmem:[#allocation113_spill] sm:$0xff] }
 0x5aa   : > { %2493 = vmatpush.msrb.mxu0 %v10738_v0  ;;  %2533 = vmatpush.msrb.mxu2 %v10740_v45  ;;  %v10792_v0 = vld [vmem:[#allocation104_spill] sm:$0xff]  ;;  %v10794_v45 = vld [vmem:[#allocation106_spill] sm:$0xff] }
 0x5ab   : > { %2613 = vmatpush.msra.mxu1 %v10749_v40  ;;  %2653 = vmatpush.msra.mxu3 %v10751_v20  ;;  %v10803_v40 = vld [vmem:[#allocation115_spill] sm:$0xff]  ;;  %v10805_v20 = vld [vmem:[#allocation117_spill] sm:$0xff] }
 0x5ac   : > { %2494 = vmatpush.msrb.mxu0 %v10741_v49  ;;  %2534 = vmatpush.msrb.mxu2 %v10743_v55  ;;  %v10795_v49 = vld [vmem:[#allocation107_spill] sm:$0xff]  ;;  %v10797_v55 = vld [vmem:[#allocation109_spill] sm:$0xff] }
 0x5ad   : > { %2495 = vmatmul.f32.vlgmr.msrb.gmra.mxu0 %v9057_v63  ;;  %2535 = vmatmul.f32.vlgmr.msrb.gmra.mxu2 %v9057_v63  ;;  %v10754_v63 = vld [vmem:[#allocation101_spill] sm:$0xff] }
 0x5ae   : > { %2581 = vmatpush.msra.mxu0 %v10746_v12  ;;  %2621 = vmatpush.msra.mxu2 %v10748_v51  ;;  %v10800_v12 = vld [vmem:[#allocation112_spill] sm:$0xff]  ;;  %v10802_v51 = vld [vmem:[#allocation114_spill] sm:$0xff] }
 0x5af   : > { %2614 = vmatpush.msra.mxu1 %v10753_v5  ;;  %2654 = vmatpush.msra.mxu3 %v10755_v8  ;;  %v10807_v5 = vld [vmem:[#allocation119_spill] sm:$0xff]  ;;  %v10809_v8 = vld [vmem:[#allocation121_spill] sm:$0xff] }
 0x5b0   : > { %2582 = vmatpush.msra.mxu0 %v10750_v16  ;;  %2622 = vmatpush.msra.mxu2 %v10752_v59  ;;  %v10804_v16 = vld [vmem:[#allocation116_spill] sm:$0xff]  ;;  %v10806_v59 = vld [vmem:[#allocation118_spill] sm:$0xff] }
 0x5b1   : > { %2615 = vmatpush.msra.mxu1 %v10757_v4  ;;  %2655 = vmatpush.msra.mxu3 %v10759_v28  ;;  %v10811_v4 = vld [vmem:[#allocation123_spill] sm:$0xff]  ;;  %v10813_v28 = vld [vmem:[#allocation125_spill] sm:$0xff] }
 0x5b2   : > { %2583 = vmatpush.msra.mxu0 %v10754_v63  ;;  %2623 = vmatpush.msra.mxu2 %v10756_v19  ;;  %v10808_v63 = vld [vmem:[#allocation120_spill] sm:$0xff]  ;;  %v10810_v19 = vld [vmem:[#allocation122_spill] sm:$0xff] }
 0x5b3   : > { %2616 = vmatpush.msra.mxu1 %v10761_v13  ;;  %2656 = vmatpush.msra.mxu3 %v10763_v23  ;;  %v10815_v13 = vld [vmem:[#allocation127_spill] sm:$0xff]  ;;  %v10817_v23 = vld [vmem:[#allocation129_spill] sm:$0xff] }
 0x5b4   : > { %2584 = vmatpush.msra.mxu0 %v10758_v26  ;;  %2624 = vmatpush.msra.mxu2 %v10760_v42  ;;  %v10812_v26 = vld [vmem:[#allocation124_spill] sm:$0xff]  ;;  %v10814_v42 = vld [vmem:[#allocation126_spill] sm:$0xff] }
 0x5b5   : > { %2681 = vmatpush.msrb.mxu1 %v10765_v58  ;;  %2721 = vmatpush.msrb.mxu3 %v10766_v60  ;;  %v10819_v58 = vld [vmem:[#allocation131_spill] sm:$0xff]  ;;  %v10820_v60 = vld [vmem:[#allocation132_spill] sm:$0xff] }
 0x5b6   : > { %2585 = vmatpush.msra.mxu0 %v10762_v7  ;;  %2625 = vmatpush.msra.mxu2 %v10764_v9  ;;  %v10816_v7 = vld [vmem:[#allocation128_spill] sm:$0xff]  ;;  %v10818_v9 = vld [vmem:[#allocation130_spill] sm:$0xff] }
 0x5b7   : > { %2682 = vmatpush.msrb.mxu1 %v10769_v37  ;;  %2722 = vmatpush.msrb.mxu3 %v10770_v1  ;;  %v10823_v37 = vld [vmem:[#allocation135_spill] sm:$0xff]  ;;  %v10824_v1 = vld [vmem:[#allocation136_spill] sm:$0xff] }
 0x5b8   : > { %2586 = vmatpush.msra.mxu0 %v10767_v31  ;;  %2626 = vmatpush.msra.mxu2 %v10768_v2  ;;  %v10821_v31 = vld [vmem:[#allocation133_spill] sm:$0xff]  ;;  %v10822_v2 = vld [vmem:[#allocation134_spill] sm:$0xff] }
 0x5b9   : > { %2683 = vmatpush.msrb.mxu1 %v10773_v24  ;;  %2723 = vmatpush.msrb.mxu3 %v10774_v29  ;;  %v3605_v24 = vld [vmem:[%s9316_s2 + $0xf0] sm:$0xff]  ;;  %v3606_v29 = vld [vmem:[%s9316_s2 + $0xf8] sm:$0xff] }
 0x5ba   : > { %2587 = vmatpush.msra.mxu0 %v10771_v3  ;;  %2627 = vmatpush.msra.mxu2 %v10772_v43  ;;  %v3599_v3 = vld [vmem:[%s9316_s2 + $0x150] sm:$0xff]  ;;  %v3600_v43 = vld [vmem:[%s9316_s2 + $0x158] sm:$0xff] }
 0x5bb   : > { %2684 = vmatpush.msrb.mxu1 %v10777_v39  ;;  %2724 = vmatpush.msrb.mxu3 %v10778_v57  ;;  %v3609_v39 = vld [vmem:[%s9316_s2 + $0xb0] sm:$0xff]  ;;  %v3610_v57 = vld [vmem:[%s9316_s2 + $0xb8] sm:$0xff] }
 0x5bc   : > { %2588 = vmatpush.msra.mxu0 %v10775_v32  ;;  %2628 = vmatpush.msra.mxu2 %v10776_v61  ;;  %v3607_v32 = vld [vmem:[%s9316_s2 + $0xd0] sm:$0xff]  ;;  %v3608_v61 = vld [vmem:[%s9316_s2 + $0xd8] sm:$0xff] }
 0x5bd   : > { %2685 = vmatpush.msrb.mxu1 %v10781_v54  ;;  %2725 = vmatpush.msrb.mxu3 %v10782_v35  ;;  %v3613_v54 = vld [vmem:[%s9316_s2 + $0x70] sm:$0xff]  ;;  %v3614_v35 = vld [vmem:[%s9316_s2 + $0x78] sm:$0xff] }
 0x5be   : > { %2589 = vmatpush.msra.mxu0 %v10779_v17  ;;  %2629 = vmatpush.msra.mxu2 %v10780_v52  ;;  %v3611_v17 = vld [vmem:[%s9316_s2 + $0x90] sm:$0xff]  ;;  %v3612_v52 = vld [vmem:[%s9316_s2 + $0x98] sm:$0xff] }
 0x5bf   : > { %2686 = vmatpush.msrb.mxu1 %v10785_v44  ;;  %2726 = vmatpush.msrb.mxu3 %v10786_v56  ;;  %v3617_v44 = vld [vmem:[%s9316_s2 + $0x30] sm:$0xff]  ;;  %v3618_v56 = vld [vmem:[%s9316_s2 + $0x38] sm:$0xff] }
 0x5c0   : > { %2590 = vmatpush.msra.mxu0 %v10783_v6  ;;  %2630 = vmatpush.msra.mxu2 %v10784_v38  ;;  %v3615_v6 = vld [vmem:[%s9316_s2 + $0x50] sm:$0xff]  ;;  %v3616_v38 = vld [vmem:[%s9316_s2 + $0x58] sm:$0xff] }
 0x5c1   : > { %2687 = vmatpush.msrb.mxu1 %v10789_v41  ;;  %2727 = vmatpush.msrb.mxu3 %v10790_v18 }
 0x5c2   : > { %2591 = vmatpush.msra.mxu0 %v10787_v11  ;;  %2631 = vmatpush.msra.mxu2 %v10788_v15  ;;  %v3619_v11 = vld [vmem:[%s9316_s2 + $0x10] sm:$0xff]  ;;  %v3620_v15 = vld [vmem:[%s9316_s2 + $0x18] sm:$0xff] }
 0x5c3   : > { %2688 = vmatpush.msrb.mxu1 %v10793_v34  ;;  %2728 = vmatpush.msrb.mxu3 %v10794_v45 }
 0x5c4   : > { %2592 = vmatpush.msra.mxu0 %v10791_v25  ;;  %2632 = vmatpush.msra.mxu2 %v10792_v0 }
 0x5c5   : > { %2689 = vmatpush.msrb.mxu1 %v10797_v55  ;;  %2729 = vmatpush.msrb.mxu3 %v10798_v50 }
 0x5c6   : > { %2593 = vmatpush.msra.mxu0 %v10795_v49  ;;  %2633 = vmatpush.msra.mxu2 %v10796_v47 }
 0x5c7   : > { %2690 = vmatpush.msrb.mxu1 %v10801_v30  ;;  %2730 = vmatpush.msrb.mxu3 %v10802_v51 }
 0x5c8   : > { %2594 = vmatpush.msra.mxu0 %v10799_v48  ;;  %2634 = vmatpush.msra.mxu2 %v10800_v12 }
 0x5c9   : > { %2691 = vmatpush.msrb.mxu1 %v10805_v20  ;;  %2731 = vmatpush.msrb.mxu3 %v10806_v59 }
 0x5ca   : > { %2595 = vmatpush.msra.mxu0 %v10803_v40  ;;  %2635 = vmatpush.msra.mxu2 %v10804_v16 }
 0x5cb   : > { %2692 = vmatpush.msrb.mxu1 %v10809_v8  ;;  %2732 = vmatpush.msrb.mxu3 %v10810_v19 }
 0x5cc   : > { %2596 = vmatpush.msra.mxu0 %v10807_v5  ;;  %2636 = vmatpush.msra.mxu2 %v10808_v63 }
 0x5cd   : > { %2693 = vmatpush.msrb.mxu1 %v10813_v28  ;;  %2733 = vmatpush.msrb.mxu3 %v10814_v42  ;;  %v2854_v28 = vld [vmem:[%s4992_s9 + $0xe8] sm:$0xff] }
 0x5ce   : > { %2661 = vmatpush.msrb.mxu0 %v10811_v4  ;;  %2701 = vmatpush.msrb.mxu2 %v10812_v26 }
 0x5cf   : > { %2694 = vmatpush.msrb.mxu1 %v10817_v23  ;;  %2734 = vmatpush.msrb.mxu3 %v10818_v9 }
 0x5d0   : > { %2662 = vmatpush.msrb.mxu0 %v10815_v13  ;;  %2702 = vmatpush.msrb.mxu2 %v10816_v7 }
 0x5d1   : > { %2695 = vmatpush.msrb.mxu1 %v10821_v31  ;;  %2735 = vmatpush.msrb.mxu3 %v10822_v2 }
 0x5d2   : > { %2663 = vmatpush.msrb.mxu0 %v10819_v58  ;;  %2703 = vmatpush.msrb.mxu2 %v10820_v60 }
 0x5d3   : > { %2696 = vmatpush.msrb.mxu1 %v8974_v33  ;;  %2736 = vmatpush.msrb.mxu3 %v8980_v21  ;;  %v3601_v33 = vld [vmem:[%s9316_s2 + $0x130] sm:$0xff]  ;;  %v3602_v21 = vld [vmem:[%s9316_s2 + $0x138] sm:$0xff] }
 0x5d4   : > { %2664 = vmatpush.msrb.mxu0 %v10823_v37  ;;  %2704 = vmatpush.msrb.mxu2 %v10824_v1  ;;  %v2853_v1 = vld [vmem:[%s4992_s9 + $0xe0] sm:$0xff] }
 0x5d6   : > { %2665 = vmatpush.msrb.mxu0 %v8986_v14  ;;  %2705 = vmatpush.msrb.mxu2 %v8992_v53  ;;  %v3603_v53 = vld [vmem:[%s9316_s2 + $0x110] sm:$0xff]  ;;  %v3604_v14 = vld [vmem:[%s9316_s2 + $0x118] sm:$0xff] }
 0x5d8   : > { %2666 = vmatpush.msrb.mxu0 %v3599_v3  ;;  %2706 = vmatpush.msrb.mxu2 %v3600_v43 }
 0x5da   : > { %2667 = vmatpush.msrb.mxu0 %v3601_v33  ;;  %2707 = vmatpush.msrb.mxu2 %v3602_v21 }
 0x5dc   : > { %2668 = vmatpush.msrb.mxu0 %v3603_v53  ;;  %2708 = vmatpush.msrb.mxu2 %v3604_v14  ;;  %v2856_v53 = vld [vmem:[%s4992_s9 + $0xf8] sm:$0xff] }
 0x5de   : > { %2669 = vmatpush.msrb.mxu0 %v3605_v24  ;;  %2709 = vmatpush.msrb.mxu2 %v3606_v29 }
 0x5e0   : > { %2670 = vmatpush.msrb.mxu0 %v3607_v32  ;;  %2710 = vmatpush.msrb.mxu2 %v3608_v61  ;;  %v2855_v32 = vld [vmem:[%s4992_s9 + $0xf0] sm:$0xff]  ;;  %s2828_s9 = sshll.u32 %s10829_s18, 3 }
 0x5e1   : > { %s277_s5 = scalar_lea.vmem %s9318_s4, %s2828_s9 }
 0x5e2   : > { %2671 = vmatpush.msrb.mxu0 %v3609_v39  ;;  %2711 = vmatpush.msrb.mxu2 %v3610_v57 }
 0x5e4   : > { %2672 = vmatpush.msrb.mxu0 %v3611_v17  ;;  %2712 = vmatpush.msrb.mxu2 %v3612_v52 }
 0x5e6   : > { %2673 = vmatpush.msrb.mxu0 %v3613_v54  ;;  %2713 = vmatpush.msrb.mxu2 %v3614_v35 }
 0x5e8   : > { %2674 = vmatpush.msrb.mxu0 %v3615_v6  ;;  %2714 = vmatpush.msrb.mxu2 %v3616_v38 }
 0x5ea   : > { %2675 = vmatpush.msrb.mxu0 %v3617_v44  ;;  %2715 = vmatpush.msrb.mxu2 %v3618_v56  ;;  %v2333_v41 = vpop.f32.mrf.mxu1 }
 0x5ec   : > { %2676 = vmatpush.msrb.mxu0 %v3619_v11  ;;  %2716 = vmatpush.msrb.mxu2 %v3620_v15 }
 0x5f0   : > { %v2373_v45 = vpop.f32.mrf.mxu3 }
 0x5f2   : > { %v2413_v12 = vpop.f32.mrf.mxu1 }
 0x5f8   : > { %v2453_v59 = vpop.f32.mrf.mxu3 }
 0x60a   : > { %v2313_v18 = vpop.f32.mrf.mxu0 }
 0x60b   : > { %v2314_v25 = vadd.f32 %v2313_v18, %v5150_v36 }
 0x60c   : > { %v2516_v42 = vpop.f32.mrf.mxu1 }
 0x60d   : > { %v2334_v0 = vadd.f32 %v2333_v41, %v2314_v25  ;;  %v2560_v58 = vadd.f32 %v2854_v28, %v2516_v42 }
 0x60f   : > { %v2456_v34 = vmul.f32 0.5, %v2334_v0  ;;  %v2567_v2 = vmul.f32 0.5, %v2560_v58 }
 0x610   : > { %v2353_v49 = vpop.f32.mrf.mxu2 }
 0x611   : > { %v2354_v47 = vadd.f32 %v2353_v49, %v5153_v46  ;;  %3015 = vtanh.f32 %v2456_v34 }
 0x612   : > { %v2393_v55 = vpop.f32.mrf.mxu0  ;;  %v2556_v14 = vpop.f32.mrf.mxu3 }
 0x613   : > { %v2374_v50 = vadd.f32 %v2373_v45, %v2354_v47  ;;  %v2394_v48 = vadd.f32 %v2393_v55, %v5155_v27  ;;  %v2562_v29 = vadd.f32 %v2856_v53, %v2556_v14 }
 0x615   : > { %v2460_v30 = vmul.f32 0.5, %v2374_v50  ;;  %v2414_v51 = vadd.f32 %v2413_v12, %v2394_v48  ;;  %v2572_v52 = vmul.f32 0.5, %v2562_v29 }
 0x617   : > { %3017 = vtanh.f32 %v2460_v30  ;;  %v3016_v16 = vpop.eup %3015 }
 0x618   : > { %v2433_v40 = vpop.f32.mrf.mxu2  ;;  %3019 = vtanh.f32 %v2414_v51  ;;  %v2458_v63 = vmul.f32 0.5, %v3016_v16 }
 0x619   : > { %v2434_v20 = vadd.f32 %v2433_v40, %v5159_v10 }
 0x61a   : > { %v2459_v13 = vadd.f32 0.5, %v2458_v63 }
 0x61b   : > { %v2454_v5 = vadd.f32 %v2453_v59, %v2434_v20 }
 0x61d   : > { %v3018_v8 = vpop.eup %3017  ;;  %v2465_v19 = vmul.f32 0.5, %v2454_v5 }
 0x61e   : > { %v2462_v4 = vmul.f32 0.5, %v3018_v8  ;;  %v3020_v26 = vpop.eup %3019 }
 0x61f   : > { %3021 = vtanh.f32 %v2465_v19  ;;  %v2470_v9 = vmul.f32 %v3020_v26, %v2459_v13 }
 0x620   : > { %v2463_v7 = vadd.f32 0.5, %v2462_v4 }
 0x622   : > { %v2469_v23 = vmul.f32 %v2463_v7, %v9023_v62 }
 0x624   : > { %v9285_v60 = vadd.f32 %v2470_v9, %v2469_v23 }
 0x625   : > { %v3022_v31 = vpop.eup %3021 }
 0x626   : > { %3023 = vtanh.f32 %v9285_v60  ;;  %v2467_v37 = vmul.f32 0.5, %v3022_v31 }
 0x627   : > { %3025 = vtanh.f32 %v2567_v2 }
 0x628   : > { %v2468_v43 = vadd.f32 0.5, %v2467_v37 }
 0x62a   : > { %v2496_v3 = vpop.f32.mrf.mxu0 }
 0x62b   : > { %v2559_v33 = vadd.f32 %v2853_v1, %v2496_v3 }
 0x62c   : > { %v3024_v21 = vpop.eup %3023 }
 0x62d   : > { %v2563_v24 = vmul.f32 0.5, %v2559_v33  ;;  %v2473_v62 = vmul.f32 %v3024_v21, %v2468_v43  ;;  %v3026_v61 = vpop.eup %3025 }
 0x62e   : > { %v2569_v17 = vmul.f32 0.5, %v3026_v61 }
 0x62f   : > { %3027 = vtanh.f32 %v2563_v24  ;;  %2617 = vmatmul.f32.vlgmr.msra.gmra.mxu1 %v2473_v62  ;;  %2657 = vmatmul.f32.vlgmr.msra.gmra.mxu3 %v2473_v62 }
 0x630   : > { %v2536_v39 = vpop.f32.mrf.mxu2  ;;  %v2570_v6 = vadd.f32 0.5, %v2569_v17 }
 0x631   : > { %v2561_v57 = vadd.f32 %v2855_v32, %v2536_v39 }
 0x632   : > { %v2576_v56 = vmul.f32 %v2570_v6, %v9044_v22 }
 0x633   : > { %3029 = vtanh.f32 %v2561_v57 }
 0x634   : > { %3031 = vtanh.f32 %v2572_v52 }
 0x635   : > { %v3028_v54 = vpop.eup %3027 }
 0x636   : > { %v2565_v35 = vmul.f32 0.5, %v3028_v54 }
 0x637   : > { %2697 = vmatmul.f32.vlgmr.msrb.gmra.mxu1 %v2473_v62  ;;  %2737 = vmatmul.f32.vlgmr.msrb.gmra.mxu3 %v2473_v62 }
 0x638   : > { %v2566_v38 = vadd.f32 0.5, %v2565_v35 }
 0x639   : > { %v3030_v44 = vpop.eup %3029 }
 0x63a   : > { %v2577_v11 = vmul.f32 %v3030_v44, %v2566_v38  ;;  %v3032_v15 = vpop.eup %3031 }
 0x63b   : > { %v2574_v18 = vmul.f32 0.5, %v3032_v15 }
 0x63c   : > { %v2578_v41 = vadd.f32 %v2577_v11, %v2576_v56 }
 0x63d   : > { %v2575_v25 = vadd.f32 0.5, %v2574_v18 }
 0x63e   : > { %3033 = vtanh.f32 %v2578_v41 }
 0x644   : > { %v3034_v0 = vpop.eup %3033 }
 0x645   : > { %v2580_v34 = vmul.f32 %v3034_v0, %v2575_v25 }
 0x647   : > { %2597 = vmatmul.f32.vlgmr.msra.gmra.mxu0 %v2580_v34  ;;  %2637 = vmatmul.f32.vlgmr.msra.gmra.mxu2 %v2580_v34 }
 0x64f   : > { %2677 = vmatmul.f32.vlgmr.msrb.gmra.mxu0 %v2580_v34  ;;  %2717 = vmatmul.f32.vlgmr.msrb.gmra.mxu2 %v2580_v34 }
 0x6ac   : > { %v2618_v45 = vpop.f32.mrf.mxu1 }
 0x6b2   : > { %v2658_v48 = vpop.f32.mrf.mxu3 }
 0x6b4   : > { %v2698_v16 = vpop.f32.mrf.mxu1 }
 0x6ba   : > { %v2738_v8 = vpop.f32.mrf.mxu3 }
 0x6c4   : > { %v2598_v49 = vpop.f32.mrf.mxu0 }
 0x6c5   : > { %v2599_v47 = vadd.f32 %v2598_v49, %v5150_v36 }
 0x6c7   : > { %v2619_v55 = vadd.f32 %v2618_v45, %v2599_v47 }
 0x6c9   : > { %v2741_v50 = vmul.f32 0.5, %v2619_v55 }
 0x6ca   : > { %v2638_v22 = vpop.f32.mrf.mxu2 }
 0x6cb   : > { %v2639_v12 = vadd.f32 %v2638_v22, %v5153_v46  ;;  %3035 = vtanh.f32 %v2741_v50 }
 0x6cc   : > { %v2678_v30 = vpop.f32.mrf.mxu0 }
 0x6cd   : > { %v2659_v51 = vadd.f32 %v2658_v48, %v2639_v12  ;;  %v2679_v40 = vadd.f32 %v2678_v30, %v5155_v27 }
 0x6cf   : > { %v2745_v20 = vmul.f32 0.5, %v2659_v51  ;;  %v2699_v59 = vadd.f32 %v2698_v16, %v2679_v40 }
 0x6d1   : > { %3037 = vtanh.f32 %v2745_v20  ;;  %v3036_v63 = vpop.eup %3035 }
 0x6d2   : > { %v2718_v5 = vpop.f32.mrf.mxu2  ;;  %3039 = vtanh.f32 %v2699_v59  ;;  %v2743_v4 = vmul.f32 0.5, %v3036_v63 }
 0x6d3   : > { %v2719_v36 = vadd.f32 %v2718_v5, %v5159_v10 }
 0x6d4   : > { %v2744_v27 = vadd.f32 0.5, %v2743_v4 }
 0x6d5   : > { %v2739_v19 = vadd.f32 %v2738_v8, %v2719_v36 }
 0x6d7   : > { %v3038_v46 = vpop.eup %3037  ;;  %v2750_v26 = vmul.f32 0.5, %v2739_v19 }
 0x6d8   : > { %v2747_v28 = vmul.f32 0.5, %v3038_v46  ;;  %v3040_v42 = vpop.eup %3039 }
 0x6d9   : > { %3041 = vtanh.f32 %v2750_v26  ;;  %v2755_v23 = vmul.f32 %v3040_v42, %v2744_v27 }
 0x6da   : > { %v2748_v13 = vadd.f32 0.5, %v2747_v28 }
 0x6dc   : > { %v2754_v7 = vmul.f32 %v2748_v13, %v9285_v60 }
 0x6de   : > { %v2756_v9 = vadd.f32 %v2755_v23, %v2754_v7 }
 0x6df   : > { %v3042_v58 = vpop.eup %3041 }
 0x6e0   : > { %3043 = vtanh.f32 %v2756_v9  ;;  %v2752_v10 = vmul.f32 0.5, %v3042_v58 }
 0x6e2   : > { %v2753_v31 = vadd.f32 0.5, %v2752_v10 }
 0x6e6   : > { %v3044_v2 = vpop.eup %3043 }
 0x6e7   : > { %v2758_v37 = vmul.f32 %v3044_v2, %v2753_v31 }
 0x6e9   : > { %2759 = vst [vmem:[%s277_s5] sm:$0xff] %v2758_v37 }
 0x6ea PF: > { %p11_p9 = scmp.ge.s32.totalorder %s3688_s19, 4   ;;  %s10825_s15 = smov %s3639_s16 }
 0x6eb   : > { %s10826_s16 = smov %s3697_s22  ;;  %s10827_s17 = smov %s3688_s19 }
 0x6ec   :  { %13 = sbr.rel (!%p11_p9) target bundleno = 2 (0x2), region = 101 }

</bundles_post_ra>
